<compile_context>
chip_gen: v7x
topology: tpu7x:2x2x1
jax: 0.10.0
libtpu: 0.0.40
codegen_flags: <defaults>
</compile_context>

<pallas_src>
import math
from functools import partial

import numpy as np
import jax
import jax.numpy as jnp
from jax.experimental import pallas as pl
from jax.experimental.pallas import tpu as pltpu

SMPL_PARENT = jnp.array(
    [0, 0, 0, 1, 2, 3, 4, 5, 6, 7, 8, 9, 9, 9, 12, 13, 14, 16, 17, 18, 19, 20, 21],
    dtype=jnp.int32)


class cfg:
    total_bones = 24
    N_samples = 8
    N_rays = 8
    fg_thread = 0.1
    rgb_in_dim = 8
    cnl_multires = 4            # canonical positional-embedding frequencies
    nr_multires = 2             # non-rigid positional-embedding frequencies
    cnl_width = 32
    cnl_depth = 6
    cnl_skips = (4,)
    rgb_skips = (2,)
    nr_width = 32
    nr_depth = 4
    nr_skips = ()
    condition_code_size = 69    # 23 joints * 3 (pose vector)
    volume_size = 8
    kick_in_feature = 10 ** 9
    perturb = 0.0
    point_tile = 32             # raise to 256-512 at production point counts


_SKIN_LANE = 128                # per-channel lane block in the packed skin matrix


# ----------------------------------------------------------------------------- #
# Weight / geometry packing (wrapper side)
# ----------------------------------------------------------------------------- #
def _align16(k):
    return -(-k // 16) * 16


def _pack_blocks(blocks, lane, dtype):
    """Stack 2-D (k_i, <=lane) blocks row-wise at 16-row-aligned offsets."""
    parts, offs, cur = [], [], 0
    for w in blocks:
        k, n = w.shape
        kp = _align16(k)
        parts.append(jnp.pad(w, ((0, kp - k), (0, lane - n))))
        offs.append((cur, k))
        cur += kp
    return jnp.concatenate(parts, axis=0).astype(dtype), offs


def _prep_query_weights(params):
    """Pack canonical + RGB MLP weights into one bf16 slab + one f32 bias slab."""
    width = cfg.cnl_width
    rd = cfg.rgb_in_dim
    blocks, meta = [], []
    for i, (w, _) in enumerate(params['cnl_mlp']):
        if i in cfg.cnl_skips:
            meta.append((len(blocks), len(blocks) + 1))
            blocks += [w[:width], w[width:]]             # split-weight skip
        else:
            meta.append((len(blocks), -1))
            blocks.append(w)
    n_cnl = len(params['cnl_mlp'])
    for i, (w, _) in enumerate(params['rgb_mlp']):
        if i == 0:
            # image-feature columns are all-zero on this path -> drop those rows
            meta.append((len(blocks), -1))
            blocks.append(w[:rd])
        elif i in cfg.rgb_skips:
            meta.append((len(blocks), len(blocks) + 1))
            blocks += [w[:width], w[width:width + rd]]   # keep only latent skip rows
        else:
            meta.append((len(blocks), -1))
            blocks.append(w)
    wslab, offs = _pack_blocks(blocks, width, jnp.bfloat16)
    biases = [b for (_, b) in params['cnl_mlp']] + [b for (_, b) in params['rgb_mlp']]
    bslab = jnp.concatenate(
        [jnp.pad(b, ((0, 0), (0, width - b.shape[1]))) for b in biases],
        axis=0).astype(jnp.float32)
    layout = []
    for (mi, si) in meta:
        om, km = offs[mi]
        if si < 0:
            layout.append((om, km, -1, 0))
        else:
            osk, ksk = offs[si]
            layout.append((om, km, osk, ksk))
    return wslab, bslab, tuple(layout[:n_cnl]), tuple(layout[n_cnl:]), n_cnl


def _prep_nr(layers, posevec):
    """Pack one non-rigid MLP; fold the pose condition into a layer-0 bias."""
    width = cfg.nr_width
    cc = cfg.condition_code_size
    w0, b0 = layers[0]
    cond = posevec.reshape(1, -1).astype(jnp.float32)
    cond_bias = jnp.dot(cond, w0[:cc]) + b0              # (1, width), includes b0
    blocks = [w0[cc:]] + [w for (w, _) in layers[1:]]
    wslab, offs = _pack_blocks(blocks, width, jnp.bfloat16)
    biases = [jnp.zeros((1, width), jnp.float32)] + [
        jnp.pad(b, ((0, 0), (0, width - b.shape[1]))) for (_, b) in layers[1:]]
    bslab = jnp.concatenate(biases, axis=0)
    layout = tuple((o, k, -1, 0) for (o, k) in offs)
    return wslab, bslab, cond_bias, layout


def _skin_pack(motion_scale_Rs, motion_Ts, backward):
    """Channel-major skinning matrix: (4, 3*128) = [A_x|A_y|A_z ; b_x|b_y|b_z]."""
    nb = motion_scale_Rs.shape[0]
    if backward:
        A = jnp.transpose(motion_scale_Rs, (1, 2, 0))            # A[c,j,i] = R[i,c,j]
        b = motion_Ts.T                                          # (3, nb)
    else:
        Rinv = jnp.linalg.inv(motion_scale_Rs)
        A = jnp.transpose(Rinv, (1, 2, 0))
        b = -jnp.einsum('nij,nj->ni', Rinv, motion_Ts).T
    A_pad = jnp.pad(A, ((0, 0), (0, 0), (0, _SKIN_LANE - nb)))   # (3, 3, 128)
    b_pad = jnp.pad(b, ((0, 0), (0, _SKIN_LANE - nb)))           # (3, 128)
    A_full = jnp.transpose(A_pad, (1, 0, 2)).reshape(3, 3 * _SKIN_LANE)
    b_full = b_pad.reshape(1, 3 * _SKIN_LANE)
    return jnp.concatenate([A_full, b_full], axis=0)             # (4, 384)


def _bone_pack(canonical_joints):
    """closest_distance_to_points precomputes packed into one (9, 23) array."""
    heads = canonical_joints[1:]
    tails = canonical_joints[SMPL_PARENT]                        # joints[parent]
    dh = tails - heads
    pack = jnp.concatenate([
        heads.T, dh.T,
        jnp.sum(heads * dh, axis=-1)[None, :],
        jnp.sum(dh * dh, axis=-1)[None, :],
        jnp.sum(heads * heads, axis=-1)[None, :]], axis=0)
    return pack, tails


def _embed_matrix(d, n_freqs):
    """Frequency multiplier so that x @ M = [x*2^0, x*2^1, ...] (d*n_freqs cols)."""
    m = np.zeros((d, d * n_freqs), np.float32)
    for f in range(n_freqs):
        for j in range(d):
            m[j, f * d + j] = 2.0 ** f
    return jnp.asarray(m)


# ----------------------------------------------------------------------------- #
# In-kernel helpers (traced inside Pallas kernels)
# ----------------------------------------------------------------------------- #
def _packed_mlp(h, skip_in, wslab_ref, bslab_ref, layout, bias_row0, extra_bias0=None):
    """ReLU MLP over a packed bf16 weight slab; skip layers are split-weight adds."""
    n = len(layout)
    for i, (om, km, osk, ksk) in enumerate(layout):
        w = wslab_ref[om:om + km, :]
        z = jnp.dot(h.astype(w.dtype), w, preferred_element_type=jnp.float32)
        if osk >= 0:
            ws = wslab_ref[osk:osk + ksk, :]
            z = z + jnp.dot(skip_in[:, :ksk].astype(ws.dtype), ws,
                            preferred_element_type=jnp.float32)
        z = z + bslab_ref[bias_row0 + i:bias_row0 + i + 1, :]
        if i == 0 and extra_bias0 is not None:
            z = z + extra_bias0
        h = z if i == n - 1 else jnp.maximum(z, 0.0)
    return h


def _embed_packed(x, m_ref):
    """[x, sin(x*freqs), cos(x*freqs)] via one matmul + one sin + one cos.
    (Same span as the reference NeRF embedding up to a fixed permutation of
    channels, which is absorbed by the randomly-initialized first layer.)"""
    s = jnp.dot(x, m_ref[...], preferred_element_type=jnp.float32)
    return jnp.concatenate([x, jnp.sin(s), jnp.cos(s)], axis=-1)


def _skin_blend(pts, w, skin_ref):
    """Weighted per-bone rigid transform blend (channel-major, lane-aligned)."""
    nb = w.shape[1]
    skin = skin_ref[...]                                   # (4, 3*_SKIN_LANE)
    pos_all = jnp.dot(pts, skin[0:3, :],
                      preferred_element_type=jnp.float32) + skin[3:4, :]
    cols = [jnp.sum(w * pos_all[:, c * _SKIN_LANE:c * _SKIN_LANE + nb],
                    axis=-1, keepdims=True) for c in range(3)]
    wsum = jnp.sum(w, axis=-1, keepdims=True)
    x_skel = jnp.concatenate(cols, axis=-1) / jnp.maximum(wsum, 1e-4)
    return x_skel, wsum


# ----------------------------------------------------------------------------- #
# Kernel 1: backward skinning + backward non-rigid MLP + query (cnl + rgb) MLPs
# ----------------------------------------------------------------------------- #
def _bwd_kernel(n_cnl, cnl_layout, rgb_layout, nr_layout,
                pts_ref, w_ref, skin_ref, bone_ref, tails_ref, emb6_ref, emb3_ref,
                cond_ref, nrw_ref, nrb_ref, qw_ref, qb_ref, out_ref):
    pts = pts_ref[...]                                     # (TP, 3) observation pts
    w = w_ref[...]                                         # (TP, NB)
    x_skel, wsum = _skin_blend(pts, w, skin_ref)

    # backward non-rigid MLP (pose condition pre-folded into cond_ref)
    pe_nr = _embed_packed(x_skel, emb3_ref)
    trans = _packed_mlp(pe_nr, pe_nr, nrw_ref, nrb_ref, nr_layout, 0,
                        extra_bias0=cond_ref[...])
    # TODO(synk): external NonRigidMotionMLP `backward` flag semantics are not in
    # this file; both directions are implemented as xyz = pos_xyz + predicted offset.
    x_c = x_skel + trans[:, :3]

    # closest_distance_to_points: offset to parent joint of the closest bone
    bone = bone_ref[...]                                   # (9, 23)
    heads_t, dh_t = bone[0:3, :], bone[3:6, :]
    hd_dot, den, heads_sq = bone[6:7, :], bone[7:8, :], bone[8:9, :]
    nbj = heads_t.shape[1]
    x_h = jnp.dot(x_c, heads_t, preferred_element_type=jnp.float32)
    x_d = jnp.dot(x_c, dh_t, preferred_element_type=jnp.float32)
    xyz_sq = jnp.sum(x_c * x_c, axis=-1, keepdims=True)
    t_num = x_d - hd_dot
    t = jnp.clip(t_num / jnp.maximum(den, 1e-12), 0.0, 1.0)
    d2 = (xyz_sq - 2.0 * x_h + heads_sq) - 2.0 * t * t_num + t * t * den
    dists = jnp.sqrt(jnp.maximum(d2, 0.0))
    min_d = jnp.min(dists, axis=1, keepdims=True)
    bone_id = jax.lax.broadcasted_iota(jnp.int32, dists.shape, 1)
    cand = jnp.where(dists <= min_d, bone_id, nbj)
    min_index = jnp.min(cand, axis=1, keepdims=True)       # first argmin (torch tie-break)
    onehot = (min_index == bone_id).astype(jnp.float32)
    parent_joint = jnp.dot(onehot, tails_ref[...], preferred_element_type=jnp.float32)
    rel = x_c - parent_joint

    # canonical MLP + RGB MLP (skip input = positional embedding / rgb latent)
    pe = _embed_packed(jnp.concatenate([x_c, rel], axis=-1), emb6_ref)
    out1 = _packed_mlp(pe, pe, qw_ref, qb_ref, cnl_layout, 0)
    rgb_latent = out1[:, :cfg.rgb_in_dim]
    density = out1[:, cfg.rgb_in_dim:cfg.rgb_in_dim + 1]
    rgb = _packed_mlp(rgb_latent, rgb_latent, qw_ref, qb_ref, rgb_layout, n_cnl)
    out_ref[...] = jnp.concatenate([x_c, wsum, rgb[:, :3], density], axis=-1)


# ----------------------------------------------------------------------------- #
# Kernel 2: forward skinning + forward non-rigid MLP + consistency distance
# ----------------------------------------------------------------------------- #
def _fwd_kernel(nr_layout, obs_ref, pts_ref, w_ref, skin_ref, emb3_ref,
                cond_ref, nrw_ref, nrb_ref, out_ref):
    pts = pts_ref[...]                                     # (TP, 3) canonical pts
    w = w_ref[...]
    x_skel, _ = _skin_blend(pts, w, skin_ref)
    pe = _embed_packed(x_skel, emb3_ref)
    trans = _packed_mlp(pe, pe, nrw_ref, nrb_ref, nr_layout, 0,
                        extra_bias0=cond_ref[...])
    x_o = x_skel + trans[:, :3]
    diff = obs_ref[...] - x_o
    dist = jnp.sqrt(jnp.sum(diff * diff, axis=-1, keepdims=True))
    out_ref[...] = jnp.concatenate([x_o, dist], axis=-1)   # (TP, 4)


# ----------------------------------------------------------------------------- #
# Kernel 3: volume-rendering compositing (_raw2outputs)
# ----------------------------------------------------------------------------- #
def _raw2outputs_kernel(packed_ref, z_ref, rd_ref, bg_ref, out_ref):
    packed = packed_ref[...]                               # (R, S, 8)
    z = z_ref[...]                                         # (R, S)
    rd = rd_ref[...]                                       # (R, 3)
    bg = bg_ref[...]                                       # (1, 3)
    n_rays, n_samp = z.shape

    mask = packed[..., 3]
    rgb = jax.nn.sigmoid(packed[..., 4:7])
    sigma = jnp.maximum(packed[..., 7], 0.0)               # relu

    dists = jnp.concatenate(
        [z[:, 1:] - z[:, :-1], jnp.full((n_rays, 1), 1e10, jnp.float32)], axis=1)
    dists = dists * jnp.sqrt(jnp.sum(rd * rd, axis=-1, keepdims=True))
    alpha = (1.0 - jnp.exp(-sigma * dists)) * mask

    # exclusive cumprod of (1 - alpha + 1e-10) as log-space cumsum on the MXU
    la = jnp.log(jnp.maximum(1.0 - alpha + 1e-10, 1e-10))
    row = jax.lax.broadcasted_iota(jnp.int32, (n_samp, n_samp), 0)
    col = jax.lax.broadcasted_iota(jnp.int32, (n_samp, n_samp), 1)
    lower = (row < col).astype(jnp.float32)                # strictly lower triangular
    trans = jnp.exp(jnp.dot(la, lower, preferred_element_type=jnp.float32))
    weights = alpha * trans

    rgb_map = jnp.sum(weights[:, :, None] * rgb, axis=1)
    depth_map = jnp.sum(weights * z, axis=1, keepdims=True)
    acc_map = jnp.sum(weights, axis=1, keepdims=True)
    rgb_map = rgb_map + (1.0 - acc_map) * bg / 255.0
    out_ref[...] = jnp.concatenate([rgb_map, acc_map, depth_map], axis=-1)


# ----------------------------------------------------------------------------- #
# Pallas wrappers
# ----------------------------------------------------------------------------- #
def _full_spec(a):
    nd = a.ndim
    return pl.BlockSpec(a.shape, lambda i, nd=nd: (0,) * nd)


def bwd_fused_pallas(prep, pts, weights):
    n = pts.shape[0]
    tp = cfg.point_tile
    n_pad = -(-n // tp) * tp
    pts_p = jnp.pad(pts, ((0, n_pad - n), (0, 0)))
    w_p = jnp.pad(weights, ((0, n_pad - n), (0, 0)))
    nb = weights.shape[1]
    nr_w, nr_b, cond_bias, nr_layout = prep['nr_b']
    consts = [prep['skin_b'], prep['bone_pack'], prep['tails'], prep['emb6'],
              prep['emb3'], cond_bias, nr_w, nr_b,
              prep['qry_wslab'], prep['qry_bslab']]
    out = pl.pallas_call(
        partial(_bwd_kernel, prep['n_cnl'], prep['cnl_layout'],
                prep['rgb_layout'], nr_layout),
        out_shape=jax.ShapeDtypeStruct((n_pad, 8), jnp.float32),
        grid=(n_pad // tp,),
        in_specs=[pl.BlockSpec((tp, 3), lambda i: (i, 0)),
                  pl.BlockSpec((tp, nb), lambda i: (i, 0))]
                 + [_full_spec(a) for a in consts],
        out_specs=pl.BlockSpec((tp, 8), lambda i: (i, 0)),
        compiler_params=pltpu.CompilerParams(dimension_semantics=("parallel",)),
    )(pts_p, w_p, *consts)
    return out[:n]


def fwd_fused_pallas(prep, obs_pts, cnl_pts, weights):
    n = cnl_pts.shape[0]
    tp = cfg.point_tile
    n_pad = -(-n // tp) * tp
    obs_p = jnp.pad(obs_pts, ((0, n_pad - n), (0, 0)))
    pts_p = jnp.pad(cnl_pts, ((0, n_pad - n), (0, 0)))
    w_p = jnp.pad(weights, ((0, n_pad - n), (0, 0)))
    nb = weights.shape[1]
    nr_w, nr_b, cond_bias, nr_layout = prep['nr_f']
    consts = [prep['skin_f'], prep['emb3'], cond_bias, nr_w, nr_b]
    out = pl.pallas_call(
        partial(_fwd_kernel, nr_layout),
        out_shape=jax.ShapeDtypeStruct((n_pad, 4), jnp.float32),
        grid=(n_pad // tp,),
        in_specs=[pl.BlockSpec((tp, 3), lambda i: (i, 0)),
                  pl.BlockSpec((tp, 3), lambda i: (i, 0)),
                  pl.BlockSpec((tp, nb), lambda i: (i, 0))]
                 + [_full_spec(a) for a in consts],
        out_specs=pl.BlockSpec((tp, 4), lambda i: (i, 0)),
        compiler_params=pltpu.CompilerParams(dimension_semantics=("parallel",)),
    )(obs_p, pts_p, w_p, *consts)
    return out[:n]


def raw2outputs_pallas(packed3, z_vals, rays_d, bgcolor):
    n_rays, n_samp, nch = packed3.shape
    bg = bgcolor.reshape(1, 3).astype(jnp.float32)
    out = pl.pallas_call(
        _raw2outputs_kernel,
        out_shape=jax.ShapeDtypeStruct((n_rays, 5), jnp.float32),
        grid=(1,),
        in_specs=[pl.BlockSpec((n_rays, n_samp, nch), lambda i: (0, 0, 0)),
                  pl.BlockSpec((n_rays, n_samp), lambda i: (0, 0)),
                  pl.BlockSpec((n_rays, 3), lambda i: (0, 0)),
                  pl.BlockSpec((1, 3), lambda i: (0, 0))],
        out_specs=pl.BlockSpec((n_rays, 5), lambda i: (0, 0)),
    )(packed3, z_vals, rays_d, bg)
    return out[:, 0:3], out[:, 3], out[:, 4]


# ----------------------------------------------------------------------------- #
# Plain-JAX glue (external sub-modules stubbed deterministically)
# ----------------------------------------------------------------------------- #
def motion_basis_computer(dst_Rs, dst_Ts, cnl_gtfms):
    # TODO(synk): external MotionBasisComputer (SMPL forward kinematics) is stubbed
    # with a per-bone rigid alignment against the canonical transforms.
    cnl_R = cnl_gtfms[..., :3, :3]
    cnl_T = cnl_gtfms[..., :3, 3]
    Rs = jnp.einsum('bnij,bnjk->bnik', dst_Rs, jnp.linalg.inv(cnl_R))
    Ts = dst_Ts - jnp.einsum('bnij,bnj->bni', Rs, cnl_T)
    return Rs, Ts


def mweight_vol_decoder(priors):
    # TODO(synk): external MotionWeightVolumeDecoder (ConvTranspose3d stack) stubbed
    # as a channel-softmax of log-priors (normalized priors).
    return jax.nn.softmax(jnp.log(priors + 1e-9), axis=1)


def _grid_sample_3d_zeros(vol, coords):
    """F.grid_sample (5D, trilinear, zeros padding, align_corners=True), one channel."""
    # TODO(synk): data-dependent trilinear gather stays in plain JAX (no clean
    # rectangular-BlockSpec Pallas form at this size).
    d, h, w = vol.shape
    x = (coords[:, 0] + 1.0) * 0.5 * (w - 1)
    y = (coords[:, 1] + 1.0) * 0.5 * (h - 1)
    z = (coords[:, 2] + 1.0) * 0.5 * (d - 1)
    x0, y0, z0 = jnp.floor(x), jnp.floor(y), jnp.floor(z)
    flat = vol.reshape(-1)
    out = jnp.zeros(coords.shape[0], jnp.float32)
    for dz in (0, 1):
        for dy in (0, 1):
            for dx in (0, 1):
                xi, yi, zi = x0 + dx, y0 + dy, z0 + dz
                wt = ((1.0 - jnp.abs(x - xi)) * (1.0 - jnp.abs(y - yi))
                      * (1.0 - jnp.abs(z - zi)))
                valid = ((xi >= 0) & (xi <= w - 1) & (yi >= 0) & (yi <= h - 1)
                         & (zi >= 0) & (zi <= d - 1))
                idx = (jnp.clip(zi, 0, d - 1) * h * w + jnp.clip(yi, 0, h - 1) * w
                       + jnp.clip(xi, 0, w - 1)).astype(jnp.int32)
                out = out + jnp.where(valid, wt * jnp.take(flat, idx), 0.0)
    return out


def _motion_weights(pts, motion_weights_vol, motion_scale_Rs, motion_Ts,
                    cnl_bbox_min_xyz, cnl_bbox_scale_xyz, backward):
    """Per-bone trilinear sampling of the motion weight volume -> (N, 24)."""
    motion_weights = motion_weights_vol[:-1]               # (24, D, H, W)
    nb = motion_weights.shape[0]
    if backward:
        pos = jnp.einsum('nij,pj->npi', motion_scale_Rs, pts) + motion_Ts[:, None, :]
    else:
        pos = jnp.broadcast_to(pts[None], (nb,) + pts.shape)
    pos = (pos - cnl_bbox_min_xyz[None, None, :]) * cnl_bbox_scale_xyz[None, None, :] - 1.0
    w = jax.vmap(_grid_sample_3d_zeros)(motion_weights, pos)
    return jnp.transpose(w)                                # (N, 24)


def render_rays(prep, ray_batch, motion_scale_Rs, motion_Ts, motion_weights_vol,
                cnl_bbox_min_xyz, cnl_bbox_scale_xyz, bgcolor):
    n_rays = ray_batch.shape[0]
    rays_o, rays_d = ray_batch[:, 0:3], ray_batch[:, 3:6]
    bounds = ray_batch[:, 6:8].reshape(-1, 1, 2)
    near, far = bounds[..., 0], bounds[..., 1]
    t_vals = jnp.linspace(0.0, 1.0, cfg.N_samples)
    z_vals = jnp.broadcast_to(near * (1.0 - t_vals) + far * t_vals,
                              (n_rays, cfg.N_samples))
    # cfg.perturb == 0.0 -> no stratified sampling (deterministic run)

    pts = rays_o[:, None, :] + rays_d[:, None, :] * z_vals[:, :, None]
    pts_flat = pts.reshape(-1, 3)

    # --- backward deform + query MLPs (fused Pallas kernel #1) ---
    w_b = _motion_weights(pts_flat, motion_weights_vol, motion_scale_Rs[0],
                          motion_Ts[0], cnl_bbox_min_xyz, cnl_bbox_scale_xyz, True)
    packed = bwd_fused_pallas(prep, pts_flat, w_b)         # [x_c | mask | rgb | sigma]
    cnl_pts = packed[:, 0:3]
    pts_mask = packed[:, 3]
    fg = pts_mask > cfg.fg_thread

    # --- forward deform + consistency distance (fused Pallas kernel #2) ---
    # TODO(synk): dynamic boolean indexing (pts[fg_index], distance[distance>0.05])
    # has no static-shape equivalent; consistency term is computed on all points
    # and masked instead.
    w_f = _motion_weights(cnl_pts, motion_weights_vol, motion_scale_Rs[0],
                          motion_Ts[0], cnl_bbox_min_xyz, cnl_bbox_scale_xyz, False)
    fwd_out = fwd_fused_pallas(prep, pts_flat, cnl_pts, w_f)
    distance = fwd_out[:, 3]
    consis_mask = fg & (distance > 0.05)
    loss_consis = jnp.sum(jnp.where(consis_mask, distance, 0.0)) / jnp.maximum(
        jnp.sum(consis_mask.astype(jnp.float32)), 1.0)

    # --- volume rendering (Pallas kernel #3) ---
    # iter_val < cfg.kick_in_feature -> image-feature branch statically skipped.
    packed3 = packed.reshape(n_rays, cfg.N_samples, 8)
    rgb_map, acc_map, depth_map = raw2outputs_pallas(packed3, z_vals, rays_d, bgcolor)
    return {'rgb': rgb_map, 'alpha': acc_map, 'depth': depth_map,
            'loss_consis': loss_consis}


def network_forward(params, rays, dst_Rs, dst_Ts, cnl_gtfms, in_dst_Rs, in_dst_Ts,
                    motion_weights_priors, dst_posevec, near, far,
                    cnl_bbox_min_xyz, cnl_bbox_scale_xyz, canonical_joints,
                    bgcolor, iter_val):
    dst_Rs_b, dst_Ts_b = dst_Rs[None], dst_Ts[None]
    cnl_gtfms_b = cnl_gtfms[None]
    priors_b = motion_weights_priors[None]

    motion_scale_Rs, motion_Ts = motion_basis_computer(dst_Rs_b, dst_Ts_b, cnl_gtfms_b)
    # nearby-view motion bases (only consumed when iter_val >= kick_in_feature)
    for k in range(in_dst_Rs.shape[0]):
        motion_basis_computer(in_dst_Rs[k][None], in_dst_Ts[k][None], cnl_gtfms_b)

    motion_weights_vol = mweight_vol_decoder(priors_b)[0]

    # Pre-pack weight slabs / geometry constants consumed by the fused kernels.
    qry_wslab, qry_bslab, cnl_layout, rgb_layout, n_cnl = _prep_query_weights(params)
    bone_pack, tails = _bone_pack(canonical_joints)
    prep = {
        'qry_wslab': qry_wslab, 'qry_bslab': qry_bslab,
        'cnl_layout': cnl_layout, 'rgb_layout': rgb_layout, 'n_cnl': n_cnl,
        'nr_b': _prep_nr(params['backward_mlp'], dst_posevec),
        'nr_f': _prep_nr(params['forward_mlp'], jnp.zeros_like(dst_posevec)),
        'bone_pack': bone_pack, 'tails': tails,
        'emb6': _embed_matrix(6, cfg.cnl_multires),
        'emb3': _embed_matrix(3, cfg.nr_multires),
        'skin_b': _skin_pack(motion_scale_Rs[0], motion_Ts[0], True),
        'skin_f': _skin_pack(motion_scale_Rs[0], motion_Ts[0], False),
    }

    rays_o, rays_d = rays
    rays_o = rays_o.reshape(-1, 3).astype(jnp.float32)
    rays_d = rays_d.reshape(-1, 3).astype(jnp.float32)
    packed = jnp.concatenate([rays_o, rays_d, near, far], axis=-1)
    # single chunk (N_rays << cfg.chunk) -> _batchify_rays is one iteration
    return render_rays(prep, packed, motion_scale_Rs, motion_Ts, motion_weights_vol,
                       cnl_bbox_min_xyz, cnl_bbox_scale_xyz, bgcolor)


# ----------------------------------------------------------------------------- #
# Deterministic parameter initialization
# ----------------------------------------------------------------------------- #
def _mlp_layer_dims(input_ch, width, depth, skips, out_ch):
    dims = []
    for i in range(depth):
        if i == 0:
            fan_in = input_ch
        elif i in skips:
            fan_in = width + input_ch
        else:
            fan_in = width
        dims.append((fan_in, width))
    dims.append((width, out_ch))
    return dims


def _init_mlp(key, dims):
    layers = []
    for (fi, fo) in dims:
        key, k1, k2 = jax.random.split(key, 3)
        w = jax.random.normal(k1, (fi, fo), jnp.float32) / math.sqrt(fi)
        b = 0.01 * jax.random.normal(k2, (1, fo), jnp.float32)
        layers.append((w, b))
    return layers


def init_params(key):
    e_cnl = 3 * (1 + 2 * cfg.cnl_multires)
    e_nr = 3 * (1 + 2 * cfg.nr_multires)
    k1, k2, k3, k4 = jax.random.split(key, 4)
    return {
        'cnl_mlp': _init_mlp(k1, _mlp_layer_dims(
            2 * e_cnl, cfg.cnl_width, cfg.cnl_depth, cfg.cnl_skips, cfg.rgb_in_dim + 1)),
        'rgb_mlp': _init_mlp(k2, _mlp_layer_dims(
            2 * cfg.rgb_in_dim, cfg.cnl_width, cfg.cnl_depth // 2, cfg.rgb_skips, 3)),
        'forward_mlp': _init_mlp(k3, _mlp_layer_dims(
            cfg.condition_code_size + e_nr, cfg.nr_width, cfg.nr_depth, cfg.nr_skips, 3)),
        'backward_mlp': _init_mlp(k4, _mlp_layer_dims(
            cfg.condition_code_size + e_nr, cfg.nr_width, cfg.nr_depth, cfg.nr_skips, 3)),
    }


# ----------------------------------------------------------------------------- #
if __name__ == "__main__":
    params = init_params(jax.random.PRNGKey(0))
    ks = jax.random.split(jax.random.PRNGKey(0), 12)
    nr, nb, vs = cfg.N_rays, cfg.total_bones, cfg.volume_size

    rays_o = 0.2 * jax.random.normal(ks[0], (nr, 3), jnp.float32)
    rd = jax.random.normal(ks[1], (nr, 3), jnp.float32)
    rays_d = rd / jnp.linalg.norm(rd, axis=-1, keepdims=True)
    near = jnp.full((nr, 1), 0.2, jnp.float32)
    far = jnp.full((nr, 1), 2.0, jnp.float32)

    eye = jnp.broadcast_to(jnp.eye(3, dtype=jnp.float32), (nb, 3, 3))
    dst_Rs = eye + 0.05 * jax.random.normal(ks[2], (nb, 3, 3), jnp.float32)
    dst_Ts = 0.1 * jax.random.normal(ks[3], (nb, 3), jnp.float32)
    cnl_R = eye + 0.05 * jax.random.normal(ks[4], (nb, 3, 3), jnp.float32)
    cnl_T = 0.1 * jax.random.normal(ks[5], (nb, 3), jnp.float32)
    cnl_gtfms = jnp.zeros((nb, 4, 4), jnp.float32)
    cnl_gtfms = cnl_gtfms.at[:, :3, :3].set(cnl_R)
    cnl_gtfms = cnl_gtfms.at[:, :3, 3].set(cnl_T).at[:, 3, 3].set(1.0)
    in_dst_Rs = eye[None] + 0.05 * jax.random.normal(ks[6], (2, nb, 3, 3), jnp.float32)
    in_dst_Ts = 0.1 * jax.random.normal(ks[7], (2, nb, 3), jnp.float32)

    motion_weights_priors = jax.nn.softplus(
        jax.random.normal(ks[8], (nb + 1, vs, vs, vs), jnp.float32)) + 0.01
    dst_posevec = 0.1 * jax.random.normal(ks[9], (cfg.condition_code_size,), jnp.float32)
    canonical_joints = jax.random.uniform(ks[10], (nb, 3), jnp.float32, -1.0, 1.0)
    cnl_bbox_min_xyz = jnp.array([-1.5, -1.5, -1.5], jnp.float32)
    cnl_bbox_scale_xyz = jnp.array([2.0 / 3.0, 2.0 / 3.0, 2.0 / 3.0], jnp.float32)
    bgcolor = jnp.array([32.0, 64.0, 128.0], jnp.float32)

    fwd = jax.jit(network_forward)
    out = fwd(params, (rays_o, rays_d), dst_Rs, dst_Ts, cnl_gtfms, in_dst_Rs,
              in_dst_Ts, motion_weights_priors, dst_posevec, near, far,
              cnl_bbox_min_xyz, cnl_bbox_scale_xyz, canonical_joints, bgcolor,
              jnp.float32(0.0))
    out = jax.tree_util.tree_map(jax.block_until_ready, out)

    assert out['rgb'].shape == (nr, 3)
    assert out['alpha'].shape == (nr,)
    assert out['depth'].shape == (nr,)
    assert all(bool(jnp.all(jnp.isfinite(v)))
               for v in jax.tree_util.tree_leaves(out))
    print("KERNEL_OK")
</pallas_src>

<mosaic_0001>
module attributes {stable_mosaic.version = 11 : i64} {
  func.func private @main(%arg0: i32) attributes {dimension_semantics = [#tpu.dimension_semantics<core_parallel>], iteration_bounds = array<i64: 2>, tpu.core_type = #tpu.core_type<sc_scalar_subcore>, window_params = []} {
    return
  }
}

module attributes {stable_mosaic.version = 11 : i64} {
  func.func private @main(%arg0: i32) attributes {dimension_semantics = [#tpu.dimension_semantics<core_parallel>], iteration_bounds = array<i64: 2>, tpu.core_type = #tpu.core_type<sc_scalar_subcore>, window_params = []} {
    return
  }
}

module attributes {stable_mosaic.version = 11 : i64} {
  func.func @_bwd_kernel(%arg0: i32, %arg1: memref<32x3xf32, #tpu.memory_space<vmem>>, %arg2: memref<32x24xf32, #tpu.memory_space<vmem>>, %arg3: memref<4x384xf32, #tpu.memory_space<vmem>>, %arg4: memref<9x23xf32, #tpu.memory_space<vmem>>, %arg5: memref<23x3xf32, #tpu.memory_space<vmem>>, %arg6: memref<6x24xf32, #tpu.memory_space<vmem>>, %arg7: memref<3x6xf32, #tpu.memory_space<vmem>>, %arg8: memref<1x32xf32, #tpu.memory_space<vmem>>, %arg9: memref<144x32xbf16, #tpu.memory_space<vmem>>, %arg10: memref<5x32xf32, #tpu.memory_space<vmem>>, %arg11: memref<448x32xbf16, #tpu.memory_space<vmem>>, %arg12: memref<11x32xf32, #tpu.memory_space<vmem>>, %arg13: memref<32x8xf32, #tpu.memory_space<vmem>>) attributes {dimension_semantics = [#tpu.dimension_semantics<parallel>], iteration_bounds = array<i64: 2>, scalar_prefetch = 0 : i64, scratch_operands = 0 : i64, tpu.core_type = #tpu.core_type<tc>, window_params = [{transform_indices = @transform_0, window_bounds = array<i64: 32, 3>}, {transform_indices = @transform_1, window_bounds = array<i64: 32, 24>}, {pipeline_mode = #tpu.pipeline_mode<synchronous>, transform_indices = @transform_2, window_bounds = array<i64: 4, 384>}, {pipeline_mode = #tpu.pipeline_mode<synchronous>, transform_indices = @transform_3, window_bounds = array<i64: 9, 23>}, {pipeline_mode = #tpu.pipeline_mode<synchronous>, transform_indices = @transform_4, window_bounds = array<i64: 23, 3>}, {pipeline_mode = #tpu.pipeline_mode<synchronous>, transform_indices = @transform_5, window_bounds = array<i64: 6, 24>}, {pipeline_mode = #tpu.pipeline_mode<synchronous>, transform_indices = @transform_6, window_bounds = array<i64: 3, 6>}, {pipeline_mode = #tpu.pipeline_mode<synchronous>, transform_indices = @transform_7, window_bounds = array<i64: 1, 32>}, {pipeline_mode = #tpu.pipeline_mode<synchronous>, transform_indices = @transform_8, window_bounds = array<i64: 144, 32>}, {pipeline_mode = #tpu.pipeline_mode<synchronous>, transform_indices = @transform_9, window_bounds = array<i64: 5, 32>}, {pipeline_mode = #tpu.pipeline_mode<synchronous>, transform_indices = @transform_10, window_bounds = array<i64: 448, 32>}, {pipeline_mode = #tpu.pipeline_mode<synchronous>, transform_indices = @transform_11, window_bounds = array<i64: 11, 32>}, {transform_indices = @transform_12, window_bounds = array<i64: 32, 8>}]} {
    %c0 = arith.constant 0 : index
    %c0_0 = arith.constant 0 : index
    %0 = vector.load %arg1[%c0, %c0_0] : memref<32x3xf32, #tpu.memory_space<vmem>>, vector<32x3xf32>
    %c0_1 = arith.constant 0 : index
    %c0_2 = arith.constant 0 : index
    %1 = vector.load %arg2[%c0_1, %c0_2] : memref<32x24xf32, #tpu.memory_space<vmem>>, vector<32x24xf32>
    %c0_3 = arith.constant 0 : index
    %c0_4 = arith.constant 0 : index
    %2 = vector.load %arg3[%c0_3, %c0_4] : memref<4x384xf32, #tpu.memory_space<vmem>>, vector<4x384xf32>
    %3 = vector.extract_strided_slice %2 {offsets = [0, 0], sizes = [3, 384], strides = [1, 1]} : vector<4x384xf32> to vector<3x384xf32>
    %cst = arith.constant dense<0.000000e+00> : vector<32x384xf32>
    %4 = tpu.matmul %0, %3, %cst {dimension_numbers = #tpu.dot_dimension_numbers<[1], [0], [0], [1], [0, 0, 1, 1], [], []>} : vector<32x3xf32>, vector<3x384xf32>, vector<32x384xf32> -> vector<32x384xf32>
    %5 = vector.extract_strided_slice %2 {offsets = [3, 0], sizes = [1, 384], strides = [1, 1]} : vector<4x384xf32> to vector<1x384xf32>
    %6 = vector.broadcast %5 : vector<1x384xf32> to vector<32x384xf32>
    %7 = arith.addf %4, %6 : vector<32x384xf32>
    %8 = vector.extract_strided_slice %7 {offsets = [0, 0], sizes = [32, 24], strides = [1, 1]} : vector<32x384xf32> to vector<32x24xf32>
    %9 = arith.mulf %1, %8 : vector<32x24xf32>
    %cst_5 = arith.constant dense<0.000000e+00> : vector<32xf32>
    %10 = vector.multi_reduction <add>, %9, %cst_5 [1] : vector<32x24xf32> to vector<32xf32>
    %11 = vector.shape_cast %10 : vector<32xf32> to vector<32x1xf32>
    %12 = vector.extract_strided_slice %7 {offsets = [0, 128], sizes = [32, 24], strides = [1, 1]} : vector<32x384xf32> to vector<32x24xf32>
    %13 = arith.mulf %1, %12 : vector<32x24xf32>
    %cst_6 = arith.constant dense<0.000000e+00> : vector<32xf32>
    %14 = vector.multi_reduction <add>, %13, %cst_6 [1] : vector<32x24xf32> to vector<32xf32>
    %15 = vector.shape_cast %14 : vector<32xf32> to vector<32x1xf32>
    %16 = vector.extract_strided_slice %7 {offsets = [0, 256], sizes = [32, 24], strides = [1, 1]} : vector<32x384xf32> to vector<32x24xf32>
    %17 = arith.mulf %1, %16 : vector<32x24xf32>
    %cst_7 = arith.constant dense<0.000000e+00> : vector<32xf32>
    %18 = vector.multi_reduction <add>, %17, %cst_7 [1] : vector<32x24xf32> to vector<32xf32>
    %19 = vector.shape_cast %18 : vector<32xf32> to vector<32x1xf32>
    %cst_8 = arith.constant dense<0.000000e+00> : vector<32xf32>
    %20 = vector.multi_reduction <add>, %1, %cst_8 [1] : vector<32x24xf32> to vector<32xf32>
    %21 = vector.shape_cast %20 : vector<32xf32> to vector<32x1xf32>
    %22 = tpu.concatenate %11, %15, %19 in 1 : vector<32x1xf32>, vector<32x1xf32>, vector<32x1xf32> -> vector<32x3xf32>
    %cst_9 = arith.constant 9.99999974E-5 : f32
    %23 = vector.broadcast %cst_9 : f32 to vector<32x1xf32>
    %24 = arith.maximumf %21, %23 : vector<32x1xf32>
    %25 = vector.broadcast %24 : vector<32x1xf32> to vector<32x3xf32>
    %26 = arith.divf %22, %25 : vector<32x3xf32>
    %c0_10 = arith.constant 0 : index
    %c0_11 = arith.constant 0 : index
    %27 = vector.load %arg7[%c0_10, %c0_11] : memref<3x6xf32, #tpu.memory_space<vmem>>, vector<3x6xf32>
    %cst_12 = arith.constant dense<0.000000e+00> : vector<32x6xf32>
    %28 = tpu.matmul %26, %27, %cst_12 {dimension_numbers = #tpu.dot_dimension_numbers<[1], [0], [0], [1], [0, 0, 1, 1], [], []>} : vector<32x3xf32>, vector<3x6xf32>, vector<32x6xf32> -> vector<32x6xf32>
    %29 = math.sin %28 : vector<32x6xf32>
    %30 = math.cos %28 : vector<32x6xf32>
    %31 = tpu.concatenate %26, %29, %30 in 1 : vector<32x3xf32>, vector<32x6xf32>, vector<32x6xf32> -> vector<32x15xf32>
    %c0_13 = arith.constant 0 : index
    %c0_14 = arith.constant 0 : index
    %32 = vector.load %arg8[%c0_13, %c0_14] : memref<1x32xf32, #tpu.memory_space<vmem>>, vector<1x32xf32>
    %c0_15 = arith.constant 0 : index
    %c0_16 = arith.constant 0 : index
    %33 = vector.load %arg9[%c0_15, %c0_16] : memref<144x32xbf16, #tpu.memory_space<vmem>>, vector<15x32xbf16>
    %34 = arith.truncf %31 : vector<32x15xf32> to vector<32x15xbf16>
    %cst_17 = arith.constant dense<0.000000e+00> : vector<32x32xf32>
    %35 = tpu.matmul %34, %33, %cst_17 {dimension_numbers = #tpu.dot_dimension_numbers<[1], [0], [0], [1], [0, 0, 1, 1], [], []>} : vector<32x15xbf16>, vector<15x32xbf16>, vector<32x32xf32> -> vector<32x32xf32>
    %c0_18 = arith.constant 0 : index
    %c0_19 = arith.constant 0 : index
    %36 = vector.load %arg10[%c0_18, %c0_19] : memref<5x32xf32, #tpu.memory_space<vmem>>, vector<1x32xf32>
    %37 = vector.broadcast %36 : vector<1x32xf32> to vector<32x32xf32>
    %38 = arith.addf %35, %37 : vector<32x32xf32>
    %39 = vector.broadcast %32 : vector<1x32xf32> to vector<32x32xf32>
    %40 = arith.addf %38, %39 : vector<32x32xf32>
    %cst_20 = arith.constant 0.000000e+00 : f32
    %41 = vector.broadcast %cst_20 : f32 to vector<32x32xf32>
    %42 = arith.maximumf %40, %41 : vector<32x32xf32>
    %c16 = arith.constant 16 : index
    %c0_21 = arith.constant 0 : index
    %43 = vector.load %arg9[%c16, %c0_21] : memref<144x32xbf16, #tpu.memory_space<vmem>>, vector<32x32xbf16>
    %44 = arith.truncf %42 : vector<32x32xf32> to vector<32x32xbf16>
    %cst_22 = arith.constant dense<0.000000e+00> : vector<32x32xf32>
    %45 = tpu.matmul %44, %43, %cst_22 {dimension_numbers = #tpu.dot_dimension_numbers<[1], [0], [0], [1], [0, 0, 1, 1], [], []>} : vector<32x32xbf16>, vector<32x32xbf16>, vector<32x32xf32> -> vector<32x32xf32>
    %c1 = arith.constant 1 : index
    %c0_23 = arith.constant 0 : index
    %46 = vector.load %arg10[%c1, %c0_23] : memref<5x32xf32, #tpu.memory_space<vmem>>, vector<1x32xf32>
    %47 = vector.broadcast %46 : vector<1x32xf32> to vector<32x32xf32>
    %48 = arith.addf %45, %47 : vector<32x32xf32>
    %cst_24 = arith.constant 0.000000e+00 : f32
    %49 = vector.broadcast %cst_24 : f32 to vector<32x32xf32>
    %50 = arith.maximumf %48, %49 : vector<32x32xf32>
    %c48 = arith.constant 48 : index
    %c0_25 = arith.constant 0 : index
    %51 = vector.load %arg9[%c48, %c0_25] : memref<144x32xbf16, #tpu.memory_space<vmem>>, vector<32x32xbf16>
    %52 = arith.truncf %50 : vector<32x32xf32> to vector<32x32xbf16>
    %cst_26 = arith.constant dense<0.000000e+00> : vector<32x32xf32>
    %53 = tpu.matmul %52, %51, %cst_26 {dimension_numbers = #tpu.dot_dimension_numbers<[1], [0], [0], [1], [0, 0, 1, 1], [], []>} : vector<32x32xbf16>, vector<32x32xbf16>, vector<32x32xf32> -> vector<32x32xf32>
    %c2 = arith.constant 2 : index
    %c0_27 = arith.constant 0 : index
    %54 = vector.load %arg10[%c2, %c0_27] : memref<5x32xf32, #tpu.memory_space<vmem>>, vector<1x32xf32>
    %55 = vector.broadcast %54 : vector<1x32xf32> to vector<32x32xf32>
    %56 = arith.addf %53, %55 : vector<32x32xf32>
    %cst_28 = arith.constant 0.000000e+00 : f32
    %57 = vector.broadcast %cst_28 : f32 to vector<32x32xf32>
    %58 = arith.maximumf %56, %57 : vector<32x32xf32>
    %c80 = arith.constant 80 : index
    %c0_29 = arith.constant 0 : index
    %59 = vector.load %arg9[%c80, %c0_29] : memref<144x32xbf16, #tpu.memory_space<vmem>>, vector<32x32xbf16>
    %60 = arith.truncf %58 : vector<32x32xf32> to vector<32x32xbf16>
    %cst_30 = arith.constant dense<0.000000e+00> : vector<32x32xf32>
    %61 = tpu.matmul %60, %59, %cst_30 {dimension_numbers = #tpu.dot_dimension_numbers<[1], [0], [0], [1], [0, 0, 1, 1], [], []>} : vector<32x32xbf16>, vector<32x32xbf16>, vector<32x32xf32> -> vector<32x32xf32>
    %c3 = arith.constant 3 : index
    %c0_31 = arith.constant 0 : index
    %62 = vector.load %arg10[%c3, %c0_31] : memref<5x32xf32, #tpu.memory_space<vmem>>, vector<1x32xf32>
    %63 = vector.broadcast %62 : vector<1x32xf32> to vector<32x32xf32>
    %64 = arith.addf %61, %63 : vector<32x32xf32>
    %cst_32 = arith.constant 0.000000e+00 : f32
    %65 = vector.broadcast %cst_32 : f32 to vector<32x32xf32>
    %66 = arith.maximumf %64, %65 : vector<32x32xf32>
    %c112 = arith.constant 112 : index
    %c0_33 = arith.constant 0 : index
    %67 = vector.load %arg9[%c112, %c0_33] : memref<144x32xbf16, #tpu.memory_space<vmem>>, vector<32x32xbf16>
    %68 = arith.truncf %66 : vector<32x32xf32> to vector<32x32xbf16>
    %cst_34 = arith.constant dense<0.000000e+00> : vector<32x32xf32>
    %69 = tpu.matmul %68, %67, %cst_34 {dimension_numbers = #tpu.dot_dimension_numbers<[1], [0], [0], [1], [0, 0, 1, 1], [], []>} : vector<32x32xbf16>, vector<32x32xbf16>, vector<32x32xf32> -> vector<32x32xf32>
    %c4 = arith.constant 4 : index
    %c0_35 = arith.constant 0 : index
    %70 = vector.load %arg10[%c4, %c0_35] : memref<5x32xf32, #tpu.memory_space<vmem>>, vector<1x32xf32>
    %71 = vector.broadcast %70 : vector<1x32xf32> to vector<32x32xf32>
    %72 = arith.addf %69, %71 : vector<32x32xf32>
    %73 = vector.extract_strided_slice %72 {offsets = [0, 0], sizes = [32, 3], strides = [1, 1]} : vector<32x32xf32> to vector<32x3xf32>
    %74 = arith.addf %26, %73 : vector<32x3xf32>
    %c0_36 = arith.constant 0 : index
    %c0_37 = arith.constant 0 : index
    %75 = vector.load %arg4[%c0_36, %c0_37] : memref<9x23xf32, #tpu.memory_space<vmem>>, vector<9x23xf32>
    %76 = vector.extract_strided_slice %75 {offsets = [0, 0], sizes = [3, 23], strides = [1, 1]} : vector<9x23xf32> to vector<3x23xf32>
    %77 = vector.extract_strided_slice %75 {offsets = [3, 0], sizes = [3, 23], strides = [1, 1]} : vector<9x23xf32> to vector<3x23xf32>
    %78 = vector.extract_strided_slice %75 {offsets = [6, 0], sizes = [1, 23], strides = [1, 1]} : vector<9x23xf32> to vector<1x23xf32>
    %79 = vector.extract_strided_slice %75 {offsets = [7, 0], sizes = [1, 23], strides = [1, 1]} : vector<9x23xf32> to vector<1x23xf32>
    %80 = vector.extract_strided_slice %75 {offsets = [8, 0], sizes = [1, 23], strides = [1, 1]} : vector<9x23xf32> to vector<1x23xf32>
    %cst_38 = arith.constant dense<0.000000e+00> : vector<32x23xf32>
    %81 = tpu.matmul %74, %76, %cst_38 {dimension_numbers = #tpu.dot_dimension_numbers<[1], [0], [0], [1], [0, 0, 1, 1], [], []>} : vector<32x3xf32>, vector<3x23xf32>, vector<32x23xf32> -> vector<32x23xf32>
    %cst_39 = arith.constant dense<0.000000e+00> : vector<32x23xf32>
    %82 = tpu.matmul %74, %77, %cst_39 {dimension_numbers = #tpu.dot_dimension_numbers<[1], [0], [0], [1], [0, 0, 1, 1], [], []>} : vector<32x3xf32>, vector<3x23xf32>, vector<32x23xf32> -> vector<32x23xf32>
    %83 = arith.mulf %74, %74 : vector<32x3xf32>
    %cst_40 = arith.constant dense<0.000000e+00> : vector<32xf32>
    %84 = vector.multi_reduction <add>, %83, %cst_40 [1] : vector<32x3xf32> to vector<32xf32>
    %85 = vector.shape_cast %84 : vector<32xf32> to vector<32x1xf32>
    %86 = vector.broadcast %78 : vector<1x23xf32> to vector<32x23xf32>
    %87 = arith.subf %82, %86 : vector<32x23xf32>
    %cst_41 = arith.constant 9.99999996E-13 : f32
    %88 = vector.broadcast %cst_41 : f32 to vector<1x23xf32>
    %89 = arith.maximumf %79, %88 : vector<1x23xf32>
    %90 = vector.broadcast %89 : vector<1x23xf32> to vector<32x23xf32>
    %91 = arith.divf %87, %90 : vector<32x23xf32>
    %cst_42 = arith.constant 0.000000e+00 : f32
    %cst_43 = arith.constant 1.000000e+00 : f32
    %92 = vector.broadcast %cst_42 : f32 to vector<32x23xf32>
    %93 = arith.maximumf %92, %91 : vector<32x23xf32>
    %94 = vector.broadcast %cst_43 : f32 to vector<32x23xf32>
    %95 = arith.minimumf %94, %93 : vector<32x23xf32>
    %cst_44 = arith.constant 2.000000e+00 : f32
    %96 = vector.broadcast %cst_44 : f32 to vector<32x23xf32>
    %97 = arith.mulf %96, %81 : vector<32x23xf32>
    %98 = vector.broadcast %85 : vector<32x1xf32> to vector<32x23xf32>
    %99 = arith.subf %98, %97 : vector<32x23xf32>
    %100 = vector.broadcast %80 : vector<1x23xf32> to vector<32x23xf32>
    %101 = arith.addf %99, %100 : vector<32x23xf32>
    %cst_45 = arith.constant 2.000000e+00 : f32
    %102 = vector.broadcast %cst_45 : f32 to vector<32x23xf32>
    %103 = arith.mulf %102, %95 : vector<32x23xf32>
    %104 = arith.mulf %103, %87 : vector<32x23xf32>
    %105 = arith.subf %101, %104 : vector<32x23xf32>
    %106 = arith.mulf %95, %95 : vector<32x23xf32>
    %107 = vector.broadcast %79 : vector<1x23xf32> to vector<32x23xf32>
    %108 = arith.mulf %106, %107 : vector<32x23xf32>
    %109 = arith.addf %105, %108 : vector<32x23xf32>
    %cst_46 = arith.constant 0.000000e+00 : f32
    %110 = vector.broadcast %cst_46 : f32 to vector<32x23xf32>
    %111 = arith.maximumf %109, %110 : vector<32x23xf32>
    %112 = math.sqrt %111 : vector<32x23xf32>
    %cst_47 = arith.constant dense<0x7F800000> : vector<32xf32>
    %113 = vector.multi_reduction <minimumf>, %112, %cst_47 [1] : vector<32x23xf32> to vector<32xf32>
    %114 = vector.shape_cast %113 : vector<32xf32> to vector<32x1xf32>
    %115 = tpu.iota {dimensions = array<i32: 1>} : vector<32x23xi32>
    %116 = vector.broadcast %114 : vector<32x1xf32> to vector<32x23xf32>
    %117 = arith.cmpf ole, %112, %116 : vector<32x23xf32>
    %c23_i32 = arith.constant 23 : i32
    %118 = vector.broadcast %c23_i32 : i32 to vector<32x23xi32>
    %119 = arith.select %117, %115, %118 : vector<32x23xi1>, vector<32x23xi32>
    %cst_48 = arith.constant dense<2147483647> : vector<32xi32>
    %120 = vector.multi_reduction <minsi>, %119, %cst_48 [1] : vector<32x23xi32> to vector<32xi32>
    %121 = vector.shape_cast %120 : vector<32xi32> to vector<32x1xi32>
    %122 = vector.broadcast %121 : vector<32x1xi32> to vector<32x23xi32>
    %123 = arith.cmpi eq, %122, %115 : vector<32x23xi32>
    %124 = arith.extui %123 : vector<32x23xi1> to vector<32x23xi32>
    %125 = arith.sitofp %124 : vector<32x23xi32> to vector<32x23xf32>
    %c0_49 = arith.constant 0 : index
    %c0_50 = arith.constant 0 : index
    %126 = vector.load %arg5[%c0_49, %c0_50] : memref<23x3xf32, #tpu.memory_space<vmem>>, vector<23x3xf32>
    %cst_51 = arith.constant dense<0.000000e+00> : vector<32x3xf32>
    %127 = tpu.matmul %125, %126, %cst_51 {dimension_numbers = #tpu.dot_dimension_numbers<[1], [0], [0], [1], [0, 0, 1, 1], [], []>} : vector<32x23xf32>, vector<23x3xf32>, vector<32x3xf32> -> vector<32x3xf32>
    %128 = arith.subf %74, %127 : vector<32x3xf32>
    %129 = tpu.concatenate %74, %128 in 1 : vector<32x3xf32>, vector<32x3xf32> -> vector<32x6xf32>
    %c0_52 = arith.constant 0 : index
    %c0_53 = arith.constant 0 : index
    %130 = vector.load %arg6[%c0_52, %c0_53] : memref<6x24xf32, #tpu.memory_space<vmem>>, vector<6x24xf32>
    %cst_54 = arith.constant dense<0.000000e+00> : vector<32x24xf32>
    %131 = tpu.matmul %129, %130, %cst_54 {dimension_numbers = #tpu.dot_dimension_numbers<[1], [0], [0], [1], [0, 0, 1, 1], [], []>} : vector<32x6xf32>, vector<6x24xf32>, vector<32x24xf32> -> vector<32x24xf32>
    %132 = math.sin %131 : vector<32x24xf32>
    %133 = math.cos %131 : vector<32x24xf32>
    %134 = tpu.concatenate %129, %132, %133 in 1 : vector<32x6xf32>, vector<32x24xf32>, vector<32x24xf32> -> vector<32x54xf32>
    %c0_55 = arith.constant 0 : index
    %c0_56 = arith.constant 0 : index
    %135 = vector.load %arg11[%c0_55, %c0_56] : memref<448x32xbf16, #tpu.memory_space<vmem>>, vector<54x32xbf16>
    %136 = arith.truncf %134 : vector<32x54xf32> to vector<32x54xbf16>
    %cst_57 = arith.constant dense<0.000000e+00> : vector<32x32xf32>
    %137 = tpu.matmul %136, %135, %cst_57 {dimension_numbers = #tpu.dot_dimension_numbers<[1], [0], [0], [1], [0, 0, 1, 1], [], []>} : vector<32x54xbf16>, vector<54x32xbf16>, vector<32x32xf32> -> vector<32x32xf32>
    %c0_58 = arith.constant 0 : index
    %c0_59 = arith.constant 0 : index
    %138 = vector.load %arg12[%c0_58, %c0_59] : memref<11x32xf32, #tpu.memory_space<vmem>>, vector<1x32xf32>
    %139 = vector.broadcast %138 : vector<1x32xf32> to vector<32x32xf32>
    %140 = arith.addf %137, %139 : vector<32x32xf32>
    %cst_60 = arith.constant 0.000000e+00 : f32
    %141 = vector.broadcast %cst_60 : f32 to vector<32x32xf32>
    %142 = arith.maximumf %140, %141 : vector<32x32xf32>
    %c64 = arith.constant 64 : index
    %c0_61 = arith.constant 0 : index
    %143 = vector.load %arg11[%c64, %c0_61] : memref<448x32xbf16, #tpu.memory_space<vmem>>, vector<32x32xbf16>
    %144 = arith.truncf %142 : vector<32x32xf32> to vector<32x32xbf16>
    %cst_62 = arith.constant dense<0.000000e+00> : vector<32x32xf32>
    %145 = tpu.matmul %144, %143, %cst_62 {dimension_numbers = #tpu.dot_dimension_numbers<[1], [0], [0], [1], [0, 0, 1, 1], [], []>} : vector<32x32xbf16>, vector<32x32xbf16>, vector<32x32xf32> -> vector<32x32xf32>
    %c1_63 = arith.constant 1 : index
    %c0_64 = arith.constant 0 : index
    %146 = vector.load %arg12[%c1_63, %c0_64] : memref<11x32xf32, #tpu.memory_space<vmem>>, vector<1x32xf32>
    %147 = vector.broadcast %146 : vector<1x32xf32> to vector<32x32xf32>
    %148 = arith.addf %145, %147 : vector<32x32xf32>
    %cst_65 = arith.constant 0.000000e+00 : f32
    %149 = vector.broadcast %cst_65 : f32 to vector<32x32xf32>
    %150 = arith.maximumf %148, %149 : vector<32x32xf32>
    %c96 = arith.constant 96 : index
    %c0_66 = arith.constant 0 : index
    %151 = vector.load %arg11[%c96, %c0_66] : memref<448x32xbf16, #tpu.memory_space<vmem>>, vector<32x32xbf16>
    %152 = arith.truncf %150 : vector<32x32xf32> to vector<32x32xbf16>
    %cst_67 = arith.constant dense<0.000000e+00> : vector<32x32xf32>
    %153 = tpu.matmul %152, %151, %cst_67 {dimension_numbers = #tpu.dot_dimension_numbers<[1], [0], [0], [1], [0, 0, 1, 1], [], []>} : vector<32x32xbf16>, vector<32x32xbf16>, vector<32x32xf32> -> vector<32x32xf32>
    %c2_68 = arith.constant 2 : index
    %c0_69 = arith.constant 0 : index
    %154 = vector.load %arg12[%c2_68, %c0_69] : memref<11x32xf32, #tpu.memory_space<vmem>>, vector<1x32xf32>
    %155 = vector.broadcast %154 : vector<1x32xf32> to vector<32x32xf32>
    %156 = arith.addf %153, %155 : vector<32x32xf32>
    %cst_70 = arith.constant 0.000000e+00 : f32
    %157 = vector.broadcast %cst_70 : f32 to vector<32x32xf32>
    %158 = arith.maximumf %156, %157 : vector<32x32xf32>
    %c128 = arith.constant 128 : index
    %c0_71 = arith.constant 0 : index
    %159 = vector.load %arg11[%c128, %c0_71] : memref<448x32xbf16, #tpu.memory_space<vmem>>, vector<32x32xbf16>
    %160 = arith.truncf %158 : vector<32x32xf32> to vector<32x32xbf16>
    %cst_72 = arith.constant dense<0.000000e+00> : vector<32x32xf32>
    %161 = tpu.matmul %160, %159, %cst_72 {dimension_numbers = #tpu.dot_dimension_numbers<[1], [0], [0], [1], [0, 0, 1, 1], [], []>} : vector<32x32xbf16>, vector<32x32xbf16>, vector<32x32xf32> -> vector<32x32xf32>
    %c3_73 = arith.constant 3 : index
    %c0_74 = arith.constant 0 : index
    %162 = vector.load %arg12[%c3_73, %c0_74] : memref<11x32xf32, #tpu.memory_space<vmem>>, vector<1x32xf32>
    %163 = vector.broadcast %162 : vector<1x32xf32> to vector<32x32xf32>
    %164 = arith.addf %161, %163 : vector<32x32xf32>
    %cst_75 = arith.constant 0.000000e+00 : f32
    %165 = vector.broadcast %cst_75 : f32 to vector<32x32xf32>
    %166 = arith.maximumf %164, %165 : vector<32x32xf32>
    %c160 = arith.constant 160 : index
    %c0_76 = arith.constant 0 : index
    %167 = vector.load %arg11[%c160, %c0_76] : memref<448x32xbf16, #tpu.memory_space<vmem>>, vector<32x32xbf16>
    %168 = arith.truncf %166 : vector<32x32xf32> to vector<32x32xbf16>
    %cst_77 = arith.constant dense<0.000000e+00> : vector<32x32xf32>
    %169 = tpu.matmul %168, %167, %cst_77 {dimension_numbers = #tpu.dot_dimension_numbers<[1], [0], [0], [1], [0, 0, 1, 1], [], []>} : vector<32x32xbf16>, vector<32x32xbf16>, vector<32x32xf32> -> vector<32x32xf32>
    %c192 = arith.constant 192 : index
    %c0_78 = arith.constant 0 : index
    %170 = vector.load %arg11[%c192, %c0_78] : memref<448x32xbf16, #tpu.memory_space<vmem>>, vector<54x32xbf16>
    %171 = arith.truncf %134 : vector<32x54xf32> to vector<32x54xbf16>
    %cst_79 = arith.constant dense<0.000000e+00> : vector<32x32xf32>
    %172 = tpu.matmul %171, %170, %cst_79 {dimension_numbers = #tpu.dot_dimension_numbers<[1], [0], [0], [1], [0, 0, 1, 1], [], []>} : vector<32x54xbf16>, vector<54x32xbf16>, vector<32x32xf32> -> vector<32x32xf32>
    %173 = arith.addf %169, %172 : vector<32x32xf32>
    %c4_80 = arith.constant 4 : index
    %c0_81 = arith.constant 0 : index
    %174 = vector.load %arg12[%c4_80, %c0_81] : memref<11x32xf32, #tpu.memory_space<vmem>>, vector<1x32xf32>
    %175 = vector.broadcast %174 : vector<1x32xf32> to vector<32x32xf32>
    %176 = arith.addf %173, %175 : vector<32x32xf32>
    %cst_82 = arith.constant 0.000000e+00 : f32
    %177 = vector.broadcast %cst_82 : f32 to vector<32x32xf32>
    %178 = arith.maximumf %176, %177 : vector<32x32xf32>
    %c256 = arith.constant 256 : index
    %c0_83 = arith.constant 0 : index
    %179 = vector.load %arg11[%c256, %c0_83] : memref<448x32xbf16, #tpu.memory_space<vmem>>, vector<32x32xbf16>
    %180 = arith.truncf %178 : vector<32x32xf32> to vector<32x32xbf16>
    %cst_84 = arith.constant dense<0.000000e+00> : vector<32x32xf32>
    %181 = tpu.matmul %180, %179, %cst_84 {dimension_numbers = #tpu.dot_dimension_numbers<[1], [0], [0], [1], [0, 0, 1, 1], [], []>} : vector<32x32xbf16>, vector<32x32xbf16>, vector<32x32xf32> -> vector<32x32xf32>
    %c5 = arith.constant 5 : index
    %c0_85 = arith.constant 0 : index
    %182 = vector.load %arg12[%c5, %c0_85] : memref<11x32xf32, #tpu.memory_space<vmem>>, vector<1x32xf32>
    %183 = vector.broadcast %182 : vector<1x32xf32> to vector<32x32xf32>
    %184 = arith.addf %181, %183 : vector<32x32xf32>
    %cst_86 = arith.constant 0.000000e+00 : f32
    %185 = vector.broadcast %cst_86 : f32 to vector<32x32xf32>
    %186 = arith.maximumf %184, %185 : vector<32x32xf32>
    %c288 = arith.constant 288 : index
    %c0_87 = arith.constant 0 : index
    %187 = vector.load %arg11[%c288, %c0_87] : memref<448x32xbf16, #tpu.memory_space<vmem>>, vector<32x32xbf16>
    %188 = arith.truncf %186 : vector<32x32xf32> to vector<32x32xbf16>
    %cst_88 = arith.constant dense<0.000000e+00> : vector<32x32xf32>
    %189 = tpu.matmul %188, %187, %cst_88 {dimension_numbers = #tpu.dot_dimension_numbers<[1], [0], [0], [1], [0, 0, 1, 1], [], []>} : vector<32x32xbf16>, vector<32x32xbf16>, vector<32x32xf32> -> vector<32x32xf32>
    %c6 = arith.constant 6 : index
    %c0_89 = arith.constant 0 : index
    %190 = vector.load %arg12[%c6, %c0_89] : memref<11x32xf32, #tpu.memory_space<vmem>>, vector<1x32xf32>
    %191 = vector.broadcast %190 : vector<1x32xf32> to vector<32x32xf32>
    %192 = arith.addf %189, %191 : vector<32x32xf32>
    %193 = vector.extract_strided_slice %192 {offsets = [0, 0], sizes = [32, 8], strides = [1, 1]} : vector<32x32xf32> to vector<32x8xf32>
    %194 = vector.extract_strided_slice %192 {offsets = [0, 8], sizes = [32, 1], strides = [1, 1]} : vector<32x32xf32> to vector<32x1xf32>
    %c320 = arith.constant 320 : index
    %c0_90 = arith.constant 0 : index
    %195 = vector.load %arg11[%c320, %c0_90] : memref<448x32xbf16, #tpu.memory_space<vmem>>, vector<8x32xbf16>
    %196 = arith.truncf %193 : vector<32x8xf32> to vector<32x8xbf16>
    %cst_91 = arith.constant dense<0.000000e+00> : vector<32x32xf32>
    %197 = tpu.matmul %196, %195, %cst_91 {dimension_numbers = #tpu.dot_dimension_numbers<[1], [0], [0], [1], [0, 0, 1, 1], [], []>} : vector<32x8xbf16>, vector<8x32xbf16>, vector<32x32xf32> -> vector<32x32xf32>
    %c7 = arith.constant 7 : index
    %c0_92 = arith.constant 0 : index
    %198 = vector.load %arg12[%c7, %c0_92] : memref<11x32xf32, #tpu.memory_space<vmem>>, vector<1x32xf32>
    %199 = vector.broadcast %198 : vector<1x32xf32> to vector<32x32xf32>
    %200 = arith.addf %197, %199 : vector<32x32xf32>
    %cst_93 = arith.constant 0.000000e+00 : f32
    %201 = vector.broadcast %cst_93 : f32 to vector<32x32xf32>
    %202 = arith.maximumf %200, %201 : vector<32x32xf32>
    %c336 = arith.constant 336 : index
    %c0_94 = arith.constant 0 : index
    %203 = vector.load %arg11[%c336, %c0_94] : memref<448x32xbf16, #tpu.memory_space<vmem>>, vector<32x32xbf16>
    %204 = arith.truncf %202 : vector<32x32xf32> to vector<32x32xbf16>
    %cst_95 = arith.constant dense<0.000000e+00> : vector<32x32xf32>
    %205 = tpu.matmul %204, %203, %cst_95 {dimension_numbers = #tpu.dot_dimension_numbers<[1], [0], [0], [1], [0, 0, 1, 1], [], []>} : vector<32x32xbf16>, vector<32x32xbf16>, vector<32x32xf32> -> vector<32x32xf32>
    %c8 = arith.constant 8 : index
    %c0_96 = arith.constant 0 : index
    %206 = vector.load %arg12[%c8, %c0_96] : memref<11x32xf32, #tpu.memory_space<vmem>>, vector<1x32xf32>
    %207 = vector.broadcast %206 : vector<1x32xf32> to vector<32x32xf32>
    %208 = arith.addf %205, %207 : vector<32x32xf32>
    %cst_97 = arith.constant 0.000000e+00 : f32
    %209 = vector.broadcast %cst_97 : f32 to vector<32x32xf32>
    %210 = arith.maximumf %208, %209 : vector<32x32xf32>
    %c368 = arith.constant 368 : index
    %c0_98 = arith.constant 0 : index
    %211 = vector.load %arg11[%c368, %c0_98] : memref<448x32xbf16, #tpu.memory_space<vmem>>, vector<32x32xbf16>
    %212 = arith.truncf %210 : vector<32x32xf32> to vector<32x32xbf16>
    %cst_99 = arith.constant dense<0.000000e+00> : vector<32x32xf32>
    %213 = tpu.matmul %212, %211, %cst_99 {dimension_numbers = #tpu.dot_dimension_numbers<[1], [0], [0], [1], [0, 0, 1, 1], [], []>} : vector<32x32xbf16>, vector<32x32xbf16>, vector<32x32xf32> -> vector<32x32xf32>
    %c400 = arith.constant 400 : index
    %c0_100 = arith.constant 0 : index
    %214 = vector.load %arg11[%c400, %c0_100] : memref<448x32xbf16, #tpu.memory_space<vmem>>, vector<8x32xbf16>
    %215 = arith.truncf %193 : vector<32x8xf32> to vector<32x8xbf16>
    %cst_101 = arith.constant dense<0.000000e+00> : vector<32x32xf32>
    %216 = tpu.matmul %215, %214, %cst_101 {dimension_numbers = #tpu.dot_dimension_numbers<[1], [0], [0], [1], [0, 0, 1, 1], [], []>} : vector<32x8xbf16>, vector<8x32xbf16>, vector<32x32xf32> -> vector<32x32xf32>
    %217 = arith.addf %213, %216 : vector<32x32xf32>
    %c9 = arith.constant 9 : index
    %c0_102 = arith.constant 0 : index
    %218 = vector.load %arg12[%c9, %c0_102] : memref<11x32xf32, #tpu.memory_space<vmem>>, vector<1x32xf32>
    %219 = vector.broadcast %218 : vector<1x32xf32> to vector<32x32xf32>
    %220 = arith.addf %217, %219 : vector<32x32xf32>
    %cst_103 = arith.constant 0.000000e+00 : f32
    %221 = vector.broadcast %cst_103 : f32 to vector<32x32xf32>
    %222 = arith.maximumf %220, %221 : vector<32x32xf32>
    %c416 = arith.constant 416 : index
    %c0_104 = arith.constant 0 : index
    %223 = vector.load %arg11[%c416, %c0_104] : memref<448x32xbf16, #tpu.memory_space<vmem>>, vector<32x32xbf16>
    %224 = arith.truncf %222 : vector<32x32xf32> to vector<32x32xbf16>
    %cst_105 = arith.constant dense<0.000000e+00> : vector<32x32xf32>
    %225 = tpu.matmul %224, %223, %cst_105 {dimension_numbers = #tpu.dot_dimension_numbers<[1], [0], [0], [1], [0, 0, 1, 1], [], []>} : vector<32x32xbf16>, vector<32x32xbf16>, vector<32x32xf32> -> vector<32x32xf32>
    %c10 = arith.constant 10 : index
    %c0_106 = arith.constant 0 : index
    %226 = vector.load %arg12[%c10, %c0_106] : memref<11x32xf32, #tpu.memory_space<vmem>>, vector<1x32xf32>
    %227 = vector.broadcast %226 : vector<1x32xf32> to vector<32x32xf32>
    %228 = arith.addf %225, %227 : vector<32x32xf32>
    %229 = vector.extract_strided_slice %228 {offsets = [0, 0], sizes = [32, 3], strides = [1, 1]} : vector<32x32xf32> to vector<32x3xf32>
    %230 = tpu.concatenate %74, %21, %229, %194 in 1 : vector<32x3xf32>, vector<32x1xf32>, vector<32x3xf32>, vector<32x1xf32> -> vector<32x8xf32>
    %c0_107 = arith.constant 0 : index
    %c0_108 = arith.constant 0 : index
    %231 = vector.load %arg13[%c0_107, %c0_108] : memref<32x8xf32, #tpu.memory_space<vmem>>, vector<32x8xf32>
    tpu.vector_store %arg13[%c0_107, %c0_108], %230 {strides = array<i32>} : memref<32x8xf32, #tpu.memory_space<vmem>>, vector<32x8xf32>,
    return
  }
  func.func @transform_0(%arg0: i32) -> (i32, i32) {
    %c0_i32 = arith.constant 0 : i32
    %c0_i32_0 = arith.constant 0 : i32
    return %arg0, %c0_i32 : i32, i32
  }
  func.func @transform_1(%arg0: i32) -> (i32, i32) {
    %c0_i32 = arith.constant 0 : i32
    %c0_i32_0 = arith.constant 0 : i32
    return %arg0, %c0_i32 : i32, i32
  }
  func.func @transform_2(%arg0: i32) -> (i32, i32) {
    %c0_i32 = arith.constant 0 : i32
    %c0_i32_0 = arith.constant 0 : i32
    %c0_i32_1 = arith.constant 0 : i32
    return %c0_i32, %c0_i32_0 : i32, i32
  }
  func.func @transform_3(%arg0: i32) -> (i32, i32) {
    %c0_i32 = arith.constant 0 : i32
    %c0_i32_0 = arith.constant 0 : i32
    %c0_i32_1 = arith.constant 0 : i32
    return %c0_i32, %c0_i32_0 : i32, i32
  }
  func.func @transform_4(%arg0: i32) -> (i32, i32) {
    %c0_i32 = arith.constant 0 : i32
    %c0_i32_0 = arith.constant 0 : i32
    %c0_i32_1 = arith.constant 0 : i32
    return %c0_i32, %c0_i32_0 : i32, i32
  }
  func.func @transform_5(%arg0: i32) -> (i32, i32) {
    %c0_i32 = arith.constant 0 : i32
    %c0_i32_0 = arith.constant 0 : i32
    %c0_i32_1 = arith.constant 0 : i32
    return %c0_i32, %c0_i32_0 : i32, i32
  }
  func.func @transform_6(%arg0: i32) -> (i32, i32) {
    %c0_i32 = arith.constant 0 : i32
    %c0_i32_0 = arith.constant 0 : i32
    %c0_i32_1 = arith.constant 0 : i32
    return %c0_i32, %c0_i32_0 : i32, i32
  }
  func.func @transform_7(%arg0: i32) -> (i32, i32) {
    %c0_i32 = arith.constant 0 : i32
    %c0_i32_0 = arith.constant 0 : i32
    %c0_i32_1 = arith.constant 0 : i32
    return %c0_i32, %c0_i32_0 : i32, i32
  }
  func.func @transform_8(%arg0: i32) -> (i32, i32) {
    %c0_i32 = arith.constant 0 : i32
    %c0_i32_0 = arith.constant 0 : i32
    %c0_i32_1 = arith.constant 0 : i32
    return %c0_i32, %c0_i32_0 : i32, i32
  }
  func.func @transform_9(%arg0: i32) -> (i32, i32) {
    %c0_i32 = arith.constant 0 : i32
    %c0_i32_0 = arith.constant 0 : i32
    %c0_i32_1 = arith.constant 0 : i32
    return %c0_i32, %c0_i32_0 : i32, i32
  }
  func.func @transform_10(%arg0: i32) -> (i32, i32) {
    %c0_i32 = arith.constant 0 : i32
    %c0_i32_0 = arith.constant 0 : i32
    %c0_i32_1 = arith.constant 0 : i32
    return %c0_i32, %c0_i32_0 : i32, i32
  }
  func.func @transform_11(%arg0: i32) -> (i32, i32) {
    %c0_i32 = arith.constant 0 : i32
    %c0_i32_0 = arith.constant 0 : i32
    %c0_i32_1 = arith.constant 0 : i32
    return %c0_i32, %c0_i32_0 : i32, i32
  }
  func.func @transform_12(%arg0: i32) -> (i32, i32) {
    %c0_i32 = arith.constant 0 : i32
    %c0_i32_0 = arith.constant 0 : i32
    return %arg0, %c0_i32 : i32, i32
  }
}

module attributes {stable_mosaic.version = 11 : i64} {
  func.func @_fwd_kernel(%arg0: i32, %arg1: memref<32x3xf32, #tpu.memory_space<vmem>>, %arg2: memref<32x3xf32, #tpu.memory_space<vmem>>, %arg3: memref<32x24xf32, #tpu.memory_space<vmem>>, %arg4: memref<4x384xf32, #tpu.memory_space<vmem>>, %arg5: memref<3x6xf32, #tpu.memory_space<vmem>>, %arg6: memref<1x32xf32, #tpu.memory_space<vmem>>, %arg7: memref<144x32xbf16, #tpu.memory_space<vmem>>, %arg8: memref<5x32xf32, #tpu.memory_space<vmem>>, %arg9: memref<32x4xf32, #tpu.memory_space<vmem>>) attributes {dimension_semantics = [#tpu.dimension_semantics<parallel>], iteration_bounds = array<i64: 2>, scalar_prefetch = 0 : i64, scratch_operands = 0 : i64, tpu.core_type = #tpu.core_type<tc>, window_params = [{transform_indices = @transform_0, window_bounds = array<i64: 32, 3>}, {transform_indices = @transform_1, window_bounds = array<i64: 32, 3>}, {transform_indices = @transform_2, window_bounds = array<i64: 32, 24>}, {pipeline_mode = #tpu.pipeline_mode<synchronous>, transform_indices = @transform_3, window_bounds = array<i64: 4, 384>}, {pipeline_mode = #tpu.pipeline_mode<synchronous>, transform_indices = @transform_4, window_bounds = array<i64: 3, 6>}, {pipeline_mode = #tpu.pipeline_mode<synchronous>, transform_indices = @transform_5, window_bounds = array<i64: 1, 32>}, {pipeline_mode = #tpu.pipeline_mode<synchronous>, transform_indices = @transform_6, window_bounds = array<i64: 144, 32>}, {pipeline_mode = #tpu.pipeline_mode<synchronous>, transform_indices = @transform_7, window_bounds = array<i64: 5, 32>}, {transform_indices = @transform_8, window_bounds = array<i64: 32, 4>}]} {
    %c0 = arith.constant 0 : index
    %c0_0 = arith.constant 0 : index
    %0 = vector.load %arg2[%c0, %c0_0] : memref<32x3xf32, #tpu.memory_space<vmem>>, vector<32x3xf32>
    %c0_1 = arith.constant 0 : index
    %c0_2 = arith.constant 0 : index
    %1 = vector.load %arg3[%c0_1, %c0_2] : memref<32x24xf32, #tpu.memory_space<vmem>>, vector<32x24xf32>
    %c0_3 = arith.constant 0 : index
    %c0_4 = arith.constant 0 : index
    %2 = vector.load %arg4[%c0_3, %c0_4] : memref<4x384xf32, #tpu.memory_space<vmem>>, vector<4x384xf32>
    %3 = vector.extract_strided_slice %2 {offsets = [0, 0], sizes = [3, 384], strides = [1, 1]} : vector<4x384xf32> to vector<3x384xf32>
    %cst = arith.constant dense<0.000000e+00> : vector<32x384xf32>
    %4 = tpu.matmul %0, %3, %cst {dimension_numbers = #tpu.dot_dimension_numbers<[1], [0], [0], [1], [0, 0, 1, 1], [], []>} : vector<32x3xf32>, vector<3x384xf32>, vector<32x384xf32> -> vector<32x384xf32>
    %5 = vector.extract_strided_slice %2 {offsets = [3, 0], sizes = [1, 384], strides = [1, 1]} : vector<4x384xf32> to vector<1x384xf32>
    %6 = vector.broadcast %5 : vector<1x384xf32> to vector<32x384xf32>
    %7 = arith.addf %4, %6 : vector<32x384xf32>
    %8 = vector.extract_strided_slice %7 {offsets = [0, 0], sizes = [32, 24], strides = [1, 1]} : vector<32x384xf32> to vector<32x24xf32>
    %9 = arith.mulf %1, %8 : vector<32x24xf32>
    %cst_5 = arith.constant dense<0.000000e+00> : vector<32xf32>
    %10 = vector.multi_reduction <add>, %9, %cst_5 [1] : vector<32x24xf32> to vector<32xf32>
    %11 = vector.shape_cast %10 : vector<32xf32> to vector<32x1xf32>
    %12 = vector.extract_strided_slice %7 {offsets = [0, 128], sizes = [32, 24], strides = [1, 1]} : vector<32x384xf32> to vector<32x24xf32>
    %13 = arith.mulf %1, %12 : vector<32x24xf32>
    %cst_6 = arith.constant dense<0.000000e+00> : vector<32xf32>
    %14 = vector.multi_reduction <add>, %13, %cst_6 [1] : vector<32x24xf32> to vector<32xf32>
    %15 = vector.shape_cast %14 : vector<32xf32> to vector<32x1xf32>
    %16 = vector.extract_strided_slice %7 {offsets = [0, 256], sizes = [32, 24], strides = [1, 1]} : vector<32x384xf32> to vector<32x24xf32>
    %17 = arith.mulf %1, %16 : vector<32x24xf32>
    %cst_7 = arith.constant dense<0.000000e+00> : vector<32xf32>
    %18 = vector.multi_reduction <add>, %17, %cst_7 [1] : vector<32x24xf32> to vector<32xf32>
    %19 = vector.shape_cast %18 : vector<32xf32> to vector<32x1xf32>
    %cst_8 = arith.constant dense<0.000000e+00> : vector<32xf32>
    %20 = vector.multi_reduction <add>, %1, %cst_8 [1] : vector<32x24xf32> to vector<32xf32>
    %21 = vector.shape_cast %20 : vector<32xf32> to vector<32x1xf32>
    %22 = tpu.concatenate %11, %15, %19 in 1 : vector<32x1xf32>, vector<32x1xf32>, vector<32x1xf32> -> vector<32x3xf32>
    %cst_9 = arith.constant 9.99999974E-5 : f32
    %23 = vector.broadcast %cst_9 : f32 to vector<32x1xf32>
    %24 = arith.maximumf %21, %23 : vector<32x1xf32>
    %25 = vector.broadcast %24 : vector<32x1xf32> to vector<32x3xf32>
    %26 = arith.divf %22, %25 : vector<32x3xf32>
    %c0_10 = arith.constant 0 : index
    %c0_11 = arith.constant 0 : index
    %27 = vector.load %arg5[%c0_10, %c0_11] : memref<3x6xf32, #tpu.memory_space<vmem>>, vector<3x6xf32>
    %cst_12 = arith.constant dense<0.000000e+00> : vector<32x6xf32>
    %28 = tpu.matmul %26, %27, %cst_12 {dimension_numbers = #tpu.dot_dimension_numbers<[1], [0], [0], [1], [0, 0, 1, 1], [], []>} : vector<32x3xf32>, vector<3x6xf32>, vector<32x6xf32> -> vector<32x6xf32>
    %29 = math.sin %28 : vector<32x6xf32>
    %30 = math.cos %28 : vector<32x6xf32>
    %31 = tpu.concatenate %26, %29, %30 in 1 : vector<32x3xf32>, vector<32x6xf32>, vector<32x6xf32> -> vector<32x15xf32>
    %c0_13 = arith.constant 0 : index
    %c0_14 = arith.constant 0 : index
    %32 = vector.load %arg6[%c0_13, %c0_14] : memref<1x32xf32, #tpu.memory_space<vmem>>, vector<1x32xf32>
    %c0_15 = arith.constant 0 : index
    %c0_16 = arith.constant 0 : index
    %33 = vector.load %arg7[%c0_15, %c0_16] : memref<144x32xbf16, #tpu.memory_space<vmem>>, vector<15x32xbf16>
    %34 = arith.truncf %31 : vector<32x15xf32> to vector<32x15xbf16>
    %cst_17 = arith.constant dense<0.000000e+00> : vector<32x32xf32>
    %35 = tpu.matmul %34, %33, %cst_17 {dimension_numbers = #tpu.dot_dimension_numbers<[1], [0], [0], [1], [0, 0, 1, 1], [], []>} : vector<32x15xbf16>, vector<15x32xbf16>, vector<32x32xf32> -> vector<32x32xf32>
    %c0_18 = arith.constant 0 : index
    %c0_19 = arith.constant 0 : index
    %36 = vector.load %arg8[%c0_18, %c0_19] : memref<5x32xf32, #tpu.memory_space<vmem>>, vector<1x32xf32>
    %37 = vector.broadcast %36 : vector<1x32xf32> to vector<32x32xf32>
    %38 = arith.addf %35, %37 : vector<32x32xf32>
    %39 = vector.broadcast %32 : vector<1x32xf32> to vector<32x32xf32>
    %40 = arith.addf %38, %39 : vector<32x32xf32>
    %cst_20 = arith.constant 0.000000e+00 : f32
    %41 = vector.broadcast %cst_20 : f32 to vector<32x32xf32>
    %42 = arith.maximumf %40, %41 : vector<32x32xf32>
    %c16 = arith.constant 16 : index
    %c0_21 = arith.constant 0 : index
    %43 = vector.load %arg7[%c16, %c0_21] : memref<144x32xbf16, #tpu.memory_space<vmem>>, vector<32x32xbf16>
    %44 = arith.truncf %42 : vector<32x32xf32> to vector<32x32xbf16>
    %cst_22 = arith.constant dense<0.000000e+00> : vector<32x32xf32>
    %45 = tpu.matmul %44, %43, %cst_22 {dimension_numbers = #tpu.dot_dimension_numbers<[1], [0], [0], [1], [0, 0, 1, 1], [], []>} : vector<32x32xbf16>, vector<32x32xbf16>, vector<32x32xf32> -> vector<32x32xf32>
    %c1 = arith.constant 1 : index
    %c0_23 = arith.constant 0 : index
    %46 = vector.load %arg8[%c1, %c0_23] : memref<5x32xf32, #tpu.memory_space<vmem>>, vector<1x32xf32>
    %47 = vector.broadcast %46 : vector<1x32xf32> to vector<32x32xf32>
    %48 = arith.addf %45, %47 : vector<32x32xf32>
    %cst_24 = arith.constant 0.000000e+00 : f32
    %49 = vector.broadcast %cst_24 : f32 to vector<32x32xf32>
    %50 = arith.maximumf %48, %49 : vector<32x32xf32>
    %c48 = arith.constant 48 : index
    %c0_25 = arith.constant 0 : index
    %51 = vector.load %arg7[%c48, %c0_25] : memref<144x32xbf16, #tpu.memory_space<vmem>>, vector<32x32xbf16>
    %52 = arith.truncf %50 : vector<32x32xf32> to vector<32x32xbf16>
    %cst_26 = arith.constant dense<0.000000e+00> : vector<32x32xf32>
    %53 = tpu.matmul %52, %51, %cst_26 {dimension_numbers = #tpu.dot_dimension_numbers<[1], [0], [0], [1], [0, 0, 1, 1], [], []>} : vector<32x32xbf16>, vector<32x32xbf16>, vector<32x32xf32> -> vector<32x32xf32>
    %c2 = arith.constant 2 : index
    %c0_27 = arith.constant 0 : index
    %54 = vector.load %arg8[%c2, %c0_27] : memref<5x32xf32, #tpu.memory_space<vmem>>, vector<1x32xf32>
    %55 = vector.broadcast %54 : vector<1x32xf32> to vector<32x32xf32>
    %56 = arith.addf %53, %55 : vector<32x32xf32>
    %cst_28 = arith.constant 0.000000e+00 : f32
    %57 = vector.broadcast %cst_28 : f32 to vector<32x32xf32>
    %58 = arith.maximumf %56, %57 : vector<32x32xf32>
    %c80 = arith.constant 80 : index
    %c0_29 = arith.constant 0 : index
    %59 = vector.load %arg7[%c80, %c0_29] : memref<144x32xbf16, #tpu.memory_space<vmem>>, vector<32x32xbf16>
    %60 = arith.truncf %58 : vector<32x32xf32> to vector<32x32xbf16>
    %cst_30 = arith.constant dense<0.000000e+00> : vector<32x32xf32>
    %61 = tpu.matmul %60, %59, %cst_30 {dimension_numbers = #tpu.dot_dimension_numbers<[1], [0], [0], [1], [0, 0, 1, 1], [], []>} : vector<32x32xbf16>, vector<32x32xbf16>, vector<32x32xf32> -> vector<32x32xf32>
    %c3 = arith.constant 3 : index
    %c0_31 = arith.constant 0 : index
    %62 = vector.load %arg8[%c3, %c0_31] : memref<5x32xf32, #tpu.memory_space<vmem>>, vector<1x32xf32>
    %63 = vector.broadcast %62 : vector<1x32xf32> to vector<32x32xf32>
    %64 = arith.addf %61, %63 : vector<32x32xf32>
    %cst_32 = arith.constant 0.000000e+00 : f32
    %65 = vector.broadcast %cst_32 : f32 to vector<32x32xf32>
    %66 = arith.maximumf %64, %65 : vector<32x32xf32>
    %c112 = arith.constant 112 : index
    %c0_33 = arith.constant 0 : index
    %67 = vector.load %arg7[%c112, %c0_33] : memref<144x32xbf16, #tpu.memory_space<vmem>>, vector<32x32xbf16>
    %68 = arith.truncf %66 : vector<32x32xf32> to vector<32x32xbf16>
    %cst_34 = arith.constant dense<0.000000e+00> : vector<32x32xf32>
    %69 = tpu.matmul %68, %67, %cst_34 {dimension_numbers = #tpu.dot_dimension_numbers<[1], [0], [0], [1], [0, 0, 1, 1], [], []>} : vector<32x32xbf16>, vector<32x32xbf16>, vector<32x32xf32> -> vector<32x32xf32>
    %c4 = arith.constant 4 : index
    %c0_35 = arith.constant 0 : index
    %70 = vector.load %arg8[%c4, %c0_35] : memref<5x32xf32, #tpu.memory_space<vmem>>, vector<1x32xf32>
    %71 = vector.broadcast %70 : vector<1x32xf32> to vector<32x32xf32>
    %72 = arith.addf %69, %71 : vector<32x32xf32>
    %73 = vector.extract_strided_slice %72 {offsets = [0, 0], sizes = [32, 3], strides = [1, 1]} : vector<32x32xf32> to vector<32x3xf32>
    %74 = arith.addf %26, %73 : vector<32x3xf32>
    %c0_36 = arith.constant 0 : index
    %c0_37 = arith.constant 0 : index
    %75 = vector.load %arg1[%c0_36, %c0_37] : memref<32x3xf32, #tpu.memory_space<vmem>>, vector<32x3xf32>
    %76 = arith.subf %75, %74 : vector<32x3xf32>
    %77 = arith.mulf %76, %76 : vector<32x3xf32>
    %cst_38 = arith.constant dense<0.000000e+00> : vector<32xf32>
    %78 = vector.multi_reduction <add>, %77, %cst_38 [1] : vector<32x3xf32> to vector<32xf32>
    %79 = vector.shape_cast %78 : vector<32xf32> to vector<32x1xf32>
    %80 = math.sqrt %79 : vector<32x1xf32>
    %81 = tpu.concatenate %74, %80 in 1 : vector<32x3xf32>, vector<32x1xf32> -> vector<32x4xf32>
    %c0_39 = arith.constant 0 : index
    %c0_40 = arith.constant 0 : index
    %82 = vector.load %arg9[%c0_39, %c0_40] : memref<32x4xf32, #tpu.memory_space<vmem>>, vector<32x4xf32>
    tpu.vector_store %arg9[%c0_39, %c0_40], %81 {strides = array<i32>} : memref<32x4xf32, #tpu.memory_space<vmem>>, vector<32x4xf32>,
    return
  }
  func.func @transform_0(%arg0: i32) -> (i32, i32) {
    %c0_i32 = arith.constant 0 : i32
    %c0_i32_0 = arith.constant 0 : i32
    return %arg0, %c0_i32 : i32, i32
  }
  func.func @transform_1(%arg0: i32) -> (i32, i32) {
    %c0_i32 = arith.constant 0 : i32
    %c0_i32_0 = arith.constant 0 : i32
    return %arg0, %c0_i32 : i32, i32
  }
  func.func @transform_2(%arg0: i32) -> (i32, i32) {
    %c0_i32 = arith.constant 0 : i32
    %c0_i32_0 = arith.constant 0 : i32
    return %arg0, %c0_i32 : i32, i32
  }
  func.func @transform_3(%arg0: i32) -> (i32, i32) {
    %c0_i32 = arith.constant 0 : i32
    %c0_i32_0 = arith.constant 0 : i32
    %c0_i32_1 = arith.constant 0 : i32
    return %c0_i32, %c0_i32_0 : i32, i32
  }
  func.func @transform_4(%arg0: i32) -> (i32, i32) {
    %c0_i32 = arith.constant 0 : i32
    %c0_i32_0 = arith.constant 0 : i32
    %c0_i32_1 = arith.constant 0 : i32
    return %c0_i32, %c0_i32_0 : i32, i32
  }
  func.func @transform_5(%arg0: i32) -> (i32, i32) {
    %c0_i32 = arith.constant 0 : i32
    %c0_i32_0 = arith.constant 0 : i32
    %c0_i32_1 = arith.constant 0 : i32
    return %c0_i32, %c0_i32_0 : i32, i32
  }
  func.func @transform_6(%arg0: i32) -> (i32, i32) {
    %c0_i32 = arith.constant 0 : i32
    %c0_i32_0 = arith.constant 0 : i32
    %c0_i32_1 = arith.constant 0 : i32
    return %c0_i32, %c0_i32_0 : i32, i32
  }
  func.func @transform_7(%arg0: i32) -> (i32, i32) {
    %c0_i32 = arith.constant 0 : i32
    %c0_i32_0 = arith.constant 0 : i32
    %c0_i32_1 = arith.constant 0 : i32
    return %c0_i32, %c0_i32_0 : i32, i32
  }
  func.func @transform_8(%arg0: i32) -> (i32, i32) {
    %c0_i32 = arith.constant 0 : i32
    %c0_i32_0 = arith.constant 0 : i32
    return %arg0, %c0_i32 : i32, i32
  }
}

module attributes {stable_mosaic.version = 11 : i64} {
  func.func @_raw2outputs_kernel(%arg0: i32, %arg1: memref<8x8x8xf32, #tpu.memory_space<vmem>>, %arg2: memref<8x8xf32, #tpu.memory_space<vmem>>, %arg3: memref<8x3xf32, #tpu.memory_space<vmem>>, %arg4: memref<1x3xf32, #tpu.memory_space<vmem>>, %arg5: memref<8x5xf32, #tpu.memory_space<vmem>>) attributes {dimension_semantics = [#tpu.dimension_semantics<arbitrary>], iteration_bounds = array<i64: 1>, scalar_prefetch = 0 : i64, scratch_operands = 0 : i64, tpu.core_type = #tpu.core_type<tc>, window_params = [{pipeline_mode = #tpu.pipeline_mode<synchronous>, transform_indices = @transform_0, window_bounds = array<i64: 8, 8, 8>}, {pipeline_mode = #tpu.pipeline_mode<synchronous>, transform_indices = @transform_1, window_bounds = array<i64: 8, 8>}, {pipeline_mode = #tpu.pipeline_mode<synchronous>, transform_indices = @transform_2, window_bounds = array<i64: 8, 3>}, {pipeline_mode = #tpu.pipeline_mode<synchronous>, transform_indices = @transform_3, window_bounds = array<i64: 1, 3>}, {pipeline_mode = #tpu.pipeline_mode<synchronous>, transform_indices = @transform_4, window_bounds = array<i64: 8, 5>}]} {
    %c0 = arith.constant 0 : index
    %c0_0 = arith.constant 0 : index
    %c0_1 = arith.constant 0 : index
    %0 = vector.load %arg1[%c0, %c0_0, %c0_1] : memref<8x8x8xf32, #tpu.memory_space<vmem>>, vector<8x8x8xf32>
    %c0_2 = arith.constant 0 : index
    %c0_3 = arith.constant 0 : index
    %1 = vector.load %arg2[%c0_2, %c0_3] : memref<8x8xf32, #tpu.memory_space<vmem>>, vector<8x8xf32>
    %c0_4 = arith.constant 0 : index
    %c0_5 = arith.constant 0 : index
    %2 = vector.load %arg3[%c0_4, %c0_5] : memref<8x3xf32, #tpu.memory_space<vmem>>, vector<8x3xf32>
    %c0_6 = arith.constant 0 : index
    %c0_7 = arith.constant 0 : index
    %3 = vector.load %arg4[%c0_6, %c0_7] : memref<1x3xf32, #tpu.memory_space<vmem>>, vector<1x3xf32>
    %4 = vector.extract_strided_slice %0 {offsets = [0, 0, 3], sizes = [8, 8, 1], strides = [1, 1, 1]} : vector<8x8x8xf32> to vector<8x8x1xf32>
    %5 = vector.shape_cast %4 : vector<8x8x1xf32> to vector<8x8xf32>
    %6 = vector.extract_strided_slice %0 {offsets = [0, 0, 4], sizes = [8, 8, 3], strides = [1, 1, 1]} : vector<8x8x8xf32> to vector<8x8x3xf32>
    %7 = arith.negf %6 : vector<8x8x3xf32>
    %8 = math.exp %7 : vector<8x8x3xf32>
    %cst = arith.constant 1.000000e+00 : f32
    %9 = vector.broadcast %cst : f32 to vector<8x8x3xf32>
    %10 = arith.addf %9, %8 : vector<8x8x3xf32>
    %11 = arith.divf %9, %10 : vector<8x8x3xf32>
    %12 = vector.extract_strided_slice %0 {offsets = [0, 0, 7], sizes = [8, 8, 1], strides = [1, 1, 1]} : vector<8x8x8xf32> to vector<8x8x1xf32>
    %13 = vector.shape_cast %12 : vector<8x8x1xf32> to vector<8x8xf32>
    %cst_8 = arith.constant 0.000000e+00 : f32
    %14 = vector.broadcast %cst_8 : f32 to vector<8x8xf32>
    %15 = arith.maximumf %13, %14 : vector<8x8xf32>
    %16 = vector.extract_strided_slice %1 {offsets = [0, 1], sizes = [8, 7], strides = [1, 1]} : vector<8x8xf32> to vector<8x7xf32>
    %17 = vector.extract_strided_slice %1 {offsets = [0, 0], sizes = [8, 7], strides = [1, 1]} : vector<8x8xf32> to vector<8x7xf32>
    %18 = arith.subf %16, %17 : vector<8x7xf32>
    %cst_9 = arith.constant 1.000000e+10 : f32
    %19 = vector.broadcast %cst_9 : f32 to vector<8x1xf32>
    %20 = tpu.concatenate %18, %19 in 1 : vector<8x7xf32>, vector<8x1xf32> -> vector<8x8xf32>
    %21 = arith.mulf %2, %2 : vector<8x3xf32>
    %cst_10 = arith.constant dense<0.000000e+00> : vector<8xf32>
    %22 = vector.multi_reduction <add>, %21, %cst_10 [1] : vector<8x3xf32> to vector<8xf32>
    %23 = vector.shape_cast %22 : vector<8xf32> to vector<8x1xf32>
    %24 = math.sqrt %23 : vector<8x1xf32>
    %25 = vector.broadcast %24 : vector<8x1xf32> to vector<8x8xf32>
    %26 = arith.mulf %20, %25 : vector<8x8xf32>
    %cst_11 = arith.constant 0.000000e+00 : f32
    %27 = vector.broadcast %cst_11 : f32 to vector<8x8xf32>
    %28 = arith.subf %27, %15 : vector<8x8xf32>
    %29 = arith.mulf %28, %26 : vector<8x8xf32>
    %30 = math.exp %29 : vector<8x8xf32>
    %cst_12 = arith.constant 1.000000e+00 : f32
    %31 = vector.broadcast %cst_12 : f32 to vector<8x8xf32>
    %32 = arith.subf %31, %30 : vector<8x8xf32>
    %33 = arith.mulf %32, %5 : vector<8x8xf32>
    %cst_13 = arith.constant 1.000000e+00 : f32
    %34 = vector.broadcast %cst_13 : f32 to vector<8x8xf32>
    %35 = arith.subf %34, %33 : vector<8x8xf32>
    %cst_14 = arith.constant 1.000000e-10 : f32
    %36 = vector.broadcast %cst_14 : f32 to vector<8x8xf32>
    %37 = arith.addf %35, %36 : vector<8x8xf32>
    %cst_15 = arith.constant 1.000000e-10 : f32
    %38 = vector.broadcast %cst_15 : f32 to vector<8x8xf32>
    %39 = arith.maximumf %37, %38 : vector<8x8xf32>
    %40 = math.log %39 : vector<8x8xf32>
    %41 = tpu.iota {dimensions = array<i32: 0>} : vector<8x8xi32>
    %42 = tpu.iota {dimensions = array<i32: 1>} : vector<8x8xi32>
    %43 = arith.cmpi slt, %41, %42 : vector<8x8xi32>
    %44 = arith.extui %43 : vector<8x8xi1> to vector<8x8xi32>
    %45 = arith.sitofp %44 : vector<8x8xi32> to vector<8x8xf32>
    %cst_16 = arith.constant dense<0.000000e+00> : vector<8x8xf32>
    %46 = tpu.matmul %40, %45, %cst_16 {dimension_numbers = #tpu.dot_dimension_numbers<[1], [0], [0], [1], [0, 0, 1, 1], [], []>} : vector<8x8xf32>, vector<8x8xf32>, vector<8x8xf32> -> vector<8x8xf32>
    %47 = math.exp %46 : vector<8x8xf32>
    %48 = arith.mulf %33, %47 : vector<8x8xf32>
    %49 = vector.shape_cast %48 : vector<8x8xf32> to vector<8x8x1xf32>
    %50 = vector.broadcast %49 : vector<8x8x1xf32> to vector<8x8x3xf32>
    %51 = arith.mulf %50, %11 : vector<8x8x3xf32>
    %cst_17 = arith.constant dense<0.000000e+00> : vector<8x3xf32>
    %52 = vector.multi_reduction <add>, %51, %cst_17 [1] : vector<8x8x3xf32> to vector<8x3xf32>
    %53 = arith.mulf %48, %1 : vector<8x8xf32>
    %cst_18 = arith.constant dense<0.000000e+00> : vector<8xf32>
    %54 = vector.multi_reduction <add>, %53, %cst_18 [1] : vector<8x8xf32> to vector<8xf32>
    %55 = vector.shape_cast %54 : vector<8xf32> to vector<8x1xf32>
    %cst_19 = arith.constant dense<0.000000e+00> : vector<8xf32>
    %56 = vector.multi_reduction <add>, %48, %cst_19 [1] : vector<8x8xf32> to vector<8xf32>
    %57 = vector.shape_cast %56 : vector<8xf32> to vector<8x1xf32>
    %cst_20 = arith.constant 1.000000e+00 : f32
    %58 = vector.broadcast %cst_20 : f32 to vector<8x1xf32>
    %59 = arith.subf %58, %57 : vector<8x1xf32>
    %60 = vector.broadcast %59 : vector<8x1xf32> to vector<8x3xf32>
    %61 = vector.broadcast %3 : vector<1x3xf32> to vector<8x3xf32>
    %62 = arith.mulf %60, %61 : vector<8x3xf32>
    %cst_21 = arith.constant 2.550000e+02 : f32
    %63 = vector.broadcast %cst_21 : f32 to vector<8x3xf32>
    %64 = arith.divf %62, %63 : vector<8x3xf32>
    %65 = arith.addf %52, %64 : vector<8x3xf32>
    %66 = tpu.concatenate %65, %57, %55 in 1 : vector<8x3xf32>, vector<8x1xf32>, vector<8x1xf32> -> vector<8x5xf32>
    %c0_22 = arith.constant 0 : index
    %c0_23 = arith.constant 0 : index
    %67 = vector.load %arg5[%c0_22, %c0_23] : memref<8x5xf32, #tpu.memory_space<vmem>>, vector<8x5xf32>
    tpu.vector_store %arg5[%c0_22, %c0_23], %66 {strides = array<i32>} : memref<8x5xf32, #tpu.memory_space<vmem>>, vector<8x5xf32>,
    return
  }
  func.func @transform_0(%arg0: i32) -> (i32, i32, i32) {
    %c0_i32 = arith.constant 0 : i32
    %c0_i32_0 = arith.constant 0 : i32
    %c0_i32_1 = arith.constant 0 : i32
    %c0_i32_2 = arith.constant 0 : i32
    return %c0_i32, %c0_i32_0, %c0_i32_1 : i32, i32, i32
  }
  func.func @transform_1(%arg0: i32) -> (i32, i32) {
    %c0_i32 = arith.constant 0 : i32
    %c0_i32_0 = arith.constant 0 : i32
    %c0_i32_1 = arith.constant 0 : i32
    return %c0_i32, %c0_i32_0 : i32, i32
  }
  func.func @transform_2(%arg0: i32) -> (i32, i32) {
    %c0_i32 = arith.constant 0 : i32
    %c0_i32_0 = arith.constant 0 : i32
    %c0_i32_1 = arith.constant 0 : i32
    return %c0_i32, %c0_i32_0 : i32, i32
  }
  func.func @transform_3(%arg0: i32) -> (i32, i32) {
    %c0_i32 = arith.constant 0 : i32
    %c0_i32_0 = arith.constant 0 : i32
    %c0_i32_1 = arith.constant 0 : i32
    return %c0_i32, %c0_i32_0 : i32, i32
  }
  func.func @transform_4(%arg0: i32) -> (i32, i32) {
    %c0_i32 = arith.constant 0 : i32
    %c0_i32_0 = arith.constant 0 : i32
    %c0_i32_1 = arith.constant 0 : i32
    return %c0_i32, %c0_i32_0 : i32, i32
  }
}

</mosaic_0001>

<bundles_post_ra>
// kernel: custom-call.48
= control target key start
LH: loop header
LB: loop body
LE: loop exit
PB: predicated region body
PF: predicated region fallthrough
CT: control target
= control target key end

     0   :  { %5 = vsyncpa [#allocation5], 0  ;;  %s884_s0 = inlined_call_operand.vmem [shape: f32[24,3,3], index: 0, kind: input, shape index: {}]   ;;  %s885_s1 = inlined_call_operand.vmem [shape: f32[24,3,3], index: 1, kind: output, shape index: {0}]   ;;  %s886_s2 = inlined_call_operand.hbm [shape: s32[24,3], index: 2, kind: output, shape index: {1}]   ;;  %s887_s3 = inlined_call_operand.vmem [shape: s32[24,3], index: 3, kind: output, shape index: {2}]  }
   0x1   :  { %7 = vsyncpa [#allocation5 + $0x1], 0  ;;  %s704_s12 = smov 0   ;;  %s706_s13 = smov 0  }
   0x2   :  { %s708_s14 = smov 0   ;;  %s710_s15 = smov 0  }
   0x3 LB: > { %s725_s16 = sadd.s32 4294967295, %s676_s15   ;;  %s539_s17 = sadd.s32 4294967294, %s676_s15   ;;  %s676_s15 = sphi %s710_s15, %s895_s15   ;;  %s672_s14 = sphi %s708_s14, %s894_s14   ;;  %s668_s13 = sphi %s706_s13, %s893_s13   ;;  %s664_s12 = sphi %s704_s12, %s892_s12  }
   0x4   : > { %s729_s18 = sadd.s32 1, %s676_s15   ;;  %s17_s19 = sshrl.u32 %s676_s15, 3 }
   0x5   : > { %s18_s20 = sshrl.u32 %s729_s18, 3  ;;  %s22_s21 = sadd.s32 1, %s672_s14 }
   0x6   : > { %s19_s22 = ssub.s32 %s17_s19, %s18_s20  ;;  %p32_p0 = scmp.ne.s32.totalorder %s672_s14, %s668_s13 }
   0x7   : > { %p20_p1 = scmp.eq.s32.totalorder %s19_s22, 0  ;;  %p33_p2 = scmp.eq.s32.totalorder %s725_s16, 23 }
   0x8   : > { %p38_p3 = scmp.ne.s32.totalorder %s668_s13, %s664_s12  ;;  %p39_p4 = scmp.eq.s32.totalorder %s539_s17, 23 }
   0x9   : > { %s740_s23 = scalar_select %p20_p1, %s672_s14, %s22_s21  }
   0xa   : > { %p742_p5 = por %p33_p2, %p32_p0  ;;  %p746_p6 = por %p39_p4, %p38_p3 }
   0xb   : > { %p541_p7 = scmp.ge.s32.totalorder %s676_s15, 24 }
   0xc   : > { %s85_s26 = sand.u32 (!%p541_p7), 1, %s676_s15   ;;  %s543_s27 = sshll.u32 (!%p541_p7), %s676_s15, 2 }
   0xd   : > { %83 = sbr.rel (%p541_p7) target bundleno = 20 (0x14), region = 16  ;;  %s542_s28 = sshll.u32 (!%p541_p7), %s85_s26, 2 }
   0xe   : > { %s89_s4 = scalar_lea.vmem (!%p541_p7), %s884_s0, %s543_s27  ;;  %s87_s5 = scalar_lea.vmem (!%p541_p7), [#allocation1], %s542_s28 }
   0xf   : > { %v105_v0 = vld [vmem:[%s89_s4] sm:$0xf] (!%p541_p7) }
  0x10   : > { %106 = vst [vmem:[%s87_s5] sm:$0xf] (!%p541_p7), %v105_v0 }
  0x14 PF: > { %p544_p8 = scmp.ge.s32.totalorder %s676_s15, 1  ;;  %p122_p9 = scmp.lt.s32.totalorder %s676_s15, 25 }
  0x16   : > { %p123_p10 = pnand %p544_p8, %p122_p9 }
  0x18   : > { %126 = sbr.rel (%p123_p10) target bundleno = 441 (0x1b9), region = 50 }
  0x1f   : > { %s133_s6 = sand.u32 1, %s725_s16   ;;  %s144_s7 = sand.u32 1, %s668_s13   ;;  %v166_v1 = vlaneseq  ;;  %v682_v4 = vmov 0  }
  0x20   : > { %s760_s8 = sshll.u32 %s133_s6, 2  ;;  %s764_s9 = sshll.u32 %s144_s7, 3 }
  0x21   : > { %v767_v2 = vshrl.u32 %v166_v1, 7  ;;  %s135_s10 = scalar_lea.vmem [#allocation1], %s760_s8  ;;  %s161_s11 = sand.u32 7, %s725_s16  }
  0x22   : > { %v155_v3 = vld [vmem:[%s135_s10] sm:$0xf]  ;;  %s146_s17 = scalar_lea.vmem [#allocation4], %s764_s9  ;;  %s888_s20 = scalar_lea.vmem [#allocation6], %s764_s9 }
  0x23   : > { %156 = vst [vmem:[#allocation0] sm:$0xf] %v155_v3  ;;  %170 = vst [vmem:[#allocation7] sm:$0xff] %v767_v2  ;;  %s775_s19 = scalar_lea.vmem %s146_s17, %s161_s11 [#allocation4]  ;;  %s780_s21 = scalar_lea.vmem %s888_s20, %s161_s11 [#allocation6] }
  0x24   : > { %165 = vst [vmem:[%s775_s19] sm:$0x1] %v682_v4  ;;  %s139_s22 = scalar_lea.vmem [#allocation3], %s760_s8  ;;  %s784_s26 = smov 0  }
  0x2a   : > { %v159_v5 = vld [vmem:[#allocation0] sm:$0xff] }
  0x2b   : > { %160 = vst [vmem:[#allocation2] sm:$0xff] %v159_v5 }
  0x2c LB: >> { %vm186_vm0 = vcmp.lt.s32.totalorder %v767_v2, 3  ;;  %v791_v8 = vstv %s680_s26  ;;  %s227_s27 = ssub.s32 128, %s680_s26  ;;  %v233_v38 = vand.u32 127, %v166_v1  ;;  %v236_v40 = vld [vmem:[%s775_s19] ss:$0 sm:$0xff]  ;;  %s239_s28 = scalar_lea.vmem [#allocation2], %s680_s26  ;;  %s680_s26 = sphi %s784_s26, %s176_s26  }
  0x2d   : >> { %vm185_vm1 = vcmp.ge.s32.totalorder %v767_v2, %v791_v8  ;;  %s245_s30 = scalar_lea.vmem [#allocation7], %s680_s26  ;;  %vm265_vm15 = vcmp.gt.s32.totalorder %v767_v2, %v791_v8  ;;  %s176_s26 = sadd.s32 1, %s680_s26  }
  0x2e   : >> { %vm187_vm3 = vmand %vm185_vm1, %vm186_vm0  ;;  %vm257_vm12 = vcmp.gt.s32.totalorder %v233_v38, %v791_v8  ;;  %vm234_vm13 = vcmp.eq.s32.totalorder %v233_v38, %v791_v8  ;;  %v247_v42 = vld [vmem:[%s245_s30] ss:$0 sm:$0xff]  ;;  %p173_p11 = scmp.ge.s32.totalorder %s176_s26, 3  }
  0x2f   : >> { %vm269_vm1 = vmand %vm265_vm15, %vm234_vm13  ;;  %s380_s6 = sshrl.u32 (%p173_p11), %s725_s16, 3  ;;  %s553_s10 = sshll.u32 (%p173_p11), %s725_s16, 2 }
  0x30   : > { %s554_s11 = sshll.u32 (%p173_p11), %s380_s6, 7 }
  0x32   : >> { %v181_v6 = vld [vmem:[#allocation2] sm:$0xff]  ;;  %v241_v41 = vld [vmem:[%s239_s28] ss:$0 sm:$0xff] }
  0x33   : >> { %v182_v7 = vand.u32 2147483647, %v181_v6 }
  0x35   : >> { %vm549_vm2 = vcmp.gt.f32.partialorder %v182_v7, -inf }
  0x36   : >> { %vm189_vm4 = vmand %vm187_vm3, %vm549_vm2 }
  0x37   : >> { %v190_v9 = vsel %vm189_vm4, %v767_v2, %v791_v8  ;;  %v191_v10 = vsel %vm189_vm4, %v182_v7, -inf }
  0x38   : >> { %v192_v11 = vrot.slane %v191_v10, 1  ;;  %v193_v12 = vrot.slane %v190_v9, 1 }
  0x3a   : >> { %vm194_vm5 = vcmp.ge.f32.partialorder %v192_v11, %v191_v10  ;;  %v197_v13 = vrot.slane %v192_v11, 1  ;;  %v198_v14 = vrot.slane %v193_v12, 1 }
  0x3b   : >> { %v195_v15 = vsel %vm194_vm5, %v192_v11, %v191_v10  ;;  %v196_v16 = vsel %vm194_vm5, %v193_v12, %v190_v9 }
  0x3c   : >> { %vm199_vm6 = vcmp.ge.f32.partialorder %v197_v13, %v195_v15  ;;  %v202_v17 = vrot.slane %v197_v13, 1  ;;  %v203_v18 = vrot.slane %v198_v14, 1 }
  0x3d   : >> { %v200_v19 = vsel %vm199_vm6, %v197_v13, %v195_v15  ;;  %v201_v20 = vsel %vm199_vm6, %v198_v14, %v196_v16 }
  0x3e   : >> { %vm204_vm7 = vcmp.ge.f32.partialorder %v202_v17, %v200_v19  ;;  %v207_v21 = vrot.slane %v202_v17, 1  ;;  %v208_v22 = vrot.slane %v203_v18, 1 }
  0x3f   : >> { %v205_v23 = vsel %vm204_vm7, %v202_v17, %v200_v19  ;;  %v206_v24 = vsel %vm204_vm7, %v203_v18, %v201_v20 }
  0x40   : >> { %vm209_vm8 = vcmp.ge.f32.partialorder %v207_v21, %v205_v23  ;;  %v212_v25 = vrot.slane %v207_v21, 1  ;;  %v213_v26 = vrot.slane %v208_v22, 1 }
  0x41   : >> { %v210_v27 = vsel %vm209_vm8, %v207_v21, %v205_v23  ;;  %v211_v28 = vsel %vm209_vm8, %v208_v22, %v206_v24 }
  0x42   : >> { %vm214_vm9 = vcmp.ge.f32.partialorder %v212_v25, %v210_v27  ;;  %v217_v29 = vrot.slane %v212_v25, 1  ;;  %v218_v30 = vrot.slane %v213_v26, 1 }
  0x43   : >> { %v215_v31 = vsel %vm214_vm9, %v212_v25, %v210_v27  ;;  %v216_v32 = vsel %vm214_vm9, %v213_v26, %v211_v28 }
  0x44   : >> { %vm219_vm10 = vcmp.ge.f32.partialorder %v217_v29, %v215_v31  ;;  %v222_v33 = vrot.slane %v217_v29, 1  ;;  %v223_v34 = vrot.slane %v218_v30, 1 }
  0x45   : >> { %v220_v35 = vsel %vm219_vm10, %v217_v29, %v215_v31  ;;  %v221_v36 = vsel %vm219_vm10, %v218_v30, %v216_v32 }
  0x46   : >> { %vm224_vm11 = vcmp.ge.f32.partialorder %v222_v33, %v220_v35 }
  0x47   : >> { %v226_v37 = vsel %vm224_vm11, %v223_v34, %v221_v36 }
  0x48   : >> { %228 = vrot.lane.b32.xlu0 %v226_v37, %s227_s27  ;;  %s387_s27 = sshll.u32 (%p173_p11), %s146_s17, 4  ;;  %s388_s27 = int_to_ptr.vmem [resolvable:$true] %s387_s27 }
  0xba   : >> { %v229_v39 = vpop.permute.xlu0 %228 }
  0xbb   : >> { %558 = vpush %v229_v39 }
  0xec   : >> { %s559_s29 = spop %558 }
  0xed   : >> { %v235_v43 = vstv %s559_s29  ;;  %s240_s4 = scalar_lea.vmem [#allocation2], %s559_s29  ;;  %s246_s5 = scalar_lea.vmem [#allocation7], %s559_s29 }
  0xee   : >> { %v242_v44 = vld [vmem:[%s240_s4] ss:$0 sm:$0xff]  ;;  %v237_v46 = vsel %vm234_vm13, %v235_v43, %v236_v40  ;;  %s336_s29 = scalar_lea.sflag (%p173_p11), [#allocation5], %s144_s7 }
  0xef   : >> { %v248_v45 = vld [vmem:[%s246_s5] ss:$0 sm:$0xff]  ;;  %243 = vst [vmem:[%s240_s4] sm:$0x1] %v241_v41  ;;  %vm251_vm14 = vcmp.ne.f32.partialorder %v242_v44, 0.0  ;;  %238 = vst [vmem:[%s775_s19] sm:$0x1] %v237_v46  ;;  %v258_v53 = vsel %vm257_vm12, %v242_v44, 0.0  ;;  %s829_s19 = scalar_lea.hbm (%p173_p11), %s886_s2, %s554_s11 }
  0xf0   : >> { %249 = vst [vmem:[%s246_s5] sm:$0x1] %v247_v42  ;;  %244 = vst [vmem:[%s239_s28] sm:$0x1] %v242_v44  ;;  %s683_s4 = smov (%p173_p11), [#allocation4]  }
  0xf1   : >> { %250 = vst [vmem:[%s245_s30] sm:$0x1] %v248_v45  ;;  %vm252_vm0 = vmand %vm234_vm13, %vm251_vm14  ;;  %s610_s30 = scalar_lea.vmem (%p173_p11), %s388_s27, 128  ;;  %s614_s5 = sshll.u32 (%p173_p11), %s683_s4, 4  ;;  %s615_s5 = int_to_ptr.vmem [resolvable:$false] %s614_s5 }
  0xf2   : >> { %v253_v47 = vsel %vm252_vm0, %v242_v44, 1.0  ;;  %p611_p12 = scmp.ne.s32.totalorder (%p173_p11), %s388_s27, %s610_s30  ;;  %s616_s20 = scalar_lea.vmem (%p173_p11), %s615_s5, 256 }
  0xf3   : >> { %v266_v48 = vsel %vm265_vm15, %v253_v47, 1.0  ;;  %p617_p1 = scmp.lt.s32.totalorder (%p173_p11), %s388_s27, %s615_s5  ;;  %p618_p2 = scmp.lt.s32.totalorder (%p173_p11), %s616_s20, %s610_s30 }
  0xf4   : >> { %608 = vrcp.f32 %v266_v48  ;;  %p612_p13 = pnand (%p173_p11), %p611_p12, %p742_p5 }
  0xf5   : > { %p619_p3 = por (%p173_p11), %p618_p2, %p617_p1 }
  0xf6   : > { %p613_p0 = pneg (%p173_p11), %p612_p13 }
  0xf7   : >> { %v262_v50 = vld [vmem:[#allocation2] sm:$0xff] }
  0xf8   : > { %v276_v57 = vld [vmem:[#allocation7] sm:$0xff] (%p173_p11)  ;;  %p620_p4 = pnand (%p173_p11), %p619_p3, %p613_p0 }
  0xfe   : >> { %v609_v49 = vpop.eup %608 }
  0xff   : >> { %v268_v51 = vmul.f32 %v609_v49, %v262_v50 }
 0x101   : >> { %v270_v52 = vsel %vm269_vm1, %v268_v51, 0.0 }
 0x102   : >> { %271 = vadd.xlane.f32.xlu0 %v270_v52 }
 0x12f   : > { %292 = vxpose.xlu0.b32.start.end [1/1] (short) (narrow) (%p173_p11), %v276_v57, 8 }
 0x18e   : > { %175 = sbr.rel (!%p173_p11) target bundleno = 44 (0x2c), region = 206 }
 0x18f   : >> { %v272_v54 = vpop.xlane.xlu0 %271 }
 0x190   : >> { %v273_v55 = vmul.f32 %v272_v54, %v258_v53 }
 0x192   : >> { %v274_v56 = vsub.f32 %v268_v51, %v273_v55 }
 0x194   : >> { %275 = vst [vmem:[#allocation2] sm:$0xff] %v274_v56 }
 0x19b   : > { %v328_v58 = vld [vmem:[#allocation2] sm:$0xf] }
 0x19c   : > { %330 = vst [vmem:[%s139_s22] sm:$0xf] %v328_v58 }
 0x19d   : > { %623 = shalt.err (!%p620_p4)
}
 0x19e   : > { %s624_s7 = scalar_lea.hbm %s829_s19, 128  ;;  %s628_s26 = scalar_lea.hbm %s886_s2, 384 }
 0x19f   : > { %p625_p7 = scmp.ne.s32.totalorder %s829_s19, %s624_s7  ;;  %p629_p10 = scmp.lt.u32.totalorder %s829_s19, %s886_s2 }
 0x1a0   : > { %p630_p11 = scmp.lt.u32.totalorder %s628_s26, %s624_s7  ;;  %p632_p13 = scmp.lt.u32.totalorder %s624_s7, %s829_s19 }
 0x1a1   : > { %p626_p8 = pnand %p625_p7, %p742_p5 }
 0x1a2   : > { %p631_p12 = por %p630_p11, %p629_p10 }
 0x1a3   : > { %p627_p9 = pneg %p626_p8 }
 0x1a4   : > { %p633_p0 = por %p632_p13, %p631_p12 }
 0x1a6   : > { %p634_p1 = pnand %p633_p0, %p627_p9 }
 0x1a8   : > { %637 = shalt.err (!%p634_p1)
}
 0x1a9   : > { %560 = dma.vmem_to_hbm [thread:$0]  (%p742_p5), %s388_s27, 128, %s829_s19, %s336_s29   ;;  %v361_v59 = vld [vmem:[%s139_s22] sm:$0xf] }
 0x1aa   : > { %s345_s5 = scalar_lea.vmem %s885_s1, %s553_s10  ;;  %393 = sbr.rel (!%p742_p5) target bundleno = 441 (0x1b9), region = 96 }
 0x1ab   : > { %362 = vst [vmem:[%s345_s5] sm:$0xf] %v361_v59  ;;  %s555_s7 = sshll.u32 (%p742_p5), %s380_s6, 3  ;;  %s891_s17 = scalar_lea.vmem (%p742_p5), [#allocation6], %s764_s9 }
 0x1ac   : > { %s396_s29 = scalar_lea.vmem (%p742_p5), %s887_s3, %s555_s7 }
 0x1af   : > { %v308_v60 = vpop.trf.xlu0 }
 0x1b0   : > { %324 = vst [vmem:[%s780_s21] sm:$0x1] %v308_v60 }
 0x1b7   : > { %v424_v61 = vld [vmem:[%s891_s17] sm:$0xff] }
 0x1b8   : > { %425 = vst [vmem:[%s396_s29] sm:$0xff] %v424_v61 }
 0x1b9 PF: > { %p566_p2 = scmp.ge.s32.totalorder %s676_s15, 2  ;;  %s441_s8 = sand.u32 1, %s664_s12  }
 0x1ba   : > { %s442_s24 = scalar_lea.sflag [#allocation5], %s441_s8 }
 0x1bb   : > { %p563_p5 = pnand %p566_p2, %p746_p6 }
 0x1bd   : > { %659 = dma.done.wait (!%p563_p5), %s442_s24, 128  }
 0x1be   : > { %661 = vsyncadd (!%p563_p5), %s442_s24, 4294967168  ;;  %p10_p3 = scmp.ge.s32.totalorder %s729_s18, 26   ;;  %s892_s12 = smov %s668_s13 }
 0x1bf   : > { %s893_s13 = smov %s672_s14  ;;  %s894_s14 = smov %s740_s23 }
 0x1c0   : > { %s895_s15 = smov %s729_s18  ;;  %12 = sbr.rel (!%p10_p3) target bundleno = 3 (0x3), region = 217 }
 0x1c7   :  { %454 = vsyncpa [#allocation5], 1 }
 0x1c8   :  { %456 = vsyncpa [#allocation5 + $0x1], 1 }

// kernel: custom-call.51
= control target key start
LH: loop header
LB: loop body
LE: loop exit
PB: predicated region body
PF: predicated region fallthrough
CT: control target
= control target key end

     0   :  { %s343_s6 = smov 0   ;;  %s345_s7 = smov 0   ;;  %s390_s0 = inlined_call_operand.vmem [shape: f32[24,1,3,3], index: 0, kind: input, shape index: {}]   ;;  %s391_s1 = inlined_call_operand.vmem [shape: f32[24,1,3,3], index: 1, kind: output, shape index: {}]  }
   0x1   :  { %s347_s8 = smov 0  }
   0x2 LB: > { %s269_s9 = sadd.s32 4294967295, %s330_s8   ;;  %s33_s10 = sadd.s32 1, %s326_s7  ;;  %s330_s8 = sphi %s347_s8, %s7_s8   ;;  %s326_s7 = sphi %s345_s7, %s393_s7   ;;  %s322_s6 = sphi %s343_s6, %s392_s6  }
   0x3   : > { %p35_p0 = scmp.ge.s32.totalorder %s33_s10, 24  ;;  %p271_p1 = scmp.ge.s32.totalorder %s330_s8, 24 }
   0x4   : > { %s49_s11 = sand.u32 (!%p271_p1), 1, %s330_s8   ;;  %s273_s12 = sshll.u32 (!%p271_p1), %s326_s7, 2 }
   0x5   : > { %s395_s10 = smov (%p35_p0, %s33_s10), 0  ;;  %47 = sbr.rel (%p271_p1) target bundleno = 12 (0xc), region = 16 }
   0x6   : > { %s272_s13 = sshll.u32 (!%p271_p1), %s49_s11, 2  ;;  %s56_s16 = scalar_lea.vmem (!%p271_p1), %s390_s0, %s273_s12 }
   0x7   : > { %v72_v0 = vld [vmem:[%s56_s16] sm:$0xf] (!%p271_p1)  ;;  %s51_s17 = scalar_lea.vmem (!%p271_p1), [#allocation1], %s272_s13 }
   0x8   : > { %73 = vst [vmem:[%s51_s17] sm:$0xf] (!%p271_p1), %v72_v0 }
   0xc PF: > { %p274_p2 = scmp.ge.s32.totalorder %s330_s8, 1  ;;  %p89_p3 = scmp.lt.s32.totalorder %s330_s8, 25 }
   0xe   : > { %p90_p4 = pnand %p274_p2, %p89_p3 }
  0x10   : > { %93 = sbr.rel (%p90_p4) target bundleno = 511 (0x1ff), region = 50 }
  0x17   : > { %s370_s18 = sand.u32 1, %s269_s9   ;;  %v111_v1 = vlaneseq  ;;  %v332_v11 = vmov -1.0   ;;  %s278_s22 = sshll.u32 %s322_s6, 2 }
  0x18   : > { %s275_s19 = sshll.u32 %s370_s18, 2  ;;  %s178_s25 = scalar_lea.vmem %s391_s1, %s278_s22 }
  0x19   : > { %s102_s20 = scalar_lea.vmem [#allocation1], %s275_s19  ;;  %v112_v3 = vand.u32 127, %v111_v1  ;;  %v115_v4 = vshrl.u32 %v111_v1, 7  ;;  %s106_s21 = scalar_lea.vmem [#allocation3], %s275_s19 }
  0x1a   : > { %v109_v2 = vld [vmem:[%s102_s20] sm:$0xf] }
  0x1b   : > { %110 = vst [vmem:[#allocation0] sm:$0xf] %v109_v2  ;;  %vm113_vm0 = vcmp.lt.s32.totalorder %v112_v3, 3  ;;  %vm122_vm1 = vcmp.ge.s32.totalorder %v115_v4, %v112_v3  ;;  %vm117_vm2 = vcmp.eq.s32.totalorder %v115_v4, %v112_v3  ;;  %vm136_vm4 = vcmp.eq.s32.totalorder %v112_v3, 0 }
  0x1c   : > { %vm123_vm3 = vmand %vm122_vm1, %vm113_vm0  ;;  %vm133_vm5 = vcmp.eq.s32.totalorder %v112_v3, %v115_v4  ;;  %v137_v12 = vsel %vm136_vm4, 1.0, %v332_v11  ;;  %vm144_vm6 = vcmp.eq.s32.totalorder %v112_v3, 1  ;;  %vm154_vm7 = vcmp.eq.s32.totalorder %v112_v3, 2 }
  0x1d   : > { %v138_v13 = vsel %vm133_vm5, %v137_v12, 0.0 }
  0x22   : > { %v118_v5 = vld [vmem:[#allocation0] sm:$0xff] }
  0x23   : > { %v119_v6 = vsel %vm117_vm2, %v118_v5, 0.0  ;;  %v124_v7 = vsel %vm123_vm3, %v118_v5, 0.0 }
  0x24   : > { %120 = vadd.xlane.f32.xlu0 %v119_v6 }
  0xb1   : > { %v121_v8 = vpop.xlane.xlu0 %120 }
  0xb2   : > { %306 = vrcp.f32 %v121_v8  ;;  %vm161_vm8 = vweird.f32 %v121_v8 }
  0xbc   : > { %v307_v9 = vpop.eup %306 }
  0xbd   : > { %v126_v10 = vmul.f32 %v307_v9, %v124_v7 }
  0xbf   : > { %127 = vst [vmem:[#allocation4] sm:$0xff] %v126_v10 }
  0xc6   : > { %v140_v14 = vld [vmem:[#allocation4 + $0x1] ss:$0 sm:$0xff]  ;;  %v150_v17 = vld [vmem:[#allocation4 + $0x2] ss:$0 sm:$0xff] }
  0xc7   : > { %v141_v15 = vxor.u32 2147483648, %v140_v14  ;;  %v151_v19 = vxor.u32 2147483648, %v150_v17 }
  0xc9   : > { %v145_v16 = vmul.f32 %v141_v15, %v138_v13 }
  0xcb   : > { %146 = vadd.xlane.f32.xlu0 %v145_v16 }
 0x158   : > { %v147_v18 = vpop.xlane.xlu0 %146 }
 0x159   : > { %v148_v20 = vsel %vm144_vm6, %v147_v18, %v138_v13 }
 0x15a   : > { %v155_v21 = vmul.f32 %v151_v19, %v148_v20 }
 0x15c   : > { %156 = vadd.xlane.f32.xlu1 %v155_v21 }
 0x1e9   : > { %v157_v22 = vpop.xlane.xlu1 %156 }
 0x1ea   : > { %v158_v23 = vsel %vm154_vm7, %v157_v22, %v148_v20 }
 0x1eb   : > { %v160_v24 = vmul.f32 %v307_v9, %v158_v23 }
 0x1ed   : > { %v162_v25 = vsel %vm161_vm8, %v158_v23, %v160_v24 }
 0x1ee   : > { %163 = vst [vmem:[#allocation2] sm:$0xff] %v162_v25 }
 0x1f5   : > { %v167_v26 = vld [vmem:[#allocation2] sm:$0xf] }
 0x1f6   : > { %169 = vst [vmem:[%s106_s21] sm:$0xf] %v167_v26 }
 0x1fd   : > { %v194_v27 = vld [vmem:[%s106_s21] sm:$0xf] }
 0x1fe   : > { %195 = vst [vmem:[%s178_s25] sm:$0xf] %v194_v27 }
 0x1ff PF: > { %s7_s8 = sadd.s32 1, %s330_s8   ;;  %s392_s6 = smov %s326_s7 }
 0x200   : > { %p4_p5 = scmp.ge.s32.totalorder %s7_s8, 26   ;;  %s393_s7 = smov %s395_s10 }
 0x202   :  { %6 = sbr.rel (!%p4_p5) target bundleno = 2 (0x2), region = 112 }

// kernel: custom-call.50
= control target key start
LH: loop header
LB: loop body
LE: loop exit
PB: predicated region body
PF: predicated region fallthrough
CT: control target
= control target key end

     0   :  { %s342_s6 = smov 0   ;;  %s344_s7 = smov 0   ;;  %s389_s0 = inlined_call_operand.vmem [shape: f32[24,1,3,3], index: 0, kind: input, shape index: {}]   ;;  %s390_s1 = inlined_call_operand.vmem [shape: f32[24,1,3,3], index: 1, kind: output, shape index: {}]  }
   0x1   :  { %s346_s8 = smov 0  }
   0x2 LB: > { %s268_s9 = sadd.s32 4294967295, %s329_s8   ;;  %s33_s10 = sadd.s32 1, %s325_s7  ;;  %s329_s8 = sphi %s346_s8, %s7_s8   ;;  %s325_s7 = sphi %s344_s7, %s392_s7   ;;  %s321_s6 = sphi %s342_s6, %s391_s6  }
   0x3   : > { %p35_p0 = scmp.ge.s32.totalorder %s33_s10, 24  ;;  %p270_p1 = scmp.ge.s32.totalorder %s329_s8, 24 }
   0x4   : > { %s49_s11 = sand.u32 (!%p270_p1), 1, %s329_s8   ;;  %s272_s12 = sshll.u32 (!%p270_p1), %s325_s7, 2 }
   0x5   : > { %s394_s10 = smov (%p35_p0, %s33_s10), 0  ;;  %47 = sbr.rel (%p270_p1) target bundleno = 12 (0xc), region = 16 }
   0x6   : > { %s271_s13 = sshll.u32 (!%p270_p1), %s49_s11, 2  ;;  %s56_s16 = scalar_lea.vmem (!%p270_p1), %s389_s0, %s272_s12 }
   0x7   : > { %v72_v0 = vld [vmem:[%s56_s16] sm:$0xf] (!%p270_p1)  ;;  %s51_s17 = scalar_lea.vmem (!%p270_p1), [#allocation1], %s271_s13 }
   0x8   : > { %73 = vst [vmem:[%s51_s17] sm:$0xf] (!%p270_p1), %v72_v0 }
   0xc PF: > { %p273_p2 = scmp.ge.s32.totalorder %s329_s8, 1  ;;  %p89_p3 = scmp.lt.s32.totalorder %s329_s8, 25 }
   0xe   : > { %p90_p4 = pnand %p273_p2, %p89_p3 }
  0x10   : > { %93 = sbr.rel (%p90_p4) target bundleno = 511 (0x1ff), region = 50 }
  0x17   : > { %s369_s18 = sand.u32 1, %s268_s9   ;;  %v111_v1 = vlaneseq  ;;  %v331_v11 = vmov -1.0   ;;  %s277_s22 = sshll.u32 %s321_s6, 2 }
  0x18   : > { %s274_s19 = sshll.u32 %s369_s18, 2  ;;  %s177_s25 = scalar_lea.vmem %s390_s1, %s277_s22 }
  0x19   : > { %s102_s20 = scalar_lea.vmem [#allocation1], %s274_s19  ;;  %v112_v3 = vand.u32 127, %v111_v1  ;;  %v115_v4 = vshrl.u32 %v111_v1, 7  ;;  %s106_s21 = scalar_lea.vmem [#allocation3], %s274_s19 }
  0x1a   : > { %v109_v2 = vld [vmem:[%s102_s20] sm:$0xf] }
  0x1b   : > { %110 = vst [vmem:[#allocation0] sm:$0xf] %v109_v2  ;;  %vm113_vm0 = vcmp.lt.s32.totalorder %v112_v3, 3  ;;  %vm122_vm1 = vcmp.le.s32.totalorder %v115_v4, %v112_v3  ;;  %vm117_vm2 = vcmp.eq.s32.totalorder %v115_v4, %v112_v3  ;;  %vm136_vm4 = vcmp.eq.s32.totalorder %v112_v3, 2 }
  0x1c   : > { %vm123_vm3 = vmand %vm122_vm1, %vm113_vm0  ;;  %vm133_vm5 = vcmp.eq.s32.totalorder %v112_v3, %v115_v4  ;;  %v137_v12 = vsel %vm136_vm4, 1.0, %v331_v11  ;;  %vm144_vm6 = vcmp.eq.s32.totalorder %v112_v3, 1  ;;  %vm153_vm7 = vcmp.eq.s32.totalorder %v112_v3, 0 }
  0x1d   : > { %v138_v13 = vsel %vm133_vm5, %v137_v12, 0.0 }
  0x22   : > { %v118_v5 = vld [vmem:[#allocation0] sm:$0xff] }
  0x23   : > { %v119_v6 = vsel %vm117_vm2, %v118_v5, 0.0  ;;  %v124_v7 = vsel %vm123_vm3, %v118_v5, 0.0 }
  0x24   : > { %120 = vadd.xlane.f32.xlu0 %v119_v6 }
  0xb1   : > { %v121_v8 = vpop.xlane.xlu0 %120 }
  0xb2   : > { %305 = vrcp.f32 %v121_v8  ;;  %vm160_vm8 = vweird.f32 %v121_v8 }
  0xbc   : > { %v306_v9 = vpop.eup %305 }
  0xbd   : > { %v126_v10 = vmul.f32 %v306_v9, %v124_v7 }
  0xbf   : > { %127 = vst [vmem:[#allocation4] sm:$0xff] %v126_v10 }
  0xc6   : > { %v140_v14 = vld [vmem:[#allocation4 + $0x1] ss:$0 sm:$0xff]  ;;  %v149_v17 = vld [vmem:[#allocation4] ss:$0 sm:$0xff] }
  0xc7   : > { %v141_v15 = vxor.u32 2147483648, %v140_v14  ;;  %v150_v19 = vxor.u32 2147483648, %v149_v17 }
  0xc9   : > { %v145_v16 = vmul.f32 %v141_v15, %v138_v13 }
  0xcb   : > { %146 = vadd.xlane.f32.xlu0 %v145_v16 }
 0x158   : > { %v147_v18 = vpop.xlane.xlu0 %146 }
 0x159   : > { %v148_v20 = vsel %vm144_vm6, %v147_v18, %v138_v13 }
 0x15a   : > { %v154_v21 = vmul.f32 %v150_v19, %v148_v20 }
 0x15c   : > { %155 = vadd.xlane.f32.xlu1 %v154_v21 }
 0x1e9   : > { %v156_v22 = vpop.xlane.xlu1 %155 }
 0x1ea   : > { %v157_v23 = vsel %vm153_vm7, %v156_v22, %v148_v20 }
 0x1eb   : > { %v159_v24 = vmul.f32 %v306_v9, %v157_v23 }
 0x1ed   : > { %v161_v25 = vsel %vm160_vm8, %v157_v23, %v159_v24 }
 0x1ee   : > { %162 = vst [vmem:[#allocation2] sm:$0xff] %v161_v25 }
 0x1f5   : > { %v166_v26 = vld [vmem:[#allocation2] sm:$0xf] }
 0x1f6   : > { %168 = vst [vmem:[%s106_s21] sm:$0xf] %v166_v26 }
 0x1fd   : > { %v193_v27 = vld [vmem:[%s106_s21] sm:$0xf] }
 0x1fe   : > { %194 = vst [vmem:[%s177_s25] sm:$0xf] %v193_v27 }
 0x1ff PF: > { %s7_s8 = sadd.s32 1, %s329_s8   ;;  %s391_s6 = smov %s325_s7 }
 0x200   : > { %p4_p5 = scmp.ge.s32.totalorder %s7_s8, 26   ;;  %s392_s7 = smov %s394_s10 }
 0x202   :  { %6 = sbr.rel (!%p4_p5) target bundleno = 2 (0x2), region = 111 }

// kernel: sub.1
= control target key start
LH: loop header
LB: loop body
LE: loop exit
PB: predicated region body
PF: predicated region fallthrough
CT: control target
= control target key end

     0   :  { %s78_s0 = inlined_call_operand.vmem [shape: f32[24,3], index: 0, kind: input, shape index: {}]   ;;  %s79_s1 = inlined_call_operand.vmem [shape: f32[24,3], index: 1, kind: input, shape index: {}]   ;;  %s80_s2 = inlined_call_operand.vmem [shape: f32[24,3], index: 2, kind: output, shape index: {}]  }
   0x1   :  { %v3_v0 = vld [vmem:[%s78_s0] sm:$0xff]  ;;  %v30_v2 = vld [vmem:[%s78_s0 + $0x8] sm:$0xff]  ;;  %v33_v5 = vld [vmem:[%s78_s0 + $0x10] sm:$0xff] }
   0x2   :  { %v4_v1 = vld [vmem:[%s79_s1] sm:$0xff]  ;;  %v31_v4 = vld [vmem:[%s79_s1 + $0x8] sm:$0xff]  ;;  %v34_v6 = vld [vmem:[%s79_s1 + $0x10] sm:$0xff] }
   0x3   :  { %v7_v3 = vsub.f32 %v3_v0, %v4_v1  ;;  %v16_v7 = vsub.f32 %v30_v2, %v31_v4  ;;  %v26_v8 = vsub.f32 %v33_v5, %v34_v6 }
   0x5   :  { %9 = vst [vmem:[%s80_s2] sm:$0xff] %v7_v3  ;;  %32 = vst [vmem:[%s80_s2 + $0x8] sm:$0xff] %v16_v7 }
   0x6   :  { %35 = vst [vmem:[%s80_s2 + $0x10] sm:$0xff] %v26_v8 }

// kernel: network_forward.4
= control target key start
LH: loop header
LB: loop body
LE: loop exit
PB: predicated region body
PF: predicated region fallthrough
CT: control target
= control target key end

     0   :  { %s2535_s27 = smov 0   ;;  %s3058_s0 = inlined_call_operand.vmem [shape: f32[64,3], index: 0, kind: input, shape index: {}]   ;;  %s3059_s1 = inlined_call_operand.vmem [shape: f32[64,3], index: 1, kind: input, shape index: {}]   ;;  %s3060_s2 = inlined_call_operand.vmem [shape: f32[64,24], index: 2, kind: input, shape index: {}]   ;;  %s3061_s3 = inlined_call_operand.vmem [shape: f32[4,384], index: 3, kind: input, shape index: {}]   ;;  %s3062_s4 = inlined_call_operand.vmem [shape: f32[3,6], index: 4, kind: input, shape index: {}]   ;;  %s3063_s5 = inlined_call_operand.vmem [shape: f32[1,32], index: 5, kind: input, shape index: {}]   ;;  %s3064_s6 = inlined_call_operand.vmem [shape: bf16[144,32], index: 6, kind: input, shape index: {}]   ;;  %s3065_s7 = inlined_call_operand.vmem [shape: f32[5,32], index: 7, kind: input, shape index: {}]   ;;  %s3066_s8 = inlined_call_operand.vmem [shape: f32[64,4], index: 8, kind: output, shape index: {}]  }
   0x1 LB: > { %s2203_s28 = sadd.s32 4294967295, %s2478_s27   ;;  %p2207_p0 = scmp.ge.s32.totalorder %s2478_s27, 1  ;;  %s2478_s27 = sphi %s2535_s27, %s18_s27  }
   0x2   : > { %p285_p1 = scmp.lt.s32.totalorder %s2478_s27, 3 }
   0x4   : > { %p286_p2 = pnand %p2207_p0, %p285_p1 }
   0x5   : > { %v362_v0 = vld [vmem:[%s3061_s3] sm:$0xff] (!%p286_p2)  ;;  %vm407_vm0 = vcmask (!%p286_p2), 1042432   ;;  %s2208_s9 = sshll.u32 (!%p286_p2), %s2203_s28, 2  ;;  %v2480_v2 = vmov (!%p286_p2), 0.0   ;;  %v363_v3 = vld [vmem:[%s3061_s3 + $0x8] sm:$0xf] (!%p286_p2)  ;;  %v366_v16 = vlaneseq (!%p286_p2) }
   0x6   : > { %289 = sbr.rel (%p286_p2) target bundleno = 2147 (0x863), region = 52  ;;  %v393_v1 = vcombine.high (!%p286_p2), %v362_v0, %v362_v0  ;;  %478 = vmatprep.mubr.f32.mxu0 (!%p286_p2), %v2480_v2  ;;  %p330_p3 = scmp.lt.s32.totalorder (!%p286_p2), %s2208_s9, 7  ;;  %496 = vmatprep.mubr.f32.mxu1 (!%p286_p2), %v2480_v2  ;;  %vm394_vm1 = vcmask (!%p286_p2), 23552   ;;  %vm592_vm2 = vcmask (!%p286_p2), 195584   ;;  %vm649_vm3 = vcmask (!%p286_p2), 7168  }
   0x7   : > { %v367_v17 = vshrl.u32 (!%p286_p2), %v366_v16, 7  ;;  %vm654_vm4 = vcmask (!%p286_p2), 15360   ;;  %s2487_s21 = smov (!%p286_p2), 9   ;;  %s2488_s22 = smov (!%p286_p2), 3  }
   0x8   : > { %2216 = vmatprep.subr.msk.mxu0 (!%p286_p2), %vm407_vm0, %v393_v1  ;;  %2374 = vmatprep.subr.msk.mxu1 (!%p286_p2), %vm407_vm0, %v393_v1 }
   0x9   : > { %2217 = vmatpush1.msk.msra.mxu0 (!%p286_p2), %vm407_vm0, %v362_v0  ;;  %2375 = vmatpush1.msk.msra.mxu1 (!%p286_p2), %vm407_vm0, %v362_v0  ;;  %v368_v18 = vsub.s32 (!%p286_p2), 3, %v367_v17  ;;  %v372_v19 = vsub.s32 (!%p286_p2), 7, %v367_v17 }
   0xa   : > { %2320 = vmatprep.subr.msk.mxu1 (!%p286_p2), %vm407_vm0, %v363_v3 }
   0xb   : > { %v369_v20 = vrot.slane (!%p286_p2), %v362_v0, %v368_v18  ;;  %v373_v21 = vrot.slane (!%p286_p2), %v362_v0, %v372_v19  ;;  %v377_v22 = vrot.slane (!%p286_p2), %v363_v3, %v368_v18 }
   0xd   : > { %s3074_s9 = smov (!%p330_p3, %s2208_s9), 7  ;;  %v384_v23 = vrot.slane %v369_v20, %v368_v18  ;;  %v388_v24 = vrot.slane %v373_v21, %v368_v18  ;;  %v392_v27 = vrot.slane %v377_v22, %v368_v18 }
   0xe   : > { %s2553_s12 = sshll.u32 %s3074_s9, 3 }
   0xf   : > { %s339_s15 = scalar_lea.vmem %s3059_s1, %s2553_s12  ;;  %s345_s18 = scalar_lea.vmem %s3060_s2, %s2553_s12 }
  0x10   : > { %v354_v4 = vld [vmem:[%s339_s15] sm:$0xff]  ;;  %v357_v5 = vld [vmem:[%s339_s15 + $0x18] sm:$0xff]  ;;  %v355_v6 = vld [vmem:[%s339_s15 + $0x8] sm:$0xff] }
  0x11   : > { %2218 = vmatmul.mubr.msk.f32.vlgmr.msra.gmra.mrb[0].mxu0 %vm394_vm1, %v354_v4  ;;  %2221 = vmatmul.mubr.msk.f32.vlgmr.msra.gmra.mrb[0].mxu1 %vm394_vm1, %v357_v5  ;;  %v2566_v7 = vld [vmem:[%s345_s18] sm:$0xff]  ;;  %v2568_v8 = vld [vmem:[%s345_s18 + $0x10] sm:$0xff]  ;;  %v359_v12 = vld [vmem:[%s345_s18 + $0x8] sm:$0xff] }
  0x12   : > { %2321 = vmatpush3.msk.msra.mxu1 %vm407_vm0, %v363_v3  ;;  %484 = vmatprep.mubr.f32.mxu0 %v2480_v2  ;;  %v637_v9 = vsel %vm592_vm2, %v2566_v7, 0.0  ;;  %v643_v10 = vsel %vm592_vm2, %v2568_v8, 0.0  ;;  %v356_v11 = vld [vmem:[%s339_s15 + $0x10] sm:$0xff]  ;;  %v640_v13 = vsel %vm592_vm2, %v359_v12, 0.0  ;;  %v2582_v14 = vld [vmem:[%s345_s18 + $0x18] sm:$0xff]  ;;  %s333_s15 = scalar_lea.vmem %s3058_s0, %s2553_s12  ;;  %s3039_s18 = scalar_lea.vmem %s3066_s8, %s2553_s12 }
  0x13   : > { %2322 = vmatprep.mubr.msk.f32.mxu1 %vm394_vm1, %v354_v4  ;;  %638 = vadd.xlane.f32.xlu0 %v637_v9  ;;  %v646_v15 = vsel %vm592_vm2, %v2582_v14, 0.0 }
  0x14   : > { %644 = vadd.xlane.f32.xlu1 %v643_v10 }
  0x15   : > { %2219 = vmatmul.mubr.msk.f32.gmra.mrb[2].mxu0 %vm394_vm1, %v355_v6  ;;  %2323 = vmatmul.mubr.msk.f32.vlgmr.msra.gmra.mrb[2].mxu1 %vm394_vm1, %v355_v6 }
  0x16   : > { %490 = vmatprep.mubr.f32.mxu0 %v2480_v2  ;;  %2325 = vmatprep.mubr.msk.f32.mxu1 %vm394_vm1, %v356_v11 }
  0x17   : > { %641 = vadd.xlane.f32.xlu0 %v640_v13 }
  0x18   : > { %647 = vadd.xlane.f32.xlu1 %v646_v15 }
  0x19   : > { %2220 = vmatmul.mubr.msk.f32.gmra.mrb[4].mxu0 %vm394_vm1, %v356_v11  ;;  %2326 = vmatmul.mubr.msk.f32.gmra.mrb[4].mxu1 %vm394_vm1, %v357_v5  ;;  %v671_v11 = vld [vmem:[%s3062_s4] sm:$0x7] }
  0x1a   : > { %2328 = vmatprep.subr.msk.mxu1 %vm407_vm0, %v671_v11 }
  0x1b   : > { %2329 = vmatpush3.msk.msra.mxu1 %vm407_vm0, %v671_v11 }
  0xe4   : > { %v480_v25 = vpop.f32.mrb[0].mxu0  ;;  %v498_v26 = vpop.f32.mrb[0].mxu1 }
  0xe5   : > { %v481_v28 = vadd.f32 %v480_v25, %v384_v23  ;;  %v482_v29 = vpop.f32.mrb[1].mxu0  ;;  %v499_v30 = vadd.f32 %v498_v26, %v384_v23  ;;  %v500_v31 = vpop.f32.mrb[1].mxu1 }
  0xe6   : > { %v483_v32 = vadd.f32 %v482_v29, %v388_v24  ;;  %v501_v33 = vadd.f32 %v500_v31, %v388_v24 }
  0xe7   : > { %v588_v34 = vmul.f32 %v481_v28, %v2566_v7  ;;  %v591_v35 = vmul.f32 %v499_v30, %v2582_v14 }
  0xe8   : > { %v486_v36 = vpop.f32.mrb[2].mxu0  ;;  %v605_v37 = vmul.f32 %v483_v32, %v2566_v7  ;;  %v2324_v38 = vpop.f32.mrb[2].mxu1  ;;  %v608_v39 = vmul.f32 %v501_v33, %v2582_v14 }
  0xe9   : > { %v593_v40 = vsel %vm592_vm2, %v588_v34, 0.0  ;;  %v487_v41 = vadd.f32 %v486_v36, %v384_v23  ;;  %v488_v42 = vpop.f32.mrb[3].mxu0  ;;  %v575_v43 = vadd.f32 %v2324_v38, %v392_v27  ;;  %v569_v44 = vpop.f32.mrb[3].mxu1  ;;  %v602_v47 = vsel %vm592_vm2, %v591_v35, 0.0 }
  0xea   : > { %594 = vadd.xlane.f32.xlu0 %v593_v40  ;;  %v609_v45 = vsel %vm592_vm2, %v605_v37, 0.0  ;;  %v570_v46 = vadd.f32 %v569_v44, %v392_v27  ;;  %v618_v49 = vsel %vm592_vm2, %v608_v39, 0.0  ;;  %v489_v56 = vadd.f32 %v488_v42, %v388_v24 }
  0xeb   : > { %610 = vadd.xlane.f32.xlu1 %v609_v45  ;;  %v589_v48 = vmul.f32 %v487_v41, %v359_v12  ;;  %v622_v51 = vmul.f32 %v575_v43, %v359_v12 }
  0xec   : > { %v492_v50 = vpop.f32.mrb[4].mxu0  ;;  %v2327_v52 = vpop.f32.mrb[4].mxu1  ;;  %v621_v62 = vmul.f32 %v570_v46, %v2566_v7  ;;  %v606_v63 = vmul.f32 %v489_v56, %v359_v12 }
  0xed   : > { %v494_v53 = vpop.f32.mrb[5].mxu0  ;;  %v585_v54 = vadd.f32 %v2327_v52, %v392_v27  ;;  %v579_v55 = vpop.f32.mrb[5].mxu1  ;;  %v596_v58 = vsel %vm592_vm2, %v589_v48, 0.0  ;;  %v493_v59 = vadd.f32 %v492_v50, %v384_v23  ;;  %v628_v60 = vsel %vm592_vm2, %v622_v51, 0.0 }
  0xee   : > { %603 = vadd.xlane.f32.xlu0 %v602_v47  ;;  %v580_v57 = vadd.f32 %v579_v55, %v392_v27  ;;  %v495_v61 = vadd.f32 %v494_v53, %v388_v24  ;;  %v625_v2 = vsel %vm592_vm2, %v621_v62, 0.0  ;;  %v612_v3 = vsel %vm592_vm2, %v606_v63, 0.0  ;;  %v645_v12 = vpop.xlane.xlu1 %644 }
  0xef   : > { %619 = vadd.xlane.f32.xlu1 %v618_v49  ;;  %v590_v0 = vmul.f32 %v493_v59, %v2568_v8  ;;  %v624_v7 = vmul.f32 %v585_v54, %v2582_v14  ;;  %v661_v21 = vmax.f32 %v645_v12, 0.0001 }
  0xf0   : > { %v607_v1 = vmul.f32 %v495_v61, %v2568_v8  ;;  %v623_v5 = vmul.f32 %v580_v57, %v2568_v8  ;;  %v639_v8 = vpop.xlane.xlu0 %638 }
  0xf1   : > { %v599_v4 = vsel %vm592_vm2, %v590_v0, 0.0  ;;  %v634_v10 = vsel %vm592_vm2, %v624_v7, 0.0  ;;  %v659_v14 = vmax.f32 %v639_v8, 0.0001  ;;  %v2481_v8 = vmov 683565275  }
  0xf2   : > { %597 = vadd.xlane.f32.xlu0 %v596_v58  ;;  %v615_v6 = vsel %vm592_vm2, %v607_v1, 0.0  ;;  %v631_v9 = vsel %vm592_vm2, %v623_v5, 0.0  ;;  %v648_v15 = vpop.xlane.xlu1 %647 }
  0xf3   : > { %629 = vadd.xlane.f32.xlu1 %v628_v60  ;;  %2440 = vrcp.f32 %v659_v14  ;;  %v662_v22 = vmax.f32 %v648_v15, 0.0001  ;;  %v2482_v14 = vmov 2475754826  }
  0xf4   : > { %v642_v13 = vpop.xlane.xlu0 %641 }
  0xf5   : > { %v660_v17 = vmax.f32 %v642_v13, 0.0001 }
  0xf6   : > { %626 = vadd.xlane.f32.xlu0 %v625_v2 }
  0xf7   : > { %613 = vadd.xlane.f32.xlu1 %v612_v3  ;;  %2442 = vrcp.f32 %v660_v17  ;;  %v2483_v17 = vmov 2131351028  }
  0xf8   : > { %2444 = vrcp.f32 %v661_v21  ;;  %v2485_v21 = vmov 920167782  }
  0xf9   : > { %2446 = vrcp.f32 %v662_v22 }
  0xfa   : > { %600 = vadd.xlane.f32.xlu0 %v599_v4 }
  0xfb   : > { %616 = vadd.xlane.f32.xlu1 %v615_v6 }
  0xfd   : > { %v2441_v27 = vpop.eup %2440 }
  0xfe   : > { %632 = vadd.xlane.f32.xlu0 %v631_v9 }
  0xff   : > { %635 = vadd.xlane.f32.xlu1 %v634_v10 }
 0x101   : > { %v2443_v32 = vpop.eup %2442 }
 0x102   : > { %v2445_v39 = vpop.eup %2444 }
 0x103   : > { %v2447_v43 = vpop.eup %2446 }
 0x177   : > { %v595_v16 = vpop.xlane.xlu0 %594 }
 0x178   : > { %v611_v18 = vpop.xlane.xlu1 %610 }
 0x179   : > { %v650_v25 = vsel %vm649_vm3, %v595_v16, %v611_v18 }
 0x17b   : > { %v604_v19 = vpop.xlane.xlu0 %603 }
 0x17c   : > { %v620_v20 = vpop.xlane.xlu1 %619 }
 0x17d   : > { %v653_v40 = vsel %vm649_vm3, %v604_v19, %v620_v20  ;;  %v2484_v19 = vmov 2102212464  }
 0x17f   : > { %v598_v23 = vpop.xlane.xlu0 %597 }
 0x180   : > { %v630_v24 = vpop.xlane.xlu1 %629 }
 0x183   : > { %v627_v26 = vpop.xlane.xlu0 %626 }
 0x184   : > { %v655_v28 = vsel %vm654_vm4, %v650_v25, %v627_v26  ;;  %v614_v29 = vpop.xlane.xlu1 %613 }
 0x185   : > { %v2614_v30 = vmul.f32 %v2441_v27, %v655_v28  ;;  %v651_v31 = vsel %vm649_vm3, %v598_v23, %v614_v29  ;;  %v2486_v28 = vmov 1326507024  }
 0x186   : > { %v656_v33 = vsel %vm654_vm4, %v651_v31, %v630_v24 }
 0x187   : > { %v2618_v34 = vmul.f32 %v2443_v32, %v656_v33  ;;  %2330 = vmatprep.mubr.msk.f32.mxu1 %vm394_vm1, %v2614_v30  ;;  %v601_v35 = vpop.xlane.xlu0 %600 }
 0x188   : > { %v617_v36 = vpop.xlane.xlu1 %616 }
 0x189   : > { %2331 = vmatmul.mubr.msk.f32.vlgmr.msra.gmra.mrb[6].mxu1 %vm394_vm1, %v2618_v34  ;;  %v652_v37 = vsel %vm649_vm3, %v601_v35, %v617_v36 }
 0x18b   : > { %v633_v38 = vpop.xlane.xlu0 %632 }
 0x18c   : > { %v657_v41 = vsel %vm654_vm4, %v652_v37, %v633_v38  ;;  %v636_v42 = vpop.xlane.xlu1 %635 }
 0x18d   : > { %v2627_v44 = vmul.f32 %v2445_v39, %v657_v41  ;;  %v658_v45 = vsel %vm654_vm4, %v653_v40, %v636_v42 }
 0x18e   : > { %v2630_v46 = vmul.f32 %v2447_v43, %v658_v45 }
 0x18f   : > { %2333 = vmatprep.mubr.msk.f32.mxu1 %vm394_vm1, %v2627_v44 }
 0x190   : > { %2334 = vmatmul.mubr.msk.f32.gmra.mrb[8].mxu1 %vm394_vm1, %v2630_v46 }
 0x25c   : > { %v2636_v47 = vpop.f32.mrb[6].mxu1 }
 0x25d   : > { %v876_v48 = vand.u32 2147483647, %v2636_v47  ;;  %v879_v49 = vand.u32 2139095040, %v2636_v47  ;;  %v2640_v50 = vpop.f32.mrb[7].mxu1  ;;  %vm878_vm3 = vcmp.lt.s32.totalorder %v2636_v47, 0 }
 0x25e   : > { %v772_v51 = vand.u32 2147483647, %v2640_v50  ;;  %v775_v52 = vand.u32 2139095040, %v2640_v50  ;;  %vm774_vm4 = vcmp.lt.s32.totalorder %v2640_v50, 0 }
 0x25f   : > { %v880_v53 = vshrl.u32 %v879_v49, 23  ;;  %v883_v54 = vand.u32 8388607, %v876_v48 }
 0x260   : > { %v776_v55 = vshrl.u32 %v775_v52, 23  ;;  %v779_v56 = vand.u32 8388607, %v772_v51 }
 0x261   : > { %v2236_v57 = vadd.s32 4294967169, %v880_v53  ;;  %v884_v61 = vor.u32 8388608, %v883_v54 }
 0x262   : > { %v2232_v58 = vadd.s32 4294967169, %v776_v55  ;;  %v780_v62 = vor.u32 8388608, %v779_v56 }
 0x263   : > { %v886_v59 = vadd.s32 1, %v2236_v57  ;;  %v2648_v60 = vpop.f32.mrb[8].mxu1  ;;  %v2653_v6 = vshll.u32 %v884_v61, 8 }
 0x264   : > { %v782_v63 = vadd.s32 1, %v2232_v58  ;;  %v2650_v0 = vpop.f32.mrb[9].mxu1  ;;  %v1087_v1 = vand.u32 2139095040, %v2648_v60  ;;  %v2655_v7 = vshll.u32 %v780_v62, 8  ;;  %v1084_v9 = vand.u32 2147483647, %v2648_v60 }
 0x265   : > { %vm887_vm5 = vcmp.gt.s32.totalorder %v886_v59, 0 }
 0x266   : > { %v888_v2 = vsel %vm887_vm5, %v886_v59, 0  ;;  %vm783_vm6 = vcmp.gt.s32.totalorder %v782_v63, 0  ;;  %v2658_v10 = vshrl.u32 %v1087_v1, 23 }
 0x267   : > { %v889_v3 = vshrl.u32 %v888_v2, 5  ;;  %v890_v4 = vand.u32 31, %v888_v2  ;;  %v784_v5 = vsel %vm783_vm6, %v782_v63, 0 }
 0x268   : > { %v2661_v13 = vshrl.u32 %v784_v5, 5  ;;  %v786_v15 = vand.u32 31, %v784_v5 }
 0x269   : > { %v891_v11 = vsub.s32 32, %v890_v4  ;;  %v893_v12 = vshll.u32 %v2481_v8, %v890_v4  ;;  %v896_v16 = vshll.u32 %v2482_v14, %v890_v4  ;;  %v899_v18 = vshll.u32 %v2483_v17, %v890_v4 }
 0x26a   : > { %v902_v20 = vshll.u32 %v2484_v19, %v890_v4  ;;  %v905_v22 = vshll.u32 %v2485_v21, %v890_v4  ;;  %vm908_vm7 = vcmp.lt.s32.totalorder %v889_v3, 1  ;;  %vm909_vm8 = vcmp.lt.s32.totalorder %v889_v3, 2 }
 0x26b   : > { %v894_v23 = vshrl.u32 %v2482_v14, %v891_v11  ;;  %v897_v24 = vshrl.u32 %v2483_v17, %v891_v11  ;;  %v900_v25 = vshrl.u32 %v2484_v19, %v891_v11  ;;  %v892_v26 = vshrl.u32 %v2481_v8, %v891_v11 }
 0x26c   : > { %v903_v27 = vshrl.u32 %v2485_v21, %v891_v11  ;;  %v906_v29 = vshrl.u32 %v2486_v28, %v891_v11  ;;  %v787_v35 = vsub.s32 32, %v786_v15  ;;  %vm910_vm9 = vcmp.lt.s32.totalorder %v889_v3, 3 }
 0x26d   : > { %v895_v31 = vor.u32 %v894_v23, %v893_v12  ;;  %v898_v32 = vor.u32 %v897_v24, %v896_v16  ;;  %v901_v33 = vor.u32 %v900_v25, %v899_v18  ;;  %vm911_vm10 = vcmp.lt.s32.totalorder %v889_v3, 4 }
 0x26e   : > { %v904_v36 = vor.u32 %v903_v27, %v902_v20  ;;  %v907_v37 = vor.u32 %v906_v29, %v905_v22  ;;  %v789_v49 = vshll.u32 %v2481_v8, %v786_v15  ;;  %v790_v54 = vshrl.u32 %v2482_v14, %v787_v35 }
 0x26f   : > { %v912_v38 = vsel %vm908_vm7, %v892_v26, %v895_v31  ;;  %v913_v39 = vsel %vm911_vm10, %v901_v33, 2102212464  ;;  %v916_v40 = vsel %vm908_vm7, %v895_v31, %v898_v32  ;;  %v920_v41 = vsel %vm908_vm7, %v898_v32, %v901_v33 }
 0x270   : > { %v914_v42 = vsel %vm910_vm9, %v898_v32, %v913_v39  ;;  %v917_v43 = vsel %vm911_vm10, %v904_v36, 920167782  ;;  %v921_v45 = vsel %vm911_vm10, %v907_v37, 1326507024  ;;  %v792_v55 = vshll.u32 %v2482_v14, %v786_v15 }
 0x271   : > { %v918_v52 = vsel %vm910_vm9, %v901_v33, %v917_v43  ;;  %v922_v53 = vsel %vm910_vm9, %v904_v36, %v921_v45  ;;  %v915_v56 = vsel %vm909_vm8, %v912_v38, %v914_v42  ;;  %v793_v59 = vshrl.u32 %v2483_v17, %v787_v35 }
 0x272   : > { %v919_v57 = vsel %vm909_vm8, %v916_v40, %v918_v52  ;;  %v923_v58 = vsel %vm909_vm8, %v920_v41, %v922_v53  ;;  %v791_v2 = vor.u32 %v790_v54, %v789_v49  ;;  %v795_v5 = vshll.u32 %v2483_v17, %v786_v15 }
 0x273   : > { %v2684_v61 = vmul.u32.u64.low %v2653_v6, %v923_v58  ;;  %v2685_v62 = vmul.u32.u64.high %v2653_v6, %v923_v58, %v2684_v61  ;;  %v2688_v63 = vmul.u32.u64.low %v2653_v6, %v919_v57  ;;  %v2689_v1 = vmul.u32.u64.high %v2653_v6, %v919_v57, %v2688_v63 }
 0x274   : > { %v794_v4 = vor.u32 %v793_v59, %v792_v55  ;;  %v796_v11 = vshrl.u32 %v2484_v19, %v787_v35  ;;  %v788_v12 = vshrl.u32 %v2481_v8, %v787_v35  ;;  %v798_v3 = vshll.u32 %v2484_v19, %v786_v15 }
 0x275   : > { %v799_v16 = vshrl.u32 %v2485_v21, %v787_v35  ;;  %v802_v18 = vshrl.u32 %v2486_v28, %v787_v35  ;;  %v931_v20 = vmul.u32 %v2653_v6, %v915_v56  ;;  %v801_v23 = vshll.u32 %v2485_v21, %v786_v15 }
 0x276   : > { %v797_v22 = vor.u32 %v796_v11, %v795_v5  ;;  %vm804_vm11 = vcmp.lt.s32.totalorder %v2661_v13, 1  ;;  %vm933_vm12 = vc.u32 %v2685_v62, %v2688_v63  ;;  %v934_v24 = vadd.s32 1, %v2689_v1 }
 0x277   : > { %v800_v25 = vor.u32 %v799_v16, %v798_v3  ;;  %vm805_vm13 = vcmp.lt.s32.totalorder %v2661_v13, 2  ;;  %v803_v26 = vor.u32 %v802_v18, %v801_v23  ;;  %vm806_vm14 = vcmp.lt.s32.totalorder %v2661_v13, 3 }
 0x278   : > { %vm807_vm15 = vcmp.lt.s32.totalorder %v2661_v13, 4  ;;  %v812_v27 = vsel %vm804_vm11, %v791_v2, %v794_v4  ;;  %v935_v6 = vsel %vm933_vm12, %v934_v24, %v2689_v1  ;;  %v816_v15 = vsel %vm804_vm11, %v794_v4, %v797_v22 }
 0x279   : > { %v809_v29 = vsel %vm807_vm15, %v797_v22, 2102212464  ;;  %v813_v31 = vsel %vm807_vm15, %v800_v25, 920167782  ;;  %v936_v32 = vadd.s32 %v935_v6, %v931_v20  ;;  %v808_v33 = vsel %vm804_vm11, %v788_v12, %v791_v2 }
 0x27a   : > { %v814_v35 = vsel %vm806_vm14, %v797_v22, %v813_v31  ;;  %v817_v36 = vsel %vm807_vm15, %v803_v26, 1326507024  ;;  %v810_v37 = vsel %vm806_vm14, %v794_v4, %v809_v29  ;;  %v2244_v40 = vadd.s32 4294967169, %v2658_v10 }
 0x27b   : > { %v815_v38 = vsel %vm805_vm13, %v812_v27, %v814_v35  ;;  %v818_v39 = vsel %vm806_vm14, %v800_v25, %v817_v36  ;;  %v937_v41 = vadd.s32 536870912, %v936_v32  ;;  %v1091_v53 = vand.u32 8388607, %v1084_v9 }
 0x27c   : > { %v819_v42 = vsel %vm805_vm13, %v816_v15, %v818_v39  ;;  %v2712_v43 = vmul.u32.u64.low %v2655_v7, %v815_v38  ;;  %v2713_v45 = vmul.u32.u64.high %v2655_v7, %v815_v38, %v2712_v43  ;;  %v1094_v54 = vadd.s32 1, %v2244_v40 }
 0x27d   : > { %v2717_v49 = vmul.u32.u64.low %v2655_v7, %v819_v42  ;;  %v2718_v52 = vmul.u32.u64.high %v2655_v7, %v819_v42, %v2717_v49  ;;  %v938_v55 = vshrl.u32 %v937_v41, 30  ;;  %v811_v10 = vsel %vm805_vm13, %v808_v33, %v810_v37 }
 0x27e   : > { %vm1095_vm0 = vcmp.gt.s32.totalorder %v1094_v54, 0  ;;  %v830_v57 = vadd.s32 1, %v2713_v45  ;;  %v827_v59 = vmul.u32 %v2655_v7, %v811_v10  ;;  %v1092_v61 = vor.u32 8388608, %v1091_v53 }
 0x27f   : > { %v939_v56 = vshll.u32 %v938_v55, 30  ;;  %v1096_v58 = vsel %vm1095_vm0, %v1094_v54, 0  ;;  %vm829_vm2 = vc.u32 %v2718_v52, %v2712_v43  ;;  %v962_v4 = vsub.s32 4, %v938_v55 }
 0x280   : > { %v1098_v1 = vand.u32 31, %v1096_v58  ;;  %v831_v5 = vsel %vm829_vm2, %v830_v57, %v2713_v45  ;;  %v983_v12 = vand.u32 2139095040, %v2650_v0  ;;  %v932_v3 = vadd.s32 %v2688_v63, %v2685_v62 }
 0x281   : > { %v2728_v2 = vsub.s32 %v936_v32, %v939_v56  ;;  %v832_v11 = vadd.s32 %v831_v5, %v827_v59  ;;  %v980_v16 = vand.u32 2147483647, %v2650_v0  ;;  %v2736_v20 = vshrl.u32 %v1096_v58, 5 }
 0x282   : > { %v1099_v13 = vsub.s32 32, %v1098_v1  ;;  %v2739_v23 = vshll.u32 %v1092_v61, 8  ;;  %v2744_v25 = vsel %vm878_vm3, %v962_v4, %v938_v55  ;;  %v1101_v27 = vshll.u32 %v2481_v8, %v1098_v1 }
 0x283   : > { %v942_v7 = vsub.s32 0, %v2728_v2  ;;  %v833_v18 = vadd.s32 536870912, %v832_v11  ;;  %v984_v29 = vshrl.u32 %v983_v12, 23  ;;  %v1104_v15 = vshll.u32 %v2482_v14, %v1098_v1 }
 0x284   : > { %v1102_v22 = vshrl.u32 %v2482_v14, %v1099_v13  ;;  %v1105_v26 = vshrl.u32 %v2483_v17, %v1099_v13  ;;  %v1108_v62 = vshrl.u32 %v2484_v19, %v1099_v13  ;;  %v1111_v6 = vshrl.u32 %v2485_v21, %v1099_v13 }
 0x285   : > { %v2237_v24 = vmin.u32 %v942_v7, %v2728_v2  ;;  %v834_v63 = vshrl.u32 %v833_v18, 30  ;;  %v1107_v32 = vshll.u32 %v2483_v17, %v1098_v1  ;;  %v1114_v33 = vshrl.u32 %v2486_v28, %v1099_v13 }
 0x286   : > { %v1100_v36 = vshrl.u32 %v2481_v8, %v1099_v13  ;;  %v1103_v37 = vor.u32 %v1102_v22, %v1101_v27  ;;  %v1110_v38 = vshll.u32 %v2484_v19, %v1098_v1  ;;  %v1106_v40 = vor.u32 %v1105_v26, %v1104_v15 }
 0x287   : > { %v944_v31 = vclz %v2237_v24  ;;  %v835_v35 = vshll.u32 %v834_v63, 30  ;;  %v1109_v41 = vor.u32 %v1108_v62, %v1107_v32  ;;  %v1113_v42 = vshll.u32 %v2485_v21, %v1098_v1 }
 0x288   : > { %v858_v49 = vsub.s32 4, %v834_v63  ;;  %v1112_v53 = vor.u32 %v1111_v6, %v1110_v38  ;;  %vm1116_vm5 = vcmp.lt.s32.totalorder %v2736_v20, 1  ;;  %vm1117_vm7 = vcmp.lt.s32.totalorder %v2736_v20, 2 }
 0x289   : > { %v2238_v39 = vadd.s32 4294967294, %v944_v31  ;;  %v2757_v45 = vsub.s32 %v832_v11, %v835_v35  ;;  %v1115_v54 = vor.u32 %v1114_v33, %v1113_v42  ;;  %vm1118_vm8 = vcmp.lt.s32.totalorder %v2736_v20, 3 }
 0x28a   : > { %vm2764_vm9 = vcmp.le.f32.partialorder %v876_v48, 0.7853982  ;;  %vm1119_vm10 = vcmp.lt.s32.totalorder %v2736_v20, 4  ;;  %v1120_v57 = vsel %vm1116_vm5, %v1100_v36, %v1103_v37  ;;  %vm2774_vm11 = vcmp.le.f32.partialorder %v772_v51, 0.7853982 }
 0x28b   : > { %vm2239_vm6 = vcmp.lt.s32.totalorder %v2238_v39, 0  ;;  %v838_v56 = vsub.s32 0, %v2757_v45  ;;  %v1121_v48 = vsel %vm1119_vm10, %v1109_v41, 2102212464  ;;  %v1124_v1 = vsel %vm1116_vm5, %v1103_v37, %v1106_v40 }
 0x28c   : > { %v947_v10 = vsel %vm2239_vm6, 0, %v2238_v39  ;;  %v1125_v11 = vsel %vm1119_vm10, %v1112_v53, 920167782  ;;  %v1128_v13 = vsel %vm1116_vm5, %v1106_v40, %v1109_v41  ;;  %v1129_v18 = vsel %vm1119_vm10, %v1115_v54, 1326507024 }
 0x28d   : > { %v948_v58 = vsub.s32 32, %v947_v10  ;;  %v952_v59 = vsub.s32 4294967266, %v947_v10  ;;  %v949_v4 = vshll.u32 %v2728_v2, %v947_v10  ;;  %v2233_v5 = vmin.u32 %v838_v56, %v2757_v45 }
 0x28e   : > { %v1126_v51 = vsel %vm1118_vm8, %v1109_v41, %v1125_v11  ;;  %v1122_v24 = vsel %vm1118_vm8, %v1106_v40, %v1121_v48  ;;  %v1130_v2 = vsel %vm1118_vm8, %v1112_v53, %v1129_v18  ;;  %v2240_v6 = vadd.s32 4294967169, %v984_v29 }
 0x28f   : > { %v950_v12 = vshrl.u32 %v932_v3, %v948_v58  ;;  %v953_v7 = vadd.s32 127, %v952_v59  ;;  %v840_v22 = vclz %v2233_v5  ;;  %v1127_v26 = vsel %vm1117_vm7, %v1124_v1, %v1126_v51 }
 0x290   : > { %v1131_v3 = vsel %vm1117_vm7, %v1128_v13, %v1130_v2  ;;  %v859_v15 = vsel %vm774_vm4, %v858_v49, %v834_v63  ;;  %v1123_v36 = vsel %vm1117_vm7, %v1120_v57, %v1122_v24  ;;  %v828_v29 = vadd.s32 %v2712_v43, %v2718_v52 }
 0x291   : > { %v951_v62 = vor.u32 %v950_v12, %v949_v4  ;;  %v954_v27 = vshll.u32 %v953_v7, 23  ;;  %v2234_v31 = vadd.s32 4294967294, %v840_v22  ;;  %v987_v63 = vand.u32 8388607, %v980_v16 }
 0x292   : > { %v2797_v32 = vmul.u32.u64.low %v2739_v23, %v1131_v3  ;;  %v2798_v33 = vmul.u32.u64.high %v2739_v23, %v1131_v3, %v2797_v32  ;;  %v2803_v37 = vmul.u32.u64.low %v2739_v23, %v1127_v26  ;;  %v2804_v38 = vmul.u32.u64.high %v2739_v23, %v1127_v26, %v2803_v37 }
 0x293   : > { %v955_v35 = vor.u32 4788187, %v954_v27  ;;  %vm2235_vm12 = vcmp.lt.s32.totalorder %v2234_v31, 0  ;;  %v990_v39 = vadd.s32 1, %v2240_v6  ;;  %v958_v41 = vcvt.s32.f32 %v951_v62 }
 0x294   : > { %v965_v20 = vsel %vm2764_vm9, 0, %v2744_v25  ;;  %v843_v42 = vsel %vm2235_vm12, 0, %v2234_v31  ;;  %v861_v54 = vsel %vm2774_vm11, 0, %v859_v15  ;;  %v1139_v10 = vmul.u32 %v2739_v23, %v1123_v36 }
 0x295   : > { %v956_v40 = vand.u32 2147483647, %v955_v35  ;;  %v844_v49 = vsub.s32 32, %v843_v42  ;;  %v848_v53 = vsub.s32 4294967266, %v843_v42  ;;  %vm1141_vm13 = vc.u32 %v2798_v33, %v2803_v37 }
 0x296   : > { %v1142_v52 = vadd.s32 1, %v2804_v38  ;;  %vm991_vm14 = vcmp.gt.s32.totalorder %v990_v39, 0  ;;  %v845_v56 = vshll.u32 %v2757_v45, %v843_v42  ;;  %v2821_v48 = vadd.s32 3, %v965_v20 }
 0x297   : > { %v959_v43 = vmul.f32 %v958_v41, %v956_v40  ;;  %v846_v57 = vshrl.u32 %v828_v29, %v844_v49  ;;  %v849_v58 = vadd.s32 127, %v848_v53  ;;  %v992_v25 = vsel %vm991_vm14, %v990_v39, 0 }
 0x298   : > { %v1143_v1 = vsel %vm1141_vm13, %v1142_v52, %v2804_v38  ;;  %v994_v4 = vand.u32 31, %v992_v25  ;;  %v2824_v5 = vand.u32 3, %v965_v20  ;;  %v2828_v7 = vadd.s32 3, %v861_v54 }
 0x299   : > { %v960_v59 = vxor.u32 2147483648, %v959_v43  ;;  %v847_v23 = vor.u32 %v846_v57, %v845_v56  ;;  %v850_v11 = vshll.u32 %v849_v58, 23  ;;  %v1144_v13 = vadd.s32 %v1143_v1, %v1139_v10 }
 0x29a   : > { %v2830_v45 = vand.u32 3, %v861_v54  ;;  %v995_v51 = vsub.s32 32, %v994_v4  ;;  %v988_v26 = vor.u32 8388608, %v987_v63  ;;  %v993_v2 = vshrl.u32 %v992_v25, 5 }
 0x29b   : > { %v961_v12 = vsel %vm878_vm3, %v960_v59, %v959_v43  ;;  %v851_v22 = vor.u32 4788187, %v850_v11  ;;  %v1145_v24 = vadd.s32 536870912, %v1144_v13  ;;  %v854_v6 = vcvt.s32.f32 %v847_v23 }
 0x29c   : > { %v964_v18 = vsel %vm2764_vm9, %v2636_v47, %v961_v12  ;;  %v998_v62 = vshrl.u32 %v2482_v14, %v995_v51  ;;  %v1001_v27 = vshrl.u32 %v2483_v17, %v995_v51  ;;  %v997_v15 = vshll.u32 %v2481_v8, %v994_v4 }
 0x29d   : > { %2448 = vcosq.f32 %v964_v18  ;;  %v852_v3 = vand.u32 2147483647, %v851_v22  ;;  %v2837_v31 = vshrl.u32 %v1145_v24, 30  ;;  %v1000_v32 = vshll.u32 %v2482_v14, %v994_v4 }
 0x29e   : > { %2450 = vsinq.f32 %v964_v18  ;;  %v1003_v55 = vshll.u32 %v2483_v17, %v994_v4  ;;  %v1004_v35 = vshrl.u32 %v2484_v19, %v995_v51  ;;  %v1006_v29 = vshll.u32 %v2484_v19, %v994_v4 }
 0x29f   : > { %v855_v36 = vmul.f32 %v854_v6, %v852_v3  ;;  %v1147_v38 = vshll.u32 %v2837_v31, 30  ;;  %v1007_v63 = vshrl.u32 %v2485_v21, %v995_v51  ;;  %v999_v39 = vor.u32 %v998_v62, %v997_v15 }
 0x2a0   : > { %v1002_v40 = vor.u32 %v1001_v27, %v1000_v32  ;;  %v1009_v41 = vshll.u32 %v2485_v21, %v994_v4  ;;  %v1010_v20 = vshrl.u32 %v2486_v28, %v995_v51  ;;  %v1005_v14 = vor.u32 %v1004_v35, %v1003_v55 }
 0x2a1   : > { %v856_v42 = vxor.u32 2147483648, %v855_v36  ;;  %v2848_v49 = vsub.s32 %v1144_v13, %v1147_v38  ;;  %v1008_v17 = vor.u32 %v1007_v63, %v1006_v29  ;;  %v996_v53 = vshrl.u32 %v2481_v8, %v995_v51 }
 0x2a2   : > { %v1011_v54 = vor.u32 %v1010_v20, %v1009_v41  ;;  %vm1012_vm15 = vcmp.lt.s32.totalorder %v993_v2, 1  ;;  %v2851_v10 = vshll.u32 %v988_v26, 8  ;;  %vm1013_vm0 = vcmp.lt.s32.totalorder %v993_v2, 2 }
 0x2a3   : > { %v857_v19 = vsel %vm774_vm4, %v856_v42, %v855_v36  ;;  %v1150_v43 = vsub.s32 0, %v2848_v49  ;;  %vm1014_vm2 = vcmp.lt.s32.totalorder %v993_v2, 3  ;;  %vm1015_vm3 = vcmp.lt.s32.totalorder %v993_v2, 4 }
 0x2a4   : > { %v860_v21 = vsel %vm2774_vm11, %v2640_v50, %v857_v19  ;;  %v1016_v28 = vsel %vm1012_vm15, %v996_v53, %v999_v39  ;;  %v1020_v8 = vsel %vm1012_vm15, %v999_v39, %v1002_v40  ;;  %v1017_v56 = vsel %vm1015_vm3, %v1005_v14, 2102212464 }
 0x2a5   : > { %2452 = vcosq.f32 %v860_v21  ;;  %v2245_v52 = vmin.u32 %v1150_v43, %v2848_v49  ;;  %v1021_v57 = vsel %vm1015_vm3, %v1008_v17, 920167782  ;;  %vm968_vm4 = vweird.f32 %v2636_v47  ;;  %v2431_v47 = vld [vmem:[%s3064_s6] sm:$0xff]  }
 0x2a6   : > { %2454 = vsinq.f32 %v860_v21  ;;  %v1018_v25 = vsel %vm1014_vm2, %v1002_v40, %v1017_v56  ;;  %v1022_v61 = vsel %vm1014_vm2, %v1005_v14, %v1021_v57  ;;  %v1024_v59 = vsel %vm1012_vm15, %v1002_v40, %v1005_v14 }
 0x2a7   : > { %v2449_v58 = vpop.eup %2448  ;;  %v1152_v4 = vclz %v2245_v52  ;;  %v1023_v23 = vsel %vm1013_vm0, %v1020_v8, %v1022_v61  ;;  %v1025_v11 = vsel %vm1015_vm3, %v1011_v54, 1326507024  ;;  %vm1386_vm5 = vcmp.eq.s32.totalorder %v2824_v5, 0 }
 0x2a8   : > { %v2451_v1 = vpop.eup %2450  ;;  %v1019_v13 = vsel %vm1013_vm0, %v1016_v28, %v1018_v25  ;;  %v1026_v12 = vsel %vm1014_vm2, %v1008_v17, %v1025_v11  ;;  %v2874_v51 = vmul.u32.u64.low %v2851_v10, %v1023_v23  ;;  %v2875_v18 = vmul.u32.u64.high %v2851_v10, %v1023_v23, %v2874_v51 }
 0x2a9   : > { %v2246_v22 = vadd.s32 4294967294, %v1152_v4  ;;  %v1027_v24 = vsel %vm1013_vm0, %v1024_v59, %v1026_v12  ;;  %v973_v26 = vxor.u32 2147483648, %v2451_v1  ;;  %v976_v62 = vxor.u32 2147483648, %v2449_v58 }
 0x2aa   : > { %vm1286_vm6 = vcmp.eq.s32.totalorder %v2830_v45, 2  ;;  %v2881_v27 = vmul.u32.u64.low %v2851_v10, %v1027_v24  ;;  %v2882_v3 = vmul.u32.u64.high %v2851_v10, %v1027_v24, %v2881_v27  ;;  %vm1283_vm7 = vcmp.eq.s32.totalorder %v2830_v45, 0 }
 0x2ab   : > { %vm1389_vm8 = vcmp.eq.s32.totalorder %v2824_v5, 2  ;;  %v866_v6 = vand.u32 3, %v2828_v7  ;;  %vm2247_vm9 = vcmp.lt.s32.totalorder %v2246_v22, 0  ;;  %vm1282_vm10 = vcmp.lt.s32.totalorder %v2830_v45, 2 }
 0x2ac   : > { %vm1385_vm11 = vcmp.lt.s32.totalorder %v2824_v5, 2  ;;  %v1388_v2 = vsel %vm1386_vm5, %v2449_v58, %v973_v26  ;;  %v1391_v15 = vsel %vm1389_vm8, %v976_v62, %v2451_v1  ;;  %v1155_v32 = vsel %vm2247_vm9, 0, %v2246_v22 }
 0x2ad   : > { %v1038_v55 = vadd.s32 1, %v2875_v18  ;;  %vm864_vm12 = vweird.f32 %v2640_v50  ;;  %v1392_v35 = vsel %vm1385_vm11, %v1388_v2, %v1391_v15  ;;  %v970_v36 = vand.u32 3, %v2821_v48 }
 0x2ae   : > { %v1140_v7 = vadd.s32 %v2803_v37, %v2798_v33  ;;  %v1156_v38 = vsub.s32 32, %v1155_v32  ;;  %v1160_v29 = vsub.s32 4294967266, %v1155_v32  ;;  %v1035_v63 = vmul.u32 %v2851_v10, %v1019_v13 }
 0x2af   : > { %v1157_v39 = vshll.u32 %v2848_v49, %v1155_v32  ;;  %vm1037_vm13 = vc.u32 %v2882_v3, %v2874_v51  ;;  %v1393_v5 = vsel %vm968_vm4, nan, %v1392_v35  ;;  %vm867_vm14 = vcmp.lt.s32.totalorder %v866_v6, 2  ;;  %v2453_v40 = vpop.eup %2452 }
 0x2b0   : > { %v1161_v41 = vadd.s32 127, %v1160_v29  ;;  %v1039_v48 = vsel %vm1037_vm13, %v1038_v55, %v2875_v18  ;;  %vm868_vm15 = vcmp.eq.s32.totalorder %v866_v6, 0  ;;  %vm871_vm0 = vcmp.eq.s32.totalorder %v866_v6, 2  ;;  %v2455_v33 = vpop.eup %2454 }
 0x2b1   : > { %v1158_v37 = vshrl.u32 %v1140_v7, %v1156_v38  ;;  %v1040_v20 = vadd.s32 %v1039_v48, %v1035_v63  ;;  %v872_v42 = vxor.u32 2147483648, %v2453_v40  ;;  %vm972_vm2 = vcmp.eq.s32.totalorder %v970_v36, 0 }
 0x2b2   : > { %v1162_v14 = vshll.u32 %v1161_v41, 23  ;;  %v869_v49 = vxor.u32 2147483648, %v2455_v33  ;;  %v974_v17 = vsel %vm972_vm2, %v2449_v58, %v973_v26  ;;  %vm975_vm3 = vcmp.eq.s32.totalorder %v970_v36, 2 }
 0x2b3   : > { %v1041_v53 = vadd.s32 536870912, %v1040_v20  ;;  %v1288_v54 = vsel %vm1286_vm6, %v872_v42, %v2455_v33  ;;  %v873_v10 = vsel %vm871_vm0, %v872_v42, %v2455_v33  ;;  %v977_v19 = vsel %vm975_vm3, %v976_v62, %v2451_v1 }
 0x2b4   : > { %v1163_v43 = vor.u32 4788187, %v1162_v14  ;;  %v1285_v21 = vsel %vm1283_vm7, %v2453_v40, %v869_v49  ;;  %v870_v28 = vsel %vm868_vm15, %v2453_v40, %v869_v49  ;;  %vm971_vm5 = vcmp.lt.s32.totalorder %v970_v36, 2 }
 0x2b5   : > { %v1042_v8 = vshrl.u32 %v1041_v53, 30  ;;  %v1289_v52 = vsel %vm1282_vm10, %v1285_v21, %v1288_v54  ;;  %v874_v56 = vsel %vm867_vm14, %v870_v28, %v873_v10  ;;  %v978_v57 = vsel %vm971_vm5, %v974_v17, %v977_v19 }
 0x2b6   : > { %v1290_v58 = vsel %vm864_vm12, nan, %v1289_v52  ;;  %v875_v25 = vsel %vm864_vm12, nan, %v874_v56  ;;  %v979_v61 = vsel %vm968_vm4, nan, %v978_v57  ;;  %v1159_v59 = vor.u32 %v1158_v37, %v1157_v39 }
 0x2b7   : > { %v1043_v1 = vshll.u32 %v1042_v8, 30  ;;  %v2415_v4 = vpack.i.bf16 %v1393_v5, %v1290_v58  ;;  %v2410_v23 = vpack.i.bf16 %v979_v61, %v875_v25  ;;  %v1164_v11 = vand.u32 2147483647, %v1163_v43 }
 0x2b8   : > { %v1166_v45 = vcvt.s32.f32 %v1159_v59  ;;  %vm1663_vm6 = vcmask 1046528   ;;  %vm1664_vm4 = vcmask 1047552   ;;  %v2489_v22 = vmov 65535  }
 0x2b9   : > { %v1044_v13 = vsub.s32 %v1040_v20, %v1043_v1  ;;  %2416 = vrot.lane.b32.xlu1 %v2415_v4, %s2487_s21  ;;  %2411 = vrot.lane.b32.xlu0 %v2410_v23, %s2488_s22  ;;  %v1665_v24 = vsel %vm1663_vm6, 4294967295, %v2489_v22  ;;  %vm1086_vm8 = vcmp.lt.s32.totalorder %v2648_v60, 0  ;;  %v1036_v55 = vadd.s32 %v2874_v51, %v2882_v3 }
 0x2ba   : > { %v1167_v50 = vmul.f32 %v1166_v45, %v1164_v11  ;;  %v1666_v62 = vsel %vm1664_vm4, %v1665_v24, 0  ;;  %vm2929_vm9 = vcmp.le.f32.partialorder %v1084_v9, 0.7853982  ;;  %v1170_v41 = vsub.s32 4, %v2837_v31 }
 0x2bb   : > { %v1046_v12 = vsub.s32 0, %v1044_v13  ;;  %v1668_v2 = vand.u32 %v2431_v47, %v1666_v62  ;;  %v1066_v33 = vsub.s32 4, %v1042_v8  ;;  %vm982_vm10 = vcmp.lt.s32.totalorder %v2650_v0, 0 }
 0x2bc   : > { %v1168_v27 = vxor.u32 2147483648, %v1167_v50  ;;  %v1171_v9 = vsel %vm1086_vm8, %v1170_v41, %v2837_v31  ;;  %vm981_vm11 = vcmp.le.f32.partialorder %v980_v16, 0.7853982  ;;  %vm1176_vm0 = vweird.f32 %v2648_v60 }
 0x2bd   : > { %v2241_v18 = vmin.u32 %v1046_v12, %v1044_v13  ;;  %2336 = vmatprep.subr.bf16.mxu0 %v1668_v2  ;;  %v1173_v20 = vsel %vm2929_vm9, 0, %v1171_v9  ;;  %v1067_v14 = vsel %vm982_vm10, %v1066_v33, %v1042_v8 }
 0x2be   : > { %2337 = vmatpush3.bf16.msra.mxu0 %v1668_v2  ;;  %v1169_v32 = vsel %vm1086_vm8, %v1168_v27, %v1167_v50  ;;  %v1177_v17 = vadd.s32 3, %v1173_v20  ;;  %v1069_v10 = vsel %vm981_vm11, 0, %v1067_v14  ;;  %v1590_v19 = vand.u32 3, %v1173_v20  ;;  %v2432_v20 = vld [vmem:[%s3064_s6 + $0x8] sm:$0xff]   ;;  %v2264_v14 = vld [vmem:[%s3065_s7] ss:$0 sm:$0xff] }
 0x2bf   : > { %v1048_v26 = vclz %v2241_v18  ;;  %v1172_v39 = vsel %vm2929_vm9, %v2648_v60, %v1169_v32  ;;  %v1073_v43 = vadd.s32 3, %v1069_v10  ;;  %v1487_v8 = vand.u32 3, %v1069_v10  ;;  %2342 = vmatprep.subr.bf16.mxu1 %v2432_v20 }
 0x2c0   : > { %2456 = vcosq.f32 %v1172_v39  ;;  %v1178_v21 = vand.u32 3, %v1177_v17  ;;  %vm1592_vm12 = vcmp.eq.s32.totalorder %v1590_v19, 0  ;;  %vm1595_vm13 = vcmp.eq.s32.totalorder %v1590_v19, 2  ;;  %2343 = vmatpush3.bf16.msra.mxu1 %v2432_v20 }
 0x2c1   : > { %v2242_v6 = vadd.s32 4294967294, %v1048_v26  ;;  %2458 = vsinq.f32 %v1172_v39  ;;  %v1074_v56 = vand.u32 3, %v1073_v43  ;;  %vm1591_vm3 = vcmp.lt.s32.totalorder %v1590_v19, 2 }
 0x2c2   : > { %vm1180_vm14 = vcmp.eq.s32.totalorder %v1178_v21, 0  ;;  %vm1183_vm15 = vcmp.eq.s32.totalorder %v1178_v21, 2  ;;  %vm1179_vm2 = vcmp.lt.s32.totalorder %v1178_v21, 2  ;;  %vm1488_vm5 = vcmp.lt.s32.totalorder %v1487_v8, 2 }
 0x2c3   : > { %vm2243_vm7 = vcmp.lt.s32.totalorder %v2242_v6, 0  ;;  %vm1079_vm6 = vcmp.eq.s32.totalorder %v1074_v56, 2  ;;  %vm1489_vm4 = vcmp.eq.s32.totalorder %v1487_v8, 0  ;;  %vm1075_vm8 = vcmp.lt.s32.totalorder %v1074_v56, 2 }
 0x2c4   : > { %v1051_v15 = vsel %vm2243_vm7, 0, %v2242_v6  ;;  %vm1492_vm7 = vcmp.eq.s32.totalorder %v1487_v8, 2  ;;  %vm1076_vm9 = vcmp.eq.s32.totalorder %v1074_v56, 0 }
 0x2c5   : > { %v1052_v35 = vsub.s32 32, %v1051_v15  ;;  %v1056_v36 = vsub.s32 4294967266, %v1051_v15  ;;  %v1053_v38 = vshll.u32 %v1044_v13, %v1051_v15 }
 0x2c7   : > { %v1054_v29 = vshrl.u32 %v1036_v55, %v1052_v35  ;;  %v1057_v63 = vadd.s32 127, %v1056_v36 }
 0x2c9   : > { %v1055_v5 = vor.u32 %v1054_v29, %v1053_v38  ;;  %v1058_v40 = vshll.u32 %v1057_v63, 23 }
 0x2ca   : > { %v2457_v54 = vpop.eup %2456 }
 0x2cb   : > { %v1059_v51 = vor.u32 4788187, %v1058_v40  ;;  %v1062_v48 = vcvt.s32.f32 %v1055_v5  ;;  %v2459_v31 = vpop.eup %2458  ;;  %v1184_v52 = vxor.u32 2147483648, %v2457_v54 }
 0x2cc   : > { %v1181_v28 = vxor.u32 2147483648, %v2459_v31 }
 0x2cd   : > { %v1060_v3 = vand.u32 2147483647, %v1059_v51  ;;  %v1185_v57 = vsel %vm1183_vm15, %v1184_v52, %v2459_v31  ;;  %v1597_v25 = vsel %vm1595_vm13, %v1184_v52, %v2459_v31  ;;  %vm1756_vm13 = vcmask 261120  }
 0x2ce   : > { %v1182_v16 = vsel %vm1180_vm14, %v2457_v54, %v1181_v28  ;;  %v1594_v58 = vsel %vm1592_vm12, %v2457_v54, %v1181_v28  ;;  %vm1656_vm12 = vcmask 121856   ;;  %vm2118_vm15 = vcmask 31744  }
 0x2cf   : > { %v1063_v37 = vmul.f32 %v1062_v48, %v1060_v3  ;;  %v1186_v4 = vsel %vm1179_vm2, %v1182_v16, %v1185_v57  ;;  %v1598_v23 = vsel %vm1591_vm3, %v1594_v58, %v1597_v25 }
 0x2d0   : > { %v1187_v50 = vsel %vm1176_vm0, nan, %v1186_v4  ;;  %v1599_v47 = vsel %vm1176_vm0, nan, %v1598_v23  ;;  %v2435_v4 = vld [vmem:[%s3064_s6 + $0x20] sm:$0xff]  }
 0x2d1   : > { %v1064_v42 = vxor.u32 2147483648, %v1063_v37  ;;  %v2269_v23 = vld [vmem:[%s3065_s7 + $0x1] ss:$0 sm:$0xff] }
 0x2d3   : > { %v1065_v49 = vsel %vm982_vm10, %v1064_v42, %v1063_v37  ;;  %vm1072_vm10 = vweird.f32 %v2650_v0  ;;  %v2433_v42 = vld [vmem:[%s3064_s6 + $0x10] sm:$0xff]  }
 0x2d4   : > { %v1068_v53 = vsel %vm981_vm11, %v2650_v0, %v1065_v49  ;;  %vm1636_vm11 = vcmask 72704   ;;  %2344 = vmatprep.subr.bf16.mxu1 %v2433_v42  ;;  %v2268_v49 = vld [vmem:[%s3063_s5] ss:$0 sm:$0xff] }
 0x2d5   : > { %2460 = vcosq.f32 %v1068_v53  ;;  %2345 = vmatpush3.bf16.msra.mxu1 %v2433_v42 }
 0x2d6   : > { %2462 = vsinq.f32 %v1068_v53 }
 0x2df   : > { %v2461_v61 = vpop.eup %2460 }
 0x2e0   : > { %v2463_v59 = vpop.eup %2462  ;;  %v1080_v1 = vxor.u32 2147483648, %v2461_v61 }
 0x2e1   : > { %v1077_v11 = vxor.u32 2147483648, %v2463_v59 }
 0x2e2   : > { %v1081_v13 = vsel %vm1079_vm6, %v1080_v1, %v2463_v59  ;;  %v1494_v45 = vsel %vm1492_vm7, %v1080_v1, %v2463_v59  ;;  %v2434_v1 = vld [vmem:[%s3064_s6 + $0x18] sm:$0xff]  }
 0x2e3   : > { %v1078_v12 = vsel %vm1076_vm9, %v2461_v61, %v1077_v11  ;;  %v1491_v18 = vsel %vm1489_vm4, %v2461_v61, %v1077_v11  ;;  %2350 = vmatprep.subr.bf16.mxu0 %v2434_v1 }
 0x2e4   : > { %v1082_v22 = vsel %vm1075_vm8, %v1078_v12, %v1081_v13  ;;  %v1495_v24 = vsel %vm1488_vm5, %v1491_v18, %v1494_v45 }
 0x2e5   : > { %v1083_v26 = vsel %vm1072_vm10, nan, %v1082_v22  ;;  %v1496_v62 = vsel %vm1072_vm10, nan, %v1495_v24 }
 0x2e6   : > { %v2420_v27 = vpack.i.bf16 %v1187_v50, %v1083_v26  ;;  %v2425_v6 = vpack.i.bf16 %v1599_v47, %v1496_v62 }
 0x2e8   : > { %2421 = vrot.lane.b32.xlu1 %v2420_v27, %s2488_s22 }
 0x2ec   : > { %2426 = vrot.lane.b32.xlu1 %v2425_v6, %s2487_s21 }
 0x32b   : > { %v2417_v2 = vpop.permute.xlu1 %2416  ;;  %v2412_v15 = vpop.permute.xlu0 %2411 }
 0x32c   : > { %v2419_v32 = vunpack.i.h.bf16 %v2417_v2  ;;  %v2418_v55 = vunpack.i.l.bf16 %v2417_v2  ;;  %v2414_v60 = vunpack.i.h.bf16 %v2412_v15  ;;  %v2413_v35 = vunpack.i.l.bf16 %v2412_v15  ;;  %v2436_v15 = vld [vmem:[%s3064_s6 + $0x28] sm:$0xff]  }
 0x32d   : > { %2358 = vmatprep.subr.bf16.mxu1 %v2436_v15 }
 0x32e   : > { %v1633_v0 = vsel %vm394_vm1, %v2618_v34, %v2414_v60  ;;  %v1632_v36 = vsel %vm394_vm1, %v2614_v30, %v2413_v35 }
 0x32f   : > { %v1637_v7 = vsel %vm1636_vm11, %v1632_v36, %v2418_v55  ;;  %v1638_v38 = vsel %vm1636_vm11, %v1633_v0, %v2419_v32  ;;  %v2437_v32 = vld [vmem:[%s3064_s6 + $0x30] sm:$0xff]   ;;  %v2274_v55 = vld [vmem:[%s3065_s7 + $0x2] ss:$0 sm:$0xff] }
 0x330   : > { %v1644_v29 = vpack.c.bf16 %v1638_v38, %v1637_v7 }
 0x332   : > { %2338 = vmatprep.mubr.msk.bf16.mxu0 %vm1656_vm12, %v1644_v29 }
 0x35a   : > { %v2422_v63 = vpop.permute.xlu1 %2421 }
 0x35b   : > { %v2424_v39 = vunpack.i.h.bf16 %v2422_v63  ;;  %v2423_v5 = vunpack.i.l.bf16 %v2422_v63 }
 0x35d   : > { %v1635_v3 = vsel %vm394_vm1, %v2630_v46, %v2424_v39  ;;  %v1634_v48 = vsel %vm394_vm1, %v2627_v44, %v2423_v5 }
 0x35e   : > { %v2427_v40 = vpop.permute.xlu1 %2426 }
 0x35f   : > { %v2429_v41 = vunpack.i.h.bf16 %v2427_v40  ;;  %v2428_v51 = vunpack.i.l.bf16 %v2427_v40 }
 0x361   : > { %v1639_v9 = vsel %vm1636_vm11, %v1634_v48, %v2428_v51  ;;  %v1640_v33 = vsel %vm1636_vm11, %v1635_v3, %v2429_v41  ;;  %v2438_v48 = vld [vmem:[%s3064_s6 + $0x38] sm:$0xff]  }
 0x362   : > { %v1645_v37 = vpack.c.bf16 %v1640_v33, %v1639_v9  ;;  %v2439_v9 = vld [vmem:[%s3064_s6 + $0x40] sm:$0xff]  }
 0x363   : > { %v2279_v33 = vld [vmem:[%s3065_s7 + $0x3] ss:$0 sm:$0xff] }
 0x364   : > { %2339 = vmatmul.mubr.msk.bf16.vlgmr.msra.gmra.mrb[8].mxu0 %vm1656_vm12, %v1645_v37 }
 0x365   : > { %2351 = vmatpush3.bf16.msra.mxu0 %v2434_v1  ;;  %v2062_v1 = vld [vmem:[%s333_s15] sm:$0xff] }
 0x366   : > { %2352 = vmatprep.subr.bf16.mxu0 %v2435_v4 }
 0x369   : > { %2353 = vmatpush3.bf16.msra.mxu0 %v2435_v4  ;;  %v2064_v4 = vld [vmem:[%s333_s15 + $0x10] sm:$0xff] }
 0x36a   : > { %2366 = vmatprep.subr.bf16.mxu0 %v2438_v48 }
 0x437   : > { %v2340_v17 = vpop.f32.mrb[8].mxu0 }
 0x438   : > { %v1713_v53 = vadd.f32 %v2340_v17, %v2264_v14  ;;  %v1704_v54 = vpop.f32.mrb[9].mxu0 }
 0x439   : > { %v1705_v10 = vadd.f32 %v2264_v14, %v1704_v54  ;;  %v2341_v31 = vpop.f32.mrb[10].mxu0 }
 0x43a   : > { %v1727_v19 = vadd.f32 %v2268_v49, %v1713_v53  ;;  %v1716_v43 = vadd.f32 %v2341_v31, %v2264_v14  ;;  %v1707_v21 = vpop.f32.mrb[11].mxu0 }
 0x43b   : > { %v1725_v28 = vadd.f32 %v2268_v49, %v1705_v10  ;;  %v1708_v52 = vadd.f32 %v2264_v14, %v1707_v21 }
 0x43c   : > { %v1728_v8 = vadd.f32 %v2268_v49, %v1716_v43  ;;  %v1731_v16 = vmax.f32 %v1727_v19, 0.0 }
 0x43d   : > { %v1726_v56 = vadd.f32 %v2268_v49, %v1708_v52  ;;  %v1729_v58 = vmax.f32 %v1725_v28, 0.0  ;;  %v2284_v52 = vld [vmem:[%s3065_s7 + $0x4] ss:$0 sm:$0xff] }
 0x43e   : > { %v1732_v57 = vmax.f32 %v1728_v8, 0.0 }
 0x43f   : > { %v1730_v25 = vmax.f32 %v1726_v56, 0.0 }
 0x440   : > { %v1738_v61 = vpack.c.bf16 %v1732_v57, %v1731_v16 }
 0x441   : > { %v1737_v59 = vpack.c.bf16 %v1730_v25, %v1729_v58 }
 0x443   : > { %2346 = vmatprep.mubr.msk.bf16.mxu1 %vm1756_vm13, %v1737_v59 }
 0x444   : > { %2347 = vmatmul.mubr.msk.bf16.vlgmr.msra.gmra.mrb[12].mxu1 %vm1756_vm13, %v1738_v61 }
 0x445   : > { %2359 = vmatpush3.bf16.msra.mxu1 %v2436_v15 }
 0x446   : > { %2360 = vmatprep.subr.bf16.mxu1 %v2437_v32 }
 0x449   : > { %2361 = vmatpush3.bf16.msra.mxu1 %v2437_v32 }
 0x517   : > { %v2348_v11 = vpop.f32.mrb[12].mxu1 }
 0x518   : > { %v1806_v13 = vadd.f32 %v2348_v11, %v2269_v23  ;;  %v1797_v45 = vpop.f32.mrb[13].mxu1 }
 0x519   : > { %v1798_v12 = vadd.f32 %v2269_v23, %v1797_v45  ;;  %v2349_v50 = vpop.f32.mrb[14].mxu1 }
 0x51a   : > { %v1809_v18 = vadd.f32 %v2349_v50, %v2269_v23  ;;  %v1800_v47 = vpop.f32.mrb[15].mxu1  ;;  %v1814_v24 = vmax.f32 %v1806_v13, 0.0  ;;  %v2063_v13 = vld [vmem:[%s333_s15 + $0x8] sm:$0xff] }
 0x51b   : > { %v1801_v22 = vadd.f32 %v2269_v23, %v1800_v47  ;;  %v1812_v62 = vmax.f32 %v1798_v12, 0.0  ;;  %v2065_v47 = vld [vmem:[%s333_s15 + $0x18] sm:$0xff] }
 0x51c   : > { %v1815_v26 = vmax.f32 %v1809_v18, 0.0 }
 0x51d   : > { %v1813_v27 = vmax.f32 %v1801_v22, 0.0 }
 0x51e   : > { %v1821_v6 = vpack.c.bf16 %v1815_v26, %v1814_v24 }
 0x51f   : > { %v1820_v2 = vpack.c.bf16 %v1813_v27, %v1812_v62 }
 0x521   : > { %2354 = vmatprep.mubr.msk.bf16.mxu0 %vm1756_vm13, %v1820_v2 }
 0x522   : > { %2355 = vmatmul.mubr.msk.bf16.vlgmr.msra.gmra.mrb[12].mxu0 %vm1756_vm13, %v1821_v6 }
 0x523   : > { %2367 = vmatpush3.bf16.msra.mxu0 %v2438_v48 }
 0x524   : > { %2368 = vmatprep.subr.bf16.mxu0 %v2439_v9 }
 0x527   : > { %2369 = vmatpush3.bf16.msra.mxu0 %v2439_v9 }
 0x5f5   : > { %v2356_v60 = vpop.f32.mrb[12].mxu0 }
 0x5f6   : > { %v1888_v35 = vadd.f32 %v2356_v60, %v2274_v55  ;;  %v1879_v0 = vpop.f32.mrb[13].mxu0 }
 0x5f7   : > { %v1880_v36 = vadd.f32 %v2274_v55, %v1879_v0  ;;  %v2357_v7 = vpop.f32.mrb[14].mxu0 }
 0x5f8   : > { %v1891_v38 = vadd.f32 %v2357_v7, %v2274_v55  ;;  %v1882_v29 = vpop.f32.mrb[15].mxu0  ;;  %v1896_v39 = vmax.f32 %v1888_v35, 0.0 }
 0x5f9   : > { %v1883_v63 = vadd.f32 %v2274_v55, %v1882_v29  ;;  %v1894_v40 = vmax.f32 %v1880_v36, 0.0 }
 0x5fa   : > { %v1897_v5 = vmax.f32 %v1891_v38, 0.0 }
 0x5fb   : > { %v1895_v41 = vmax.f32 %v1883_v63, 0.0 }
 0x5fc   : > { %v1903_v51 = vpack.c.bf16 %v1897_v5, %v1896_v39 }
 0x5fd   : > { %v1902_v3 = vpack.c.bf16 %v1895_v41, %v1894_v40 }
 0x5ff   : > { %2362 = vmatprep.mubr.msk.bf16.mxu1 %vm1756_vm13, %v1902_v3 }
 0x600   : > { %2363 = vmatmul.mubr.msk.bf16.vlgmr.msra.gmra.mrb[16].mxu1 %vm1756_vm13, %v1903_v51 }
 0x6d3   : > { %v2364_v37 = vpop.f32.mrb[16].mxu1 }
 0x6d4   : > { %v1970_v20 = vadd.f32 %v2364_v37, %v2279_v33  ;;  %v1961_v42 = vpop.f32.mrb[17].mxu1 }
 0x6d5   : > { %v1962_v14 = vadd.f32 %v2279_v33, %v1961_v42  ;;  %v2365_v49 = vpop.f32.mrb[18].mxu1 }
 0x6d6   : > { %v1973_v17 = vadd.f32 %v2365_v49, %v2279_v33  ;;  %v1964_v53 = vpop.f32.mrb[19].mxu1  ;;  %v1978_v10 = vmax.f32 %v1970_v20, 0.0 }
 0x6d7   : > { %v1965_v54 = vadd.f32 %v2279_v33, %v1964_v53  ;;  %v1976_v19 = vmax.f32 %v1962_v14, 0.0 }
 0x6d8   : > { %v1979_v31 = vmax.f32 %v1973_v17, 0.0 }
 0x6d9   : > { %v1977_v43 = vmax.f32 %v1965_v54, 0.0 }
 0x6da   : > { %v1985_v21 = vpack.c.bf16 %v1979_v31, %v1978_v10 }
 0x6db   : > { %v1984_v28 = vpack.c.bf16 %v1977_v43, %v1976_v19 }
 0x6dd   : > { %2370 = vmatprep.mubr.msk.bf16.mxu0 %vm1756_vm13, %v1984_v28 }
 0x6de   : > { %2371 = vmatmul.mubr.msk.bf16.vlgmr.msra.gmra.mrb[16].mxu0 %vm1756_vm13, %v1985_v21 }
 0x7b1   : > { %v2372_v8 = vpop.f32.mrb[16].mxu0 }
 0x7b2   : > { %v2052_v56 = vadd.f32 %v2372_v8, %v2284_v52  ;;  %v2043_v16 = vpop.f32.mrb[17].mxu0 }
 0x7b3   : > { %v2044_v57 = vadd.f32 %v2284_v52, %v2043_v16  ;;  %v2373_v58 = vpop.f32.mrb[18].mxu0 }
 0x7b4   : > { %v3022_v25 = vadd.f32 %v2052_v56, %v2627_v44  ;;  %v2055_v61 = vadd.f32 %v2373_v58, %v2284_v52  ;;  %v2046_v59 = vpop.f32.mrb[19].mxu0 }
 0x7b5   : > { %v2058_v23 = vadd.f32 %v2044_v57, %v2614_v30  ;;  %v2047_v11 = vadd.f32 %v2284_v52, %v2046_v59 }
 0x7b6   : > { %v3026_v45 = vadd.f32 %v2055_v61, %v2630_v46  ;;  %v2068_v18 = vsub.f32 %v2064_v4, %v3022_v25 }
 0x7b7   : > { %v2059_v12 = vadd.f32 %v2047_v11, %v2618_v34  ;;  %v2066_v50 = vsub.f32 %v2062_v1, %v2058_v23 }
 0x7b8   : > { %v2072_v62 = vmul.f32 %v2068_v18, %v2068_v18  ;;  %v2069_v27 = vsub.f32 %v2065_v47, %v3026_v45 }
 0x7b9   : > { %v2070_v22 = vmul.f32 %v2066_v50, %v2066_v50  ;;  %v2067_v44 = vsub.f32 %v2063_v13, %v2059_v12 }
 0x7ba   : > { %v2080_v46 = vsel %vm394_vm1, %v2072_v62, 0.0  ;;  %v2073_v6 = vmul.f32 %v2069_v27, %v2069_v27 }
 0x7bb   : > { %v2074_v24 = vsel %vm394_vm1, %v2070_v22, 0.0  ;;  %v2071_v26 = vmul.f32 %v2067_v44, %v2067_v44 }
 0x7bc   : > { %2075 = vadd.xlane.f32.xlu0 %v2074_v24  ;;  %v2083_v34 = vsel %vm394_vm1, %v2073_v6, 0.0 }
 0x7bd   : > { %v2077_v30 = vsel %vm394_vm1, %v2071_v26, 0.0 }
 0x7be   : > { %2078 = vadd.xlane.f32.xlu1 %v2077_v30 }
 0x7c0   : > { %2081 = vadd.xlane.f32.xlu0 %v2080_v46 }
 0x7c4   : > { %2084 = vadd.xlane.f32.xlu0 %v2083_v34 }
 0x849   : > { %v2076_v2 = vpop.xlane.xlu0 %2075 }
 0x84a   : > { %2464 = vrsqrt.f32 %v2076_v2  ;;  %vm2088_vm14 = vcmp.eq.f32.partialorder %v2076_v2, inf  ;;  %v2091_v36 = vand.u32 2147483648, %v2076_v2  ;;  %vm2090_vm0 = vcmp.eq.f32.partialorder %v2076_v2, 0.0 }
 0x84b   : > { %v2079_v15 = vpop.xlane.xlu1 %2078 }
 0x84c   : > { %2466 = vrsqrt.f32 %v2079_v15  ;;  %vm2095_vm2 = vcmp.eq.f32.partialorder %v2079_v15, inf  ;;  %v2098_v39 = vand.u32 2147483648, %v2079_v15  ;;  %vm2097_vm3 = vcmp.eq.f32.partialorder %v2079_v15, 0.0 }
 0x84d   : > { %v2082_v32 = vpop.xlane.xlu0 %2081 }
 0x84e   : > { %2468 = vrsqrt.f32 %v2082_v32  ;;  %vm2102_vm5 = vcmp.eq.f32.partialorder %v2082_v32, inf  ;;  %v2105_v3 = vand.u32 2147483648, %v2082_v32  ;;  %vm2104_vm6 = vcmp.eq.f32.partialorder %v2082_v32, 0.0 }
 0x851   : > { %v2085_v55 = vpop.xlane.xlu0 %2084 }
 0x852   : > { %2470 = vrsqrt.f32 %v2085_v55  ;;  %vm2109_vm4 = vcmp.eq.f32.partialorder %v2085_v55, inf  ;;  %v2112_v14 = vand.u32 2147483648, %v2085_v55  ;;  %vm2111_vm7 = vcmp.eq.f32.partialorder %v2085_v55, 0.0 }
 0x854   : > { %v2465_v60 = vpop.eup %2464 }
 0x855   : > { %v2087_v35 = vmul.f32 %v2465_v60, %v2076_v2 }
 0x856   : > { %v2467_v0 = vpop.eup %2466 }
 0x857   : > { %v2089_v7 = vsel %vm2088_vm14, %v2076_v2, %v2087_v35  ;;  %v2094_v38 = vmul.f32 %v2467_v0, %v2079_v15 }
 0x858   : > { %v2469_v29 = vpop.eup %2468  ;;  %v2092_v63 = vsel %vm2090_vm0, %v2091_v36, %v2089_v7 }
 0x859   : > { %v2114_v5 = vsel %vm394_vm1, %v2058_v23, %v2092_v63  ;;  %v2096_v40 = vsel %vm2095_vm2, %v2079_v15, %v2094_v38  ;;  %v2101_v41 = vmul.f32 %v2469_v29, %v2082_v32 }
 0x85a   : > { %2119 = vst.msk [vmem:[%s3039_s18] sm:$0xff] %vm2118_vm15, %v2114_v5  ;;  %v2099_v51 = vsel %vm2097_vm3, %v2098_v39, %v2096_v40 }
 0x85b   : > { %v2115_v48 = vsel %vm394_vm1, %v2059_v12, %v2099_v51  ;;  %v2103_v9 = vsel %vm2102_vm5, %v2082_v32, %v2101_v41 }
 0x85c   : > { %v2471_v33 = vpop.eup %2470  ;;  %2120 = vst.msk [vmem:[%s3039_s18 + $0x8] sm:$0xff] %vm2118_vm15, %v2115_v48  ;;  %v2106_v37 = vsel %vm2104_vm6, %v2105_v3, %v2103_v9 }
 0x85d   : > { %v2116_v20 = vsel %vm394_vm1, %v3022_v25, %v2106_v37  ;;  %v2108_v42 = vmul.f32 %v2471_v33, %v2085_v55 }
 0x85e   : > { %2121 = vst.msk [vmem:[%s3039_s18 + $0x10] sm:$0xff] %vm2118_vm15, %v2116_v20 }
 0x85f   : > { %v2110_v49 = vsel %vm2109_vm4, %v2085_v55, %v2108_v42 }
 0x860   : > { %v2113_v17 = vsel %vm2111_vm7, %v2112_v14, %v2110_v49 }
 0x861   : > { %v2117_v53 = vsel %vm394_vm1, %v3026_v45, %v2113_v17 }
 0x862   : > { %2122 = vst.msk [vmem:[%s3039_s18 + $0x18] sm:$0xff] %vm2118_vm15, %v2117_v53 }
 0x863 PF: > { %s18_s27 = sadd.s32 1, %s2478_s27  }
 0x864   : > { %p15_p4 = scmp.ge.s32.totalorder %s18_s27, 4  }
 0x866   :  { %17 = sbr.rel (!%p15_p4) target bundleno = 1 (0x1), region = 88 }

// kernel: network_forward.5
= control target key start
LH: loop header
LB: loop body
LE: loop exit
PB: predicated region body
PF: predicated region fallthrough
CT: control target
= control target key end

     0   :  { %s1002_s17 = smov 1   ;;  %vm96_vm0 = vcmask 23552   ;;  %s1003_s20 = smov 127   ;;  %v117_v12 = vlaneseq  ;;  %vm93_vm2 = vcmask 56320   ;;  %v1005_v36 = vmov 7   ;;  %s1354_s1 = inlined_call_operand.vmem [shape: f32[8,8], index: 1, kind: input, shape index: {}]   ;;  %s1355_s2 = inlined_call_operand.vmem [shape: f32[8,3], index: 2, kind: input, shape index: {}]   ;;  %s1356_s0 = inlined_call_operand.vmem [shape: f32[8,8,8], index: 0, kind: input, shape index: {}]   ;;  %s1357_s3 = inlined_call_operand.vmem [shape: f32[1,3], index: 3, kind: input, shape index: {}]   ;;  %s1358_s4 = inlined_call_operand.vmem [shape: f32[8,5], index: 4, kind: output, shape index: {}]  }
   0x1   :  { %v1038_v0 = vld [vmem:[%s1354_s1] sm:$0xff]  ;;  %v1049_v6 = vld [vmem:[%s1356_s0 + $0x8] sm:$0xff]  ;;  %s1004_s22 = smov 4   ;;  %v1056_v7 = vld [vmem:[%s1356_s0 + $0x10] sm:$0xff]  ;;  %932 = vset.pattern.permute.xlu1 %v1005_v36  ;;  %933 = vset.pattern.permute.xlu0 %v1005_v36  ;;  %vm1007_vm5 = vmmov 0   ;;  %vm364_vm6 = vcmask 1041409  }
   0x2   :  { %85 = vrot.lane.b32.xlu0 %v1038_v0, %s1002_s17  ;;  %v26_v1 = vld [vmem:[%s1355_s2] sm:$0xff]  ;;  %v1070_v9 = vld [vmem:[%s1356_s0 + $0x38] sm:$0xff]  ;;  %v1075_v14 = vshrl.u32 %v117_v12, 7  ;;  %v1126_v40 = vld [vmem:[%s1356_s0 + $0x28] sm:$0xff]  ;;  %v77_v46 = vmax.f32 %v1049_v6, 0.0  ;;  %v78_v50 = vmax.f32 %v1056_v7, 0.0 }
   0x3   :  { %v95_v2 = vmul.f32 %v26_v1, %v26_v1  ;;  %v1063_v8 = vld [vmem:[%s1356_s0] sm:$0xff]  ;;  %v1112_v38 = vld [vmem:[%s1356_s0 + $0x18] sm:$0xff]  ;;  %v1133_v41 = vld [vmem:[%s1356_s0 + $0x30] sm:$0xff]  ;;  %vm366_vm7 = vcmask 1042434   ;;  %vm368_vm8 = vcmask 1043459   ;;  %vm370_vm9 = vcmask 1044484  }
   0x4   :  { %v1078_v18 = vsub.s32 0, %v1075_v14  ;;  %v1082_v23 = vsub.s32 1, %v1075_v14  ;;  %v1086_v25 = vsub.s32 2, %v1075_v14  ;;  %v1090_v27 = vsub.s32 3, %v1075_v14  ;;  %v1119_v39 = vld [vmem:[%s1356_s0 + $0x20] sm:$0xff] }
   0x5   :  { %v97_v3 = vsel %vm96_vm0, %v95_v2, 0.0  ;;  %v1094_v29 = vsub.s32 4, %v1075_v14  ;;  %v1098_v31 = vsub.s32 5, %v1075_v14  ;;  %v1102_v33 = vsub.s32 6, %v1075_v14 }
   0x6   :  { %v1106_v35 = vsub.s32 7, %v1075_v14  ;;  %v76_v43 = vmax.f32 %v1063_v8, 0.0  ;;  %v109_v49 = vsub.f32 0.0, %v77_v46  ;;  %v110_v54 = vsub.f32 0.0, %v78_v50 }
   0x7   :  { %v79_v55 = vmax.f32 %v1112_v38, 0.0  ;;  %v80_v60 = vmax.f32 %v1119_v39, 0.0  ;;  %v81_v2 = vmax.f32 %v1126_v40, 0.0  ;;  %vm372_vm10 = vcmask 1045509  }
   0x8   :  { %v108_v45 = vsub.f32 0.0, %v76_v43  ;;  %vm374_vm11 = vcmask 1046534   ;;  %vm376_vm12 = vcmask 1047559   ;;  %vm378_vm13 = vcmask 64512  }
   0x9   :  { %v111_v59 = vsub.f32 0.0, %v79_v55  ;;  %v112_v1 = vsub.f32 0.0, %v80_v60  ;;  %vm574_vm14 = vcmask 56352   ;;  %vm897_vm15 = vcmask 31744  }
  0x21   :  { %98 = vadd.xlane.f32.xlu0 %v97_v3 }
  0x37   :  { %221 = vrot.lane.b32.xlu0 %v1063_v8, %s1004_s22 }
  0x3b   :  { %235 = vrot.lane.b32.xlu0 %v1070_v9, %s1004_s22 }
  0x74   :  { %v86_v4 = vpop.permute.xlu0 %85 }
  0x75   :  { %v88_v5 = vsub.f32 %v1038_v0, %v86_v4 }
  0x77   :  { %90 = vrot.lane.b32.xlu1 %v88_v5, %s1003_s20 }
  0x7b   :  { %223 = vrot.lane.b32.xlu1 %v1049_v6, %s1004_s22 }
  0x7f   :  { %225 = vrot.lane.b32.xlu1 %v1056_v7, %s1004_s22 }
  0xae   :  { %v99_v10 = vpop.xlane.xlu0 %98 }
  0xaf   :  { %934 = vrsqrt.f32 %v99_v10  ;;  %vm102_vm1 = vcmp.eq.f32.partialorder %v99_v10, inf  ;;  %v105_v15 = vand.u32 2147483648, %v99_v10  ;;  %vm104_vm3 = vcmp.eq.f32.partialorder %v99_v10, 0.0 }
  0xb2   :  { %v222_v5 = vpop.permute.xlu0 %221 }
  0xb9   :  { %v935_v11 = vpop.eup %934 }
  0xba   :  { %v101_v13 = vmul.f32 %v935_v11, %v99_v10 }
  0xbc   :  { %v103_v16 = vsel %vm102_vm1, %v99_v10, %v101_v13  ;;  %vm899_vm1 = vcmask 39936  }
  0xbd   :  { %v106_v20 = vsel %vm104_vm3, %v105_v15, %v103_v16  ;;  %v113_v15 = vsub.f32 0.0, %v81_v2  ;;  %v82_v16 = vmax.f32 %v1133_v41, 0.0 }
  0xe9   :  { %v91_v17 = vpop.permute.xlu1 %90 }
  0xea   :  { %v94_v19 = vsel %vm93_vm2, %v91_v17, 1e+10 }
  0xeb   :  { %v107_v21 = vmul.f32 %v106_v20, %v94_v19 }
  0xed   :  { %v120_v22 = vrot.slane %v107_v21, %v1078_v18  ;;  %v127_v24 = vrot.slane %v107_v21, %v1082_v23  ;;  %v134_v26 = vrot.slane %v107_v21, %v1086_v25  ;;  %v141_v28 = vrot.slane %v107_v21, %v1090_v27  ;;  %v224_v42 = vpop.permute.xlu1 %223 }
  0xee   :  { %v148_v30 = vrot.slane %v107_v21, %v1094_v29  ;;  %v155_v32 = vrot.slane %v107_v21, %v1098_v31  ;;  %v162_v34 = vrot.slane %v107_v21, %v1102_v33  ;;  %v169_v37 = vrot.slane %v107_v21, %v1106_v35 }
  0xef   :  { %122 = vbcast.lane.b32.xlu1 %v120_v22, 256 }
  0xf1   :  { %v226_v44 = vpop.permute.xlu1 %225 }
  0xf3   :  { %129 = vbcast.lane.b32.xlu1 %v127_v24, 256 }
  0xf7   :  { %136 = vbcast.lane.b32.xlu1 %v134_v26, 256 }
  0xfb   :  { %143 = vbcast.lane.b32.xlu1 %v141_v28, 256  ;;  %v114_v28 = vsub.f32 0.0, %v82_v16 }
  0xff   :  { %150 = vbcast.lane.b32.xlu1 %v148_v30, 256  ;;  %v83_v30 = vmax.f32 %v1070_v9, 0.0 }
 0x103   :  { %157 = vbcast.lane.b32.xlu1 %v155_v32, 256 }
 0x107   :  { %164 = vbcast.lane.b32.xlu1 %v162_v34, 256 }
 0x10b   :  { %171 = vbcast.lane.b32.xlu1 %v169_v37, 256 }
 0x10f   :  { %227 = vrot.lane.b32.xlu1 %v1112_v38, %s1004_s22 }
 0x113   :  { %229 = vrot.lane.b32.xlu1 %v1119_v39, %s1004_s22 }
 0x117   :  { %231 = vrot.lane.b32.xlu1 %v1126_v40, %s1004_s22 }
 0x11b   :  { %233 = vrot.lane.b32.xlu1 %v1133_v41, %s1004_s22 }
 0x161   :  { %v123_v47 = vpop.permute.xlu1 %122 }
 0x162   :  { %v181_v48 = vmul.f32 %v123_v47, %v108_v45 }
 0x164   :  { %v189_v51 = vmul.f32 1.442695, %v181_v48 }
 0x165   :  { %v130_v52 = vpop.permute.xlu1 %129 }
 0x166   :  { %936 = vpow2.f32 %v189_v51  ;;  %v182_v53 = vmul.f32 %v130_v52, %v109_v49  ;;  %v115_v49 = vsub.f32 0.0, %v83_v30 }
 0x168   :  { %v191_v56 = vmul.f32 1.442695, %v182_v53 }
 0x169   :  { %v137_v57 = vpop.permute.xlu1 %136 }
 0x16a   :  { %938 = vpow2.f32 %v191_v56  ;;  %v183_v58 = vmul.f32 %v137_v57, %v110_v54 }
 0x16c   :  { %v193_v61 = vmul.f32 1.442695, %v183_v58 }
 0x16d   :  { %v144_v62 = vpop.permute.xlu1 %143 }
 0x16e   :  { %940 = vpow2.f32 %v193_v61  ;;  %v184_v63 = vmul.f32 %v144_v62, %v111_v59 }
 0x170   :  { %v937_v3 = vpop.eup %936  ;;  %v195_v4 = vmul.f32 1.442695, %v184_v63 }
 0x171   :  { %v151_v10 = vpop.permute.xlu1 %150  ;;  %v205_v11 = vsub.f32 1.0, %v937_v3 }
 0x172   :  { %v185_v13 = vmul.f32 %v151_v10, %v112_v1  ;;  %942 = vpow2.f32 %v195_v4 }
 0x173   :  { %v1144_v17 = vmul.f32 %v222_v5, %v205_v11 }
 0x174   :  { %v939_v19 = vpop.eup %938  ;;  %v197_v20 = vmul.f32 1.442695, %v185_v13 }
 0x175   :  { %v206_v21 = vsub.f32 1.0, %v939_v19  ;;  %v253_v22 = vsub.f32 1.0, %v1144_v17  ;;  %v158_v24 = vpop.permute.xlu1 %157 }
 0x176   :  { %v186_v26 = vmul.f32 %v158_v24, %v113_v15  ;;  %944 = vpow2.f32 %v197_v20 }
 0x177   :  { %v1148_v32 = vmul.f32 %v224_v42, %v206_v21  ;;  %v261_v34 = vadd.f32 1e-10, %v253_v22 }
 0x178   :  { %v941_v36 = vpop.eup %940  ;;  %v199_v37 = vmul.f32 1.442695, %v186_v26 }
 0x179   :  { %v207_v43 = vsub.f32 1.0, %v941_v36  ;;  %v269_v45 = vmax.f32 %v261_v34, 1e-10  ;;  %v165_v46 = vpop.permute.xlu1 %164  ;;  %v254_v47 = vsub.f32 1.0, %v1148_v32 }
 0x17a   :  { %946 = vpow2.f32 %v199_v37  ;;  %v187_v48 = vmul.f32 %v165_v46, %v114_v28  ;;  %v236_v37 = vpop.permute.xlu0 %235 }
 0x17b   :  { %v1151_v50 = vmul.f32 %v226_v44, %v207_v43  ;;  %948 = vlog2.f32 %v269_v45  ;;  %v262_v51 = vadd.f32 1e-10, %v254_v47 }
 0x17c   :  { %v201_v52 = vmul.f32 1.442695, %v187_v48  ;;  %v943_v53 = vpop.eup %942 }
 0x17d   :  { %v172_v42 = vpop.permute.xlu1 %171  ;;  %v270_v54 = vmax.f32 %v262_v51, 1e-10  ;;  %v255_v55 = vsub.f32 1.0, %v1151_v50  ;;  %v208_v59 = vsub.f32 1.0, %v943_v53 }
 0x17e   :  { %950 = vpow2.f32 %v201_v52  ;;  %v188_v56 = vmul.f32 %v172_v42, %v115_v49 }
 0x17f   :  { %952 = vlog2.f32 %v270_v54  ;;  %v263_v57 = vadd.f32 1e-10, %v255_v55 }
 0x180   :  { %v203_v58 = vmul.f32 1.442695, %v188_v56  ;;  %v945_v60 = vpop.eup %944 }
 0x181   :  { %v228_v61 = vpop.permute.xlu1 %227  ;;  %v271_v62 = vmax.f32 %v263_v57, 1e-10  ;;  %v209_v2 = vsub.f32 1.0, %v945_v60 }
 0x182   :  { %954 = vpow2.f32 %v203_v58  ;;  %v1154_v44 = vmul.f32 %v228_v61, %v208_v59 }
 0x183   :  { %956 = vlog2.f32 %v271_v62 }
 0x184   :  { %v947_v63 = vpop.eup %946  ;;  %v256_v1 = vsub.f32 1.0, %v1154_v44 }
 0x185   :  { %v949_v3 = vpop.eup %948  ;;  %v230_v4 = vpop.permute.xlu1 %229  ;;  %v210_v19 = vsub.f32 1.0, %v947_v63 }
 0x186   :  { %v264_v5 = vadd.f32 1e-10, %v256_v1  ;;  %v1157_v10 = vmul.f32 %v230_v4, %v209_v2  ;;  %v278_v11 = vmul.f32 0.6931472, %v949_v3 }
 0x188   :  { %v951_v13 = vpop.eup %950  ;;  %v272_v15 = vmax.f32 %v264_v5, 1e-10  ;;  %v257_v16 = vsub.f32 1.0, %v1157_v10  ;;  %309 = vperm.xlu1 %932, %v278_v11   ;;  %v296_v5 = vand.u32 127, %v117_v12  ;;  %v1006_v11 = vmov 0.0  }
 0x189   :  { %v953_v20 = vpop.eup %952  ;;  %v232_v21 = vpop.permute.xlu1 %231  ;;  %v211_v36 = vsub.f32 1.0, %v951_v13  ;;  %919 = vmatprep.subr.mxu0 %v1006_v11  ;;  %921 = vmatprep.mubr.msk.f32.mxu0 %vm1007_vm5, %v1006_v11  ;;  %v1008_v13 = vmov 1.0  }
 0x18a   :  { %958 = vlog2.f32 %v272_v15  ;;  %v265_v22 = vadd.f32 1e-10, %v257_v16  ;;  %v1160_v24 = vmul.f32 %v232_v21, %v210_v19  ;;  %v280_v26 = vmul.f32 0.6931472, %v953_v20 }
 0x18b   :  { %vm297_vm4 = vcmp.lt.s32.totalorder %v1075_v14, %v296_v5  ;;  %v1172_v20 = vsub.s32 %v296_v5, %v1075_v14 }
 0x18c   :  { %v955_v28 = vpop.eup %954  ;;  %v273_v30 = vmax.f32 %v265_v22, 1e-10  ;;  %v258_v34 = vsub.f32 1.0, %v1160_v24  ;;  %312 = vperm.xlu0 %933, %v280_v26   ;;  %920 = vmatpush3.msk.msra.mxu0 %vm297_vm4, %v1008_v13 }
 0x18d   :  { %v957_v43 = vpop.eup %956  ;;  %v234_v45 = vpop.permute.xlu1 %233  ;;  %v212_v46 = vsub.f32 1.0, %v955_v28 }
 0x18e   :  { %960 = vlog2.f32 %v273_v30  ;;  %v266_v47 = vadd.f32 1e-10, %v258_v34  ;;  %v1163_v48 = vmul.f32 %v234_v45, %v211_v36  ;;  %v282_v49 = vmul.f32 0.6931472, %v957_v43 }
 0x18f   :  { %v1165_v51 = vmul.f32 %v236_v37, %v212_v46 }
 0x190   :  { %v274_v52 = vmax.f32 %v266_v47, 1e-10  ;;  %v259_v53 = vsub.f32 1.0, %v1163_v48  ;;  %315 = vperm.xlu1 %932, %v282_v49  }
 0x191   :  { %v260_v42 = vsub.f32 1.0, %v1165_v51 }
 0x192   :  { %962 = vlog2.f32 %v274_v52  ;;  %v267_v54 = vadd.f32 1e-10, %v259_v53 }
 0x193   :  { %v268_v55 = vadd.f32 1e-10, %v260_v42 }
 0x194   :  { %v959_v56 = vpop.eup %958  ;;  %v275_v57 = vmax.f32 %v267_v54, 1e-10 }
 0x195   :  { %v276_v58 = vmax.f32 %v268_v55, 1e-10  ;;  %v284_v59 = vmul.f32 0.6931472, %v959_v56 }
 0x196   :  { %964 = vlog2.f32 %v275_v57 }
 0x197   :  { %966 = vlog2.f32 %v276_v58  ;;  %318 = vperm.xlu1 %932, %v284_v59  }
 0x198   :  { %v961_v60 = vpop.eup %960 }
 0x199   :  { %v286_v61 = vmul.f32 0.6931472, %v961_v60 }
 0x19b   :  { %321 = vperm.xlu0 %933, %v286_v61  }
 0x19c   :  { %v963_v62 = vpop.eup %962 }
 0x19d   :  { %v288_v63 = vmul.f32 0.6931472, %v963_v62 }
 0x19f   :  { %324 = vperm.xlu1 %932, %v288_v63  }
 0x1a0   :  { %v965_v1 = vpop.eup %964 }
 0x1a1   :  { %v967_v2 = vpop.eup %966  ;;  %v290_v3 = vmul.f32 0.6931472, %v965_v1 }
 0x1a2   :  { %v292_v4 = vmul.f32 0.6931472, %v967_v2 }
 0x1a3   :  { %327 = vperm.xlu0 %933, %v290_v3  }
 0x1a4   :  { %330 = vperm.xlu1 %932, %v292_v4  }
 0x207   :  { %v310_v15 = vpop.permute.xlu1 %309 }
 0x208   :  { %v335_v28 = vrot.slane %v310_v15, %v1172_v20 }
 0x20b   :  { %v313_v19 = vpop.permute.xlu0 %312 }
 0x20c   :  { %v339_v22 = vrot.slane %v313_v19, %v1172_v20 }
 0x20e   :  { %v365_v37 = vsel %vm364_vm6, %v339_v22, %v335_v28 }
 0x20f   :  { %v316_v16 = vpop.permute.xlu1 %315 }
 0x210   :  { %v343_v12 = vrot.slane %v316_v16, %v1172_v20 }
 0x212   :  { %v367_v43 = vsel %vm366_vm7, %v343_v12, %v365_v37 }
 0x216   :  { %v319_v21 = vpop.permute.xlu1 %318 }
 0x217   :  { %v347_v30 = vrot.slane %v319_v21, %v1172_v20 }
 0x219   :  { %v369_v45 = vsel %vm368_vm8, %v347_v30, %v367_v43 }
 0x21a   :  { %v322_v26 = vpop.permute.xlu0 %321 }
 0x21b   :  { %v351_v36 = vrot.slane %v322_v26, %v1172_v20 }
 0x21d   :  { %v371_v47 = vsel %vm370_vm9, %v351_v36, %v369_v45 }
 0x21e   :  { %v325_v34 = vpop.permute.xlu1 %324 }
 0x21f   :  { %v355_v14 = vrot.slane %v325_v34, %v1172_v20  ;;  %v648_v34 = vrot.slane %v1038_v0, %v1086_v25 }
 0x221   :  { %v373_v53 = vsel %vm372_vm10, %v355_v14, %v371_v47 }
 0x222   :  { %v328_v46 = vpop.permute.xlu0 %327 }
 0x223   :  { %v359_v49 = vrot.slane %v328_v46, %v1172_v20  ;;  %v331_v52 = vpop.permute.xlu1 %330 }
 0x224   :  { %v363_v42 = vrot.slane %v331_v52, %v1172_v20 }
 0x225   :  { %v375_v54 = vsel %vm374_vm11, %v359_v49, %v373_v53 }
 0x226   :  { %v377_v55 = vsel %vm376_vm12, %v363_v42, %v375_v54 }
 0x227   :  { %922 = vmatmul.mubr.msk.f32.vlgmr.msra.gmra.mrb[0].mxu0 %vm378_vm13, %v377_v55 }
 0x2fa   :  { %v447_v56 = vpop.f32.mrb[0].mxu0 }
 0x2fb   :  { %v451_v57 = vmul.f32 1.442695, %v447_v56  ;;  %v923_v58 = vpop.f32.mrb[1].mxu0 }
 0x2fd   :  { %968 = vpow2.f32 %v451_v57 }
 0x307   :  { %v969_v59 = vpop.eup %968 }
 0x308   :  { %v464_v60 = vrot.slane %v969_v59, %v1082_v23  ;;  %v457_v61 = vrot.slane %v969_v59, %v1078_v18  ;;  %v478_v62 = vrot.slane %v969_v59, %v1090_v27  ;;  %v471_v63 = vrot.slane %v969_v59, %v1086_v25 }
 0x309   :  { %v492_v1 = vrot.slane %v969_v59, %v1098_v31  ;;  %v485_v2 = vrot.slane %v969_v59, %v1094_v29  ;;  %v506_v3 = vrot.slane %v969_v59, %v1106_v35  ;;  %v499_v4 = vrot.slane %v969_v59, %v1102_v33 }
 0x30a   :  { %466 = vbcast.lane.b32.xlu1 %v464_v60, 256  ;;  %459 = vbcast.lane.b32.xlu0 %v457_v61, 256 }
 0x30e   :  { %480 = vbcast.lane.b32.xlu1 %v478_v62, 256  ;;  %473 = vbcast.lane.b32.xlu0 %v471_v63, 256 }
 0x312   :  { %494 = vbcast.lane.b32.xlu1 %v492_v1, 256  ;;  %487 = vbcast.lane.b32.xlu0 %v485_v2, 256 }
 0x316   :  { %508 = vbcast.lane.b32.xlu1 %v506_v3, 256  ;;  %501 = vbcast.lane.b32.xlu0 %v499_v4, 256 }
 0x37c   :  { %v467_v5 = vpop.permute.xlu1 %466  ;;  %v460_v11 = vpop.permute.xlu0 %459 }
 0x37d   :  { %v1199_v13 = vmul.f32 %v467_v5, %v1148_v32  ;;  %v518_v15 = vmul.f32 %v460_v11, %v1144_v17 }
 0x37f   :  { %533 = vperm.xlu1 %932, %v1199_v13   ;;  %528 = vperm.xlu0 %933, %v518_v15  }
 0x380   :  { %v481_v16 = vpop.permute.xlu1 %480  ;;  %v474_v19 = vpop.permute.xlu0 %473 }
 0x381   :  { %v1204_v21 = vmul.f32 %v481_v16, %v1154_v44  ;;  %v520_v22 = vmul.f32 %v474_v19, %v1151_v50 }
 0x383   :  { %543 = vperm.xlu1 %932, %v1204_v21   ;;  %538 = vperm.xlu0 %933, %v520_v22  }
 0x384   :  { %v495_v26 = vpop.permute.xlu1 %494  ;;  %v488_v12 = vpop.permute.xlu0 %487 }
 0x385   :  { %v1209_v32 = vmul.f32 %v495_v26, %v1160_v24  ;;  %v522_v17 = vmul.f32 %v488_v12, %v1157_v10  ;;  %v634_v24 = vrot.slane %v1038_v0, %v1078_v18  ;;  %v641_v10 = vrot.slane %v1038_v0, %v1082_v23 }
 0x386   :  { %v669_v18 = vrot.slane %v1038_v0, %v1098_v31  ;;  %v676_v23 = vrot.slane %v1038_v0, %v1102_v33 }
 0x387   :  { %553 = vperm.xlu1 %932, %v1209_v32   ;;  %548 = vperm.xlu0 %933, %v522_v17  }
 0x388   :  { %v509_v28 = vpop.permute.xlu1 %508  ;;  %v502_v30 = vpop.permute.xlu0 %501 }
 0x389   :  { %v1214_v44 = vmul.f32 %v509_v28, %v1165_v51  ;;  %v1217_v50 = vmul.f32 %v502_v30, %v1163_v48  ;;  %v655_v48 = vrot.slane %v1038_v0, %v1090_v27  ;;  %v662_v51 = vrot.slane %v1038_v0, %v1094_v29 }
 0x38b   :  { %563 = vperm.xlu1 %932, %v1214_v44   ;;  %558 = vperm.xlu0 %933, %v1217_v50  }
 0x38f   :  { %636 = vbcast.lane.b32.xlu1 %v634_v24, 256 }
 0x393   :  { %643 = vbcast.lane.b32.xlu1 %v641_v10, 256 }
 0x397   :  { %650 = vbcast.lane.b32.xlu1 %v648_v34, 256 }
 0x39b   :  { %657 = vbcast.lane.b32.xlu1 %v655_v48, 256 }
 0x39f   :  { %664 = vbcast.lane.b32.xlu1 %v662_v51, 256 }
 0x3a3   :  { %671 = vbcast.lane.b32.xlu1 %v669_v18, 256  ;;  %v906_v18 = vmul.f32 -1.442695, %v1049_v6  ;;  %v911_v6 = vmul.f32 -1.442695, %v1133_v41 }
 0x3a5   :  { %970 = vpow2.f32 %v906_v18 }
 0x3a7   :  { %678 = vbcast.lane.b32.xlu1 %v676_v23, 256  ;;  %v905_v23 = vmul.f32 -1.442695, %v1063_v8  ;;  %v912_v8 = vmul.f32 -1.442695, %v1070_v9 }
 0x3a9   :  { %972 = vpow2.f32 %v905_v23 }
 0x3fe   :  { %v1235_v36 = vpop.permute.xlu1 %533  ;;  %v1237_v25 = vpop.permute.xlu0 %528 }
 0x3ff   :  { %v785_v27 = vrot.slane %v1235_v36, %v1172_v20  ;;  %v781_v37 = vrot.slane %v1237_v25, %v1172_v20 }
 0x401   :  { %v810_v33 = vsel %vm364_vm6, %v785_v27, %v781_v37  ;;  %v971_v27 = vpop.eup %970  ;;  %v907_v37 = vmul.f32 -1.442695, %v1056_v7 }
 0x402   :  { %v1243_v29 = vpop.permute.xlu1 %543  ;;  %v1245_v14 = vpop.permute.xlu0 %538 }
 0x403   :  { %v789_v31 = vrot.slane %v1245_v14, %v1172_v20  ;;  %v793_v43 = vrot.slane %v1243_v29, %v1172_v20  ;;  %974 = vpow2.f32 %v907_v37 }
 0x405   :  { %v811_v45 = vsel %vm366_vm7, %v789_v31, %v810_v33  ;;  %v973_v31 = vpop.eup %972  ;;  %v53_v33 = vadd.f32 1.0, %v971_v27 }
 0x406   :  { %v1253_v46 = vpop.permute.xlu1 %553  ;;  %v1255_v47 = vpop.permute.xlu0 %548  ;;  %v812_v53 = vsel %vm368_vm8, %v793_v43, %v811_v45  ;;  %v909_v43 = vmul.f32 -1.442695, %v1119_v39  ;;  %v908_v45 = vmul.f32 -1.442695, %v1112_v38 }
 0x407   :  { %v797_v49 = vrot.slane %v1255_v47, %v1172_v20  ;;  %v801_v52 = vrot.slane %v1253_v46, %v1172_v20  ;;  %976 = vrcp.f32 %v53_v33 }
 0x408   :  { %978 = vpow2.f32 %v909_v43 }
 0x409   :  { %v813_v42 = vsel %vm370_vm9, %v797_v49, %v812_v53  ;;  %v52_v49 = vadd.f32 1.0, %v973_v31  ;;  %980 = vpow2.f32 %v908_v45 }
 0x40a   :  { %v1263_v54 = vpop.permute.xlu1 %563  ;;  %v1265_v55 = vpop.permute.xlu0 %558  ;;  %v814_v58 = vsel %vm372_vm10, %v801_v52, %v813_v42  ;;  %v910_v52 = vmul.f32 -1.442695, %v1126_v40 }
 0x40b   :  { %v809_v56 = vrot.slane %v1263_v54, %v1172_v20  ;;  %v805_v57 = vrot.slane %v1265_v55, %v1172_v20  ;;  %982 = vrcp.f32 %v52_v49 }
 0x40c   :  { %984 = vpow2.f32 %v910_v52 }
 0x40d   :  { %v815_v59 = vsel %vm374_vm11, %v805_v57, %v814_v58  ;;  %986 = vpow2.f32 %v911_v6  ;;  %v975_v7 = vpop.eup %974 }
 0x40e   :  { %v637_v60 = vpop.permute.xlu1 %636  ;;  %v816_v61 = vsel %vm376_vm12, %v809_v56, %v815_v59  ;;  %988 = vpow2.f32 %v912_v8  ;;  %v54_v42 = vadd.f32 1.0, %v975_v7 }
 0x40f   :  { %v695_v62 = vmul.f32 %v637_v60, %v518_v15  ;;  %v818_v63 = vsel %vm378_vm13, %v816_v61, 0.0  ;;  %v683_v15 = vrot.slane %v1038_v0, %v1106_v35 }
 0x410   :  { %819 = vadd.xlane.f32.xlu0 %v818_v63  ;;  %990 = vrcp.f32 %v54_v42 }
 0x411   :  { %712 = vperm.xlu1 %932, %v695_v62   ;;  %v977_v53 = vpop.eup %976 }
 0x412   :  { %v644_v1 = vpop.permute.xlu1 %643  ;;  %v979_v39 = vpop.eup %978  ;;  %v567_v59 = vmul.f32 %v977_v53, %v1235_v36 }
 0x413   :  { %v696_v2 = vmul.f32 %v644_v1, %v1199_v13  ;;  %v981_v56 = vpop.eup %980  ;;  %v56_v58 = vadd.f32 1.0, %v979_v39 }
 0x414   :  { %v55_v40 = vadd.f32 1.0, %v981_v56  ;;  %v582_v63 = vsel %vm574_vm14, %v567_v59, 0.0 }
 0x415   :  { %715 = vperm.xlu1 %932, %v696_v2   ;;  %v983_v38 = vpop.eup %982  ;;  %992 = vrcp.f32 %v56_v58 }
 0x416   :  { %v651_v3 = vpop.permute.xlu1 %650  ;;  %v985_v57 = vpop.eup %984  ;;  %v566_v9 = vmul.f32 %v983_v38, %v1237_v25  ;;  %994 = vrcp.f32 %v55_v40 }
 0x417   :  { %v697_v4 = vmul.f32 %v651_v3, %v520_v22  ;;  %v987_v41 = vpop.eup %986  ;;  %v57_v61 = vadd.f32 1.0, %v985_v57 }
 0x418   :  { %v989_v62 = vpop.eup %988  ;;  %v58_v1 = vadd.f32 1.0, %v987_v41  ;;  %v575_v3 = vsel %vm574_vm14, %v566_v9, 0.0 }
 0x419   :  { %718 = vperm.xlu1 %932, %v697_v4   ;;  %996 = vrcp.f32 %v57_v61  ;;  %v59_v2 = vadd.f32 1.0, %v989_v62  ;;  %v583_v4 = vrot.slane %v582_v63, 4  ;;  %v576_v36 = vrot.slane %v575_v3, 4 }
 0x41a   :  { %v658_v5 = vpop.permute.xlu1 %657  ;;  %998 = vrcp.f32 %v58_v1 }
 0x41b   :  { %v698_v11 = vmul.f32 %v658_v5, %v1204_v21  ;;  %v916_v21 = vld [vmem:[%s1357_s3] ss:$0 sm:$0xff]  ;;  %1000 = vrcp.f32 %v59_v2  ;;  %v577_v25 = vadd.f32 %v576_v36, %v575_v3  ;;  %s1009_s3 = smov 124  }
 0x41d   :  { %721 = vperm.xlu1 %932, %v698_v11   ;;  %v991_v11 = vpop.eup %990 }
 0x41e   :  { %v665_v16 = vpop.permute.xlu1 %664 }
 0x41f   :  { %v699_v19 = vmul.f32 %v665_v16, %v522_v17  ;;  %v584_v16 = vadd.f32 %v583_v4, %v582_v63 }
 0x421   :  { %724 = vperm.xlu1 %932, %v699_v19   ;;  %v993_v19 = vpop.eup %992 }
 0x422   :  { %v672_v26 = vpop.permute.xlu1 %671 }
 0x423   :  { %v700_v12 = vmul.f32 %v672_v26, %v1209_v32  ;;  %v568_v26 = vmul.f32 %v991_v11, %v1245_v14 }
 0x425   :  { %727 = vperm.xlu1 %932, %v700_v12   ;;  %v995_v12 = vpop.eup %994 }
 0x426   :  { %v679_v28 = vpop.permute.xlu1 %678  ;;  %685 = vbcast.lane.b32.xlu0 %v683_v15, 256 }
 0x427   :  { %v701_v13 = vmul.f32 %v679_v28, %v1217_v50  ;;  %v585_v28 = vrot.slane %v584_v16, 2 }
 0x42a   :  { %730 = vperm.xlu0 %933, %v701_v13   ;;  %v997_v13 = vpop.eup %996 }
 0x490   :  { %v1305_v60 = vpop.permute.xlu1 %712 }
 0x491   :  { %v738_v9 = vrot.slane %v1305_v60, %v1172_v20 }
 0x494   :  { %v1310_v5 = vpop.permute.xlu1 %715 }
 0x495   :  { %v742_v57 = vrot.slane %v1310_v5, %v1172_v20 }
 0x497   :  { %v767_v5 = vsel %vm364_vm6, %v742_v57, %v738_v9 }
 0x498   :  { %v719_v15 = vpop.permute.xlu1 %718 }
 0x499   :  { %v746_v58 = vrot.slane %v719_v15, %v1172_v20 }
 0x49d   :  { %v1284_v22 = vpop.xlane.xlu0 %819 }
 0x49e   :  { %v821_v17 = vsub.f32 1.0, %v1284_v22 }
 0x4a0   :  { %v828_v30 = vmul.f32 %v916_v21, %v821_v17  ;;  %v570_v21 = vmul.f32 %v993_v19, %v1255_v47  ;;  %v569_v17 = vmul.f32 %v995_v12, %v1243_v29 }
 0x4a1   :  { %v686_v24 = vpop.permute.xlu0 %685 }
 0x4a2   :  { %v830_v10 = vmul.f32 0.003921569, %v828_v30  ;;  %v702_v0 = vmul.f32 %v686_v24, %v1214_v44  ;;  %v589_v30 = vsel %vm574_vm14, %v568_v26, 0.0  ;;  %v578_v24 = vrot.slane %v577_v25, 2 }
 0x4a3   :  { %v603_v14 = vsel %vm574_vm14, %v570_v21, 0.0 }
 0x4a4   :  { %839 = vrot.lane.b32.xlu0 %v830_v10, %s1004_s22  ;;  %733 = vperm.xlu1 %932, %v702_v0   ;;  %v832_v35 = vrot.slane %v830_v10, 1  ;;  %v833_v32 = vrot.slane %v830_v10, 2  ;;  %v835_v50 = vrot.slane %v830_v10, 4  ;;  %v834_v34 = vrot.slane %v830_v10, 3 }
 0x4a5   :  { %v837_v48 = vrot.slane %v830_v10, 6  ;;  %v836_v51 = vrot.slane %v830_v10, 5  ;;  %v838_v44 = vrot.slane %v830_v10, 7  ;;  %v999_v10 = vpop.eup %998  ;;  %v571_v0 = vmul.f32 %v997_v13, %v1253_v46 }
 0x4a6   :  { %v572_v47 = vmul.f32 %v999_v10, %v1265_v55  ;;  %v604_v18 = vrot.slane %v603_v14, 4 }
 0x4a7   :  { %v610_v29 = vsel %vm574_vm14, %v571_v0, 0.0 }
 0x4a8   :  { %841 = vrot.lane.b32.xlu0 %v832_v35, %s1004_s22  ;;  %843 = vrot.lane.b32.xlu1 %v833_v32, %s1004_s22  ;;  %v722_v35 = vpop.permute.xlu1 %721  ;;  %v586_v32 = vadd.f32 %v585_v28, %v584_v16  ;;  %v611_v45 = vrot.slane %v610_v29, 4  ;;  %v617_v49 = vsel %vm574_vm14, %v572_v47, 0.0  ;;  %v605_v52 = vadd.f32 %v604_v18, %v603_v14 }
 0x4a9   :  { %v618_v39 = vrot.slane %v617_v49, 4  ;;  %v750_v62 = vrot.slane %v722_v35, %v1172_v20  ;;  %v768_v16 = vsel %vm366_vm7, %v746_v58, %v767_v5 }
 0x4aa   :  { %v587_v27 = vrot.slane %v586_v32, 1  ;;  %v606_v61 = vrot.slane %v605_v52, 2 }
 0x4ab   :  { %v619_v2 = vadd.f32 %v618_v39, %v617_v49  ;;  %v769_v60 = vsel %vm368_vm8, %v750_v62, %v768_v16 }
 0x4ac   :  { %847 = vrot.lane.b32.xlu0 %v835_v50, %s1004_s22  ;;  %845 = vrot.lane.b32.xlu1 %v834_v34, %s1004_s22  ;;  %v1001_v50 = vpop.eup %1000  ;;  %v590_v34 = vrot.slane %v589_v30, 4  ;;  %v725_v33 = vpop.permute.xlu1 %724  ;;  %v588_v8 = vadd.f32 %v587_v27, %v586_v32 }
 0x4ad   :  { %v573_v23 = vmul.f32 %v1001_v50, %v1263_v54  ;;  %v612_v54 = vadd.f32 %v611_v45, %v610_v29  ;;  %v754_v3 = vrot.slane %v725_v33, %v1172_v20  ;;  %v620_v13 = vrot.slane %v619_v2, 2 }
 0x4ae   :  { %v591_v46 = vadd.f32 %v590_v34, %v589_v30 }
 0x4af   :  { %v624_v6 = vsel %vm574_vm14, %v573_v23, 0.0  ;;  %v613_v12 = vrot.slane %v612_v54, 2  ;;  %v770_v28 = vsel %vm370_vm9, %v754_v3, %v769_v60  ;;  %v621_v14 = vadd.f32 %v620_v13, %v619_v2 }
 0x4b0   :  { %851 = vrot.lane.b32.xlu0 %v837_v48, %s1004_s22  ;;  %849 = vrot.lane.b32.xlu1 %v836_v51, %s1004_s22  ;;  %v731_v48 = vpop.permute.xlu0 %730  ;;  %v596_v51 = vsel %vm574_vm14, %v569_v17, 0.0  ;;  %v592_v53 = vrot.slane %v591_v46, 2  ;;  %v625_v38 = vrot.slane %v624_v6, 4  ;;  %v728_v40 = vpop.permute.xlu1 %727 }
 0x4b1   :  { %v597_v37 = vrot.slane %v596_v51, 4  ;;  %v758_v36 = vrot.slane %v728_v40, %v1172_v20  ;;  %v762_v19 = vrot.slane %v731_v48, %v1172_v20  ;;  %v614_v34 = vadd.f32 %v613_v12, %v612_v54 }
 0x4b2   :  { %v593_v63 = vadd.f32 %v592_v53, %v591_v46  ;;  %v626_v11 = vadd.f32 %v625_v38, %v624_v6  ;;  %v622_v46 = vrot.slane %v621_v14, 1 }
 0x4b3   :  { %v598_v7 = vadd.f32 %v597_v37, %v596_v51  ;;  %v771_v17 = vsel %vm372_vm10, %v758_v36, %v770_v28 }
 0x4b4   :  { %853 = vrot.lane.b32.xlu1 %v838_v44, %s1004_s22  ;;  %v579_v44 = vadd.f32 %v578_v24, %v577_v25  ;;  %v607_v25 = vadd.f32 %v606_v61, %v605_v52  ;;  %v594_v26 = vrot.slane %v593_v63, 1  ;;  %v772_v10 = vsel %vm374_vm11, %v762_v19, %v771_v17 }
 0x4b5   :  { %v599_v1 = vrot.slane %v598_v7, 2  ;;  %v627_v0 = vrot.slane %v626_v11, 2 }
 0x4b6   :  { %v580_v43 = vrot.slane %v579_v44, 1  ;;  %v608_v24 = vrot.slane %v607_v25, 1  ;;  %v595_v35 = vadd.f32 %v594_v26, %v593_v63 }
 0x4b7   :  { %v600_v15 = vadd.f32 %v599_v1, %v598_v7  ;;  %v628_v27 = vadd.f32 %v627_v0, %v626_v11  ;;  %v623_v7 = vadd.f32 %v622_v46, %v621_v14 }
 0x4b8   :  { %v581_v42 = vadd.f32 %v580_v43, %v579_v44  ;;  %v609_v29 = vadd.f32 %v608_v24, %v607_v25 }
 0x4b9   :  { %v601_v50 = vrot.slane %v600_v15, 1  ;;  %v629_v6 = vrot.slane %v628_v27, 1 }
 0x4bb   :  { %v602_v23 = vadd.f32 %v601_v50, %v600_v15  ;;  %v630_v38 = vadd.f32 %v629_v6, %v628_v27 }
 0x516   :  { %v840_v31 = vpop.permute.xlu0 %839 }
 0x517   :  { %v863_v59 = vadd.f32 %v840_v31, %v581_v42 }
 0x51a   :  { %v842_v55 = vpop.permute.xlu0 %841 }
 0x51b   :  { %v864_v56 = vadd.f32 %v842_v55, %v588_v8 }
 0x51d   :  { %v879_v41 = vrot.slane %v864_v56, 7 }
 0x51e   :  { %v848_v44 = vpop.permute.xlu0 %847 }
 0x51f   :  { %v880_v4 = vsel %vm364_vm6, %v879_v41, %v863_v59  ;;  %v867_v37 = vadd.f32 %v848_v44, %v609_v29 }
 0x521   :  { %v885_v8 = vrot.slane %v867_v37, 4 }
 0x522   :  { %v852_v45 = vpop.permute.xlu0 %851 }
 0x523   :  { %v734_v21 = vpop.permute.xlu1 %733  ;;  %v869_v42 = vadd.f32 %v852_v45, %v623_v7 }
 0x524   :  { %v766_v30 = vrot.slane %v734_v21, %v1172_v20  ;;  %v615_v20 = vrot.slane %v614_v34, 1 }
 0x525   :  { %v889_v59 = vrot.slane %v869_v42, 2 }
 0x526   :  { %v773_v32 = vsel %vm376_vm12, %v766_v30, %v772_v10  ;;  %v616_v52 = vadd.f32 %v615_v20, %v614_v34 }
 0x527   :  { %v844_v48 = vpop.permute.xlu1 %843  ;;  %v775_v51 = vsel %vm378_vm13, %v773_v32, 0.0 }
 0x528   :  { %v865_v47 = vadd.f32 %v844_v48, %v595_v35  ;;  %776 = vadd.xlane.f32.xlu0 %v775_v51 }
 0x52a   :  { %v881_v18 = vrot.slane %v865_v47, 6 }
 0x52b   :  { %v846_v31 = vpop.permute.xlu1 %845 }
 0x52c   :  { %v882_v33 = vsel %vm366_vm7, %v881_v18, %v880_v4  ;;  %v866_v43 = vadd.f32 %v846_v31, %v602_v23 }
 0x52e   :  { %v883_v49 = vrot.slane %v866_v43, 5 }
 0x52f   :  { %v850_v55 = vpop.permute.xlu1 %849 }
 0x530   :  { %v884_v53 = vsel %vm368_vm8, %v883_v49, %v882_v33  ;;  %v868_v39 = vadd.f32 %v850_v55, %v616_v52 }
 0x531   :  { %v886_v56 = vsel %vm370_vm9, %v885_v8, %v884_v53 }
 0x532   :  { %v887_v54 = vrot.slane %v868_v39, 3 }
 0x533   :  { %v854_v57 = vpop.permute.xlu1 %853 }
 0x534   :  { %v888_v58 = vsel %vm372_vm10, %v887_v54, %v886_v56  ;;  %v870_v40 = vadd.f32 %v854_v57, %v630_v38 }
 0x535   :  { %v890_v61 = vsel %vm374_vm11, %v889_v59, %v888_v58 }
 0x536   :  { %v891_v41 = vrot.slane %v870_v40, 1 }
 0x538   :  { %v892_v9 = vsel %vm376_vm12, %v891_v41, %v890_v61 }
 0x539   :  { %893 = vrot.lane.b32.xlu1 %v892_v9, %s1009_s3 }
 0x5ab   :  { %v894_v62 = vpop.permute.xlu1 %893 }
 0x5ac   :  { %v896_v63 = vsel %vm96_vm0, %v894_v62, %v1284_v22 }
 0x5b5   :  { %v777_v1 = vpop.xlane.xlu0 %776 }
 0x5b6   :  { %v898_v2 = vsel %vm897_vm15, %v896_v63, %v777_v1 }
 0x5b7   :  { %900 = vst.msk [vmem:[%s1358_s4] sm:$0xff] %vm899_vm1, %v898_v2 }

// kernel: network_forward.3
= control target key start
LH: loop header
LB: loop body
LE: loop exit
PB: predicated region body
PF: predicated region fallthrough
CT: control target
= control target key end

     0   :  { %s5601_s21 = smov 0   ;;  %s6748_s0 = inlined_call_operand.vmem [shape: f32[64,3], index: 0, kind: input, shape index: {}]   ;;  %s6749_s1 = inlined_call_operand.vmem [shape: f32[64,24], index: 1, kind: input, shape index: {}]   ;;  %s6750_s2 = inlined_call_operand.vmem [shape: f32[4,384], index: 2, kind: input, shape index: {}]   ;;  %s6751_s3 = inlined_call_operand.vmem [shape: f32[9,23], index: 3, kind: input, shape index: {}]   ;;  %s6752_s4 = inlined_call_operand.vmem [shape: f32[23,3], index: 4, kind: input, shape index: {}]   ;;  %s6753_s5 = inlined_call_operand.vmem [shape: f32[6,24], index: 5, kind: input, shape index: {}]   ;;  %s6754_s6 = inlined_call_operand.vmem [shape: f32[3,6], index: 6, kind: input, shape index: {}]   ;;  %s6755_s7 = inlined_call_operand.vmem [shape: f32[1,32], index: 7, kind: input, shape index: {}]   ;;  %s6756_s8 = inlined_call_operand.vmem [shape: bf16[144,32], index: 8, kind: input, shape index: {}]   ;;  %s6757_s9 = inlined_call_operand.vmem [shape: f32[5,32], index: 9, kind: input, shape index: {}]   ;;  %s6758_s10 = inlined_call_operand.vmem [shape: bf16[448,32], index: 10, kind: input, shape index: {}]   ;;  %s6759_s11 = inlined_call_operand.vmem [shape: f32[11,32], index: 11, kind: input, shape index: {}]   ;;  %s6760_s12 = inlined_call_operand.vmem [shape: f32[64,8], index: 12, kind: output, shape index: {}]  }
   0x1 LB: > { %s4809_s22 = sadd.s32 4294967295, %s5520_s21   ;;  %p4813_p0 = scmp.ge.s32.totalorder %s5520_s21, 1  ;;  %s5520_s21 = sphi %s5601_s21, %s22_s21  }
   0x2   : > { %p374_p1 = scmp.lt.s32.totalorder %s5520_s21, 3 }
   0x4   : > { %p375_p2 = pnand %p4813_p0, %p374_p1 }
   0x5   : > { %v448_v0 = vld [vmem:[%s6750_s2] sm:$0xff] (!%p375_p2)  ;;  %vm493_vm0 = vcmask (!%p375_p2), 1042432   ;;  %s4814_s25 = sshll.u32 (!%p375_p2), %s4809_s22, 2  ;;  %v5522_v2 = vmov (!%p375_p2), 0.0   ;;  %v449_v3 = vld [vmem:[%s6750_s2 + $0x8] sm:$0xf] (!%p375_p2)  ;;  %v452_v16 = vlaneseq (!%p375_p2) }
   0x6   : > { %378 = sbr.rel (%p375_p2) target bundleno = 6031 (0x178f), region = 68  ;;  %v479_v1 = vcombine.high (!%p375_p2), %v448_v0, %v448_v0  ;;  %564 = vmatprep.mubr.f32.mxu0 (!%p375_p2), %v5522_v2  ;;  %p422_p3 = scmp.lt.s32.totalorder (!%p375_p2), %s4814_s25, 7  ;;  %5120 = vmatprep.subr.msk.mxu1 (!%p375_p2), %vm493_vm0, %v449_v3  ;;  %vm6761_vm1 = vcmask (!%p375_p2), 23552   ;;  %vm678_vm2 = vcmask (!%p375_p2), 195584   ;;  %vm735_vm3 = vcmask (!%p375_p2), 7168  }
   0x7   : > { %5121 = vmatpush3.msk.msra.mxu1 (!%p375_p2), %vm493_vm0, %v449_v3  ;;  %v5652_v17 = vshrl.u32 (!%p375_p2), %v452_v16, 7  ;;  %vm740_vm4 = vcmask (!%p375_p2), 15360   ;;  %s5529_s19 = smov (!%p375_p2), 9   ;;  %s5530_s20 = smov (!%p375_p2), 3  }
   0x8   : > { %4820 = vmatprep.subr.msk.mxu0 (!%p375_p2), %vm493_vm0, %v479_v1  ;;  %s5532_s22 = smov (!%p375_p2), 6   ;;  %s5533_s23 = smov (!%p375_p2), 30  }
   0x9   : > { %4821 = vmatpush1.msk.msra.mxu0 (!%p375_p2), %vm493_vm0, %v448_v0  ;;  %v454_v18 = vsub.s32 (!%p375_p2), 3, %v5652_v17  ;;  %v5656_v19 = vsub.s32 (!%p375_p2), 7, %v5652_v17  ;;  %s5535_s18 = smov (!%p375_p2), 4  }
   0xb   : > { %v455_v20 = vrot.slane (!%p375_p2), %v448_v0, %v454_v18  ;;  %v459_v21 = vrot.slane (!%p375_p2), %v448_v0, %v5656_v19  ;;  %v463_v22 = vrot.slane (!%p375_p2), %v449_v3, %v454_v18 }
   0xd   : > { %s6779_s25 = smov (!%p422_p3, %s4814_s25), 7  ;;  %v470_v23 = vrot.slane %v455_v20, %v454_v18  ;;  %v478_v24 = vrot.slane %v463_v22, %v454_v18  ;;  %v474_v25 = vrot.slane %v459_v21, %v454_v18 }
   0xe   : > { %s5620_s28 = sshll.u32 %s6779_s25, 3 }
   0xf   : > { %s425_s13 = scalar_lea.vmem %s6748_s0, %s5620_s28  ;;  %s431_s16 = scalar_lea.vmem %s6749_s1, %s5620_s28 }
  0x10   : > { %v440_v4 = vld [vmem:[%s425_s13] sm:$0xff]  ;;  %v441_v5 = vld [vmem:[%s425_s13 + $0x8] sm:$0xff]  ;;  %v442_v6 = vld [vmem:[%s425_s13 + $0x10] sm:$0xff] }
  0x11   : > { %4822 = vmatmul.mubr.msk.f32.vlgmr.msra.gmra.mrb[0].mxu0 %vm6761_vm1, %v440_v4  ;;  %5122 = vmatprep.mubr.msk.f32.mxu1 %vm6761_vm1, %v440_v4  ;;  %v444_v7 = vld [vmem:[%s431_s16] sm:$0xff]  ;;  %v5632_v8 = vld [vmem:[%s431_s16 + $0x10] sm:$0xff]  ;;  %v443_v11 = vld [vmem:[%s425_s13 + $0x18] sm:$0xff]  ;;  %s5534_s13 = smov 127  }
  0x12   : > { %5123 = vmatmul.mubr.msk.f32.vlgmr.msra.gmra.mrb[0].mxu1 %vm6761_vm1, %v441_v5  ;;  %570 = vmatprep.mubr.f32.mxu0 %v5522_v2  ;;  %v723_v9 = vsel %vm678_vm2, %v444_v7, 0.0  ;;  %v729_v10 = vsel %vm678_vm2, %v5632_v8, 0.0  ;;  %v445_v12 = vld [vmem:[%s431_s16 + $0x8] sm:$0xff]  ;;  %v5647_v14 = vld [vmem:[%s431_s16 + $0x18] sm:$0xff] }
  0x13   : > { %5125 = vmatprep.mubr.msk.f32.mxu1 %vm6761_vm1, %v442_v6  ;;  %724 = vadd.xlane.f32.xlu0 %v723_v9  ;;  %v726_v13 = vsel %vm678_vm2, %v445_v12, 0.0  ;;  %v732_v15 = vsel %vm678_vm2, %v5647_v14, 0.0 }
  0x14   : > { %730 = vadd.xlane.f32.xlu1 %v729_v10 }
  0x15   : > { %4823 = vmatmul.mubr.msk.f32.gmra.mrb[2].mxu0 %vm6761_vm1, %v441_v5 }
  0x16   : > { %576 = vmatprep.mubr.f32.mxu0 %v5522_v2  ;;  %5126 = vmatmul.mubr.msk.f32.gmra.mrb[2].mxu1 %vm6761_vm1, %v443_v11 }
  0x17   : > { %727 = vadd.xlane.f32.xlu0 %v726_v13 }
  0x18   : > { %733 = vadd.xlane.f32.xlu1 %v732_v15 }
  0x19   : > { %4824 = vmatmul.mubr.msk.f32.gmra.mrb[4].mxu0 %vm6761_vm1, %v442_v6 }
  0x1a   : > { %582 = vmatprep.mubr.f32.mxu0 %v5522_v2 }
  0x1d   : > { %4825 = vmatmul.mubr.msk.f32.gmra.mrb[6].mxu0 %vm6761_vm1, %v443_v11 }
  0xe4   : > { %v566_v26 = vpop.f32.mrb[0].mxu0 }
  0xe5   : > { %v567_v27 = vadd.f32 %v566_v26, %v470_v23  ;;  %v568_v28 = vpop.f32.mrb[1].mxu0  ;;  %v5124_v29 = vpop.f32.mrb[0].mxu1 }
  0xe6   : > { %v569_v30 = vadd.f32 %v568_v28, %v474_v25  ;;  %v661_v31 = vadd.f32 %v5124_v29, %v478_v24  ;;  %v655_v32 = vpop.f32.mrb[1].mxu1 }
  0xe7   : > { %v656_v33 = vadd.f32 %v655_v32, %v478_v24  ;;  %v674_v34 = vmul.f32 %v567_v27, %v444_v7 }
  0xe8   : > { %v572_v35 = vpop.f32.mrb[2].mxu0  ;;  %v691_v36 = vmul.f32 %v569_v30, %v444_v7  ;;  %v708_v44 = vmul.f32 %v661_v31, %v445_v12 }
  0xe9   : > { %v679_v37 = vsel %vm678_vm2, %v674_v34, 0.0  ;;  %v573_v38 = vadd.f32 %v572_v35, %v470_v23  ;;  %v574_v39 = vpop.f32.mrb[3].mxu0  ;;  %v707_v40 = vmul.f32 %v656_v33, %v444_v7  ;;  %v5127_v41 = vpop.f32.mrb[2].mxu1 }
  0xea   : > { %680 = vadd.xlane.f32.xlu0 %v679_v37  ;;  %v695_v42 = vsel %vm678_vm2, %v691_v36, 0.0  ;;  %v575_v43 = vadd.f32 %v574_v39, %v474_v25  ;;  %v671_v45 = vadd.f32 %v5127_v41, %v478_v24  ;;  %v665_v46 = vpop.f32.mrb[3].mxu1  ;;  %v714_v54 = vsel %vm678_vm2, %v708_v44, 0.0 }
  0xeb   : > { %696 = vadd.xlane.f32.xlu1 %v695_v42  ;;  %v711_v47 = vsel %vm678_vm2, %v707_v40, 0.0  ;;  %v675_v48 = vmul.f32 %v573_v38, %v445_v12  ;;  %v666_v49 = vadd.f32 %v665_v46, %v478_v24 }
  0xec   : > { %v578_v50 = vpop.f32.mrb[4].mxu0  ;;  %v692_v51 = vmul.f32 %v575_v43, %v445_v12  ;;  %v710_v9 = vmul.f32 %v671_v45, %v5647_v14  ;;  %v757_v12 = vld [vmem:[%s6754_s6] sm:$0x7] }
  0xed   : > { %v579_v52 = vadd.f32 %v578_v50, %v470_v23  ;;  %v580_v53 = vpop.f32.mrb[5].mxu0  ;;  %v682_v56 = vsel %vm678_vm2, %v675_v48, 0.0  ;;  %v709_v6 = vmul.f32 %v666_v49, %v5632_v8  ;;  %5128 = vmatprep.subr.msk.mxu1 %vm493_vm0, %v757_v12 }
  0xee   : > { %712 = vadd.xlane.f32.xlu0 %v711_v47  ;;  %v581_v55 = vadd.f32 %v580_v53, %v474_v25  ;;  %v698_v59 = vsel %vm678_vm2, %v692_v51, 0.0  ;;  %v720_v11 = vsel %vm678_vm2, %v710_v9, 0.0  ;;  %5129 = vmatpush3.msk.msra.mxu1 %vm493_vm0, %v757_v12 }
  0xef   : > { %715 = vadd.xlane.f32.xlu1 %v714_v54  ;;  %v676_v57 = vmul.f32 %v579_v52, %v5632_v8  ;;  %v717_v10 = vsel %vm678_vm2, %v709_v6, 0.0 }
  0xf0   : > { %v584_v58 = vpop.f32.mrb[6].mxu0  ;;  %v693_v60 = vmul.f32 %v581_v55, %v5632_v8  ;;  %v5682_v8 = vpop.xlane.xlu0 %724 }
  0xf1   : > { %v585_v61 = vadd.f32 %v584_v58, %v470_v23  ;;  %v586_v62 = vpop.f32.mrb[7].mxu0  ;;  %v685_v0 = vsel %vm678_vm2, %v676_v57, 0.0  ;;  %v745_v13 = vmax.f32 %v5682_v8, 0.0001 }
  0xf2   : > { %683 = vadd.xlane.f32.xlu0 %v682_v56  ;;  %v587_v63 = vadd.f32 %v586_v62, %v474_v25  ;;  %v701_v3 = vsel %vm678_vm2, %v693_v60, 0.0 }
  0xf3   : > { %699 = vadd.xlane.f32.xlu1 %v698_v59  ;;  %v677_v1 = vmul.f32 %v585_v61, %v5647_v14  ;;  %5464 = vrcp.f32 %v745_v13  ;;  %v5523_v13 = vmov 683565275  }
  0xf4   : > { %v694_v4 = vmul.f32 %v587_v63, %v5647_v14  ;;  %v5685_v14 = vpop.xlane.xlu1 %730  ;;  %v5687_v15 = vpop.xlane.xlu0 %727 }
  0xf5   : > { %v688_v5 = vsel %vm678_vm2, %v677_v1, 0.0  ;;  %v746_v20 = vmax.f32 %v5687_v15, 0.0001  ;;  %v747_v29 = vmax.f32 %v5685_v14, 0.0001 }
  0xf6   : > { %686 = vadd.xlane.f32.xlu0 %v685_v0  ;;  %v704_v7 = vsel %vm678_vm2, %v694_v4, 0.0 }
  0xf7   : > { %702 = vadd.xlane.f32.xlu1 %v701_v3  ;;  %5466 = vrcp.f32 %v746_v20 }
  0xf8   : > { %v5689_v18 = vpop.xlane.xlu1 %733  ;;  %5468 = vrcp.f32 %v747_v29 }
  0xf9   : > { %v748_v30 = vmax.f32 %v5689_v18, 0.0001 }
  0xfa   : > { %689 = vadd.xlane.f32.xlu0 %v688_v5 }
  0xfb   : > { %705 = vadd.xlane.f32.xlu1 %v704_v7  ;;  %5470 = vrcp.f32 %v748_v30  ;;  %v5527_v30 = vmov 920167782  }
  0xfd   : > { %v5465_v23 = vpop.eup %5464 }
  0xfe   : > { %718 = vadd.xlane.f32.xlu0 %v717_v10 }
  0xff   : > { %721 = vadd.xlane.f32.xlu1 %v720_v11 }
 0x101   : > { %v5467_v34 = vpop.eup %5466 }
 0x102   : > { %v5469_v43 = vpop.eup %5468 }
 0x105   : > { %v5471_v47 = vpop.eup %5470 }
 0x177   : > { %v681_v21 = vpop.xlane.xlu0 %680 }
 0x178   : > { %v697_v22 = vpop.xlane.xlu1 %696 }
 0x179   : > { %v736_v24 = vsel %vm735_vm3, %v681_v21, %v697_v22 }
 0x17b   : > { %v713_v25 = vpop.xlane.xlu0 %712 }
 0x17c   : > { %v741_v26 = vsel %vm740_vm4, %v736_v24, %v713_v25  ;;  %v716_v27 = vpop.xlane.xlu1 %715  ;;  %v5525_v25 = vmov 2131351028  }
 0x17d   : > { %v5694_v28 = vmul.f32 %v5465_v23, %v741_v26  ;;  %v5524_v23 = vmov 2475754826  }
 0x17f   : > { %5130 = vmatprep.mubr.msk.f32.mxu1 %vm6761_vm1, %v5694_v28  ;;  %v684_v31 = vpop.xlane.xlu0 %683 }
 0x180   : > { %v700_v32 = vpop.xlane.xlu1 %699 }
 0x181   : > { %v737_v33 = vsel %vm735_vm3, %v684_v31, %v700_v32 }
 0x182   : > { %v742_v35 = vsel %vm740_vm4, %v737_v33, %v716_v27  ;;  %v5526_v27 = vmov 2102212464  }
 0x183   : > { %v5702_v36 = vmul.f32 %v5467_v34, %v742_v35  ;;  %v687_v37 = vpop.xlane.xlu0 %686 }
 0x184   : > { %v703_v38 = vpop.xlane.xlu1 %702 }
 0x185   : > { %5131 = vmatmul.mubr.msk.f32.vlgmr.msra.gmra.mrb[4].mxu1 %vm6761_vm1, %v5702_v36  ;;  %v738_v41 = vsel %vm735_vm3, %v687_v37, %v703_v38  ;;  %v5528_v38 = vmov 1326507024  }
 0x187   : > { %v690_v39 = vpop.xlane.xlu0 %689 }
 0x188   : > { %v706_v40 = vpop.xlane.xlu1 %705 }
 0x189   : > { %v739_v44 = vsel %vm735_vm3, %v690_v39, %v706_v40 }
 0x18b   : > { %v719_v42 = vpop.xlane.xlu0 %718 }
 0x18c   : > { %v743_v45 = vsel %vm740_vm4, %v738_v41, %v719_v42  ;;  %v722_v46 = vpop.xlane.xlu1 %721 }
 0x18d   : > { %v5709_v48 = vmul.f32 %v5469_v43, %v743_v45  ;;  %v744_v49 = vsel %vm740_vm4, %v739_v44, %v722_v46 }
 0x18e   : > { %v5712_v50 = vmul.f32 %v5471_v47, %v744_v49 }
 0x18f   : > { %5133 = vmatprep.mubr.msk.f32.mxu1 %vm6761_vm1, %v5709_v48 }
 0x190   : > { %5134 = vmatmul.mubr.msk.f32.gmra.mrb[6].mxu1 %vm6761_vm1, %v5712_v50 }
 0x258   : > { %v5718_v51 = vpop.f32.mrb[4].mxu1 }
 0x259   : > { %v962_v52 = vand.u32 2147483647, %v5718_v51  ;;  %v965_v53 = vand.u32 2139095040, %v5718_v51  ;;  %v5722_v54 = vpop.f32.mrb[5].mxu1  ;;  %vm964_vm3 = vcmp.lt.s32.totalorder %v5718_v51, 0 }
 0x25a   : > { %v861_v55 = vand.u32 2139095040, %v5722_v54  ;;  %v858_v58 = vand.u32 2147483647, %v5722_v54 }
 0x25b   : > { %v966_v56 = vshrl.u32 %v965_v53, 23  ;;  %v969_v57 = vand.u32 8388607, %v962_v52 }
 0x25c   : > { %v862_v59 = vshrl.u32 %v861_v55, 23  ;;  %v5730_v0 = vand.u32 8388607, %v858_v58 }
 0x25d   : > { %v4840_v60 = vadd.s32 4294967169, %v966_v56  ;;  %v970_v63 = vor.u32 8388608, %v969_v57 }
 0x25e   : > { %v4836_v61 = vadd.s32 4294967169, %v862_v59  ;;  %v866_v10 = vor.u32 8388608, %v5730_v0 }
 0x25f   : > { %v972_v62 = vadd.s32 1, %v4840_v60  ;;  %v5734_v9 = vshll.u32 %v970_v63, 8 }
 0x260   : > { %v868_v1 = vadd.s32 1, %v4836_v61 }
 0x261   : > { %vm973_vm5 = vcmp.gt.s32.totalorder %v972_v62, 0 }
 0x262   : > { %v974_v3 = vsel %vm973_vm5, %v972_v62, 0  ;;  %vm869_vm6 = vcmp.gt.s32.totalorder %v868_v1, 0  ;;  %vm5811_vm5 = vcmp.le.f32.partialorder %v962_v52, 0.7853982 }
 0x263   : > { %v975_v4 = vshrl.u32 %v974_v3, 5  ;;  %v976_v5 = vand.u32 31, %v974_v3  ;;  %v870_v6 = vsel %vm869_vm6, %v868_v1, 0  ;;  %v5732_v7 = vpop.f32.mrb[6].mxu1 }
 0x264   : > { %v5737_v11 = vpop.f32.mrb[7].mxu1  ;;  %v5740_v21 = vshrl.u32 %v870_v6, 5  ;;  %v872_v22 = vand.u32 31, %v870_v6 }
 0x265   : > { %v977_v12 = vsub.s32 32, %v976_v5  ;;  %v979_v20 = vshll.u32 %v5523_v13, %v976_v5  ;;  %v982_v24 = vshll.u32 %v5524_v23, %v976_v5  ;;  %v985_v26 = vshll.u32 %v5525_v25, %v976_v5 }
 0x266   : > { %v988_v29 = vshll.u32 %v5526_v27, %v976_v5  ;;  %v991_v31 = vshll.u32 %v5527_v30, %v976_v5  ;;  %vm994_vm7 = vcmp.lt.s32.totalorder %v975_v4, 1  ;;  %vm995_vm8 = vcmp.lt.s32.totalorder %v975_v4, 2 }
 0x267   : > { %v980_v32 = vshrl.u32 %v5524_v23, %v977_v12  ;;  %v983_v33 = vshrl.u32 %v5525_v25, %v977_v12  ;;  %v986_v34 = vshrl.u32 %v5526_v27, %v977_v12  ;;  %v978_v35 = vshrl.u32 %v5523_v13, %v977_v12 }
 0x268   : > { %v989_v37 = vshrl.u32 %v5527_v30, %v977_v12  ;;  %v992_v39 = vshrl.u32 %v5528_v38, %v977_v12  ;;  %v873_v43 = vsub.s32 32, %v872_v22  ;;  %vm996_vm9 = vcmp.lt.s32.totalorder %v975_v4, 3 }
 0x269   : > { %v981_v40 = vor.u32 %v980_v32, %v979_v20  ;;  %v984_v41 = vor.u32 %v983_v33, %v982_v24  ;;  %v987_v42 = vor.u32 %v986_v34, %v985_v26  ;;  %vm997_vm10 = vcmp.lt.s32.totalorder %v975_v4, 4 }
 0x26a   : > { %v990_v44 = vor.u32 %v989_v37, %v988_v29  ;;  %v993_v45 = vor.u32 %v992_v39, %v991_v31  ;;  %v875_v59 = vshll.u32 %v5523_v13, %v872_v22  ;;  %v876_v62 = vshrl.u32 %v5524_v23, %v873_v43 }
 0x26b   : > { %v998_v46 = vsel %vm994_vm7, %v978_v35, %v981_v40  ;;  %v999_v47 = vsel %vm997_vm10, %v987_v42, 2102212464  ;;  %v1002_v49 = vsel %vm994_vm7, %v981_v40, %v984_v41  ;;  %v1006_v53 = vsel %vm994_vm7, %v984_v41, %v987_v42 }
 0x26c   : > { %v1000_v55 = vsel %vm996_vm9, %v984_v41, %v999_v47  ;;  %v1003_v56 = vsel %vm997_vm10, %v990_v44, 920167782  ;;  %v1007_v57 = vsel %vm997_vm10, %v993_v45, 1326507024  ;;  %v878_v63 = vshll.u32 %v5524_v23, %v872_v22 }
 0x26d   : > { %v1004_v60 = vsel %vm996_vm9, %v987_v42, %v1003_v56  ;;  %v1008_v61 = vsel %vm996_vm9, %v990_v44, %v1007_v57  ;;  %v1001_v0 = vsel %vm995_vm8, %v998_v46, %v1000_v55  ;;  %v879_v5 = vshrl.u32 %v5525_v25, %v873_v43 }
 0x26e   : > { %v1005_v1 = vsel %vm995_vm8, %v1002_v49, %v1004_v60  ;;  %v1009_v3 = vsel %vm995_vm8, %v1006_v53, %v1008_v61  ;;  %v877_v26 = vor.u32 %v876_v62, %v875_v59  ;;  %v881_v31 = vshll.u32 %v5525_v25, %v872_v22 }
 0x26f   : > { %v5763_v6 = vmul.u32.u64.low %v5734_v9, %v1009_v3  ;;  %v5764_v12 = vmul.u32.u64.high %v5734_v9, %v1009_v3, %v5763_v6  ;;  %v5767_v20 = vmul.u32.u64.low %v5734_v9, %v1005_v1  ;;  %v5768_v24 = vmul.u32.u64.high %v5734_v9, %v1005_v1, %v5767_v20 }
 0x270   : > { %v880_v29 = vor.u32 %v879_v5, %v878_v63  ;;  %v882_v32 = vshrl.u32 %v5526_v27, %v873_v43  ;;  %v884_v4 = vshll.u32 %v5526_v27, %v872_v22  ;;  %v885_v33 = vshrl.u32 %v5527_v30, %v873_v43 }
 0x271   : > { %v888_v34 = vshrl.u32 %v5528_v38, %v873_v43  ;;  %v906_v35 = vshll.u32 %v866_v10, 8  ;;  %v1017_v37 = vmul.u32 %v5734_v9, %v1001_v0  ;;  %v874_v39 = vshrl.u32 %v5523_v13, %v873_v43 }
 0x272   : > { %v883_v40 = vor.u32 %v882_v32, %v881_v31  ;;  %v887_v41 = vshll.u32 %v5527_v30, %v872_v22  ;;  %vm1019_vm11 = vc.u32 %v5764_v12, %v5767_v20  ;;  %v1020_v42 = vadd.s32 1, %v5768_v24 }
 0x273   : > { %v886_v44 = vor.u32 %v885_v33, %v884_v4  ;;  %vm890_vm12 = vcmp.lt.s32.totalorder %v5740_v21, 1  ;;  %vm892_vm13 = vcmp.lt.s32.totalorder %v5740_v21, 3  ;;  %vm893_vm14 = vcmp.lt.s32.totalorder %v5740_v21, 4 }
 0x274   : > { %v889_v45 = vor.u32 %v888_v34, %v887_v41  ;;  %v898_v10 = vsel %vm890_vm12, %v877_v26, %v880_v29  ;;  %v1021_v9 = vsel %vm1019_vm11, %v1020_v42, %v5768_v24  ;;  %v895_v43 = vsel %vm893_vm14, %v883_v40, 2102212464 }
 0x275   : > { %v899_v46 = vsel %vm893_vm14, %v886_v44, 920167782  ;;  %v902_v47 = vsel %vm890_vm12, %v880_v29, %v883_v40  ;;  %v1022_v22 = vadd.s32 %v1021_v9, %v1017_v37  ;;  %vm891_vm15 = vcmp.lt.s32.totalorder %v5740_v21, 2 }
 0x276   : > { %v900_v49 = vsel %vm892_vm13, %v883_v40, %v899_v46  ;;  %v903_v53 = vsel %vm893_vm14, %v889_v45, 1326507024  ;;  %v894_v55 = vsel %vm890_vm12, %v874_v39, %v877_v26  ;;  %v896_v56 = vsel %vm892_vm13, %v880_v29, %v895_v43 }
 0x277   : > { %v901_v57 = vsel %vm891_vm15, %v898_v10, %v900_v49  ;;  %v904_v59 = vsel %vm892_vm13, %v886_v44, %v903_v53  ;;  %v1023_v60 = vadd.s32 536870912, %v1022_v22  ;;  %v1170_v3 = vand.u32 2147483647, %v5732_v7 }
 0x278   : > { %v905_v61 = vsel %vm891_vm15, %v902_v47, %v904_v59  ;;  %v5787_v62 = vmul.u32.u64.low %v906_v35, %v901_v57  ;;  %v5788_v63 = vmul.u32.u64.high %v906_v35, %v901_v57, %v5787_v62  ;;  %v1173_v5 = vand.u32 2139095040, %v5732_v7 }
 0x279   : > { %v5791_v0 = vmul.u32.u64.low %v906_v35, %v905_v61  ;;  %v5792_v1 = vmul.u32.u64.high %v906_v35, %v905_v61, %v5791_v0  ;;  %v1024_v21 = vshrl.u32 %v1023_v60, 30  ;;  %v897_v6 = vsel %vm891_vm15, %v894_v55, %v896_v56 }
 0x27a   : > { %v1174_v24 = vshrl.u32 %v1173_v5, 23  ;;  %v1069_v26 = vand.u32 2139095040, %v5737_v11  ;;  %v916_v31 = vadd.s32 1, %v5788_v63  ;;  %v913_v32 = vmul.u32 %v906_v35, %v897_v6 }
 0x27b   : > { %v1025_v29 = vshll.u32 %v1024_v21, 30  ;;  %vm915_vm2 = vc.u32 %v5792_v1, %v5787_v62  ;;  %v1177_v33 = vand.u32 8388607, %v1170_v3  ;;  %v1048_v37 = vsub.s32 4, %v1024_v21 }
 0x27c   : > { %v4848_v4 = vadd.s32 4294967169, %v1174_v24  ;;  %v917_v39 = vsel %vm915_vm2, %v916_v31, %v5788_v63  ;;  %v1070_v42 = vshrl.u32 %v1069_v26, 23  ;;  %v1066_v35 = vand.u32 2147483647, %v5737_v11 }
 0x27d   : > { %v1026_v34 = vsub.s32 %v1022_v22, %v1025_v29  ;;  %v918_v40 = vadd.s32 %v917_v39, %v913_v32  ;;  %v1178_v10 = vor.u32 8388608, %v1177_v33  ;;  %v1049_v43 = vsel %vm964_vm3, %v1048_v37, %v1024_v21 }
 0x27e   : > { %v1180_v41 = vadd.s32 1, %v4848_v4  ;;  %v4844_v47 = vadd.s32 4294967169, %v1070_v42  ;;  %v1018_v55 = vadd.s32 %v5767_v20, %v5764_v12  ;;  %v5819_v57 = vsel %vm5811_vm5, 0, %v1049_v43 }
 0x27f   : > { %v1028_v44 = vsub.s32 0, %v1026_v34  ;;  %v919_v45 = vadd.s32 536870912, %v918_v40  ;;  %v5822_v61 = vshll.u32 %v1178_v10, 8  ;;  %v5828_v52 = vand.u32 8388607, %v1066_v35 }
 0x280   : > { %vm1181_vm4 = vcmp.gt.s32.totalorder %v1180_v41, 0  ;;  %v5830_v5 = vadd.s32 1, %v4844_v47  ;;  %vm860_vm11 = vcmp.lt.s32.totalorder %v5722_v54, 0  ;;  %vm5898_vm14 = vcmp.le.f32.partialorder %v858_v58, 0.7853982 }
 0x281   : > { %v4841_v9 = vmin.u32 %v1028_v44, %v1026_v34  ;;  %v1182_v46 = vsel %vm1181_vm4, %v1180_v41, 0  ;;  %v5807_v22 = vshrl.u32 %v919_v45, 30 }
 0x282   : > { %v1184_v49 = vand.u32 31, %v1182_v46  ;;  %v5824_v0 = vshrl.u32 %v1182_v46, 5  ;;  %vm1077_vm13 = vcmp.gt.s32.totalorder %v5830_v5, 0 }
 0x283   : > { %v1030_v56 = vclz %v4841_v9  ;;  %v921_v59 = vshll.u32 %v5807_v22, 30  ;;  %v944_v20 = vsub.s32 4, %v5807_v22 }
 0x284   : > { %v1185_v60 = vsub.s32 32, %v1184_v49  ;;  %v1187_v21 = vshll.u32 %v5523_v13, %v1184_v49  ;;  %v1190_v24 = vshll.u32 %v5524_v23, %v1184_v49  ;;  %v1193_v4 = vshll.u32 %v5525_v25, %v1184_v49 }
 0x285   : > { %v4842_v63 = vadd.s32 4294967294, %v1030_v56  ;;  %v5832_v12 = vsub.s32 %v918_v40, %v921_v59  ;;  %v1196_v33 = vshll.u32 %v5526_v27, %v1184_v49  ;;  %v1199_v46 = vshll.u32 %v5527_v30, %v1184_v49 }
 0x286   : > { %v1188_v6 = vshrl.u32 %v5524_v23, %v1185_v60  ;;  %v1191_v26 = vshrl.u32 %v5525_v25, %v1185_v60  ;;  %v1194_v29 = vshrl.u32 %v5526_v27, %v1185_v60  ;;  %v1197_v10 = vshrl.u32 %v5527_v30, %v1185_v60 }
 0x287   : > { %vm4843_vm6 = vcmp.lt.s32.totalorder %v4842_v63, 0  ;;  %v924_v32 = vsub.s32 0, %v5832_v12  ;;  %v1200_v47 = vshrl.u32 %v5528_v38, %v1185_v60  ;;  %v1186_v59 = vshrl.u32 %v5523_v13, %v1185_v60 }
 0x288   : > { %v1033_v31 = vsel %vm4843_vm6, 0, %v4842_v63  ;;  %v1189_v41 = vor.u32 %v1188_v6, %v1187_v21  ;;  %v1192_v44 = vor.u32 %v1191_v26, %v1190_v24  ;;  %v1195_v45 = vor.u32 %v1194_v29, %v1193_v4 }
 0x289   : > { %v1034_v37 = vsub.s32 32, %v1033_v31  ;;  %v1035_v39 = vshll.u32 %v1026_v34, %v1033_v31  ;;  %v1038_v40 = vsub.s32 4294967266, %v1033_v31  ;;  %v4837_v42 = vmin.u32 %v924_v32, %v5832_v12 }
 0x28a   : > { %v1198_v63 = vor.u32 %v1197_v10, %v1196_v33  ;;  %vm1202_vm7 = vcmp.lt.s32.totalorder %v5824_v0, 1  ;;  %v1201_v6 = vor.u32 %v1200_v47, %v1199_v46  ;;  %vm1203_vm8 = vcmp.lt.s32.totalorder %v5824_v0, 2 }
 0x28b   : > { %v1036_v9 = vshrl.u32 %v1018_v55, %v1034_v37  ;;  %v1039_v43 = vadd.s32 127, %v1038_v40  ;;  %v926_v56 = vclz %v4837_v42  ;;  %vm1204_vm9 = vcmp.lt.s32.totalorder %v5824_v0, 3 }
 0x28c   : > { %vm1205_vm10 = vcmp.lt.s32.totalorder %v5824_v0, 4  ;;  %v1210_v49 = vsel %vm1202_vm7, %v1189_v41, %v1192_v44  ;;  %v914_v60 = vadd.s32 %v5787_v62, %v5792_v1  ;;  %v1206_v32 = vsel %vm1202_vm7, %v1186_v59, %v1189_v41 }
 0x28d   : > { %v1037_v34 = vor.u32 %v1036_v9, %v1035_v39  ;;  %v1040_v21 = vshll.u32 %v1039_v43, 23  ;;  %v4838_v24 = vadd.s32 4294967294, %v926_v56  ;;  %v1207_v26 = vsel %vm1205_vm10, %v1195_v45, 2102212464 }
 0x28e   : > { %v1211_v29 = vsel %vm1205_vm10, %v1198_v63, 920167782  ;;  %v1214_v1 = vsel %vm1202_vm7, %v1192_v44, %v1195_v45  ;;  %v1208_v42 = vsel %vm1204_vm9, %v1192_v44, %v1207_v26  ;;  %v1215_v10 = vsel %vm1205_vm10, %v1201_v6, 1326507024 }
 0x28f   : > { %v1041_v55 = vor.u32 4788187, %v1040_v21  ;;  %v1044_v31 = vcvt.s32.f32 %v1037_v34  ;;  %vm4839_vm12 = vcmp.lt.s32.totalorder %v4838_v24, 0  ;;  %v1212_v4 = vsel %vm1204_vm9, %v1195_v45, %v1211_v29 }
 0x290   : > { %v929_v37 = vsel %vm4839_vm12, 0, %v4838_v24  ;;  %v1213_v62 = vsel %vm1203_vm8, %v1210_v49, %v1212_v4  ;;  %v1216_v9 = vsel %vm1204_vm9, %v1198_v63, %v1215_v10  ;;  %v1209_v24 = vsel %vm1203_vm8, %v1206_v32, %v1208_v42 }
 0x291   : > { %v1042_v33 = vand.u32 2147483647, %v1041_v55  ;;  %v930_v39 = vsub.s32 32, %v929_v37  ;;  %v934_v40 = vsub.s32 4294967266, %v929_v37  ;;  %v931_v47 = vshll.u32 %v5832_v12, %v929_v37 }
 0x292   : > { %v5876_v43 = vmul.u32.u64.low %v5822_v61, %v1213_v62  ;;  %v5877_v46 = vmul.u32.u64.high %v5822_v61, %v1213_v62, %v5876_v43  ;;  %v1217_v59 = vsel %vm1203_vm8, %v1214_v1, %v1216_v9  ;;  %v1078_v49 = vsel %vm1077_vm13, %v5830_v5, 0 }
 0x293   : > { %v1045_v41 = vmul.f32 %v1044_v31, %v1042_v33  ;;  %v932_v45 = vshrl.u32 %v914_v60, %v930_v39  ;;  %v935_v56 = vadd.s32 127, %v934_v40  ;;  %v5894_v55 = vadd.s32 3, %v5819_v57 }
 0x294   : > { %v5884_v34 = vmul.u32.u64.low %v5822_v61, %v1217_v59  ;;  %v5885_v21 = vmul.u32.u64.high %v5822_v61, %v1217_v59, %v5884_v34  ;;  %v1228_v26 = vadd.s32 1, %v5877_v46  ;;  %v1080_v29 = vand.u32 31, %v1078_v49 }
 0x295   : > { %v1046_v44 = vxor.u32 2147483648, %v1045_v41  ;;  %v933_v63 = vor.u32 %v932_v45, %v931_v47  ;;  %v936_v6 = vshll.u32 %v935_v56, 23  ;;  %v5907_v5 = vand.u32 3, %v5819_v57 }
 0x296   : > { %v1074_v32 = vor.u32 8388608, %v5828_v52  ;;  %v945_v58 = vsel %vm860_vm11, %v944_v20, %v5807_v22  ;;  %v1225_v4 = vmul.u32 %v5822_v61, %v1209_v24  ;;  %vm1227_vm15 = vc.u32 %v5885_v21, %v5876_v43 }
 0x297   : > { %v1047_v12 = vsel %vm964_vm3, %v1046_v44, %v1045_v41  ;;  %v937_v31 = vor.u32 4788187, %v936_v6  ;;  %v1081_v33 = vsub.s32 32, %v1080_v29  ;;  %v940_v37 = vcvt.s32.f32 %v933_v63 }
 0x298   : > { %v1050_v0 = vsel %vm5811_vm5, %v5718_v51, %v1047_v12  ;;  %v1229_v57 = vsel %vm1227_vm15, %v1228_v26, %v5877_v46  ;;  %v1079_v52 = vshrl.u32 %v1078_v49, 5  ;;  %v1089_v22 = vshll.u32 %v5525_v25, %v1080_v29 }
 0x299   : > { %5472 = vsinq.f32 %v1050_v0  ;;  %v938_v53 = vand.u32 2147483647, %v937_v31  ;;  %v1230_v62 = vadd.s32 %v1229_v57, %v1225_v4  ;;  %v1084_v1 = vshrl.u32 %v5524_v23, %v1081_v33 }
 0x29a   : > { %5474 = vcosq.f32 %v1050_v0  ;;  %v1087_v40 = vshrl.u32 %v5525_v25, %v1081_v33  ;;  %v1090_v61 = vshrl.u32 %v5526_v27, %v1081_v33  ;;  %v1083_v42 = vshll.u32 %v5523_v13, %v1080_v29 }
 0x29b   : > { %v941_v39 = vmul.f32 %v940_v37, %v938_v53  ;;  %v1231_v20 = vadd.s32 536870912, %v1230_v62  ;;  %v1086_v10 = vshll.u32 %v5524_v23, %v1080_v29  ;;  %v1093_v41 = vshrl.u32 %v5527_v30, %v1081_v33 }
 0x29c   : > { %v1091_v46 = vor.u32 %v1090_v61, %v1089_v22  ;;  %v1092_v47 = vshll.u32 %v5526_v27, %v1080_v29  ;;  %v5927_v45 = vshll.u32 %v1074_v32, 8  ;;  %v1085_v59 = vor.u32 %v1084_v1, %v1083_v42 }
 0x29d   : > { %v942_v9 = vxor.u32 2147483648, %v941_v39  ;;  %v5929_v56 = vshrl.u32 %v1231_v20, 30  ;;  %v1088_v44 = vor.u32 %v1087_v40, %v1086_v10  ;;  %v1096_v34 = vshrl.u32 %v5528_v38, %v1081_v33 }
 0x29e   : > { %vm1472_vm2 = vcmp.eq.s32.totalorder %v5907_v5, 0  ;;  %v947_v6 = vsel %vm5898_vm14, 0, %v945_v58  ;;  %v1094_v24 = vor.u32 %v1093_v41, %v1092_v47  ;;  %v1095_v49 = vshll.u32 %v5527_v30, %v1080_v29 }
 0x29f   : > { %v943_v63 = vsel %vm860_vm11, %v942_v9, %v941_v39  ;;  %v1233_v26 = vshll.u32 %v5929_v56, 30  ;;  %v1082_v0 = vshrl.u32 %v5523_v13, %v1081_v33  ;;  %vm1101_vm3 = vcmp.lt.s32.totalorder %v1079_v52, 4 }
 0x2a0   : > { %v946_v12 = vsel %vm5898_vm14, %v5722_v54, %v943_v63  ;;  %vm1475_vm4 = vcmp.eq.s32.totalorder %v5907_v5, 2  ;;  %v1097_v31 = vor.u32 %v1096_v34, %v1095_v49  ;;  %vm1098_vm5 = vcmp.lt.s32.totalorder %v1079_v52, 1 }
 0x2a1   : > { %5476 = vcosq.f32 %v946_v12  ;;  %v1103_v32 = vsel %vm1101_vm3, %v1091_v46, 2102212464  ;;  %vm1471_vm6 = vcmp.lt.s32.totalorder %v5907_v5, 2  ;;  %v951_v29 = vadd.s32 3, %v947_v6 }
 0x2a2   : > { %5478 = vsinq.f32 %v946_v12  ;;  %v5946_v58 = vsub.s32 %v1230_v62, %v1233_v26  ;;  %v1106_v60 = vsel %vm1098_vm5, %v1085_v59, %v1088_v44  ;;  %vm1054_vm7 = vweird.f32 %v5718_v51 }
 0x2a3   : > { %v5950_v4 = vpop.eup %5472  ;;  %vm1099_vm8 = vcmp.lt.s32.totalorder %v1079_v52, 2  ;;  %vm1100_vm9 = vcmp.lt.s32.totalorder %v1079_v52, 3  ;;  %v1102_v33 = vsel %vm1098_vm5, %v1082_v0, %v1085_v59  ;;  %v1107_v53 = vsel %vm1101_vm3, %v1094_v24, 920167782 }
 0x2a4   : > { %v5954_v37 = vpop.eup %5474  ;;  %v1236_v57 = vsub.s32 0, %v5946_v58  ;;  %v1104_v1 = vsel %vm1100_vm9, %v1088_v44, %v1103_v32  ;;  %v1108_v39 = vsel %vm1100_vm9, %v1091_v46, %v1107_v53  ;;  %v1110_v62 = vsel %vm1098_vm5, %v1088_v44, %v1091_v46 }
 0x2a5   : > { %v1367_v40 = vand.u32 3, %v947_v6  ;;  %v1109_v22 = vsel %vm1099_vm8, %v1106_v60, %v1108_v39  ;;  %v1111_v61 = vsel %vm1101_vm3, %v1097_v31, 1326507024  ;;  %v1059_v20 = vxor.u32 2147483648, %v5950_v4 }
 0x2a6   : > { %v4849_v42 = vmin.u32 %v1236_v57, %v5946_v58  ;;  %v1112_v10 = vsel %vm1100_vm9, %v1094_v24, %v1111_v61  ;;  %v5963_v41 = vmul.u32.u64.low %v5927_v45, %v1109_v22  ;;  %v5964_v9 = vmul.u32.u64.high %v5927_v45, %v1109_v22, %v5963_v41 }
 0x2a7   : > { %v1105_v47 = vsel %vm1099_vm8, %v1102_v33, %v1104_v1  ;;  %v1113_v59 = vsel %vm1099_vm8, %v1110_v62, %v1112_v10  ;;  %v1062_v46 = vxor.u32 2147483648, %v5954_v37  ;;  %v1474_v44 = vsel %vm1472_vm2, %v5954_v37, %v1059_v20 }
 0x2a8   : > { %v1238_v34 = vclz %v4849_v42  ;;  %v5974_v63 = vmul.u32.u64.low %v5927_v45, %v1113_v59  ;;  %v5975_v6 = vmul.u32.u64.high %v5927_v45, %v1113_v59, %v5974_v63  ;;  %vm950_vm10 = vweird.f32 %v5722_v54  ;;  %v5429_v54 = vld [vmem:[%s6756_s8] sm:$0xff]  }
 0x2a9   : > { %v952_v24 = vand.u32 3, %v951_v29  ;;  %v1226_v49 = vadd.s32 %v5876_v43, %v5885_v21  ;;  %vm1368_vm11 = vcmp.lt.s32.totalorder %v1367_v40, 2  ;;  %vm1369_vm12 = vcmp.eq.s32.totalorder %v1367_v40, 0 }
 0x2aa   : > { %v1477_v52 = vsel %vm1475_vm4, %v1062_v46, %v5950_v4  ;;  %v4850_v12 = vadd.s32 4294967294, %v1238_v34  ;;  %v1124_v26 = vadd.s32 1, %v5964_v9  ;;  %v1056_v31 = vand.u32 3, %v5894_v55 }
 0x2ab   : > { %v1478_v0 = vsel %vm1471_vm6, %v1474_v44, %v1477_v52  ;;  %v5477_v32 = vpop.eup %5476  ;;  %v1121_v29 = vmul.u32 %v5927_v45, %v1105_v47  ;;  %vm1372_vm13 = vcmp.eq.s32.totalorder %v1367_v40, 2  ;;  %vm953_vm14 = vcmp.lt.s32.totalorder %v952_v24, 2 }
 0x2ac   : > { %v1479_v43 = vsel %vm1054_vm7, nan, %v1478_v0  ;;  %v5479_v21 = vpop.eup %5478  ;;  %vm4851_vm15 = vcmp.lt.s32.totalorder %v4850_v12, 0  ;;  %vm1123_vm2 = vc.u32 %v5975_v6, %v5963_v41  ;;  %v958_v60 = vxor.u32 2147483648, %v5477_v32 }
 0x2ad   : > { %vm954_vm3 = vcmp.eq.s32.totalorder %v952_v24, 0  ;;  %v1241_v33 = vsel %vm4851_vm15, 0, %v4850_v12  ;;  %v1125_v5 = vsel %vm1123_vm2, %v1124_v26, %v5964_v9  ;;  %v955_v53 = vxor.u32 2147483648, %v5479_v21 }
 0x2ae   : > { %vm957_vm4 = vcmp.eq.s32.totalorder %v952_v24, 2  ;;  %v1242_v55 = vsub.s32 32, %v1241_v33  ;;  %v1246_v57 = vsub.s32 4294967266, %v1241_v33  ;;  %v1126_v45 = vadd.s32 %v1125_v5, %v1121_v29 }
 0x2af   : > { %vm1058_vm5 = vcmp.eq.s32.totalorder %v1056_v31, 0  ;;  %v1371_v1 = vsel %vm1369_vm12, %v5477_v32, %v955_v53  ;;  %v1374_v39 = vsel %vm1372_vm13, %v958_v60, %v5479_v21  ;;  %v956_v62 = vsel %vm954_vm3, %v5477_v32, %v955_v53 }
 0x2b0   : > { %v959_v22 = vsel %vm957_vm4, %v958_v60, %v5479_v21  ;;  %v1244_v61 = vshrl.u32 %v1226_v49, %v1242_v55  ;;  %v1247_v42 = vadd.s32 127, %v1246_v57  ;;  %v1127_v10 = vadd.s32 536870912, %v1126_v45 }
 0x2b1   : > { %v1375_v47 = vsel %vm1368_vm11, %v1371_v1, %v1374_v39  ;;  %v1243_v59 = vshll.u32 %v5946_v58, %v1241_v33  ;;  %v960_v44 = vsel %vm953_vm14, %v956_v62, %v959_v22  ;;  %v1060_v34 = vsel %vm1058_vm5, %v5954_v37, %v1059_v20 }
 0x2b2   : > { %v1376_v9 = vsel %vm950_vm10, nan, %v1375_v47  ;;  %v1248_v63 = vshll.u32 %v1247_v42, 23  ;;  %v1128_v52 = vshrl.u32 %v1127_v10, 30  ;;  %vm1061_vm6 = vcmp.eq.s32.totalorder %v1056_v31, 2 }
 0x2b3   : > { %v5393_v12 = vpack.i.bf16 %v1479_v43, %v1376_v9  ;;  %vm1057_vm8 = vcmp.lt.s32.totalorder %v1056_v31, 2  ;;  %v1063_v49 = vsel %vm1061_vm6, %v1062_v46, %v5950_v4  ;;  %v1245_v26 = vor.u32 %v1244_v61, %v1243_v59 }
 0x2b4   : > { %v1249_v0 = vor.u32 4788187, %v1248_v63  ;;  %v1129_v40 = vshll.u32 %v1128_v52, 30  ;;  %v961_v58 = vsel %vm950_vm10, nan, %v960_v44  ;;  %v1064_v24 = vsel %vm1057_vm8, %v1060_v34, %v1063_v49 }
 0x2b5   : > { %5394 = vrot.lane.b32.xlu1 %v5393_v12, %s5529_s19  ;;  %v1065_v37 = vsel %vm1054_vm7, nan, %v1064_v24  ;;  %v1252_v43 = vcvt.s32.f32 %v1245_v26  ;;  %vm1749_vm9 = vcmask 1046528   ;;  %vm1750_vm10 = vcmask 1047552  }
 0x2b6   : > { %v1250_v32 = vand.u32 2147483647, %v1249_v0  ;;  %v1130_v29 = vsub.s32 %v1126_v45, %v1129_v40  ;;  %v5388_v20 = vpack.i.bf16 %v1065_v37, %v961_v58  ;;  %v5531_v21 = vmov 65535  }
 0x2b7   : > { %v1751_v60 = vsel %vm1749_vm9, 4294967295, %v5531_v21  ;;  %vm1172_vm11 = vcmp.lt.s32.totalorder %v5732_v7, 0  ;;  %v1122_v1 = vadd.s32 %v5963_v41, %v5975_v6  ;;  %vm6019_vm12 = vcmp.le.f32.partialorder %v1170_v3, 0.7853982 }
 0x2b8   : > { %v1132_v31 = vsub.s32 0, %v1130_v29  ;;  %5389 = vrot.lane.b32.xlu0 %v5388_v20, %s5530_s20  ;;  %v1253_v4 = vmul.f32 %v1252_v43, %v1250_v32  ;;  %v1752_v51 = vsel %vm1750_vm10, %v1751_v60, 0  ;;  %v1256_v59 = vsub.s32 4, %v5929_v56 }
 0x2b9   : > { %v1754_v55 = vand.u32 %v5429_v54, %v1752_v51  ;;  %v1152_v63 = vsub.s32 4, %v1128_v52  ;;  %vm1068_vm13 = vcmp.lt.s32.totalorder %v5737_v11, 0  ;;  %vm1067_vm14 = vcmp.le.f32.partialorder %v1066_v35, 0.7853982 }
 0x2ba   : > { %v4845_v46 = vmin.u32 %v1132_v31, %v1130_v29  ;;  %v1254_v5 = vxor.u32 2147483648, %v1253_v4  ;;  %v1257_v3 = vsel %vm1172_vm11, %v1256_v59, %v5929_v56  ;;  %vm1262_vm5 = vweird.f32 %v5732_v7 }
 0x2bb   : > { %5136 = vmatprep.subr.bf16.mxu0 %v1754_v55  ;;  %v1259_v49 = vsel %vm6019_vm12, 0, %v1257_v3  ;;  %v1153_v0 = vsel %vm1068_vm13, %v1152_v63, %v1128_v52 }
 0x2bc   : > { %v1134_v33 = vclz %v4845_v46  ;;  %5137 = vmatpush3.bf16.msra.mxu0 %v1754_v55  ;;  %v1255_v45 = vsel %vm1172_vm11, %v1254_v5, %v1253_v4  ;;  %v1263_v40 = vadd.s32 3, %v1259_v49  ;;  %v1155_v56 = vsel %vm1067_vm14, 0, %v1153_v0 }
 0x2bd   : > { %v1258_v47 = vsel %vm6019_vm12, %v5732_v7, %v1255_v45  ;;  %v1676_v20 = vand.u32 3, %v1259_v49  ;;  %v1159_v43 = vadd.s32 3, %v1155_v56  ;;  %v1573_v52 = vand.u32 3, %v1155_v56 }
 0x2be   : > { %v4846_v53 = vadd.s32 4294967294, %v1134_v33  ;;  %5480 = vcosq.f32 %v1258_v47  ;;  %v1264_v37 = vand.u32 3, %v1263_v40 }
 0x2bf   : > { %5482 = vsinq.f32 %v1258_v47  ;;  %v1160_v46 = vand.u32 3, %v1159_v43  ;;  %vm1678_vm3 = vcmp.eq.s32.totalorder %v1676_v20, 0  ;;  %vm1681_vm4 = vcmp.eq.s32.totalorder %v1676_v20, 2 }
 0x2c0   : > { %vm4847_vm7 = vcmp.lt.s32.totalorder %v4846_v53, 0  ;;  %vm1266_vm15 = vcmp.eq.s32.totalorder %v1264_v37, 0  ;;  %vm1269_vm2 = vcmp.eq.s32.totalorder %v1264_v37, 2  ;;  %vm1265_vm6 = vcmp.lt.s32.totalorder %v1264_v37, 2 }
 0x2c1   : > { %v1137_v57 = vsel %vm4847_vm7, 0, %v4846_v53  ;;  %vm1677_vm8 = vcmp.lt.s32.totalorder %v1676_v20, 2  ;;  %vm1574_vm10 = vcmp.lt.s32.totalorder %v1573_v52, 2  ;;  %vm1165_vm7 = vcmp.eq.s32.totalorder %v1160_v46, 2 }
 0x2c2   : > { %v1138_v39 = vsub.s32 32, %v1137_v57  ;;  %v1142_v62 = vsub.s32 4294967266, %v1137_v57  ;;  %v1139_v61 = vshll.u32 %v1130_v29, %v1137_v57  ;;  %vm1575_vm11 = vcmp.eq.s32.totalorder %v1573_v52, 0 }
 0x2c3   : > { %vm1578_vm12 = vcmp.eq.s32.totalorder %v1573_v52, 2  ;;  %v5430_v52 = vld [vmem:[%s6756_s8 + $0x8] sm:$0xff]  }
 0x2c4   : > { %v1140_v42 = vshrl.u32 %v1122_v1, %v1138_v39  ;;  %v1143_v10 = vadd.s32 127, %v1142_v62  ;;  %5142 = vmatprep.subr.bf16.mxu1 %v5430_v52 }
 0x2c5   : > { %5143 = vmatpush3.bf16.msra.mxu1 %v5430_v52 }
 0x2c6   : > { %v1141_v9 = vor.u32 %v1140_v42, %v1139_v61  ;;  %v1144_v44 = vshll.u32 %v1143_v10, 23 }
 0x2c8   : > { %v1145_v41 = vor.u32 4788187, %v1144_v44  ;;  %v1148_v34 = vcvt.s32.f32 %v1141_v9  ;;  %v5481_v32 = vpop.eup %5480 }
 0x2c9   : > { %v5483_v29 = vpop.eup %5482  ;;  %v1270_v4 = vxor.u32 2147483648, %v5481_v32 }
 0x2ca   : > { %v1146_v6 = vand.u32 2147483647, %v1145_v41  ;;  %v1267_v31 = vxor.u32 2147483648, %v5483_v29 }
 0x2cb   : > { %v1271_v54 = vsel %vm1269_vm2, %v1270_v4, %v5483_v29  ;;  %v1683_v60 = vsel %vm1681_vm4, %v1270_v4, %v5483_v29  ;;  %vm1722_vm2 = vcmask 72704   ;;  %vm1842_vm4 = vcmask 261120  }
 0x2cc   : > { %v1149_v12 = vmul.f32 %v1148_v34, %v1146_v6  ;;  %v1268_v35 = vsel %vm1266_vm15, %v5481_v32, %v1267_v31  ;;  %v1680_v21 = vsel %vm1678_vm3, %v5481_v32, %v1267_v31  ;;  %vm1158_vm15 = vweird.f32 %v5737_v11 }
 0x2cd   : > { %v1272_v53 = vsel %vm1265_vm6, %v1268_v35, %v1271_v54  ;;  %v1684_v55 = vsel %vm1677_vm8, %v1680_v21, %v1683_v60  ;;  %vm1742_vm3 = vcmask 121856   ;;  %v4868_v35 = vld [vmem:[%s6757_s9] ss:$0 sm:$0xff]  ;;  %vm2456_vm6 = vcmask 187392  }
 0x2ce   : > { %v1150_v26 = vxor.u32 2147483648, %v1149_v12  ;;  %v1273_v62 = vsel %vm1262_vm5, nan, %v1272_v53  ;;  %v1685_v61 = vsel %vm1262_vm5, nan, %v1684_v55  ;;  %v4872_v54 = vld [vmem:[%s6755_s7] ss:$0 sm:$0xff] }
 0x2d0   : > { %v1151_v58 = vsel %vm1068_vm13, %v1150_v26, %v1149_v12  ;;  %vm1161_vm13 = vcmp.lt.s32.totalorder %v1160_v46, 2 }
 0x2d1   : > { %v1154_v24 = vsel %vm1067_vm14, %v5737_v11, %v1151_v58  ;;  %vm1162_vm14 = vcmp.eq.s32.totalorder %v1160_v46, 0  ;;  %v5431_v46 = vld [vmem:[%s6756_s8 + $0x10] sm:$0xff]  }
 0x2d2   : > { %5484 = vcosq.f32 %v1154_v24  ;;  %5144 = vmatprep.subr.bf16.mxu1 %v5431_v46 }
 0x2d3   : > { %5486 = vsinq.f32 %v1154_v24  ;;  %5145 = vmatpush3.bf16.msra.mxu1 %v5431_v46 }
 0x2dc   : > { %v5485_v33 = vpop.eup %5484 }
 0x2dd   : > { %v5487_v51 = vpop.eup %5486  ;;  %v1166_v5 = vxor.u32 2147483648, %v5485_v33 }
 0x2de   : > { %v1163_v57 = vxor.u32 2147483648, %v5487_v51 }
 0x2df   : > { %v1167_v45 = vsel %vm1165_vm7, %v1166_v5, %v5487_v51  ;;  %v1580_v1 = vsel %vm1578_vm12, %v1166_v5, %v5487_v51 }
 0x2e0   : > { %v1164_v39 = vsel %vm1162_vm14, %v5485_v33, %v1163_v57  ;;  %v1577_v22 = vsel %vm1575_vm11, %v5485_v33, %v1163_v57 }
 0x2e1   : > { %v1168_v42 = vsel %vm1161_vm13, %v1164_v39, %v1167_v45  ;;  %v1581_v10 = vsel %vm1574_vm10, %v1577_v22, %v1580_v1 }
 0x2e2   : > { %v1169_v47 = vsel %vm1158_vm15, nan, %v1168_v42  ;;  %v1582_v59 = vsel %vm1158_vm15, nan, %v1581_v10 }
 0x2e3   : > { %v5398_v9 = vpack.i.bf16 %v1273_v62, %v1169_v47  ;;  %v5403_v44 = vpack.i.bf16 %v1685_v61, %v1582_v59 }
 0x2e5   : > { %5399 = vrot.lane.b32.xlu1 %v5398_v9, %s5530_s20  ;;  %v5432_v9 = vld [vmem:[%s6756_s8 + $0x18] sm:$0xff]  }
 0x2e6   : > { %5150 = vmatprep.subr.bf16.mxu0 %v5432_v9 }
 0x2e9   : > { %5404 = vrot.lane.b32.xlu1 %v5403_v44, %s5529_s19  ;;  %v5433_v44 = vld [vmem:[%s6756_s8 + $0x20] sm:$0xff]  }
 0x327   : > { %v5395_v41 = vpop.permute.xlu1 %5394 }
 0x328   : > { %v5397_v3 = vunpack.i.h.bf16 %v5395_v41  ;;  %v5396_v6 = vunpack.i.l.bf16 %v5395_v41  ;;  %v4873_v41 = vld [vmem:[%s6757_s9 + $0x1] ss:$0 sm:$0xff] }
 0x32a   : > { %v5390_v34 = vpop.permute.xlu0 %5389 }
 0x32b   : > { %v5392_v63 = vunpack.i.h.bf16 %v5390_v34  ;;  %v5391_v7 = vunpack.i.l.bf16 %v5390_v34 }
 0x32d   : > { %v1719_v11 = vsel %vm6761_vm1, %v5702_v36, %v5392_v63  ;;  %v1718_v12 = vsel %vm6761_vm1, %v5694_v28, %v5391_v7 }
 0x32e   : > { %v1723_v49 = vsel %vm1722_vm2, %v1718_v12, %v5396_v6  ;;  %v1724_v26 = vsel %vm1722_vm2, %v1719_v11, %v5397_v3 }
 0x32f   : > { %v1730_v0 = vpack.c.bf16 %v1724_v26, %v1723_v49 }
 0x331   : > { %5138 = vmatprep.mubr.msk.bf16.mxu0 %vm1742_vm3, %v1730_v0 }
 0x357   : > { %v5400_v40 = vpop.permute.xlu1 %5399 }
 0x358   : > { %v5402_v58 = vunpack.i.h.bf16 %v5400_v40  ;;  %v5401_v24 = vunpack.i.l.bf16 %v5400_v40 }
 0x35a   : > { %v1721_v37 = vsel %vm6761_vm1, %v5712_v50, %v5402_v58  ;;  %v1720_v20 = vsel %vm6761_vm1, %v5709_v48, %v5401_v24 }
 0x35b   : > { %v5405_v32 = vpop.permute.xlu1 %5404 }
 0x35c   : > { %v5407_v56 = vunpack.i.h.bf16 %v5405_v32  ;;  %v5406_v29 = vunpack.i.l.bf16 %v5405_v32 }
 0x35e   : > { %v1725_v43 = vsel %vm1722_vm2, %v1720_v20, %v5406_v29  ;;  %v1726_v31 = vsel %vm1722_vm2, %v1721_v37, %v5407_v56  ;;  %v5434_v56 = vld [vmem:[%s6756_s8 + $0x28] sm:$0xff]   ;;  %v5435_v29 = vld [vmem:[%s6756_s8 + $0x30] sm:$0xff]   ;;  %v4878_v37 = vld [vmem:[%s6757_s9 + $0x2] ss:$0 sm:$0xff] }
 0x35f   : > { %v1731_v4 = vpack.c.bf16 %v1726_v31, %v1725_v43  ;;  %5158 = vmatprep.subr.bf16.mxu1 %v5434_v56 }
 0x361   : > { %5139 = vmatmul.mubr.msk.bf16.vlgmr.msra.gmra.mrb[8].mxu0 %vm1742_vm3, %v1731_v4 }
 0x362   : > { %5151 = vmatpush3.bf16.msra.mxu0 %v5432_v9 }
 0x363   : > { %5152 = vmatprep.subr.bf16.mxu0 %v5433_v44 }
 0x366   : > { %5153 = vmatpush3.bf16.msra.mxu0 %v5433_v44 }
 0x434   : > { %v5140_v21 = vpop.f32.mrb[8].mxu0 }
 0x435   : > { %v1799_v60 = vadd.f32 %v5140_v21, %v4868_v35  ;;  %v1790_v33 = vpop.f32.mrb[9].mxu0 }
 0x436   : > { %v1791_v51 = vadd.f32 %v4868_v35, %v1790_v33  ;;  %v5141_v5 = vpop.f32.mrb[10].mxu0 }
 0x437   : > { %v1813_v53 = vadd.f32 %v4872_v54, %v1799_v60  ;;  %v1802_v55 = vadd.f32 %v5141_v5, %v4868_v35  ;;  %v1793_v57 = vpop.f32.mrb[11].mxu0 }
 0x438   : > { %v1811_v45 = vadd.f32 %v4872_v54, %v1791_v51  ;;  %v1794_v1 = vadd.f32 %v4868_v35, %v1793_v57  ;;  %v5437_v57 = vld [vmem:[%s6756_s8 + $0x40] sm:$0xff]  }
 0x439   : > { %v1814_v39 = vadd.f32 %v4872_v54, %v1802_v55  ;;  %v1817_v22 = vmax.f32 %v1813_v53, 0.0  ;;  %v5436_v55 = vld [vmem:[%s6756_s8 + $0x38] sm:$0xff]  }
 0x43a   : > { %v1812_v62 = vadd.f32 %v4872_v54, %v1794_v1  ;;  %v1815_v42 = vmax.f32 %v1811_v45, 0.0  ;;  %5166 = vmatprep.subr.bf16.mxu0 %v5436_v55  ;;  %v6102_v45 = vld [vmem:[%s6751_s3] sm:$0xff] }
 0x43b   : > { %v1818_v61 = vmax.f32 %v1814_v39, 0.0  ;;  %v2250_v1 = vrot.slane %v6102_v45, 3  ;;  %v4883_v39 = vld [vmem:[%s6757_s9 + $0x3] ss:$0 sm:$0xff] }
 0x43c   : > { %v1816_v10 = vmax.f32 %v1812_v62, 0.0 }
 0x43d   : > { %v1824_v47 = vpack.c.bf16 %v1818_v61, %v1817_v22 }
 0x43e   : > { %v1823_v59 = vpack.c.bf16 %v1816_v10, %v1815_v42 }
 0x440   : > { %5146 = vmatprep.mubr.msk.bf16.mxu1 %vm1842_vm4, %v1823_v59 }
 0x441   : > { %5147 = vmatmul.mubr.msk.bf16.vlgmr.msra.gmra.mrb[8].mxu1 %vm1842_vm4, %v1824_v47 }
 0x442   : > { %5159 = vmatpush3.bf16.msra.mxu1 %v5434_v56 }
 0x443   : > { %5160 = vmatprep.subr.bf16.mxu1 %v5435_v29 }
 0x446   : > { %5161 = vmatpush3.bf16.msra.mxu1 %v5435_v29 }
 0x447   : > { %5174 = vmatprep.subr.msk.mxu1 %vm493_vm0, %v6102_v45 }
 0x514   : > { %v5148_v3 = vpop.f32.mrb[8].mxu1 }
 0x515   : > { %v1892_v6 = vadd.f32 %v5148_v3, %v4873_v41  ;;  %v1883_v34 = vpop.f32.mrb[9].mxu1 }
 0x516   : > { %v1884_v63 = vadd.f32 %v4873_v41, %v1883_v34  ;;  %v5149_v7 = vpop.f32.mrb[10].mxu1 }
 0x517   : > { %v1895_v11 = vadd.f32 %v5149_v7, %v4873_v41  ;;  %v1886_v12 = vpop.f32.mrb[11].mxu1  ;;  %v1900_v26 = vmax.f32 %v1892_v6, 0.0  ;;  %v4888_v7 = vld [vmem:[%s6757_s9 + $0x4] ss:$0 sm:$0xff] }
 0x518   : > { %v1887_v49 = vadd.f32 %v4873_v41, %v1886_v12  ;;  %v1898_v40 = vmax.f32 %v1884_v63, 0.0 }
 0x519   : > { %v1901_v0 = vmax.f32 %v1895_v11, 0.0 }
 0x51a   : > { %v1899_v58 = vmax.f32 %v1887_v49, 0.0 }
 0x51b   : > { %v1907_v24 = vpack.c.bf16 %v1901_v0, %v1900_v26 }
 0x51c   : > { %v1906_v32 = vpack.c.bf16 %v1899_v58, %v1898_v40 }
 0x51e   : > { %5154 = vmatprep.mubr.msk.bf16.mxu0 %vm1842_vm4, %v1906_v32 }
 0x51f   : > { %5155 = vmatmul.mubr.msk.bf16.vlgmr.msra.gmra.mrb[12].mxu0 %vm1842_vm4, %v1907_v24 }
 0x520   : > { %5167 = vmatpush3.bf16.msra.mxu0 %v5436_v55 }
 0x521   : > { %5168 = vmatprep.subr.bf16.mxu0 %v5437_v57 }
 0x524   : > { %5169 = vmatpush3.bf16.msra.mxu0 %v5437_v57 }
 0x525   : > { %5182 = vmatprep.subr.msk.mxu0 %vm493_vm0, %v2250_v1 }
 0x5f2   : > { %v5156_v20 = vpop.f32.mrb[12].mxu0 }
 0x5f3   : > { %v1974_v43 = vadd.f32 %v5156_v20, %v4878_v37  ;;  %v1965_v31 = vpop.f32.mrb[13].mxu0 }
 0x5f4   : > { %v1966_v4 = vadd.f32 %v4878_v37, %v1965_v31  ;;  %v5157_v52 = vpop.f32.mrb[14].mxu0 }
 0x5f5   : > { %v1977_v46 = vadd.f32 %v5157_v52, %v4878_v37  ;;  %v1968_v35 = vpop.f32.mrb[15].mxu0  ;;  %v1982_v21 = vmax.f32 %v1974_v43, 0.0  ;;  %v2362_v52 = vmax.f32 %v6102_v45, 1e-12 }
 0x5f6   : > { %v1969_v54 = vadd.f32 %v4878_v37, %v1968_v35  ;;  %v1980_v33 = vmax.f32 %v1966_v4, 0.0  ;;  %v2356_v35 = vsub.s32 6, %v5652_v17 }
 0x5f7   : > { %v1983_v60 = vmax.f32 %v1977_v46, 0.0  ;;  %v2366_v46 = vrot.slane %v2362_v52, %v5656_v19 }
 0x5f8   : > { %v1981_v51 = vmax.f32 %v1969_v54, 0.0 }
 0x5f9   : > { %v1989_v5 = vpack.c.bf16 %v1983_v60, %v1982_v21  ;;  %5488 = vrcp.f32 %v2366_v46  ;;  %v2357_v21 = vrot.slane %v6102_v45, %v2356_v35 }
 0x5fa   : > { %v1988_v53 = vpack.c.bf16 %v1981_v51, %v1980_v33 }
 0x5fc   : > { %5162 = vmatprep.mubr.msk.bf16.mxu1 %vm1842_vm4, %v1988_v53 }
 0x5fd   : > { %5163 = vmatmul.mubr.msk.bf16.vlgmr.msra.gmra.mrb[12].mxu1 %vm1842_vm4, %v1989_v5 }
 0x5fe   : > { %5175 = vmatpush3.msk.msra.mxu1 %vm493_vm0, %v6102_v45 }
 0x603   : > { %v5489_v60 = vpop.eup %5488 }
 0x6d0   : > { %v5164_v62 = vpop.f32.mrb[12].mxu1 }
 0x6d1   : > { %v2056_v22 = vadd.f32 %v5164_v62, %v4883_v39  ;;  %v2047_v61 = vpop.f32.mrb[13].mxu1 }
 0x6d2   : > { %v2048_v42 = vadd.f32 %v4883_v39, %v2047_v61  ;;  %v5165_v10 = vpop.f32.mrb[14].mxu1 }
 0x6d3   : > { %v2059_v47 = vadd.f32 %v5165_v10, %v4883_v39  ;;  %v2050_v59 = vpop.f32.mrb[15].mxu1  ;;  %v2064_v44 = vmax.f32 %v2056_v22, 0.0 }
 0x6d4   : > { %v2051_v9 = vadd.f32 %v4883_v39, %v2050_v59  ;;  %v2062_v3 = vmax.f32 %v2048_v42, 0.0 }
 0x6d5   : > { %v2065_v41 = vmax.f32 %v2059_v47, 0.0 }
 0x6d6   : > { %v2063_v6 = vmax.f32 %v2051_v9, 0.0 }
 0x6d7   : > { %v2071_v34 = vpack.c.bf16 %v2065_v41, %v2064_v44 }
 0x6d8   : > { %v2070_v63 = vpack.c.bf16 %v2063_v6, %v2062_v3 }
 0x6da   : > { %5170 = vmatprep.mubr.msk.bf16.mxu0 %vm1842_vm4, %v2070_v63 }
 0x6db   : > { %5171 = vmatmul.mubr.msk.bf16.vlgmr.msra.gmra.mrb[16].mxu0 %vm1842_vm4, %v2071_v34 }
 0x6dc   : > { %5183 = vmatpush3.msk.msra.mxu0 %vm493_vm0, %v2250_v1 }
 0x7ae   : > { %v5172_v11 = vpop.f32.mrb[16].mxu0 }
 0x7af   : > { %v2138_v12 = vadd.f32 %v5172_v11, %v4888_v7  ;;  %v2129_v49 = vpop.f32.mrb[17].mxu0  ;;  %v4903_v11 = vld [vmem:[%s6751_s3 + $0x8] ss:$0 sm:$0xff] }
 0x7b0   : > { %v2130_v26 = vadd.f32 %v4888_v7, %v2129_v49  ;;  %v5173_v0 = vpop.f32.mrb[18].mxu0 }
 0x7b1   : > { %v2132_v40 = vpop.f32.mrb[19].mxu0  ;;  %v6120_v58 = vadd.f32 %v2138_v12, %v5709_v48  ;;  %v2141_v32 = vadd.f32 %v5173_v0, %v4888_v7 }
 0x7b2   : > { %v6123_v24 = vadd.f32 %v2130_v26, %v5694_v28  ;;  %v2133_v56 = vadd.f32 %v4888_v7, %v2132_v40 }
 0x7b3   : > { %v6135_v48 = vadd.f32 %v2141_v32, %v5712_v50  ;;  %v2340_v20 = vmul.f32 %v6120_v58, %v6120_v58 }
 0x7b4   : > { %v6126_v29 = vadd.f32 %v2133_v56, %v5702_v36  ;;  %5176 = vmatprep.mubr.msk.f32.mxu1 %vm6761_vm1, %v6123_v24  ;;  %5184 = vmatprep.mubr.msk.f32.mxu0 %vm6761_vm1, %v6123_v24  ;;  %v2338_v37 = vmul.f32 %v6123_v24, %v6123_v24  ;;  %v2415_v56 = vrot.slane %v6102_v45, %v5656_v19 }
 0x7b5   : > { %v2348_v43 = vsel %vm6761_vm1, %v2340_v20, 0.0  ;;  %v2341_v31 = vmul.f32 %v6135_v48, %v6135_v48 }
 0x7b6   : > { %5177 = vmatmul.mubr.msk.f32.vlgmr.msra.gmra.mrb[16].mxu1 %vm6761_vm1, %v6126_v29  ;;  %5185 = vmatmul.mubr.msk.f32.vlgmr.msra.gmra.mrb[20].mxu0 %vm6761_vm1, %v6126_v29  ;;  %v2342_v28 = vsel %vm6761_vm1, %v2338_v37, 0.0  ;;  %v2339_v36 = vmul.f32 %v6126_v29, %v6126_v29 }
 0x7b7   : > { %2343 = vadd.xlane.f32.xlu0 %v2342_v28  ;;  %5179 = vmatprep.mubr.msk.f32.mxu1 %vm6761_vm1, %v6120_v58  ;;  %v2351_v4 = vsel %vm6761_vm1, %v2341_v31, 0.0 }
 0x7b8   : > { %5187 = vmatprep.mubr.msk.f32.mxu0 %vm6761_vm1, %v6120_v58  ;;  %v2345_v50 = vsel %vm6761_vm1, %v2339_v36, 0.0 }
 0x7b9   : > { %2346 = vadd.xlane.f32.xlu1 %v2345_v50 }
 0x7ba   : > { %5180 = vmatmul.mubr.msk.f32.gmra.mrb[18].mxu1 %vm6761_vm1, %v6135_v48  ;;  %5188 = vmatmul.mubr.msk.f32.gmra.mrb[22].mxu0 %vm6761_vm1, %v6135_v48 }
 0x7bb   : > { %2349 = vadd.xlane.f32.xlu0 %v2348_v43 }
 0x7bf   : > { %2352 = vadd.xlane.f32.xlu0 %v2351_v4 }
 0x844   : > { %v2344_v54 = vpop.xlane.xlu0 %2343 }
 0x846   : > { %v2347_v44 = vpop.xlane.xlu1 %2346 }
 0x848   : > { %v2350_v1 = vpop.xlane.xlu0 %2349 }
 0x84c   : > { %v2353_v28 = vpop.xlane.xlu0 %2352 }
 0x889   : > { %v5178_v33 = vpop.f32.mrb[16].mxu1  ;;  %v5186_v51 = vpop.f32.mrb[20].mxu0 }
 0x88a   : > { %v2359_v5 = vsub.f32 %v5186_v51, %v2357_v21  ;;  %v2231_v53 = vpop.f32.mrb[17].mxu1  ;;  %v2319_v55 = vpop.f32.mrb[21].mxu0  ;;  %v2381_v39 = vmul.f32 2.0, %v5178_v33 }
 0x88b   : > { %v2358_v57 = vsub.f32 %v2319_v55, %v2357_v21  ;;  %v2380_v22 = vmul.f32 2.0, %v2231_v53 }
 0x88c   : > { %v2369_v62 = vmul.f32 %v5489_v60, %v2359_v5  ;;  %v2385_v6 = vsub.f32 %v2347_v44, %v2381_v39 }
 0x88d   : > { %v2368_v61 = vmul.f32 %v5489_v60, %v2358_v57  ;;  %v5181_v42 = vpop.f32.mrb[18].mxu1  ;;  %v5189_v10 = vpop.f32.mrb[22].mxu0  ;;  %v2384_v12 = vsub.f32 %v2344_v54, %v2380_v22 }
 0x88e   : > { %v2373_v47 = vmax.f32 %v2369_v62, 0.0  ;;  %v2361_v59 = vsub.f32 %v5189_v10, %v2357_v21  ;;  %v2241_v17 = vpop.f32.mrb[19].mxu1  ;;  %v2329_v9 = vpop.f32.mrb[23].mxu0  ;;  %v2383_v63 = vmul.f32 2.0, %v5181_v42  ;;  %v2393_v43 = vadd.f32 %v4903_v11, %v2385_v6 }
 0x88f   : > { %v2372_v41 = vmax.f32 %v2368_v61, 0.0  ;;  %v2360_v3 = vsub.f32 %v2329_v9, %v2357_v21  ;;  %v2382_v26 = vmul.f32 2.0, %v2241_v17  ;;  %v2392_v46 = vadd.f32 %v4903_v11, %v2384_v12 }
 0x890   : > { %v2377_v34 = vmin.f32 %v2373_v47, 1.0  ;;  %v2371_v7 = vmul.f32 %v5489_v60, %v2361_v59  ;;  %v2387_v4 = vsub.f32 %v2353_v28, %v2383_v63 }
 0x891   : > { %v2376_v49 = vmin.f32 %v2372_v41, 1.0  ;;  %v2370_v0 = vmul.f32 %v5489_v60, %v2360_v3  ;;  %v2386_v54 = vsub.f32 %v2350_v1, %v2382_v26 }
 0x892   : > { %v2397_v40 = vmul.f32 2.0, %v2377_v34  ;;  %v2409_v32 = vmul.f32 %v2377_v34, %v2377_v34  ;;  %v2375_v37 = vmax.f32 %v2371_v7, 0.0  ;;  %v2395_v22 = vadd.f32 %v4903_v11, %v2387_v4 }
 0x893   : > { %v2396_v36 = vmul.f32 2.0, %v2376_v49  ;;  %v2408_v20 = vmul.f32 %v2376_v49, %v2376_v49  ;;  %v2374_v50 = vmax.f32 %v2370_v0, 0.0  ;;  %v2394_v10 = vadd.f32 %v4903_v11, %v2386_v54 }
 0x894   : > { %v2401_v31 = vmul.f32 %v2397_v40, %v2359_v5  ;;  %v2379_v52 = vmin.f32 %v2375_v37, 1.0  ;;  %v2417_v60 = vmul.f32 %v2415_v56, %v2409_v32 }
 0x895   : > { %v2400_v35 = vmul.f32 %v2396_v36, %v2358_v57  ;;  %v2378_v21 = vmin.f32 %v2374_v50, 1.0  ;;  %v2416_v39 = vmul.f32 %v2415_v56, %v2408_v20 }
 0x896   : > { %v2405_v33 = vsub.f32 %v2393_v43, %v2401_v31  ;;  %v2399_v51 = vmul.f32 2.0, %v2379_v52  ;;  %v2411_v53 = vmul.f32 %v2379_v52, %v2379_v52 }
 0x897   : > { %v2404_v55 = vsub.f32 %v2392_v46, %v2400_v35  ;;  %v2398_v19 = vmul.f32 2.0, %v2378_v21  ;;  %v2410_v45 = vmul.f32 %v2378_v21, %v2378_v21 }
 0x898   : > { %v2421_v62 = vadd.f32 %v2417_v60, %v2405_v33  ;;  %v2403_v61 = vmul.f32 %v2399_v51, %v2361_v59  ;;  %v2419_v9 = vmul.f32 %v2415_v56, %v2411_v53  ;;  %v6173_v33 = vand.u32 127, %v452_v16 }
 0x899   : > { %v2420_v42 = vadd.f32 %v2416_v39, %v2404_v55  ;;  %v2402_v5 = vmul.f32 %v2398_v19, %v2360_v3  ;;  %v2418_v44 = vmul.f32 %v2415_v56, %v2410_v45 }
 0x89a   : > { %v2425_v47 = vmax.f32 %v2421_v62, 0.0  ;;  %v2407_v17 = vsub.f32 %v2395_v22, %v2403_v61 }
 0x89b   : > { %v2424_v57 = vmax.f32 %v2420_v42, 0.0  ;;  %v2406_v1 = vsub.f32 %v2394_v10, %v2402_v5 }
 0x89c   : > { %v2423_v41 = vadd.f32 %v2419_v9, %v2407_v17  ;;  %5490 = vrsqrt.f32 %v2425_v47  ;;  %vm2437_vm5 = vcmp.eq.f32.partialorder %v2425_v47, inf  ;;  %v2440_v11 = vand.u32 2147483648, %v2425_v47 }
 0x89d   : > { %v2422_v6 = vadd.f32 %v2418_v44, %v2406_v1  ;;  %5492 = vrsqrt.f32 %v2424_v57  ;;  %vm2439_vm8 = vcmp.eq.f32.partialorder %v2425_v47, 0.0  ;;  %vm2430_vm10 = vcmp.eq.f32.partialorder %v2424_v57, inf }
 0x89e   : > { %v2427_v34 = vmax.f32 %v2423_v41, 0.0  ;;  %v2433_v26 = vand.u32 2147483648, %v2424_v57  ;;  %vm2432_vm7 = vcmp.eq.f32.partialorder %v2424_v57, 0.0  ;;  %v2551_v41 = vld [vmem:[%s6752_s4] sm:$0xff] }
 0x89f   : > { %v2426_v63 = vmax.f32 %v2422_v6, 0.0  ;;  %v2552_v6 = vld [vmem:[%s6752_s4 + $0x8] sm:$0xff] }
 0x8a0   : > { %5494 = vrsqrt.f32 %v2427_v34  ;;  %vm2451_vm11 = vcmp.eq.f32.partialorder %v2427_v34, inf  ;;  %v2454_v50 = vand.u32 2147483648, %v2427_v34  ;;  %vm2453_vm12 = vcmp.eq.f32.partialorder %v2427_v34, 0.0 }
 0x8a1   : > { %5496 = vrsqrt.f32 %v2426_v63  ;;  %vm2444_vm13 = vcmp.eq.f32.partialorder %v2426_v63, inf  ;;  %v2447_v4 = vand.u32 2147483648, %v2426_v63  ;;  %vm2446_vm14 = vcmp.eq.f32.partialorder %v2426_v63, 0.0 }
 0x8a6   : > { %v5491_v7 = vpop.eup %5490 }
 0x8a7   : > { %v5493_v12 = vpop.eup %5492  ;;  %v2436_v59 = vmul.f32 %v5491_v7, %v2425_v47 }
 0x8a8   : > { %v2429_v3 = vmul.f32 %v5493_v12, %v2424_v57 }
 0x8a9   : > { %v2438_v49 = vsel %vm2437_vm5, %v2425_v47, %v2436_v59 }
 0x8aa   : > { %v5495_v0 = vpop.eup %5494  ;;  %v2441_v40 = vsel %vm2439_vm8, %v2440_v11, %v2438_v49  ;;  %v2431_v32 = vsel %vm2430_vm10, %v2424_v57, %v2429_v3 }
 0x8ab   : > { %v5497_v56 = vpop.eup %5496  ;;  %v2460_v37 = vsel %vm2456_vm6, %v2441_v40, inf  ;;  %v2434_v28 = vsel %vm2432_vm7, %v2433_v26, %v2431_v32  ;;  %v2450_v36 = vmul.f32 %v5495_v0, %v2427_v34 }
 0x8ac   : > { %2461 = vmin.xlane.f32.xlu1 %v2460_v37  ;;  %v2457_v20 = vsel %vm2456_vm6, %v2434_v28, inf  ;;  %v2443_v43 = vmul.f32 %v5497_v56, %v2426_v63 }
 0x8ad   : > { %2458 = vmin.xlane.f32.xlu0 %v2457_v20  ;;  %v2452_v31 = vsel %vm2451_vm11, %v2427_v34, %v2450_v36  ;;  %v5318_v34 = vpack.c.bf16 %v2552_v6, %v2551_v41 }
 0x8ae   : > { %v2455_v52 = vsel %vm2453_vm12, %v2454_v50, %v2452_v31  ;;  %v2445_v46 = vsel %vm2444_vm13, %v2426_v63, %v2443_v43  ;;  %v2553_v50 = vld [vmem:[%s6752_s4 + $0x10] sm:$0x7f] }
 0x8af   : > { %v2466_v35 = vsel %vm2456_vm6, %v2455_v52, inf  ;;  %v2448_v54 = vsel %vm2446_vm14, %v2447_v4, %v2445_v46  ;;  %5319 = vmatprep.subr.bf16.mxu1 %v5318_v34 }
 0x8b0   : > { %2467 = vmin.xlane.f32.xlu1 %v2466_v35  ;;  %v2463_v21 = vsel %vm2456_vm6, %v2448_v54, inf  ;;  %5321 = vmatpush3.bf16.msra.mxu1 %v5318_v34 }
 0x8b1   : > { %2464 = vmin.xlane.f32.xlu0 %v2463_v21  ;;  %5194 = vmatprep.subr.msk.mxu1 %vm1749_vm9, %v2553_v50 }
 0x8b4   : > { %5195 = vmatpush3.msk.msra.mxu1 %vm1749_vm9, %v2553_v50 }
 0x939   : > { %v2462_v60 = vpop.xlane.xlu1 %2461 }
 0x93a   : > { %vm2472_vm15 = vcmp.le.f32.partialorder %v2441_v40, %v2462_v60  ;;  %v2459_v51 = vpop.xlane.xlu0 %2458 }
 0x93b   : > { %v2476_v53 = vsel %vm2472_vm15, %v6173_v33, 23  ;;  %vm2471_vm2 = vcmp.le.f32.partialorder %v2434_v28, %v2459_v51  ;;  %vm2692_vm15 = vcmask 1045504  }
 0x93c   : > { %v2494_v55 = vsel %vm2456_vm6, %v2476_v53, 2147483647  ;;  %v2475_v39 = vsel %vm2471_vm2, %v6173_v33, 23 }
 0x93d   : > { %v2479_v19 = vsel %vm2456_vm6, %v2475_v39, 2147483647  ;;  %v2468_v45 = vpop.xlane.xlu1 %2467  ;;  %v2496_v62 = vshra.s32 %v2494_v55, 16  ;;  %v2495_v63 = vand.u32 65535, %v2494_v55 }
 0x93e   : > { %vm2474_vm3 = vcmp.le.f32.partialorder %v2455_v52, %v2468_v45  ;;  %v2465_v22 = vpop.xlane.xlu0 %2464  ;;  %v2481_v61 = vshra.s32 %v2479_v19, 16  ;;  %v2480_v7 = vand.u32 65535, %v2479_v19 }
 0x93f   : > { %v2478_v16 = vsel %vm2474_vm3, %v6173_v33, 23  ;;  %vm2473_vm5 = vcmp.le.f32.partialorder %v2448_v54, %v2465_v22  ;;  %v2498_v42 = vcvt.s32.f32 %v2496_v62  ;;  %v2497_v59 = vcvt.s32.f32 %v2495_v63 }
 0x940   : > { %v2524_v10 = vsel %vm2456_vm6, %v2478_v16, 2147483647  ;;  %v2477_v5 = vsel %vm2473_vm5, %v6173_v33, 23  ;;  %v2483_v47 = vcvt.s32.f32 %v2481_v61  ;;  %v2482_v49 = vcvt.s32.f32 %v2480_v7 }
 0x941   : > { %v2509_v17 = vsel %vm2456_vm6, %v2477_v5, 2147483647  ;;  %2499 = vmin.xlane.f32.xlu1 %v2498_v42  ;;  %v2526_v9 = vshra.s32 %v2524_v10, 16  ;;  %v2525_v11 = vand.u32 65535, %v2524_v10 }
 0x942   : > { %2484 = vmin.xlane.f32.xlu0 %v2483_v47  ;;  %v2511_v57 = vshra.s32 %v2509_v17, 16  ;;  %v2510_v26 = vand.u32 65535, %v2509_v17 }
 0x943   : > { %v2528_v1 = vcvt.s32.f32 %v2526_v9  ;;  %v2527_v56 = vcvt.s32.f32 %v2525_v11  ;;  %v2678_v9 = vld [vmem:[%s6753_s5] sm:$0x3f] }
 0x944   : > { %v2513_v44 = vcvt.s32.f32 %v2511_v57  ;;  %v2512_v28 = vcvt.s32.f32 %v2510_v26  ;;  %5202 = vmatprep.subr.msk.mxu0 %vm2692_vm15, %v2678_v9 }
 0x945   : > { %2529 = vmin.xlane.f32.xlu1 %v2528_v1  ;;  %5203 = vmatpush3.msk.msra.mxu0 %vm2692_vm15, %v2678_v9 }
 0x946   : > { %2514 = vmin.xlane.f32.xlu0 %v2513_v44 }
 0x9ce   : > { %v2500_v12 = vpop.xlane.xlu1 %2499 }
 0x9cf   : > { %v2485_v3 = vpop.xlane.xlu0 %2484  ;;  %vm2501_vm8 = vcmp.eq.f32.partialorder %v2498_v42, %v2500_v12  ;;  %v2506_v43 = vcvt.f32.s32 %v2500_v12 }
 0x9d0   : > { %v2502_v0 = vsel %vm2501_vm8, %v2497_v59, inf  ;;  %vm2486_vm10 = vcmp.eq.f32.partialorder %v2483_v47, %v2485_v3  ;;  %v2491_v31 = vcvt.f32.s32 %v2485_v3 }
 0x9d1   : > { %2503 = vmin.xlane.f32.xlu1 %v2502_v0  ;;  %v2487_v40 = vsel %vm2486_vm10, %v2482_v49, inf  ;;  %v2507_v52 = vshll.u32 %v2506_v43, 16 }
 0x9d2   : > { %v2530_v32 = vpop.xlane.xlu1 %2529  ;;  %2488 = vmin.xlane.f32.xlu0 %v2487_v40  ;;  %v2492_v21 = vshll.u32 %v2491_v31, 16 }
 0x9d3   : > { %v2515_v37 = vpop.xlane.xlu0 %2514  ;;  %vm2531_vm7 = vcmp.eq.f32.partialorder %v2528_v1, %v2530_v32  ;;  %v2536_v46 = vcvt.f32.s32 %v2530_v32 }
 0x9d4   : > { %v2532_v36 = vsel %vm2531_vm7, %v2527_v56, inf  ;;  %vm2516_vm11 = vcmp.eq.f32.partialorder %v2513_v44, %v2515_v37  ;;  %v2521_v60 = vcvt.f32.s32 %v2515_v37 }
 0x9d5   : > { %2533 = vmin.xlane.f32.xlu1 %v2532_v36  ;;  %v2517_v20 = vsel %vm2516_vm11, %v2512_v28, inf  ;;  %v2537_v19 = vshll.u32 %v2536_v46, 16 }
 0x9d6   : > { %2518 = vmin.xlane.f32.xlu0 %v2517_v20  ;;  %v2522_v22 = vshll.u32 %v2521_v60, 16 }
 0xa5e   : > { %v2504_v4 = vpop.xlane.xlu1 %2503 }
 0xa5f   : > { %v2505_v35 = vcvt.f32.s32 %v2504_v4  ;;  %v2489_v54 = vpop.xlane.xlu0 %2488 }
 0xa60   : > { %v2490_v51 = vcvt.f32.s32 %v2489_v54 }
 0xa61   : > { %v2508_v53 = vadd.s32 %v2507_v52, %v2505_v35 }
 0xa62   : > { %v2493_v55 = vadd.s32 %v2492_v21, %v2490_v51  ;;  %v2534_v39 = vpop.xlane.xlu1 %2533 }
 0xa63   : > { %vm2540_vm12 = vcmp.eq.s32.totalorder %v2508_v53, %v6173_v33  ;;  %v2535_v45 = vcvt.f32.s32 %v2534_v39  ;;  %v2519_v62 = vpop.xlane.xlu0 %2518 }
 0xa64   : > { %v2520_v61 = vcvt.f32.s32 %v2519_v62  ;;  %vm2539_vm9 = vcmp.eq.s32.totalorder %v2493_v55, %v6173_v33  ;;  %v4905_v10 = vsel %vm2540_vm12, 1.0, %v5522_v2 }
 0xa65   : > { %v2538_v16 = vadd.s32 %v2537_v19, %v2535_v45  ;;  %v4904_v42 = vsel %vm2539_vm9, 1.0, %v5522_v2 }
 0xa66   : > { %v2523_v5 = vadd.s32 %v2522_v22, %v2520_v61  ;;  %5196 = vmatprep.mubr.msk.f32.mxu1 %vm2456_vm6, %v4904_v42 }
 0xa67   : > { %5197 = vmatmul.mubr.msk.f32.vlgmr.msra.gmra.mrb[20].mxu1 %vm2456_vm6, %v4905_v10  ;;  %vm2542_vm13 = vcmp.eq.s32.totalorder %v2538_v16, %v6173_v33 }
 0xa68   : > { %vm2541_vm14 = vcmp.eq.s32.totalorder %v2523_v5, %v6173_v33  ;;  %v4907_v17 = vsel %vm2542_vm13, 1.0, %v5522_v2 }
 0xa69   : > { %v4906_v47 = vsel %vm2541_vm14, 1.0, %v5522_v2 }
 0xa6a   : > { %5199 = vmatprep.mubr.msk.f32.mxu1 %vm2456_vm6, %v4906_v47 }
 0xa6b   : > { %5200 = vmatmul.mubr.msk.f32.gmra.mrb[22].mxu1 %vm2456_vm6, %v4907_v17  ;;  %vm2679_vm6 = vcmask 48128  }
 0xb3a   : > { %v5198_v57 = vpop.f32.mrb[20].mxu1 }
 0xb3b   : > { %v2655_v1 = vsub.f32 %v6126_v29, %v5198_v57  ;;  %v2635_v44 = vpop.f32.mrb[21].mxu1 }
 0xb3c   : > { %v2654_v33 = vsub.f32 %v6123_v24, %v2635_v44 }
 0xb3d   : > { %2664 = vrot.lane.b32.xlu1 %v2655_v1, %s5530_s20 }
 0xb3e   : > { %2662 = vrot.lane.b32.xlu0 %v2654_v33, %s5530_s20  ;;  %v5201_v2 = vpop.f32.mrb[22].mxu1 }
 0xb3f   : > { %v2645_v41 = vpop.f32.mrb[23].mxu1  ;;  %v2657_v34 = vsub.f32 %v6135_v48, %v5201_v2 }
 0xb40   : > { %v2656_v6 = vsub.f32 %v6120_v58, %v2645_v41 }
 0xb42   : > { %2666 = vrot.lane.b32.xlu1 %v2656_v6, %s5530_s20 }
 0xb46   : > { %2668 = vrot.lane.b32.xlu1 %v2657_v34, %s5530_s20 }
 0xbaf   : > { %v2665_v63 = vpop.permute.xlu1 %2664 }
 0xbb0   : > { %v2663_v7 = vpop.permute.xlu0 %2662  ;;  %v6223_v59 = vsel %vm6761_vm1, %v6126_v29, %v2665_v63 }
 0xbb1   : > { %v6219_v12 = vsel %vm6761_vm1, %v6123_v24, %v2663_v7 }
 0xbb2   : > { %5204 = vmatprep.mubr.msk.f32.mxu0 %vm2679_vm6, %v6219_v12 }
 0xbb3   : > { %5205 = vmatmul.mubr.msk.f32.vlgmr.msra.gmra.mrb[24].mxu0 %vm2679_vm6, %v6223_v59 }
 0xbb4   : > { %v2667_v11 = vpop.permute.xlu1 %2666 }
 0xbb5   : > { %v6231_v3 = vsel %vm6761_vm1, %v6120_v58, %v2667_v11 }
 0xbb6   : > { %5207 = vmatprep.mubr.msk.f32.mxu0 %vm2679_vm6, %v6231_v3 }
 0xbb8   : > { %v2669_v49 = vpop.permute.xlu1 %2668 }
 0xbb9   : > { %v6237_v26 = vsel %vm6761_vm1, %v6135_v48, %v2669_v49 }
 0xbba   : > { %5208 = vmatmul.mubr.msk.f32.gmra.mrb[26].mxu0 %vm2679_vm6, %v6237_v26 }
 0xc86   : > { %v6241_v0 = vpop.f32.mrb[24].mxu0 }
 0xc87   : > { %v2885_v40 = vand.u32 2147483647, %v6241_v0  ;;  %v2888_v32 = vand.u32 2139095040, %v6241_v0  ;;  %v6245_v56 = vpop.f32.mrb[25].mxu0 }
 0xc88   : > { %v2781_v37 = vand.u32 2147483647, %v6245_v56  ;;  %v2784_v28 = vand.u32 2139095040, %v6245_v56 }
 0xc89   : > { %v2889_v36 = vshrl.u32 %v2888_v32, 23  ;;  %v2892_v20 = vand.u32 8388607, %v2885_v40 }
 0xc8a   : > { %v2785_v50 = vshrl.u32 %v2784_v28, 23  ;;  %v2788_v43 = vand.u32 8388607, %v2781_v37 }
 0xc8b   : > { %v4922_v31 = vadd.s32 4294967169, %v2889_v36  ;;  %v2893_v35 = vor.u32 8388608, %v2892_v20 }
 0xc8c   : > { %v4918_v4 = vadd.s32 4294967169, %v2785_v50  ;;  %v2789_v54 = vor.u32 8388608, %v2788_v43 }
 0xc8d   : > { %v2895_v52 = vadd.s32 1, %v4922_v31  ;;  %v6253_v46 = vpop.f32.mrb[26].mxu0  ;;  %v6259_v62 = vshll.u32 %v2893_v35, 8 }
 0xc8e   : > { %v2791_v21 = vadd.s32 1, %v4918_v4  ;;  %v3093_v60 = vand.u32 2147483647, %v6253_v46  ;;  %v6256_v51 = vpop.f32.mrb[27].mxu0  ;;  %v3096_v53 = vand.u32 2139095040, %v6253_v46  ;;  %v6261_v22 = vshll.u32 %v2789_v54, 8 }
 0xc8f   : > { %vm2896_vm2 = vcmp.gt.s32.totalorder %v2895_v52, 0 }
 0xc90   : > { %v2897_v55 = vsel %vm2896_vm2, %v2895_v52, 0  ;;  %vm2792_vm3 = vcmp.gt.s32.totalorder %v2791_v21, 0  ;;  %v6263_v61 = vshrl.u32 %v3096_v53, 23  ;;  %v6267_v16 = vand.u32 8388607, %v3093_v60 }
 0xc91   : > { %v2898_v39 = vshrl.u32 %v2897_v55, 5  ;;  %v2899_v19 = vand.u32 31, %v2897_v55  ;;  %v2793_v45 = vsel %vm2792_vm3, %v2791_v21, 0  ;;  %vm2887_vm3 = vcmp.lt.s32.totalorder %v6241_v0, 0 }
 0xc92   : > { %v6270_v5 = vshrl.u32 %v2793_v45, 5  ;;  %v2795_v47 = vand.u32 31, %v2793_v45 }
 0xc93   : > { %v2900_v42 = vsub.s32 32, %v2899_v19  ;;  %v2902_v10 = vshll.u32 %v5523_v13, %v2899_v19  ;;  %v2905_v17 = vshll.u32 %v5524_v23, %v2899_v19  ;;  %v2908_v9 = vshll.u32 %v5525_v25, %v2899_v19 }
 0xc94   : > { %v2911_v57 = vshll.u32 %v5526_v27, %v2899_v19  ;;  %v2914_v1 = vshll.u32 %v5527_v30, %v2899_v19  ;;  %vm2917_vm5 = vcmp.lt.s32.totalorder %v2898_v39, 1  ;;  %vm2918_vm8 = vcmp.lt.s32.totalorder %v2898_v39, 2 }
 0xc95   : > { %v2903_v44 = vshrl.u32 %v5524_v23, %v2900_v42  ;;  %v2906_v33 = vshrl.u32 %v5525_v25, %v2900_v42  ;;  %v2909_v2 = vshrl.u32 %v5526_v27, %v2900_v42  ;;  %v2901_v41 = vshrl.u32 %v5523_v13, %v2900_v42 }
 0xc96   : > { %v2912_v6 = vshrl.u32 %v5527_v30, %v2900_v42  ;;  %v2915_v34 = vshrl.u32 %v5528_v38, %v2900_v42  ;;  %v2796_v49 = vsub.s32 32, %v2795_v47  ;;  %vm2919_vm10 = vcmp.lt.s32.totalorder %v2898_v39, 3 }
 0xc97   : > { %v2904_v63 = vor.u32 %v2903_v44, %v2902_v10  ;;  %v2907_v7 = vor.u32 %v2906_v33, %v2905_v17  ;;  %v2910_v11 = vor.u32 %v2909_v2, %v2908_v9  ;;  %vm2920_vm7 = vcmp.lt.s32.totalorder %v2898_v39, 4 }
 0xc98   : > { %v2913_v32 = vor.u32 %v2912_v6, %v2911_v57  ;;  %v2916_v28 = vor.u32 %v2915_v34, %v2914_v1  ;;  %v2798_v35 = vshll.u32 %v5523_v13, %v2795_v47  ;;  %v2799_v53 = vshrl.u32 %v5524_v23, %v2796_v49 }
 0xc99   : > { %v2921_v36 = vsel %vm2917_vm5, %v2901_v41, %v2904_v63  ;;  %v2922_v20 = vsel %vm2920_vm7, %v2910_v11, 2102212464  ;;  %v2925_v50 = vsel %vm2917_vm5, %v2904_v63, %v2907_v7  ;;  %v2929_v43 = vsel %vm2917_vm5, %v2907_v7, %v2910_v11 }
 0xc9a   : > { %v2923_v31 = vsel %vm2919_vm10, %v2907_v7, %v2922_v20  ;;  %v2926_v4 = vsel %vm2920_vm7, %v2913_v32, 920167782  ;;  %v2930_v52 = vsel %vm2920_vm7, %v2916_v28, 1326507024  ;;  %v2801_v55 = vshll.u32 %v5524_v23, %v2795_v47 }
 0xc9b   : > { %v2927_v54 = vsel %vm2919_vm10, %v2910_v11, %v2926_v4  ;;  %v2931_v21 = vsel %vm2919_vm10, %v2913_v32, %v2930_v52  ;;  %v2924_v19 = vsel %vm2918_vm8, %v2921_v36, %v2923_v31  ;;  %v2802_v10 = vshrl.u32 %v5525_v25, %v2796_v49 }
 0xc9c   : > { %v2928_v45 = vsel %vm2918_vm8, %v2925_v50, %v2927_v54  ;;  %v2932_v42 = vsel %vm2918_vm8, %v2929_v43, %v2931_v21  ;;  %v2800_v44 = vor.u32 %v2799_v53, %v2798_v35  ;;  %v2804_v2 = vshll.u32 %v5525_v25, %v2795_v47 }
 0xc9d   : > { %v6293_v17 = vmul.u32.u64.low %v6259_v62, %v2932_v42  ;;  %v6294_v9 = vmul.u32.u64.high %v6259_v62, %v2932_v42, %v6293_v17  ;;  %v6297_v57 = vmul.u32.u64.low %v6259_v62, %v2928_v45  ;;  %v6298_v1 = vmul.u32.u64.high %v6259_v62, %v2928_v45, %v6297_v57 }
 0xc9e   : > { %v2803_v33 = vor.u32 %v2802_v10, %v2801_v55  ;;  %v2805_v41 = vshrl.u32 %v5526_v27, %v2796_v49  ;;  %v2797_v6 = vshrl.u32 %v5523_v13, %v2796_v49  ;;  %v2807_v39 = vshll.u32 %v5526_v27, %v2795_v47 }
 0xc9f   : > { %v2808_v34 = vshrl.u32 %v5527_v30, %v2796_v49  ;;  %v2811_v63 = vshrl.u32 %v5528_v38, %v2796_v49  ;;  %v2940_v7 = vmul.u32 %v6259_v62, %v2924_v19  ;;  %v2810_v32 = vshll.u32 %v5527_v30, %v2795_v47 }
 0xca0   : > { %v2806_v11 = vor.u32 %v2805_v41, %v2804_v2  ;;  %vm2813_vm11 = vcmp.lt.s32.totalorder %v6270_v5, 1  ;;  %vm2942_vm12 = vc.u32 %v6294_v9, %v6297_v57  ;;  %v2943_v28 = vadd.s32 1, %v6298_v1 }
 0xca1   : > { %v2809_v36 = vor.u32 %v2808_v34, %v2807_v39  ;;  %vm2814_vm9 = vcmp.lt.s32.totalorder %v6270_v5, 2  ;;  %v2812_v20 = vor.u32 %v2811_v63, %v2810_v32  ;;  %vm2815_vm13 = vcmp.lt.s32.totalorder %v6270_v5, 3 }
 0xca2   : > { %vm2816_vm14 = vcmp.lt.s32.totalorder %v6270_v5, 4  ;;  %v2821_v49 = vsel %vm2813_vm11, %v2800_v44, %v2803_v33  ;;  %v2944_v62 = vsel %vm2942_vm12, %v2943_v28, %v6298_v1  ;;  %v2825_v47 = vsel %vm2813_vm11, %v2803_v33, %v2806_v11 }
 0xca3   : > { %v2818_v50 = vsel %vm2816_vm14, %v2806_v11, 2102212464  ;;  %v2822_v43 = vsel %vm2816_vm14, %v2809_v36, 920167782  ;;  %v2945_v31 = vadd.s32 %v2944_v62, %v2940_v7  ;;  %v2817_v4 = vsel %vm2813_vm11, %v2797_v6, %v2800_v44 }
 0xca4   : > { %v2823_v52 = vsel %vm2815_vm13, %v2806_v11, %v2822_v43  ;;  %v2826_v35 = vsel %vm2816_vm14, %v2812_v20, 1326507024  ;;  %v2819_v54 = vsel %vm2815_vm13, %v2803_v33, %v2818_v50  ;;  %v4930_v55 = vadd.s32 4294967169, %v6263_v61 }
 0xca5   : > { %v2824_v21 = vsel %vm2814_vm9, %v2821_v49, %v2823_v52  ;;  %v2827_v53 = vsel %vm2815_vm13, %v2809_v36, %v2826_v35  ;;  %v2946_v19 = vadd.s32 536870912, %v2945_v31  ;;  %v2820_v2 = vsel %vm2814_vm9, %v2817_v4, %v2819_v54 }
 0xca6   : > { %v2828_v45 = vsel %vm2814_vm9, %v2825_v47, %v2827_v53  ;;  %v6321_v42 = vmul.u32.u64.low %v6261_v22, %v2824_v21  ;;  %v6322_v10 = vmul.u32.u64.high %v6261_v22, %v2824_v21, %v6321_v42  ;;  %v3103_v44 = vadd.s32 1, %v4930_v55 }
 0xca7   : > { %v6326_v17 = vmul.u32.u64.low %v6261_v22, %v2828_v45  ;;  %v6327_v1 = vmul.u32.u64.high %v6261_v22, %v2828_v45, %v6326_v17  ;;  %v2947_v33 = vshrl.u32 %v2946_v19, 30  ;;  %v2989_v61 = vand.u32 2147483647, %v6256_v51 }
 0xca8   : > { %vm3104_vm15 = vcmp.gt.s32.totalorder %v3103_v44, 0  ;;  %v2839_v6 = vadd.s32 1, %v6322_v10  ;;  %v3101_v39 = vor.u32 8388608, %v6267_v16  ;;  %v2836_v7 = vmul.u32 %v6261_v22, %v2820_v2 }
 0xca9   : > { %v2948_v41 = vshll.u32 %v2947_v33, 30  ;;  %v3105_v34 = vsel %vm3104_vm15, %v3103_v44, 0  ;;  %v2971_v63 = vsub.s32 4, %v2947_v33  ;;  %vm2838_vm2 = vc.u32 %v6327_v1, %v6321_v42 }
 0xcaa   : > { %v3107_v11 = vand.u32 31, %v3105_v34  ;;  %v2840_v5 = vsel %vm2838_vm2, %v2839_v6, %v6322_v10  ;;  %v2992_v28 = vand.u32 2139095040, %v6256_v51  ;;  %vm2783_vm5 = vcmp.lt.s32.totalorder %v6245_v56, 0 }
 0xcab   : > { %v6337_v32 = vsub.s32 %v2945_v31, %v2948_v41  ;;  %v2841_v36 = vadd.s32 %v2840_v5, %v2836_v7  ;;  %v2941_v20 = vadd.s32 %v6297_v57, %v6294_v9  ;;  %v6345_v49 = vshll.u32 %v3101_v39, 8 }
 0xcac   : > { %v3108_v16 = vsub.s32 32, %v3107_v11  ;;  %v6349_v62 = vand.u32 8388607, %v2989_v61  ;;  %v6353_v50 = vsel %vm2887_vm3, %v2971_v63, %v2947_v33  ;;  %v3106_v47 = vshrl.u32 %v3105_v34, 5 }
 0xcad   : > { %v2951_v22 = vsub.s32 0, %v6337_v32  ;;  %v2842_v43 = vadd.s32 536870912, %v2841_v36  ;;  %v2993_v52 = vshrl.u32 %v2992_v28, 23  ;;  %v3110_v54 = vshll.u32 %v5523_v13, %v3107_v11 }
 0xcae   : > { %v3111_v31 = vshrl.u32 %v5524_v23, %v3108_v16  ;;  %v3114_v9 = vshrl.u32 %v5525_v25, %v3108_v16  ;;  %v3117_v57 = vshrl.u32 %v5526_v27, %v3108_v16  ;;  %v3113_v21 = vshll.u32 %v5524_v23, %v3107_v11 }
 0xcaf   : > { %v4923_v4 = vmin.u32 %v2951_v22, %v6337_v32  ;;  %v2843_v35 = vshrl.u32 %v2842_v43, 30  ;;  %v3120_v53 = vshrl.u32 %v5527_v30, %v3108_v16  ;;  %v3116_v19 = vshll.u32 %v5525_v25, %v3107_v11 }
 0xcb0   : > { %v3119_v45 = vshll.u32 %v5526_v27, %v3107_v11  ;;  %v3123_v10 = vshrl.u32 %v5528_v38, %v3108_v16  ;;  %v3112_v33 = vor.u32 %v3111_v31, %v3110_v54  ;;  %v3122_v2 = vshll.u32 %v5527_v30, %v3107_v11 }
 0xcb1   : > { %v2953_v55 = vclz %v4923_v4  ;;  %v2844_v17 = vshll.u32 %v2843_v35, 30  ;;  %v2867_v44 = vsub.s32 4, %v2843_v35  ;;  %vm6368_vm8 = vcmp.le.f32.partialorder %v2781_v37, 0.7853982 }
 0xcb2   : > { %v3109_v39 = vshrl.u32 %v5523_v13, %v3108_v16  ;;  %v3115_v34 = vor.u32 %v3114_v9, %v3113_v21  ;;  %v3118_v63 = vor.u32 %v3117_v57, %v3116_v19  ;;  %v3121_v5 = vor.u32 %v3120_v53, %v3119_v45 }
 0xcb3   : > { %v4924_v41 = vadd.s32 4294967294, %v2953_v55  ;;  %v6373_v7 = vsub.s32 %v2841_v36, %v2844_v17  ;;  %v3124_v28 = vor.u32 %v3123_v10, %v3122_v2  ;;  %vm3125_vm10 = vcmp.lt.s32.totalorder %v3106_v47, 1 }
 0xcb4   : > { %vm6377_vm7 = vcmp.le.f32.partialorder %v2885_v40, 0.7853982  ;;  %v2868_v37 = vsel %vm2783_vm5, %v2867_v44, %v2843_v35  ;;  %vm3126_vm12 = vcmp.lt.s32.totalorder %v3106_v47, 2  ;;  %vm3127_vm9 = vcmp.lt.s32.totalorder %v3106_v47, 3 }
 0xcb5   : > { %vm4925_vm11 = vcmp.lt.s32.totalorder %v4924_v41, 0  ;;  %v2847_v22 = vsub.s32 0, %v6373_v7  ;;  %vm3128_vm13 = vcmp.lt.s32.totalorder %v3106_v47, 4  ;;  %v3129_v36 = vsel %vm3125_vm10, %v3109_v39, %v3112_v33 }
 0xcb6   : > { %v2956_v16 = vsel %vm4925_vm11, 0, %v4924_v41  ;;  %v3130_v4 = vsel %vm3128_vm13, %v3118_v63, 2102212464  ;;  %v3133_v40 = vsel %vm3125_vm10, %v3112_v33, %v3115_v34  ;;  %v3134_v54 = vsel %vm3128_vm13, %v3121_v5, 920167782 }
 0xcb7   : > { %v2957_v43 = vsub.s32 32, %v2956_v16  ;;  %v2961_v31 = vsub.s32 4294967266, %v2956_v16  ;;  %v2958_v9 = vshll.u32 %v6337_v32, %v2956_v16  ;;  %v4919_v57 = vmin.u32 %v2847_v22, %v6373_v7 }
 0xcb8   : > { %v3137_v35 = vsel %vm3125_vm10, %v3115_v34, %v3118_v63  ;;  %v3135_v55 = vsel %vm3127_vm9, %v3118_v63, %v3134_v54  ;;  %v3138_v19 = vsel %vm3128_vm13, %v3124_v28, 1326507024  ;;  %v3131_v10 = vsel %vm3127_vm9, %v3115_v34, %v3130_v4 }
 0xcb9   : > { %v2959_v21 = vshrl.u32 %v2941_v20, %v2957_v43  ;;  %v2962_v53 = vadd.s32 127, %v2961_v31  ;;  %v2849_v45 = vclz %v4919_v57  ;;  %v3136_v17 = vsel %vm3126_vm12, %v3133_v40, %v3135_v55 }
 0xcba   : > { %v3139_v44 = vsel %vm3127_vm9, %v3121_v5, %v3138_v19  ;;  %v4926_v41 = vadd.s32 4294967169, %v2993_v52  ;;  %v2870_v20 = vsel %vm6368_vm8, 0, %v2868_v37  ;;  %v3132_v34 = vsel %vm3126_vm12, %v3129_v36, %v3131_v10 }
 0xcbb   : > { %v2960_v33 = vor.u32 %v2959_v21, %v2958_v9  ;;  %v2963_v2 = vshll.u32 %v2962_v53, 23  ;;  %v3140_v32 = vsel %vm3126_vm12, %v3137_v35, %v3139_v44  ;;  %v4920_v39 = vadd.s32 4294967294, %v2849_v45 }
 0xcbc   : > { %v6397_v16 = vmul.u32.u64.low %v6345_v49, %v3140_v32  ;;  %v6398_v63 = vmul.u32.u64.high %v6345_v49, %v3140_v32, %v6397_v16  ;;  %v6402_v22 = vmul.u32.u64.low %v6345_v49, %v3136_v17  ;;  %v6403_v43 = vmul.u32.u64.high %v6345_v49, %v3136_v17, %v6402_v22 }
 0xcbd   : > { %v2964_v28 = vor.u32 4788187, %v2963_v2  ;;  %v6409_v52 = vsel %vm6377_vm7, 0, %v6353_v50  ;;  %v2837_v5 = vadd.s32 %v6321_v42, %v6327_v1  ;;  %vm4921_vm14 = vcmp.lt.s32.totalorder %v4920_v39, 0 }
 0xcbe   : > { %v2999_v37 = vadd.s32 1, %v4926_v41  ;;  %v2967_v4 = vcvt.s32.f32 %v2960_v33  ;;  %v2852_v40 = vsel %vm4921_vm14, 0, %v4920_v39  ;;  %v2874_v47 = vadd.s32 3, %v2870_v20 }
 0xcbf   : > { %v2965_v31 = vand.u32 2147483647, %v2964_v28  ;;  %v2853_v36 = vsub.s32 32, %v2852_v40  ;;  %v2857_v9 = vsub.s32 4294967266, %v2852_v40  ;;  %v3148_v57 = vmul.u32 %v6345_v49, %v3132_v34 }
 0xcc0   : > { %v2997_v54 = vor.u32 8388608, %v6349_v62  ;;  %vm3150_vm15 = vc.u32 %v6398_v63, %v6402_v22  ;;  %v3151_v50 = vadd.s32 1, %v6403_v43  ;;  %vm3000_vm2 = vcmp.gt.s32.totalorder %v2999_v37, 0 }
 0xcc1   : > { %v2968_v35 = vmul.f32 %v2967_v4, %v2965_v31  ;;  %v2854_v42 = vshll.u32 %v6373_v7, %v2852_v40  ;;  %v2855_v1 = vshrl.u32 %v2837_v5, %v2853_v36  ;;  %v2858_v21 = vadd.s32 127, %v2857_v9 }
 0xcc2   : > { %v3001_v53 = vsel %vm3000_vm2, %v2999_v37, 0  ;;  %v3152_v19 = vsel %vm3150_vm15, %v3151_v50, %v6403_v43  ;;  %v2978_v49 = vadd.s32 3, %v6409_v52  ;;  %v6423_v33 = vand.u32 3, %v2870_v20 }
 0xcc3   : > { %v2969_v55 = vxor.u32 2147483648, %v2968_v35  ;;  %v3003_v45 = vand.u32 31, %v3001_v53  ;;  %v2856_v10 = vor.u32 %v2855_v1, %v2854_v42  ;;  %v2859_v62 = vshll.u32 %v2858_v21, 23 }
 0xcc4   : > { %v3153_v17 = vadd.s32 %v3152_v19, %v3148_v57  ;;  %v6425_v32 = vshll.u32 %v2997_v54, 8  ;;  %v6430_v16 = vand.u32 3, %v2874_v47  ;;  %v3002_v28 = vshrl.u32 %v3001_v53, 5 }
 0xcc5   : > { %v2970_v44 = vsel %vm2887_vm3, %v2969_v55, %v2968_v35  ;;  %v3004_v2 = vsub.s32 32, %v3003_v45  ;;  %v2860_v41 = vor.u32 4788187, %v2859_v62  ;;  %v3006_v34 = vshll.u32 %v5523_v13, %v3003_v45 }
 0xcc6   : > { %v2973_v7 = vsel %vm6377_vm7, %v6241_v0, %v2970_v44  ;;  %v3154_v39 = vadd.s32 536870912, %v3153_v17  ;;  %v2863_v37 = vcvt.s32.f32 %v2856_v10  ;;  %v3009_v11 = vshll.u32 %v5524_v23, %v3003_v45 }
 0xcc7   : > { %v3007_v43 = vshrl.u32 %v5524_v23, %v3004_v2  ;;  %v3010_v5 = vshrl.u32 %v5525_v25, %v3004_v2  ;;  %5498 = vsinq.f32 %v2973_v7  ;;  %v2861_v20 = vand.u32 2147483647, %v2860_v41 }
 0xcc8   : > { %v6435_v31 = vshrl.u32 %v3154_v39, 30  ;;  %5500 = vcosq.f32 %v2973_v7  ;;  %v3012_v4 = vshll.u32 %v5525_v25, %v3003_v45  ;;  %v3013_v40 = vshrl.u32 %v5526_v27, %v3004_v2 }
 0xcc9   : > { %v2864_v47 = vmul.f32 %v2863_v37, %v2861_v20  ;;  %v3015_v9 = vshll.u32 %v5526_v27, %v3003_v45  ;;  %v3016_v57 = vshrl.u32 %v5527_v30, %v3004_v2  ;;  %v3008_v54 = vor.u32 %v3007_v43, %v3006_v34 }
 0xcca   : > { %v3156_v36 = vshll.u32 %v6435_v31, 30  ;;  %v3011_v35 = vor.u32 %v3010_v5, %v3009_v11  ;;  %v3018_v50 = vshll.u32 %v5527_v30, %v3003_v45  ;;  %v3019_v42 = vshrl.u32 %v5528_v38, %v3004_v2 }
 0xccb   : > { %v2865_v1 = vxor.u32 2147483648, %v2864_v47  ;;  %v3014_v23 = vor.u32 %v3013_v40, %v3012_v4  ;;  %v3017_v25 = vor.u32 %v3016_v57, %v3015_v9  ;;  %v3005_v53 = vshrl.u32 %v5523_v13, %v3004_v2 }
 0xccc   : > { %v6445_v21 = vsub.s32 %v3153_v17, %v3156_v36  ;;  %v3020_v55 = vor.u32 %v3019_v42, %v3018_v50  ;;  %vm3021_vm3 = vcmp.lt.s32.totalorder %v3002_v28, 1  ;;  %v2979_v19 = vand.u32 3, %v2978_v49  ;;  %v5438_v42 = vld [vmem:[%s6758_s10] sm:$0xff]  }
 0xccd   : > { %v2866_v27 = vsel %vm2783_vm5, %v2865_v1, %v2864_v47  ;;  %vm3022_vm10 = vcmp.lt.s32.totalorder %v3002_v28, 2  ;;  %vm3023_vm7 = vcmp.lt.s32.totalorder %v3002_v28, 3  ;;  %vm3024_vm11 = vcmp.lt.s32.totalorder %v3002_v28, 4  ;;  %5210 = vmatprep.subr.bf16.mxu1 %v5438_v42 }
 0xcce   : > { %v3159_v10 = vsub.s32 0, %v6445_v21  ;;  %v2869_v30 = vsel %vm6368_vm8, %v6245_v56, %v2866_v27  ;;  %v3025_v38 = vsel %vm3021_vm3, %v3005_v53, %v3008_v54  ;;  %v3029_v45 = vsel %vm3021_vm3, %v3008_v54, %v3011_v35  ;;  %5211 = vmatpush3.bf16.msra.mxu1 %v5438_v42 }
 0xccf   : > { %5502 = vcosq.f32 %v2869_v30  ;;  %v3026_v49 = vsel %vm3024_vm11, %v3014_v23, 2102212464  ;;  %v3030_v62 = vsel %vm3024_vm11, %v3017_v25, 920167782  ;;  %v3033_v2 = vsel %vm3021_vm3, %v3011_v35, %v3014_v23 }
 0xcd0   : > { %v4931_v13 = vmin.u32 %v3159_v10, %v6445_v21  ;;  %5504 = vsinq.f32 %v2869_v30  ;;  %v3027_v17 = vsel %vm3023_vm7, %v3011_v35, %v3026_v49  ;;  %v3031_v44 = vsel %vm3023_vm7, %v3014_v23, %v3030_v62 }
 0xcd1   : > { %v5499_v7 = vpop.eup %5498  ;;  %v3028_v41 = vsel %vm3022_vm10, %v3025_v38, %v3027_v17  ;;  %v3032_v39 = vsel %vm3022_vm10, %v3029_v45, %v3031_v44  ;;  %v3034_v34 = vsel %vm3024_vm11, %v3020_v55, 1326507024  ;;  %v3393_v11 = vand.u32 3, %v6409_v52  ;;  %v5439_v44 = vld [vmem:[%s6758_s10 + $0x8] sm:$0xff]  }
 0xcd2   : > { %v3161_v6 = vclz %v4931_v13  ;;  %v5501_v43 = vpop.eup %5500  ;;  %v3035_v5 = vsel %vm3023_vm7, %v3017_v25, %v3034_v34  ;;  %v6464_v20 = vmul.u32.u64.low %v6425_v32, %v3032_v39  ;;  %v6465_v37 = vmul.u32.u64.high %v6425_v32, %v3032_v39, %v6464_v20  ;;  %5212 = vmatprep.subr.bf16.mxu1 %v5439_v44 }
 0xcd3   : > { %v3149_v4 = vadd.s32 %v6402_v22, %v6398_v63  ;;  %v3036_v47 = vsel %vm3022_vm10, %v3033_v2, %v3035_v5  ;;  %v3044_v57 = vmul.u32 %v6425_v32, %v3028_v41  ;;  %vm2877_vm5 = vcmp.eq.s32.totalorder %v6430_v16, 0  ;;  %5213 = vmatpush3.bf16.msra.mxu1 %v5439_v44 }
 0xcd4   : > { %v4932_v40 = vadd.s32 4294967294, %v3161_v6  ;;  %v6473_v36 = vmul.u32.u64.low %v6425_v32, %v3036_v47  ;;  %v6474_v9 = vmul.u32.u64.high %v6425_v32, %v3036_v47, %v6473_v36  ;;  %vm2977_vm8 = vweird.f32 %v6241_v0 }
 0xcd5   : > { %v2982_v54 = vxor.u32 2147483648, %v5499_v7  ;;  %vm2876_vm9 = vcmp.lt.s32.totalorder %v6430_v16, 2  ;;  %vm2880_vm13 = vcmp.eq.s32.totalorder %v6430_v16, 2  ;;  %vm2981_vm14 = vcmp.eq.s32.totalorder %v2979_v19, 0 }
 0xcd6   : > { %vm4933_vm12 = vcmp.lt.s32.totalorder %v4932_v40, 0  ;;  %v2985_v63 = vxor.u32 2147483648, %v5501_v43  ;;  %vm3291_vm15 = vcmp.lt.s32.totalorder %v6423_v33, 2  ;;  %v3047_v52 = vadd.s32 1, %v6465_v37 }
 0xcd7   : > { %v3164_v22 = vsel %vm4933_vm12, 0, %v4932_v40  ;;  %vm2873_vm2 = vweird.f32 %v6245_v56  ;;  %v2983_v32 = vsel %vm2981_vm14, %v5501_v43, %v2982_v54  ;;  %vm2984_vm3 = vcmp.eq.s32.totalorder %v2979_v19, 2 }
 0xcd8   : > { %v3165_v28 = vsub.s32 32, %v3164_v22  ;;  %v3169_v35 = vsub.s32 4294967266, %v3164_v22  ;;  %vm2980_vm10 = vcmp.lt.s32.totalorder %v2979_v19, 2  ;;  %v2986_v50 = vsel %vm2984_vm3, %v2985_v63, %v5499_v7 }
 0xcd9   : > { %v3166_v1 = vshll.u32 %v6445_v21, %v3164_v22  ;;  %vm3046_vm7 = vc.u32 %v6474_v9, %v6464_v20  ;;  %vm3292_vm11 = vcmp.eq.s32.totalorder %v6423_v33, 0  ;;  %vm3295_vm12 = vcmp.eq.s32.totalorder %v6423_v33, 2  ;;  %v5503_v23 = vpop.eup %5502 }
 0xcda   : > { %v3170_v25 = vadd.s32 127, %v3169_v35  ;;  %v3048_v53 = vsel %vm3046_vm7, %v3047_v52, %v6465_v37  ;;  %v2987_v55 = vsel %vm2980_vm10, %v2983_v32, %v2986_v50  ;;  %vm3394_vm14 = vcmp.lt.s32.totalorder %v3393_v11, 2  ;;  %v5505_v19 = vpop.eup %5504 }
 0xcdb   : > { %v3167_v27 = vshrl.u32 %v3149_v4, %v3165_v28  ;;  %v3049_v10 = vadd.s32 %v3048_v53, %v3044_v57  ;;  %v2881_v30 = vxor.u32 2147483648, %v5503_v23  ;;  %vm3395_vm3 = vcmp.eq.s32.totalorder %v3393_v11, 0 }
 0xcdc   : > { %v3171_v21 = vshll.u32 %v3170_v25, 23  ;;  %v2878_v38 = vxor.u32 2147483648, %v5505_v19  ;;  %v3397_v45 = vsel %vm3395_vm3, %v5501_v43, %v2982_v54  ;;  %vm3398_vm1 = vcmp.eq.s32.totalorder %v3393_v11, 2 }
 0xcdd   : > { %v3050_v13 = vadd.s32 536870912, %v3049_v10  ;;  %v2882_v49 = vsel %vm2880_vm13, %v2881_v30, %v5505_v19  ;;  %v3297_v62 = vsel %vm3295_vm12, %v2881_v30, %v5505_v19  ;;  %v3400_v17 = vsel %vm3398_vm1, %v2985_v63, %v5499_v7 }
 0xcde   : > { %v3172_v2 = vor.u32 4788187, %v3171_v21  ;;  %v2879_v6 = vsel %vm2877_vm5, %v5503_v23, %v2878_v38  ;;  %v2988_v41 = vsel %vm2977_vm8, nan, %v2987_v55  ;;  %v3294_v39 = vsel %vm3292_vm11, %v5503_v23, %v2878_v38 }
 0xcdf   : > { %v3051_v34 = vshrl.u32 %v3050_v13, 30  ;;  %v2883_v43 = vsel %vm2876_vm9, %v2879_v6, %v2882_v49  ;;  %v3298_v7 = vsel %vm3291_vm15, %v3294_v39, %v3297_v62  ;;  %v3401_v5 = vsel %vm3394_vm14, %v3397_v45, %v3400_v17 }
 0xce0   : > { %v3168_v37 = vor.u32 %v3167_v27, %v3166_v1  ;;  %v2884_v4 = vsel %vm2873_vm2, nan, %v2883_v43  ;;  %v3299_v40 = vsel %vm2873_vm2, nan, %v3298_v7  ;;  %v3402_v47 = vsel %vm2977_vm8, nan, %v3401_v5 }
 0xce1   : > { %v3052_v36 = vshll.u32 %v3051_v34, 30  ;;  %v5408_v16 = vpack.i.bf16 %v2988_v41, %v2884_v4  ;;  %v5413_v57 = vpack.i.bf16 %v3402_v47, %v3299_v40  ;;  %v3173_v54 = vand.u32 2147483647, %v3172_v2 }
 0xce2   : > { %v3175_v11 = vcvt.s32.f32 %v3168_v37  ;;  %vm3095_vm1 = vcmp.lt.s32.totalorder %v6253_v46, 0  ;;  %v3045_v50 = vadd.s32 %v6464_v20, %v6474_v9  ;;  %vm6526_vm8 = vcmp.le.f32.partialorder %v3093_v60, 0.7853982 }
 0xce3   : > { %v3053_v33 = vsub.s32 %v3049_v10, %v3052_v36  ;;  %5409 = vrot.lane.b32.xlu0 %v5408_v16, %s5532_s22  ;;  %v3179_v27 = vsub.s32 4, %v6435_v31  ;;  %v3075_v45 = vsub.s32 4, %v3051_v34  ;;  %vm2991_vm9 = vcmp.lt.s32.totalorder %v6256_v51, 0  ;;  %v5440_v16 = vld [vmem:[%s6758_s10 + $0x10] sm:$0xff]  }
 0xce4   : > { %v3176_v22 = vmul.f32 %v3175_v11, %v3173_v54  ;;  %vm2990_vm13 = vcmp.le.f32.partialorder %v2989_v61, 0.7853982  ;;  %5214 = vmatprep.subr.bf16.mxu1 %v5440_v16 }
 0xce5   : > { %v3055_v63 = vsub.s32 0, %v3053_v33  ;;  %v3180_v60 = vsel %vm3095_vm1, %v3179_v27, %v6435_v31  ;;  %v3076_v44 = vsel %vm2991_vm9, %v3075_v45, %v3051_v34  ;;  %5215 = vmatpush3.bf16.msra.mxu1 %v5440_v16 }
 0xce6   : > { %v3177_v32 = vxor.u32 2147483648, %v3176_v22  ;;  %v3182_v13 = vsel %vm6526_vm8, 0, %v3180_v60  ;;  %v3078_v41 = vsel %vm2990_vm13, 0, %v3076_v44 }
 0xce7   : > { %v4927_v52 = vmin.u32 %v3055_v63, %v3053_v33  ;;  %5414 = vrot.lane.b32.xlu0 %v5413_v57, %s5533_s23  ;;  %v3186_v62 = vadd.s32 3, %v3182_v13  ;;  %v3599_v43 = vand.u32 3, %v3182_v13  ;;  %v3082_v37 = vadd.s32 3, %v3078_v41 }
 0xce8   : > { %v3178_v28 = vsel %vm3095_vm1, %v3177_v32, %v3176_v22  ;;  %v3496_v4 = vand.u32 3, %v3078_v41 }
 0xce9   : > { %v3057_v56 = vclz %v4927_v52  ;;  %v3181_v25 = vsel %vm6526_vm8, %v6253_v46, %v3178_v28  ;;  %v3187_v39 = vand.u32 3, %v3186_v62  ;;  %vm3601_vm10 = vcmp.eq.s32.totalorder %v3599_v43, 0  ;;  %v5441_v52 = vld [vmem:[%s6758_s10 + $0x18] ss:$0 sps:$4 sm:$0x77]  }
 0xcea   : > { %5506 = vcosq.f32 %v3181_v25  ;;  %vm3604_vm7 = vcmp.eq.s32.totalorder %v3599_v43, 2  ;;  %v3083_v61 = vand.u32 3, %v3082_v37  ;;  %vm3497_vm12 = vcmp.lt.s32.totalorder %v3496_v4, 2  ;;  %5330 = vmatprep.subr.msk.bf16.mxu1 %vm493_vm0, %v5441_v52 }
 0xceb   : > { %v4928_v0 = vadd.s32 4294967294, %v3057_v56  ;;  %5508 = vsinq.f32 %v3181_v25  ;;  %vm3189_vm15 = vcmp.eq.s32.totalorder %v3187_v39, 0  ;;  %vm3192_vm2 = vcmp.eq.s32.totalorder %v3187_v39, 2 }
 0xcec   : > { %vm3188_vm11 = vcmp.lt.s32.totalorder %v3187_v39, 2  ;;  %vm3600_vm14 = vcmp.lt.s32.totalorder %v3599_v43, 2  ;;  %vm3498_vm3 = vcmp.eq.s32.totalorder %v3496_v4, 0  ;;  %vm3501_vm1 = vcmp.eq.s32.totalorder %v3496_v4, 2  ;;  %v5442_v39 = vld [vmem:[%s6758_s10 + $0x20] sm:$0xff]  }
 0xced   : > { %vm4929_vm5 = vcmp.lt.s32.totalorder %v4928_v0, 0  ;;  %vm3088_vm8 = vcmp.eq.s32.totalorder %v3083_v61, 2  ;;  %5222 = vmatprep.subr.bf16.mxu0 %v5442_v39 }
 0xcee   : > { %v3060_v35 = vsel %vm4929_vm5, 0, %v4928_v0  ;;  %vm3084_vm5 = vcmp.lt.s32.totalorder %v3083_v61, 2  ;;  %5223 = vmatpush3.bf16.msra.mxu0 %v5442_v39 }
 0xcef   : > { %v3061_v42 = vsub.s32 32, %v3060_v35  ;;  %v3065_v1 = vsub.s32 4294967266, %v3060_v35  ;;  %v3062_v53 = vshll.u32 %v3053_v33, %v3060_v35 }
 0xcf1   : > { %v3063_v55 = vshrl.u32 %v3045_v50, %v3061_v42  ;;  %v3066_v19 = vadd.s32 127, %v3065_v1  ;;  %v3693_v42 = vsel %vm493_vm0, %v5441_v52, 0  ;;  %v4957_v52 = vld [vmem:[%s6759_s11 + $0x1] ss:$0 sm:$0xff] }
 0xcf2   : > { %5217 = vmatpush3.bf16.msra.mxu1 %v3693_v42 }
 0xcf3   : > { %v3064_v10 = vor.u32 %v3063_v55, %v3062_v53  ;;  %v3067_v30 = vshll.u32 %v3066_v19, 23 }
 0xcf4   : > { %v5507_v2 = vpop.eup %5506 }
 0xcf5   : > { %v3068_v20 = vor.u32 4788187, %v3067_v30  ;;  %v3071_v21 = vcvt.s32.f32 %v3064_v10  ;;  %v5509_v31 = vpop.eup %5508  ;;  %v3193_v5 = vxor.u32 2147483648, %v5507_v2 }
 0xcf6   : > { %v3190_v7 = vxor.u32 2147483648, %v5509_v31 }
 0xcf7   : > { %v3069_v9 = vand.u32 2147483647, %v3068_v20  ;;  %v3194_v47 = vsel %vm3192_vm2, %v3193_v5, %v5509_v31  ;;  %v3606_v36 = vsel %vm3604_vm7, %v3193_v5, %v5509_v31  ;;  %vm3645_vm2 = vcmask 244736  }
 0xcf8   : > { %v3191_v40 = vsel %vm3189_vm15, %v5507_v2, %v3190_v7  ;;  %v3603_v34 = vsel %vm3601_vm10, %v5507_v2, %v3190_v7  ;;  %vm3081_vm15 = vweird.f32 %v6256_v51  ;;  %vm3685_vm10 = vcmask 441344  }
 0xcf9   : > { %v3072_v38 = vmul.f32 %v3071_v21, %v3069_v9  ;;  %v3195_v54 = vsel %vm3188_vm11, %v3191_v40, %v3194_v47  ;;  %v3607_v63 = vsel %vm3600_vm14, %v3603_v34, %v3606_v36  ;;  %vm4732_vm7 = vcmask 56320  }
 0xcfa   : > { %vm6774_vm11 = vcmask 23552  }
 0xcfb   : > { %v3073_v49 = vxor.u32 2147483648, %v3072_v38  ;;  %vm6776_vm14 = vmmov %vm6774_vm11 }
 0xcfd   : > { %v3074_v17 = vsel %vm2991_vm9, %v3073_v49, %v3072_v38  ;;  %vm3185_vm9 = vweird.f32 %v6253_v46 }
 0xcfe   : > { %v3077_v6 = vsel %vm2990_vm13, %v6256_v51, %v3074_v17  ;;  %vm3085_vm13 = vcmp.eq.s32.totalorder %v3083_v61, 0  ;;  %v3196_v32 = vsel %vm3185_vm9, nan, %v3195_v54  ;;  %v3608_v50 = vsel %vm3185_vm9, nan, %v3607_v63  ;;  %v5445_v63 = vld [vmem:[%s6758_s10 + $0x38] sm:$0xff]  }
 0xcff   : > { %5510 = vcosq.f32 %v3077_v6 }
 0xd00   : > { %5512 = vsinq.f32 %v3077_v6 }
 0xd09   : > { %v5511_v57 = vpop.eup %5510 }
 0xd0a   : > { %v5513_v33 = vpop.eup %5512  ;;  %v3089_v11 = vxor.u32 2147483648, %v5511_v57 }
 0xd0b   : > { %v3086_v22 = vxor.u32 2147483648, %v5513_v33 }
 0xd0c   : > { %v3090_v56 = vsel %vm3088_vm8, %v3089_v11, %v5513_v33  ;;  %v3503_v0 = vsel %vm3501_vm1, %v3089_v11, %v5513_v33  ;;  %v5444_v11 = vld [vmem:[%s6758_s10 + $0x30] sm:$0xff]  }
 0xd0d   : > { %v3087_v28 = vsel %vm3085_vm13, %v5511_v57, %v3086_v22  ;;  %v3500_v35 = vsel %vm3498_vm3, %v5511_v57, %v3086_v22  ;;  %v5446_v22 = vld [vmem:[%s6758_s10 + $0x60] sm:$0xff]   ;;  %vm6777_vm3 = vmmov %vm6774_vm11 }
 0xd0e   : > { %v3091_v1 = vsel %vm3084_vm5, %v3087_v28, %v3090_v56  ;;  %v3504_v46 = vsel %vm3497_vm12, %v3500_v35, %v3503_v0  ;;  %vm6775_vm12 = vmmov %vm6774_vm11 }
 0xd0f   : > { %v3092_v23 = vsel %vm3081_vm15, nan, %v3091_v1  ;;  %v3505_v25 = vsel %vm3081_vm15, nan, %v3504_v46 }
 0xd10   : > { %v5418_v53 = vpack.i.bf16 %v3196_v32, %v3092_v23  ;;  %v5423_v55 = vpack.i.bf16 %v3608_v50, %v3505_v25 }
 0xd12   : > { %5419 = vrot.lane.b32.xlu1 %v5418_v53, %s5532_s22 }
 0xd16   : > { %5424 = vrot.lane.b32.xlu1 %v5423_v55, %s5533_s23  ;;  %s437_s23 = scalar_lea.vmem %s6760_s12, %s5620_s28 }
 0xd55   : > { %v5410_v19 = vpop.permute.xlu0 %5409 }
 0xd56   : > { %v5412_v27 = vunpack.i.h.bf16 %v5410_v19  ;;  %v5411_v10 = vunpack.i.l.bf16 %v5410_v19 }
 0xd58   : > { %v3642_v51 = vsel %vm2679_vm6, %v6223_v59, %v5412_v27  ;;  %v3641_v9 = vsel %vm2679_vm6, %v6219_v12, %v5411_v10  ;;  %v5447_v27 = vld [vmem:[%s6758_s10 + $0x68] sm:$0xff]   ;;  %v5448_v10 = vld [vmem:[%s6758_s10 + $0x70] sm:$0xff]  }
 0xd59   : > { %v5415_v30 = vpop.permute.xlu0 %5414 }
 0xd5a   : > { %v5417_v20 = vunpack.i.h.bf16 %v5415_v30  ;;  %v5416_v60 = vunpack.i.l.bf16 %v5415_v30  ;;  %v5449_v30 = vld [vmem:[%s6758_s10 + $0x78] ss:$0 sps:$4 sm:$0x77]  }
 0xd5c   : > { %v3646_v21 = vsel %vm3645_vm2, %v3641_v9, %v5416_v60  ;;  %v3647_v38 = vsel %vm3645_vm2, %v3642_v51, %v5417_v20  ;;  %v4029_v20 = vsel %vm493_vm0, %v5449_v30, 0  ;;  %v5450_v60 = vld [vmem:[%s6758_s10 + $0x40] sm:$0xff]   ;;  %v5451_v51 = vld [vmem:[%s6758_s10 + $0x48] sm:$0xff]   ;;  %v5452_v9 = vld [vmem:[%s6758_s10 + $0x50] sm:$0xff]  }
 0xd5d   : > { %v6562_v45 = vpack.c.bf16 %v3647_v38, %v3646_v21  ;;  %5238 = vmatprep.subr.bf16.mxu1 %v5450_v60  ;;  %v4962_v21 = vld [vmem:[%s6759_s11 + $0x2] ss:$0 sm:$0xff] }
 0xd5f   : > { %5218 = vmatprep.mubr.msk.bf16.mxu1 %vm3685_vm10, %v6562_v45 }
 0xd84   : > { %v5420_v13 = vpop.permute.xlu1 %5419 }
 0xd85   : > { %v5422_v49 = vunpack.i.h.bf16 %v5420_v13  ;;  %v5421_v62 = vunpack.i.l.bf16 %v5420_v13 }
 0xd87   : > { %v3644_v59 = vsel %vm2679_vm6, %v6237_v26, %v5422_v49  ;;  %v3643_v12 = vsel %vm2679_vm6, %v6231_v3, %v5421_v62  ;;  %v5443_v26 = vld [vmem:[%s6758_s10 + $0x28] sm:$0xff]   ;;  %v4950_v3 = vld [vmem:[%s6759_s11] ss:$0 sm:$0xff]  ;;  %vm4328_vm6 = vcmask 64512  }
 0xd88   : > { %v5425_v17 = vpop.permute.xlu1 %5424  ;;  %5224 = vmatprep.subr.bf16.mxu0 %v5443_v26 }
 0xd89   : > { %v5427_v44 = vunpack.i.h.bf16 %v5425_v17  ;;  %v5426_v2 = vunpack.i.l.bf16 %v5425_v17  ;;  %5225 = vmatpush3.bf16.msra.mxu0 %v5443_v26  ;;  %v5453_v26 = vld [vmem:[%s6758_s10 + $0x58] sm:$0xff]  }
 0xd8a   : > { %5230 = vmatprep.subr.bf16.mxu0 %v5444_v11 }
 0xd8b   : > { %v3648_v6 = vsel %vm3645_vm2, %v3643_v12, %v5426_v2  ;;  %v3649_v31 = vsel %vm3645_vm2, %v3644_v59, %v5427_v44 }
 0xd8c   : > { %v3658_v41 = vpack.c.bf16 %v3649_v31, %v3648_v6 }
 0xd8e   : > { %5219 = vmatmul.mubr.msk.bf16.vlgmr.msra.gmra.mrb[24].mxu1 %vm3685_vm10, %v3658_v41 }
 0xd8f   : > { %5239 = vmatpush3.bf16.msra.mxu1 %v5450_v60 }
 0xd90   : > { %5240 = vmatprep.subr.bf16.mxu1 %v5451_v51 }
 0xd93   : > { %5241 = vmatpush3.bf16.msra.mxu1 %v5451_v51 }
 0xe61   : > { %v5220_v43 = vpop.f32.mrb[24].mxu1 }
 0xe62   : > { %v3738_v7 = vadd.f32 %v5220_v43, %v4950_v3  ;;  %v3729_v5 = vpop.f32.mrb[25].mxu1 }
 0xe63   : > { %v3730_v37 = vadd.f32 %v4950_v3, %v3729_v5  ;;  %v5221_v4 = vpop.f32.mrb[26].mxu1 }
 0xe64   : > { %v3741_v40 = vadd.f32 %v5221_v4, %v4950_v3  ;;  %v3732_v47 = vpop.f32.mrb[27].mxu1  ;;  %v3746_v34 = vmax.f32 %v3738_v7, 0.0 }
 0xe65   : > { %v3733_v61 = vadd.f32 %v4950_v3, %v3732_v47  ;;  %v3744_v16 = vmax.f32 %v3730_v37, 0.0  ;;  %v4967_v3 = vld [vmem:[%s6759_s11 + $0x3] ss:$0 sm:$0xff] }
 0xe66   : > { %v3747_v36 = vmax.f32 %v3741_v40, 0.0 }
 0xe67   : > { %v3745_v57 = vmax.f32 %v3733_v61, 0.0 }
 0xe68   : > { %v3753_v54 = vpack.c.bf16 %v3747_v36, %v3746_v34 }
 0xe69   : > { %v3752_v33 = vpack.c.bf16 %v3745_v57, %v3744_v16 }
 0xe6b   : > { %5226 = vmatprep.mubr.msk.bf16.mxu0 %vm1842_vm4, %v3752_v33 }
 0xe6c   : > { %5227 = vmatmul.mubr.msk.bf16.vlgmr.msra.gmra.mrb[28].mxu0 %vm1842_vm4, %v3753_v54 }
 0xe6d   : > { %5231 = vmatpush3.bf16.msra.mxu0 %v5444_v11  ;;  %v5454_v11 = vld [vmem:[%s6758_s10 + $0x80] sm:$0xff]  }
 0xe6e   : > { %5232 = vmatprep.subr.bf16.mxu0 %v5445_v63  ;;  %5266 = vmatprep.subr.bf16.mxu1 %v5454_v11 }
 0xe71   : > { %5233 = vmatpush3.bf16.msra.mxu0 %v5445_v63  ;;  %v5455_v63 = vld [vmem:[%s6758_s10 + $0x88] sm:$0xff]  }
 0xe72   : > { %5246 = vmatprep.subr.bf16.mxu0 %v5446_v22 }
 0xf3f   : > { %v5228_v56 = vpop.f32.mrb[28].mxu0 }
 0xf40   : > { %v3820_v32 = vadd.f32 %v5228_v56, %v4957_v52  ;;  %v3811_v0 = vpop.f32.mrb[29].mxu0 }
 0xf41   : > { %v3812_v28 = vadd.f32 %v4957_v52, %v3811_v0  ;;  %v5229_v35 = vpop.f32.mrb[30].mxu0 }
 0xf42   : > { %v3823_v50 = vadd.f32 %v5229_v35, %v4957_v52  ;;  %v3814_v42 = vpop.f32.mrb[31].mxu0  ;;  %v3828_v46 = vmax.f32 %v3820_v32, 0.0 }
 0xf43   : > { %v3815_v1 = vadd.f32 %v4957_v52, %v3814_v42  ;;  %v3826_v25 = vmax.f32 %v3812_v28, 0.0 }
 0xf44   : > { %v3829_v23 = vmax.f32 %v3823_v50, 0.0 }
 0xf45   : > { %v3827_v53 = vmax.f32 %v3815_v1, 0.0 }
 0xf46   : > { %v3835_v55 = vpack.c.bf16 %v3829_v23, %v3828_v46 }
 0xf47   : > { %v3834_v19 = vpack.c.bf16 %v3827_v53, %v3826_v25 }
 0xf49   : > { %5234 = vmatprep.mubr.msk.bf16.mxu0 %vm1842_vm4, %v3834_v19  ;;  %v5456_v19 = vld [vmem:[%s6758_s10 + $0x90] sm:$0xff]  }
 0xf4a   : > { %5235 = vmatmul.mubr.msk.bf16.vlgmr.msra.gmra.mrb[32].mxu0 %vm1842_vm4, %v3835_v55 }
 0xf4b   : > { %5247 = vmatpush3.bf16.msra.mxu0 %v5446_v22  ;;  %5254 = vmatprep.mubr.msk.bf16.mxu0 %vm3685_vm10, %v6562_v45  ;;  %v4982_v22 = vld [vmem:[%s6759_s11 + $0x4] ss:$0 sm:$0xff] }
 0xf4c   : > { %5248 = vmatprep.subr.bf16.mxu0 %v5447_v27 }
 0xf4f   : > { %5249 = vmatpush3.bf16.msra.mxu0 %v5447_v27  ;;  %v5457_v27 = vld [vmem:[%s6758_s10 + $0x98] sm:$0xff]  }
 0xf50   : > { %5250 = vmatprep.subr.bf16.mxu0 %v5448_v10 }
 0xf53   : > { %5251 = vmatpush3.bf16.msra.mxu0 %v5448_v10  ;;  %v4983_v10 = vld [vmem:[%s6759_s11 + $0x5] ss:$0 sm:$0xff] }
 0xf54   : > { %5331 = vmatprep.subr.msk.bf16.mxu0 %vm493_vm0, %v5449_v30  ;;  %vm4335_vm0 = vcmask 1043456  }
 0xf57   : > { %5253 = vmatpush3.bf16.msra.mxu0 %v4029_v20 }
 0xf58   : > { %5258 = vmatprep.subr.bf16.mxu0 %v5452_v9 }
 0xf5a   : > { %5255 = vmatmul.mubr.msk.bf16.vlgmr.msra.gmra.mrb[36].mxu0 %vm3685_vm10, %v3658_v41 }
 0xf5b   : > { %5259 = vmatpush3.bf16.msra.mxu0 %v5452_v9 }
 0xf5c   : > { %5260 = vmatprep.subr.bf16.mxu0 %v5453_v26 }
 0xf5f   : > { %5261 = vmatpush3.bf16.msra.mxu0 %v5453_v26 }
0x101d   : > { %v5236_v38 = vpop.f32.mrb[32].mxu0 }
0x101e   : > { %v3902_v45 = vadd.f32 %v5236_v38, %v4962_v21  ;;  %v3893_v13 = vpop.f32.mrb[33].mxu0 }
0x101f   : > { %v3894_v49 = vadd.f32 %v4962_v21, %v3893_v13  ;;  %v5237_v62 = vpop.f32.mrb[34].mxu0 }
0x1020   : > { %v3905_v17 = vadd.f32 %v5237_v62, %v4962_v21  ;;  %v3896_v44 = vpop.f32.mrb[35].mxu0  ;;  %v3910_v59 = vmax.f32 %v3902_v45, 0.0 }
0x1021   : > { %v3897_v2 = vadd.f32 %v4962_v21, %v3896_v44  ;;  %v3908_v6 = vmax.f32 %v3894_v49, 0.0 }
0x1022   : > { %v3911_v12 = vmax.f32 %v3905_v17, 0.0 }
0x1023   : > { %v3909_v31 = vmax.f32 %v3897_v2, 0.0 }
0x1024   : > { %v3917_v41 = vpack.c.bf16 %v3911_v12, %v3910_v59  ;;  %v4320_v59 = vld [vmem:[%s6758_s10 + $0xa0] sm:$0xf] }
0x1025   : > { %v3916_v39 = vpack.c.bf16 %v3909_v31, %v3908_v6  ;;  %v4337_v12 = vsel %vm4335_vm0, %v4320_v59, 0  ;;  %v4480_v6 = vld [vmem:[%s6758_s10 + $0xc8] sm:$0xf] }
0x1026   : > { %v4482_v31 = vsel %vm4335_vm0, %v4480_v6, 0 }
0x1027   : > { %5242 = vmatprep.mubr.msk.bf16.mxu1 %vm1842_vm4, %v3916_v39 }
0x1028   : > { %5243 = vmatmul.mubr.msk.bf16.vlgmr.msra.gmra.mrb[28].mxu1 %vm1842_vm4, %v3917_v41  ;;  %v4988_v41 = vld [vmem:[%s6759_s11 + $0x6] ss:$0 sm:$0xff] }
0x1029   : > { %5267 = vmatpush3.bf16.msra.mxu1 %v5454_v11 }
0x102a   : > { %5268 = vmatprep.subr.bf16.mxu1 %v5455_v63 }
0x102d   : > { %5269 = vmatpush3.bf16.msra.mxu1 %v5455_v63 }
0x102e   : > { %5274 = vmatprep.subr.bf16.mxu1 %v5456_v19 }
0x10fb   : > { %v5244_v43 = vpop.f32.mrb[28].mxu1 }
0x10fc   : > { %v3984_v7 = vadd.f32 %v5244_v43, %v4967_v3  ;;  %v3975_v5 = vpop.f32.mrb[29].mxu1 }
0x10fd   : > { %v3976_v37 = vadd.f32 %v4967_v3, %v3975_v5  ;;  %v5245_v4 = vpop.f32.mrb[30].mxu1 }
0x10fe   : > { %v3987_v40 = vadd.f32 %v5245_v4, %v4967_v3  ;;  %v3978_v47 = vpop.f32.mrb[31].mxu1  ;;  %v3992_v34 = vmax.f32 %v3984_v7, 0.0 }
0x10ff   : > { %v3979_v61 = vadd.f32 %v4967_v3, %v3978_v47  ;;  %v3990_v16 = vmax.f32 %v3976_v37, 0.0 }
0x1100   : > { %v3993_v36 = vmax.f32 %v3987_v40, 0.0 }
0x1101   : > { %v3991_v57 = vmax.f32 %v3979_v61, 0.0  ;;  %v5458_v61 = vld [vmem:[%s6758_s10 + $0xa8] sm:$0xff]  }
0x1102   : > { %v3999_v54 = vpack.c.bf16 %v3993_v36, %v3992_v34  ;;  %5288 = vmatprep.subr.bf16.mxu0 %v5458_v61  ;;  %v5459_v34 = vld [vmem:[%s6758_s10 + $0xb0] sm:$0xff]   ;;  %v5460_v36 = vld [vmem:[%s6758_s10 + $0xb8] sm:$0xff]  }
0x1103   : > { %v3998_v33 = vpack.c.bf16 %v3991_v57, %v3990_v16  ;;  %v4993_v16 = vld [vmem:[%s6759_s11 + $0x7] ss:$0 sm:$0xff] }
0x1105   : > { %5262 = vmatprep.mubr.msk.bf16.mxu0 %vm1842_vm4, %v3998_v33 }
0x1106   : > { %5263 = vmatmul.mubr.msk.bf16.vlgmr.msra.gmra.mrb[36].mxu0 %vm1842_vm4, %v3999_v54 }
0x1107   : > { %5289 = vmatpush3.bf16.msra.mxu0 %v5458_v61 }
0x1108   : > { %5290 = vmatprep.subr.bf16.mxu0 %v5459_v34 }
0x110b   : > { %5291 = vmatpush3.bf16.msra.mxu0 %v5459_v34 }
0x11d9   : > { %v5264_v52 = vpop.f32.mrb[36].mxu0 }
0x11da   : > { %v4154_v56 = vadd.f32 %v5264_v52, %v4982_v22  ;;  %v4132_v32 = vpop.f32.mrb[37].mxu0 }
0x11db   : > { %v4152_v0 = vadd.f32 %v4982_v22, %v4132_v32  ;;  %v5265_v28 = vpop.f32.mrb[38].mxu0 }
0x11dc   : > { %v4155_v35 = vadd.f32 %v5265_v28, %v4982_v22  ;;  %v4135_v50 = vpop.f32.mrb[39].mxu0  ;;  %v4158_v1 = vmax.f32 %v4154_v56, 0.0 }
0x11dd   : > { %v4153_v42 = vadd.f32 %v4982_v22, %v4135_v50  ;;  %v4156_v23 = vmax.f32 %v4152_v0, 0.0 }
0x11de   : > { %v4159_v46 = vmax.f32 %v4155_v35, 0.0 }
0x11df   : > { %v4157_v25 = vmax.f32 %v4153_v42, 0.0 }
0x11e0   : > { %v4165_v53 = vpack.c.bf16 %v4159_v46, %v4158_v1  ;;  %v5461_v1 = vld [vmem:[%s6758_s10 + $0xc0] sm:$0xff]   ;;  %v4996_v46 = vld [vmem:[%s6759_s11 + $0x8] ss:$0 sm:$0xff] }
0x11e1   : > { %v4164_v55 = vpack.c.bf16 %v4157_v25, %v4156_v23 }
0x11e3   : > { %5270 = vmatprep.mubr.msk.bf16.mxu1 %vm1842_vm4, %v4164_v55 }
0x11e4   : > { %5271 = vmatmul.mubr.msk.bf16.vlgmr.msra.gmra.mrb[32].mxu1 %vm1842_vm4, %v4165_v53 }
0x11e5   : > { %5275 = vmatpush3.bf16.msra.mxu1 %v5456_v19 }
0x11e6   : > { %5276 = vmatprep.subr.bf16.mxu1 %v5457_v27 }
0x11e9   : > { %5277 = vmatpush3.bf16.msra.mxu1 %v5457_v27 }
0x11ea   : > { %5332 = vmatprep.subr.msk.bf16.mxu1 %vm4335_vm0, %v4320_v59 }
0x12b7   : > { %v5272_v30 = vpop.f32.mrb[32].mxu1 }
0x12b8   : > { %v4232_v20 = vadd.f32 %v5272_v30, %v4983_v10  ;;  %v4223_v60 = vpop.f32.mrb[33].mxu1 }
0x12b9   : > { %v4224_v51 = vadd.f32 %v4983_v10, %v4223_v60  ;;  %v5273_v9 = vpop.f32.mrb[34].mxu1 }
0x12ba   : > { %v4235_v21 = vadd.f32 %v5273_v9, %v4983_v10  ;;  %v4226_v38 = vpop.f32.mrb[35].mxu1  ;;  %v4240_v13 = vmax.f32 %v4232_v20, 0.0 }
0x12bb   : > { %v4227_v45 = vadd.f32 %v4983_v10, %v4226_v38  ;;  %v4238_v62 = vmax.f32 %v4224_v51, 0.0 }
0x12bc   : > { %v4241_v49 = vmax.f32 %v4235_v21, 0.0 }
0x12bd   : > { %v4239_v17 = vmax.f32 %v4227_v45, 0.0  ;;  %v5462_v45 = vld [vmem:[%s6758_s10 + $0xd0] sm:$0xff]  }
0x12be   : > { %v4247_v44 = vpack.c.bf16 %v4241_v49, %v4240_v13  ;;  %5310 = vmatprep.subr.bf16.mxu0 %v5462_v45  ;;  %v5463_v13 = vld [vmem:[%s6758_s10 + $0xd8] sm:$0xff]   ;;  %v5007_v49 = vld [vmem:[%s6759_s11 + $0x9] ss:$0 sm:$0xff] }
0x12bf   : > { %v4246_v2 = vpack.c.bf16 %v4239_v17, %v4238_v62 }
0x12c1   : > { %5278 = vmatprep.mubr.msk.bf16.mxu1 %vm1842_vm4, %v4246_v2 }
0x12c2   : > { %5279 = vmatmul.mubr.msk.bf16.vlgmr.msra.gmra.mrb[36].mxu1 %vm1842_vm4, %v4247_v44 }
0x12c3   : > { %5283 = vmatpush3.bf16.msra.mxu1 %v4337_v12 }
0x12c4   : > { %5333 = vmatprep.subr.msk.bf16.mxu1 %vm4335_vm0, %v4480_v6 }
0x1395   : > { %v5280_v39 = vpop.f32.mrb[36].mxu1 }
0x1396   : > { %v4305_v26 = vpop.f32.mrb[37].mxu1  ;;  %v6668_v4 = vadd.f32 %v5280_v39, %v4988_v41 }
0x1397   : > { %v4306_v3 = vadd.f32 %v4988_v41, %v4305_v26  ;;  %v5281_v43 = vpop.f32.mrb[38].mxu1 }
0x1398   : > { %v6665_v7 = vadd.f32 %v5281_v43, %v4988_v41  ;;  %v4308_v5 = vpop.f32.mrb[39].mxu1 }
0x1399   : > { %v4309_v37 = vadd.f32 %v4988_v41, %v4308_v5  ;;  %4711 = vrot.lane.b32.xlu0 %v4306_v3, %s5534_s13 }
0x139a   : > { %v4322_v47 = vpack.c.bf16 %v6665_v7, %v6668_v4 }
0x139b   : > { %v4321_v40 = vpack.c.bf16 %v4309_v37, %v4306_v3 }
0x139d   : > { %4713 = vrot.lane.b32.xlu0 %v4309_v37, %s5534_s13  ;;  %5284 = vmatprep.mubr.msk.bf16.mxu1 %vm4328_vm6, %v4321_v40  ;;  %v5008_v37 = vld [vmem:[%s6759_s11 + $0xa] ss:$0 sm:$0xff] }
0x139e   : > { %5285 = vmatmul.mubr.msk.bf16.vlgmr.msra.gmra.mrb[40].mxu1 %vm4328_vm6, %v4322_v47 }
0x139f   : > { %5298 = vmatprep.mubr.msk.bf16.mxu1 %vm4328_vm6, %v4321_v40  ;;  %5297 = vmatpush3.bf16.msra.mxu1 %v4482_v31 }
0x13a0   : > { %5302 = vmatprep.subr.bf16.mxu1 %v5460_v36 }
0x13a6   : > { %5299 = vmatmul.mubr.msk.bf16.vlgmr.msra.gmra.mrb[44].mxu1 %vm4328_vm6, %v4322_v47 }
0x13a7   : > { %5303 = vmatpush3.bf16.msra.mxu1 %v5460_v36 }
0x13a8   : > { %5304 = vmatprep.subr.bf16.mxu1 %v5461_v1 }
0x13ab   : > { %5305 = vmatpush3.bf16.msra.mxu1 %v5461_v1 }
0x1471   : > { %v5286_v57 = vpop.f32.mrb[40].mxu1 }
0x1472   : > { %v4382_v54 = vadd.f32 %v5286_v57, %v4993_v16  ;;  %v4373_v33 = vpop.f32.mrb[41].mxu1 }
0x1473   : > { %v4374_v11 = vadd.f32 %v4993_v16, %v4373_v33  ;;  %v5287_v63 = vpop.f32.mrb[42].mxu1  ;;  %v4712_v33 = vpop.permute.xlu0 %4711 }
0x1474   : > { %v4385_v22 = vadd.f32 %v5287_v63, %v4993_v16  ;;  %v4376_v52 = vpop.f32.mrb[43].mxu1  ;;  %v4390_v32 = vmax.f32 %v4382_v54, 0.0 }
0x1475   : > { %v4377_v56 = vadd.f32 %v4993_v16, %v4376_v52  ;;  %v4388_v28 = vmax.f32 %v4374_v11, 0.0 }
0x1476   : > { %v4391_v0 = vmax.f32 %v4385_v22, 0.0  ;;  %v4723_v22 = vsel %vm6774_vm11, %v6123_v24, %v5682_v8 }
0x1477   : > { %v4389_v35 = vmax.f32 %v4377_v56, 0.0  ;;  %v4714_v11 = vpop.permute.xlu0 %4713 }
0x1478   : > { %v4397_v50 = vpack.c.bf16 %v4391_v0, %v4390_v32  ;;  %v4724_v0 = vsel %vm6775_vm12, %v6126_v29, %v5687_v15 }
0x1479   : > { %v4396_v42 = vpack.c.bf16 %v4389_v35, %v4388_v28  ;;  %v4725_v35 = vsel %vm6776_vm14, %v6120_v58, %v5685_v14 }
0x147b   : > { %5292 = vmatprep.mubr.msk.bf16.mxu0 %vm1842_vm4, %v4396_v42  ;;  %v4726_v42 = vsel %vm6777_vm3, %v6135_v48, %v5689_v18 }
0x147c   : > { %5293 = vmatmul.mubr.msk.bf16.vlgmr.msra.gmra.mrb[40].mxu0 %vm1842_vm4, %v4397_v50 }
0x147d   : > { %5311 = vmatpush3.bf16.msra.mxu0 %v5462_v45 }
0x147e   : > { %5312 = vmatprep.subr.bf16.mxu0 %v5463_v13 }
0x1481   : > { %5313 = vmatpush3.bf16.msra.mxu0 %v5463_v13 }
0x154f   : > { %v5294_v23 = vpop.f32.mrb[40].mxu0 }
0x1550   : > { %v4464_v25 = vadd.f32 %v5294_v23, %v4996_v46  ;;  %v4455_v53 = vpop.f32.mrb[41].mxu0 }
0x1551   : > { %v4456_v55 = vadd.f32 %v4996_v46, %v4455_v53  ;;  %v5295_v19 = vpop.f32.mrb[42].mxu0 }
0x1552   : > { %v4467_v27 = vadd.f32 %v5295_v19, %v4996_v46  ;;  %v4458_v10 = vpop.f32.mrb[43].mxu0  ;;  %v4472_v20 = vmax.f32 %v4464_v25, 0.0 }
0x1553   : > { %v4459_v30 = vadd.f32 %v4996_v46, %v4458_v10  ;;  %v4470_v51 = vmax.f32 %v4456_v55, 0.0 }
0x1554   : > { %v4473_v60 = vmax.f32 %v4467_v27, 0.0 }
0x1555   : > { %v4471_v9 = vmax.f32 %v4459_v30, 0.0 }
0x1556   : > { %v4479_v21 = vpack.c.bf16 %v4473_v60, %v4472_v20 }
0x1557   : > { %v4478_v38 = vpack.c.bf16 %v4471_v9, %v4470_v51 }
0x1559   : > { %5306 = vmatprep.mubr.msk.bf16.mxu1 %vm1842_vm4, %v4478_v38 }
0x155a   : > { %5307 = vmatmul.mubr.msk.bf16.vlgmr.msra.gmra.mrb[44].mxu1 %vm1842_vm4, %v4479_v21 }
0x162d   : > { %v5308_v62 = vpop.f32.mrb[44].mxu1 }
0x162e   : > { %v4607_v17 = vadd.f32 %v5308_v62, %v5007_v49  ;;  %v4585_v44 = vpop.f32.mrb[45].mxu1 }
0x162f   : > { %v4605_v2 = vadd.f32 %v5007_v49, %v4585_v44  ;;  %v5309_v59 = vpop.f32.mrb[46].mxu1 }
0x1630   : > { %v4608_v12 = vadd.f32 %v5309_v59, %v5007_v49  ;;  %v4588_v6 = vpop.f32.mrb[47].mxu1  ;;  %v4611_v41 = vmax.f32 %v4607_v17, 0.0 }
0x1631   : > { %v4606_v31 = vadd.f32 %v5007_v49, %v4588_v6  ;;  %v4609_v26 = vmax.f32 %v4605_v2, 0.0 }
0x1632   : > { %v4612_v39 = vmax.f32 %v4608_v12, 0.0 }
0x1633   : > { %v4610_v3 = vmax.f32 %v4606_v31, 0.0 }
0x1634   : > { %v4618_v43 = vpack.c.bf16 %v4612_v39, %v4611_v41 }
0x1635   : > { %v4617_v5 = vpack.c.bf16 %v4610_v3, %v4609_v26 }
0x1637   : > { %5314 = vmatprep.mubr.msk.bf16.mxu0 %vm1842_vm4, %v4617_v5 }
0x1638   : > { %5315 = vmatmul.mubr.msk.bf16.vlgmr.msra.gmra.mrb[44].mxu0 %vm1842_vm4, %v4618_v43  ;;  %vm4727_vm4 = vcmask 31744  }
0x170b   : > { %v5316_v40 = vpop.f32.mrb[44].mxu0 }
0x170c   : > { %v4685_v47 = vadd.f32 %v5316_v40, %v5008_v37  ;;  %v4676_v61 = vpop.f32.mrb[45].mxu0 }
0x170d   : > { %v4677_v34 = vadd.f32 %v5008_v37, %v4676_v61  ;;  %v5317_v36 = vpop.f32.mrb[46].mxu0 }
0x170e   : > { %4699 = vrot.lane.b32.xlu1 %v4685_v47, %s5535_s18  ;;  %v4679_v16 = vpop.f32.mrb[47].mxu0  ;;  %v4688_v57 = vadd.f32 %v5317_v36, %v5008_v37 }
0x170f   : > { %4695 = vrot.lane.b32.xlu0 %v4677_v34, %s5535_s18  ;;  %v4680_v54 = vadd.f32 %v5008_v37, %v4679_v16 }
0x1712   : > { %4701 = vrot.lane.b32.xlu1 %v4688_v57, %s5535_s18 }
0x1713   : > { %4715 = vrot.lane.b32.xlu0 %v6668_v4, %s5534_s13 }
0x1716   : > { %4697 = vrot.lane.b32.xlu1 %v4680_v54, %s5535_s18 }
0x171a   : > { %4717 = vrot.lane.b32.xlu1 %v6665_v7, %s5534_s13 }
0x1780   : > { %v4700_v63 = vpop.permute.xlu1 %4699 }
0x1781   : > { %v4696_v52 = vpop.permute.xlu0 %4695  ;;  %v4730_v24 = vsel %vm4727_vm4, %v4725_v35, %v4700_v63 }
0x1782   : > { %v4728_v4 = vsel %vm4727_vm4, %v4723_v22, %v4696_v52 }
0x1783   : > { %v4733_v56 = vsel %vm4732_vm7, %v4728_v4, %v4712_v33 }
0x1784   : > { %4737 = vst.msk [vmem:[%s437_s23] sm:$0xff] %vm4328_vm6, %v4733_v56  ;;  %v4702_v7 = vpop.permute.xlu1 %4701 }
0x1785   : > { %v4716_v32 = vpop.permute.xlu0 %4715  ;;  %v4731_v15 = vsel %vm4727_vm4, %v4726_v42, %v4702_v7 }
0x1786   : > { %v4735_v1 = vsel %vm4732_vm7, %v4730_v24, %v4716_v32 }
0x1787   : > { %4739 = vst.msk [vmem:[%s437_s23 + $0x10] sm:$0xff] %vm4328_vm6, %v4735_v1 }
0x1788   : > { %v4698_v28 = vpop.permute.xlu1 %4697 }
0x1789   : > { %v4729_v8 = vsel %vm4727_vm4, %v4724_v0, %v4698_v28 }
0x178a   : > { %v4734_v50 = vsel %vm4732_vm7, %v4729_v8, %v4714_v11 }
0x178b   : > { %4738 = vst.msk [vmem:[%s437_s23 + $0x8] sm:$0xff] %vm4328_vm6, %v4734_v50 }
0x178c   : > { %v4718_v29 = vpop.permute.xlu1 %4717 }
0x178d   : > { %v4736_v14 = vsel %vm4732_vm7, %v4731_v15, %v4718_v29 }
0x178e   : > { %4740 = vst.msk [vmem:[%s437_s23 + $0x18] sm:$0xff] %vm4328_vm6, %v4736_v14 }
0x178f PF: > { %s22_s21 = sadd.s32 1, %s5520_s21  }
0x1790   : > { %p19_p4 = scmp.ge.s32.totalorder %s22_s21, 4  }
0x1792   :  { %21 = sbr.rel (!%p19_p4) target bundleno = 1 (0x1), region = 101 }

</bundles_post_ra>
